<compile_context>
chip_gen: v7x
topology: tpu7x:2x2x1
jax: 0.10.0
libtpu: 0.0.40
codegen_flags: <defaults>
</compile_context>

<pallas_src>
import functools

import jax
import jax.numpy as jnp
from jax.experimental import pallas as pl
from jax.experimental.pallas import tpu as pltpu


def _round_up(x, m):
    return (x + m - 1) // m * m


# ---------------------------------------------------------------------------
# Pallas GEMM kernel: bf16 operands, f32 accumulator, fused bias (+ optional tanh)
# ---------------------------------------------------------------------------

def _matmul_bias_kernel(a_ref, b_ref, bias_ref, o_ref, acc_ref, *, activation):
    @pl.when(pl.program_id(2) == 0)
    def _():
        acc_ref[...] = jnp.zeros_like(acc_ref)

    acc_ref[...] += jnp.dot(a_ref[...], b_ref[...],
                            preferred_element_type=jnp.float32)

    @pl.when(pl.program_id(2) == pl.num_programs(2) - 1)
    def _():
        y = acc_ref[...] + bias_ref[...]
        if activation == "tanh":
            y = jnp.tanh(y)       # EUP slot, free in the MXU epilogue
        o_ref[...] = y.astype(o_ref.dtype)


def pallas_matmul_bias(a, b, bias, *, activation=None):
    """out = act(a @ b + bias).  a:[M,K] (cast to bf16), b:[K,N] bf16, bias:[N] f32."""
    M, K = a.shape
    K2, N = b.shape
    assert K == K2 and bias.shape == (N,) and N % 128 == 0

    # Adaptive, layout-legal tiles; avoid padding whenever M/K already fit.
    Mp = _round_up(M, 16)                       # bf16 sublane packing
    tm = min(256, Mp)
    if Mp % tm:
        Mp = _round_up(Mp, tm)
    Kp = _round_up(K, 128)
    if Kp <= 1024:
        tk = Kp
    else:
        tk = max(t for t in (1024, 896, 768, 640, 512, 384, 256, 128)
                 if Kp % t == 0)
    tn = N if N <= 256 else (256 if N % 256 == 0 else 128)

    a = a.astype(jnp.bfloat16)
    b = b.astype(jnp.bfloat16)
    if Mp != M or Kp != K:
        a = jnp.pad(a, ((0, Mp - M), (0, Kp - K)))
    if Kp != K:
        b = jnp.pad(b, ((0, Kp - K), (0, 0)))
    bias2 = bias.reshape(1, N).astype(jnp.float32)

    out = pl.pallas_call(
        functools.partial(_matmul_bias_kernel, activation=activation),
        out_shape=jax.ShapeDtypeStruct((Mp, N), jnp.float32),
        grid_spec=pltpu.PrefetchScalarGridSpec(
            num_scalar_prefetch=0,
            grid=(Mp // tm, N // tn, Kp // tk),
            in_specs=[
                pl.BlockSpec((tm, tk), lambda i, j, k: (i, k)),
                pl.BlockSpec((tk, tn), lambda i, j, k: (k, j)),
                pl.BlockSpec((1, tn), lambda i, j, k: (0, j)),
            ],
            out_specs=pl.BlockSpec((tm, tn), lambda i, j, k: (i, j)),
            scratch_shapes=[pltpu.VMEM((tm, tn), jnp.float32)],
        ),
        compiler_params=pltpu.CompilerParams(
            dimension_semantics=("parallel", "parallel", "arbitrary"),
            vmem_limit_bytes=32 * 1024 * 1024),
    )(a, b, bias2)
    if Mp != M:
        out = out[:M]
    return out


# ---------------------------------------------------------------------------
# InstanceNorm (+ReLU) (+residual) on NHWC layout, tiled over (batch, channel)
# ---------------------------------------------------------------------------

def _instance_norm_kernel(x_ref, o_ref, *, relu):
    x = x_ref[...]                               # (1, H*W, tc) f32
    mean = jnp.mean(x, axis=1, keepdims=True)
    var = jnp.mean(jnp.square(x - mean), axis=1, keepdims=True)
    y = (x - mean) * jax.lax.rsqrt(var + 1e-5)
    if relu:
        y = jnp.maximum(y, 0.0)
    o_ref[...] = y


def _instance_norm_res_kernel(x_ref, r_ref, o_ref):
    x = x_ref[...]
    mean = jnp.mean(x, axis=1, keepdims=True)
    var = jnp.mean(jnp.square(x - mean), axis=1, keepdims=True)
    y = (x - mean) * jax.lax.rsqrt(var + 1e-5)
    o_ref[...] = y + r_ref[...]                  # fused residual add


def _channel_tile(C):
    if C % 256 == 0:
        return 256
    if C % 128 == 0:
        return 128
    return C


def instance_norm(x_nhwc, *, relu=False, residual=None):
    """InstanceNorm2d(affine=False, eps=1e-5) [+ReLU] [+residual], NHWC, no transposes."""
    N, H, W, C = x_nhwc.shape
    HW = H * W
    tc = _channel_tile(C)
    x3 = x_nhwc.reshape(N, HW, C).astype(jnp.float32)
    spec = pl.BlockSpec((1, HW, tc), lambda n, c: (n, 0, c))
    grid = (N, C // tc)
    cparams = pltpu.CompilerParams(dimension_semantics=("parallel", "parallel"),
                                   vmem_limit_bytes=32 * 1024 * 1024)
    if residual is None:
        out = pl.pallas_call(
            functools.partial(_instance_norm_kernel, relu=relu),
            out_shape=jax.ShapeDtypeStruct((N, HW, C), jnp.float32),
            grid_spec=pltpu.PrefetchScalarGridSpec(
                num_scalar_prefetch=0, grid=grid,
                in_specs=[spec], out_specs=spec),
            compiler_params=cparams,
        )(x3)
    else:
        r3 = residual.reshape(N, HW, C).astype(jnp.float32)
        out = pl.pallas_call(
            _instance_norm_res_kernel,
            out_shape=jax.ShapeDtypeStruct((N, HW, C), jnp.float32),
            grid_spec=pltpu.PrefetchScalarGridSpec(
                num_scalar_prefetch=0, grid=grid,
                in_specs=[spec, spec], out_specs=spec),
            compiler_params=cparams,
        )(x3, r3)
    return out.reshape(N, H, W, C)


# ---------------------------------------------------------------------------
# Conv helpers (indexing glue in XLA; all FLOPs in the Pallas GEMM)
# ---------------------------------------------------------------------------

def conv2d_gemm(x_nhwc, wmat, bias, kh, kw, *, stride=1, pad=0,
                pad_mode="constant", activation=None):
    """Conv2d with a precomputed (kh*kw*Cin, Cout_padded) bf16 weight matrix."""
    if pad > 0:
        x_nhwc = jnp.pad(x_nhwc, ((0, 0), (pad, pad), (pad, pad), (0, 0)),
                         mode=pad_mode)
    N, H, W, C = x_nhwc.shape
    oh = (H - kh) // stride + 1
    ow = (W - kw) // stride + 1
    # TODO(synk): fully removing the im2col HBM materialization needs a manual-DMA
    # (pl.ANY + make_async_copy) overlapping-window gather; here the patch matrix is
    # built in bf16 (half the bytes) and consumed by a single fused GEMM.
    xb = x_nhwc.astype(jnp.bfloat16)
    cols = []
    for i in range(kh):
        for j in range(kw):
            cols.append(xb[:, i:i + stride * (oh - 1) + 1:stride,
                              j:j + stride * (ow - 1) + 1:stride, :])
    patches = jnp.stack(cols, axis=3).reshape(N * oh * ow, kh * kw * C)
    assert patches.shape[1] == wmat.shape[0], (patches.shape, wmat.shape)
    O = wmat.shape[1]
    out = pallas_matmul_bias(patches, wmat, bias, activation=activation)
    return out.reshape(N, oh, ow, O)


def conv_transpose2d_phase(x, phases, bias):
    """ConvTranspose2d(k=3, s=2, p=1, op=1) via 4 sub-pixel phase convolutions."""
    ee, eo, oe, oo = phases
    N, H, W, C = x.shape
    O = ee.shape[1]
    x_r = jnp.pad(x, ((0, 0), (0, 0), (0, 1), (0, 0)))   # +1 col right
    x_b = jnp.pad(x, ((0, 0), (0, 1), (0, 0), (0, 0)))   # +1 row bottom
    x_br = jnp.pad(x, ((0, 0), (0, 1), (0, 1), (0, 0)))  # both
    p_ee = conv2d_gemm(x, ee, bias, 1, 1)
    p_eo = conv2d_gemm(x_r, eo, bias, 1, 2)
    p_oe = conv2d_gemm(x_b, oe, bias, 2, 1)
    p_oo = conv2d_gemm(x_br, oo, bias, 2, 2)
    out = jnp.zeros((N, 2 * H, 2 * W, O), jnp.float32)
    out = out.at[:, 0::2, 0::2, :].set(p_ee)
    out = out.at[:, 0::2, 1::2, :].set(p_eo)
    out = out.at[:, 1::2, 0::2, :].set(p_oe)
    out = out.at[:, 1::2, 1::2, :].set(p_oo)
    return out


def resnet_block(x, w1, b1, w2, b2):
    y = conv2d_gemm(x, w1, b1, 3, 3, pad=1, pad_mode="reflect")
    y = instance_norm(y, relu=True)
    y = conv2d_gemm(y, w2, b2, 3, 3, pad=1, pad_mode="reflect")
    return instance_norm(y, relu=False, residual=x)      # IN + residual fused


# ---------------------------------------------------------------------------
# One-time weight preprocessing (hoisted out of the forward pass)
# ---------------------------------------------------------------------------

def _conv_mat(w, in_pad=None, out_pad=None):
    # PyTorch conv weight (O, I, kh, kw) -> bf16 matrix (kh*kw*Ip, Op), im2col tap order.
    O, I, kh, kw = w.shape
    m = jnp.transpose(w, (2, 3, 1, 0))                    # (kh, kw, I, O)
    if in_pad and in_pad > I:
        m = jnp.pad(m, ((0, 0), (0, 0), (0, in_pad - I), (0, 0)))
    if out_pad and out_pad > O:
        m = jnp.pad(m, ((0, 0), (0, 0), (0, 0), (0, out_pad - O)))
    kh_, kw_, Ip, Op = m.shape
    return m.reshape(kh_ * kw_ * Ip, Op).astype(jnp.bfloat16)


def _bias_pad(b, out_pad=None):
    if out_pad and out_pad > b.shape[0]:
        b = jnp.pad(b, (0, out_pad - b.shape[0]))
    return b.astype(jnp.float32)


def _phase_mats(w_t, out_pad=None):
    # w_t: ConvTranspose2d weight (Cin, Cout, 3, 3). wf[di,dj] = flipped kernel tap.
    Cout = w_t.shape[1]

    def wf(di, dj):
        m = w_t[:, :, 2 - di, 2 - dj]                     # (Cin, Cout)
        if out_pad and out_pad > Cout:
            m = jnp.pad(m, ((0, 0), (0, out_pad - Cout)))
        return m

    def mk(taps):
        return jnp.concatenate([wf(di, dj) for di, dj in taps],
                               axis=0).astype(jnp.bfloat16)

    ee = mk([(1, 1)])                                     # out[2y,   2x  ]
    eo = mk([(1, 0), (1, 2)])                             # out[2y,   2x+1]
    oe = mk([(0, 1), (2, 1)])                             # out[2y+1, 2x  ]
    oo = mk([(0, 0), (0, 2), (2, 0), (2, 2)])             # out[2y+1, 2x+1]
    return ee, eo, oe, oo


def prepare_params(raw):
    """Convert PyTorch-layout weights to GEMM-ready (bf16) matrices once."""
    p = {}
    p["c0_w"] = _conv_mat(raw["c0_w"], out_pad=128)       # 64 -> 128 lane-aligned
    p["c0_b"] = _bias_pad(raw["c0_b"], 128)
    p["d1_w"] = _conv_mat(raw["d1_w"], in_pad=128)        # consumes padded 128-ch input
    p["d1_b"] = _bias_pad(raw["d1_b"])
    p["d2_w"] = _conv_mat(raw["d2_w"])
    p["d2_b"] = _bias_pad(raw["d2_b"])
    for i in range(9):
        p[f"r{i}_1_w"] = _conv_mat(raw[f"r{i}_1_w"])
        p[f"r{i}_1_b"] = _bias_pad(raw[f"r{i}_1_b"])
        p[f"r{i}_2_w"] = _conv_mat(raw[f"r{i}_2_w"])
        p[f"r{i}_2_b"] = _bias_pad(raw[f"r{i}_2_b"])
    p["u1_phases"] = _phase_mats(raw["u1_w"], out_pad=128)
    p["u1_b"] = _bias_pad(raw["u1_b"])
    p["u2_phases"] = _phase_mats(raw["u2_w"], out_pad=128)  # 64 -> 128
    p["u2_b"] = _bias_pad(raw["u2_b"], 128)
    p["cf_w"] = _conv_mat(raw["cf_w"], in_pad=128, out_pad=128)  # 65 -> 128
    p["cf_b"] = _bias_pad(raw["cf_b"], 128)
    return p


# ---------------------------------------------------------------------------
# SketchTranslator forward
# ---------------------------------------------------------------------------

def sketch_translator_forward(p, sketch_nchw):
    # External NCHW (PyTorch), internal NHWC with 128/256-aligned channel widths.
    x = jnp.transpose(sketch_nchw, (0, 2, 3, 1)).astype(jnp.float32)

    # model[0:4]  ReflectPad(3) + Conv 1->64 k7 + IN + ReLU   (kept at 128 padded ch)
    x = conv2d_gemm(x, p["c0_w"], p["c0_b"], 7, 7, pad=3, pad_mode="reflect")
    x = instance_norm(x, relu=True)
    # model[4:10] two stride-2 downsampling convs
    x = conv2d_gemm(x, p["d1_w"], p["d1_b"], 3, 3, stride=2, pad=1)
    x = instance_norm(x, relu=True)
    x = conv2d_gemm(x, p["d2_w"], p["d2_b"], 3, 3, stride=2, pad=1)
    x = instance_norm(x, relu=True)
    # model[10:19] 9 ResNet blocks (IN+residual fused)
    for i in range(9):
        x = resnet_block(x, p[f"r{i}_1_w"], p[f"r{i}_1_b"],
                         p[f"r{i}_2_w"], p[f"r{i}_2_b"])
    # model[19:22] first upsample -> feature1 (128 ch)
    x = conv_transpose2d_phase(x, p["u1_phases"], p["u1_b"])
    x = instance_norm(x, relu=True)
    feature1 = x
    # model[22:25] second upsample -> feature2 (64 real ch, padded to 128)
    x = conv_transpose2d_phase(x, p["u2_phases"], p["u2_b"])
    x = instance_norm(x, relu=True)
    feature2 = x
    # model[25:28] ReflectPad(3) + Conv 64->65 k7 + Tanh (tanh fused in GEMM epilogue)
    x = conv2d_gemm(x, p["cf_w"], p["cf_b"], 7, 7, pad=3, pad_mode="reflect",
                    activation="tanh")
    feature3 = x
    feature4 = feature3                                   # model[28:] is empty

    to_nchw = lambda t, c: jnp.transpose(t, (0, 3, 1, 2))[:, :c]
    return [to_nchw(feature1, 128), to_nchw(feature2, 64),
            to_nchw(feature3, 65), to_nchw(feature4, 65)]


# ---------------------------------------------------------------------------
# Deterministic synthetic parameters (init_type='normal', init_gain=0.02)
# ---------------------------------------------------------------------------

def init_params(seed=0):
    key = jax.random.PRNGKey(seed)
    keys = iter(jax.random.split(key, 64))
    params = {}

    def add_conv(name, o, i, k):
        params[name + "_w"] = jax.random.normal(next(keys), (o, i, k, k),
                                                jnp.float32) * 0.02
        params[name + "_b"] = jnp.zeros((o,), jnp.float32)

    add_conv("c0", 64, 1, 7)
    add_conv("d1", 128, 64, 3)
    add_conv("d2", 256, 128, 3)
    for i in range(9):
        add_conv(f"r{i}_1", 256, 256, 3)
        add_conv(f"r{i}_2", 256, 256, 3)
    # ConvTranspose2d weights use (Cin, Cout, k, k) layout in PyTorch.
    params["u1_w"] = jax.random.normal(next(keys), (256, 128, 3, 3),
                                       jnp.float32) * 0.02
    params["u1_b"] = jnp.zeros((128,), jnp.float32)
    params["u2_w"] = jax.random.normal(next(keys), (128, 64, 3, 3),
                                       jnp.float32) * 0.02
    params["u2_b"] = jnp.zeros((64,), jnp.float32)
    add_conv("cf", 65, 64, 7)
    return params


if __name__ == "__main__":
    raw_params = init_params(0)
    params = prepare_params(raw_params)        # one-time weight prep, outside jit
    sketch = jax.random.normal(jax.random.PRNGKey(0), (2, 1, 16, 16),
                               jnp.float32)

    fwd = jax.jit(sketch_translator_forward)
    feats = fwd(params, sketch)
    feats = jax.block_until_ready(feats)

    assert feats[0].shape == (2, 128, 8, 8), feats[0].shape
    assert feats[1].shape == (2, 64, 16, 16), feats[1].shape
    assert feats[2].shape == (2, 65, 16, 16), feats[2].shape
    assert feats[3].shape == (2, 65, 16, 16), feats[3].shape
    assert all(bool(jnp.all(jnp.isfinite(f))) for f in feats)
    print("KERNEL_OK")
</pallas_src>

<mosaic_0001>
module attributes {stable_mosaic.version = 11 : i64} {
  func.func @_instance_norm_kernel(%arg0: i32, %arg1: i32, %arg2: memref<1x256x128xf32, #tpu.memory_space<vmem>>, %arg3: memref<1x256x128xf32, #tpu.memory_space<vmem>>) attributes {dimension_semantics = [#tpu.dimension_semantics<parallel>, #tpu.dimension_semantics<parallel>], iteration_bounds = array<i64: 2, 1>, scalar_prefetch = 0 : i64, scratch_operands = 0 : i64, tpu.core_type = #tpu.core_type<tc>, window_params = [{transform_indices = @transform_0, window_bounds = array<i64: 1, 256, 128>}, {transform_indices = @transform_1, window_bounds = array<i64: 1, 256, 128>}]} {
    %c0 = arith.constant 0 : index
    %c0_0 = arith.constant 0 : index
    %c0_1 = arith.constant 0 : index
    %0 = vector.load %arg2[%c0, %c0_0, %c0_1] : memref<1x256x128xf32, #tpu.memory_space<vmem>>, vector<1x256x128xf32>
    %cst = arith.constant dense<0.000000e+00> : vector<1x128xf32>
    %1 = vector.multi_reduction <add>, %0, %cst [1] : vector<1x256x128xf32> to vector<1x128xf32>
    %2 = vector.shape_cast %1 : vector<1x128xf32> to vector<1x1x128xf32>
    %cst_2 = arith.constant 2.560000e+02 : f32
    %3 = vector.broadcast %cst_2 : f32 to vector<1x1x128xf32>
    %4 = arith.divf %2, %3 : vector<1x1x128xf32>
    %5 = vector.broadcast %4 : vector<1x1x128xf32> to vector<1x256x128xf32>
    %6 = arith.subf %0, %5 : vector<1x256x128xf32>
    %7 = arith.mulf %6, %6 : vector<1x256x128xf32>
    %cst_3 = arith.constant dense<0.000000e+00> : vector<1x128xf32>
    %8 = vector.multi_reduction <add>, %7, %cst_3 [1] : vector<1x256x128xf32> to vector<1x128xf32>
    %9 = vector.shape_cast %8 : vector<1x128xf32> to vector<1x1x128xf32>
    %cst_4 = arith.constant 2.560000e+02 : f32
    %10 = vector.broadcast %cst_4 : f32 to vector<1x1x128xf32>
    %11 = arith.divf %9, %10 : vector<1x1x128xf32>
    %12 = vector.broadcast %4 : vector<1x1x128xf32> to vector<1x256x128xf32>
    %13 = arith.subf %0, %12 : vector<1x256x128xf32>
    %cst_5 = arith.constant 9.99999974E-6 : f32
    %14 = vector.broadcast %cst_5 : f32 to vector<1x1x128xf32>
    %15 = arith.addf %11, %14 : vector<1x1x128xf32>
    %16 = math.rsqrt %15 : vector<1x1x128xf32>
    %17 = vector.broadcast %16 : vector<1x1x128xf32> to vector<1x256x128xf32>
    %18 = arith.mulf %13, %17 : vector<1x256x128xf32>
    %cst_6 = arith.constant 0.000000e+00 : f32
    %19 = vector.broadcast %cst_6 : f32 to vector<1x256x128xf32>
    %20 = arith.maximumf %18, %19 : vector<1x256x128xf32>
    %c0_7 = arith.constant 0 : index
    %c0_8 = arith.constant 0 : index
    %c0_9 = arith.constant 0 : index
    %21 = vector.load %arg3[%c0_7, %c0_8, %c0_9] : memref<1x256x128xf32, #tpu.memory_space<vmem>>, vector<1x256x128xf32>
    tpu.vector_store %arg3[%c0_7, %c0_8, %c0_9], %20 {strides = array<i32>} : memref<1x256x128xf32, #tpu.memory_space<vmem>>, vector<1x256x128xf32>,
    return
  }
  func.func @transform_0(%arg0: i32, %arg1: i32) -> (i32, i32, i32) {
    %c0_i32 = arith.constant 0 : i32
    %c0_i32_0 = arith.constant 0 : i32
    return %arg0, %c0_i32, %arg1 : i32, i32, i32
  }
  func.func @transform_1(%arg0: i32, %arg1: i32) -> (i32, i32, i32) {
    %c0_i32 = arith.constant 0 : i32
    %c0_i32_0 = arith.constant 0 : i32
    return %arg0, %c0_i32, %arg1 : i32, i32, i32
  }
}

module attributes {stable_mosaic.version = 11 : i64} {
  func.func @_matmul_bias_kernel(%arg0: i32, %arg1: i32, %arg2: i32, %arg3: memref<256x128xbf16, #tpu.memory_space<vmem>>, %arg4: memref<128x128xbf16, #tpu.memory_space<vmem>>, %arg5: memref<1x128xf32, #tpu.memory_space<vmem>>, %arg6: memref<256x128xf32, #tpu.memory_space<vmem>>, %arg7: memref<256x128xf32, #tpu.memory_space<vmem>>) attributes {dimension_semantics = [#tpu.dimension_semantics<parallel>, #tpu.dimension_semantics<parallel>, #tpu.dimension_semantics<arbitrary>], iteration_bounds = array<i64: 2, 1, 1>, scalar_prefetch = 0 : i64, scratch_operands = 1 : i64, tpu.core_type = #tpu.core_type<tc>, window_params = [{transform_indices = @transform_0, window_bounds = array<i64: 256, 128>}, {transform_indices = @transform_1, window_bounds = array<i64: 128, 128>}, {transform_indices = @transform_2, window_bounds = array<i64: 1, 128>}, {transform_indices = @transform_3, window_bounds = array<i64: 256, 128>}]} {
    %c0_i32 = arith.constant 0 : i32
    %0 = arith.cmpi eq, %arg2, %c0_i32 : i32
    %1 = arith.extui %0 : i1 to i32
    %c0_i32_0 = arith.constant 0 : i32
    %2 = arith.cmpi ne, %1, %c0_i32_0 : i32
    scf.if %2 {
      %cst_10 = arith.constant 0.000000e+00 : f32
      %12 = vector.broadcast %cst_10 : f32 to vector<256x128xf32>
      %c0_11 = arith.constant 0 : index
      %c0_12 = arith.constant 0 : index
      %13 = vector.load %arg7[%c0_11, %c0_12] : memref<256x128xf32, #tpu.memory_space<vmem>>, vector<256x128xf32>
      tpu.vector_store %arg7[%c0_11, %c0_12], %12 {strides = array<i32>} : memref<256x128xf32, #tpu.memory_space<vmem>>, vector<256x128xf32>,
    } else {
    }
    %c0 = arith.constant 0 : index
    %c0_1 = arith.constant 0 : index
    %3 = vector.load %arg7[%c0, %c0_1] : memref<256x128xf32, #tpu.memory_space<vmem>>, vector<256x128xf32>
    %c0_2 = arith.constant 0 : index
    %c0_3 = arith.constant 0 : index
    %4 = vector.load %arg3[%c0_2, %c0_3] : memref<256x128xbf16, #tpu.memory_space<vmem>>, vector<256x128xbf16>
    %c0_4 = arith.constant 0 : index
    %c0_5 = arith.constant 0 : index
    %5 = vector.load %arg4[%c0_4, %c0_5] : memref<128x128xbf16, #tpu.memory_space<vmem>>, vector<128x128xbf16>
    %cst = arith.constant dense<0.000000e+00> : vector<256x128xf32>
    %6 = tpu.matmul %4, %5, %cst {dimension_numbers = #tpu.dot_dimension_numbers<[1], [0], [0], [1], [0, 0, 1, 1], [], []>} : vector<256x128xbf16>, vector<128x128xbf16>, vector<256x128xf32> -> vector<256x128xf32>
    %7 = arith.addf %3, %6 : vector<256x128xf32>
    %c0_6 = arith.constant 0 : index
    %c0_7 = arith.constant 0 : index
    %8 = vector.load %arg7[%c0_6, %c0_7] : memref<256x128xf32, #tpu.memory_space<vmem>>, vector<256x128xf32>
    tpu.vector_store %arg7[%c0_6, %c0_7], %7 {strides = array<i32>} : memref<256x128xf32, #tpu.memory_space<vmem>>, vector<256x128xf32>,
    %c0_i32_8 = arith.constant 0 : i32
    %9 = arith.cmpi eq, %arg2, %c0_i32_8 : i32
    %10 = arith.extui %9 : i1 to i32
    %c0_i32_9 = arith.constant 0 : i32
    %11 = arith.cmpi ne, %10, %c0_i32_9 : i32
    scf.if %11 {
      %c0_10 = arith.constant 0 : index
      %c0_11 = arith.constant 0 : index
      %12 = vector.load %arg7[%c0_10, %c0_11] : memref<256x128xf32, #tpu.memory_space<vmem>>, vector<256x128xf32>
      %c0_12 = arith.constant 0 : index
      %c0_13 = arith.constant 0 : index
      %13 = vector.load %arg5[%c0_12, %c0_13] : memref<1x128xf32, #tpu.memory_space<vmem>>, vector<1x128xf32>
      %14 = vector.broadcast %13 : vector<1x128xf32> to vector<256x128xf32>
      %15 = arith.addf %12, %14 : vector<256x128xf32>
      %c0_14 = arith.constant 0 : index
      %c0_15 = arith.constant 0 : index
      %16 = vector.load %arg6[%c0_14, %c0_15] : memref<256x128xf32, #tpu.memory_space<vmem>>, vector<256x128xf32>
      tpu.vector_store %arg6[%c0_14, %c0_15], %15 {strides = array<i32>} : memref<256x128xf32, #tpu.memory_space<vmem>>, vector<256x128xf32>,
    } else {
    }
    return
  }
  func.func @transform_0(%arg0: i32, %arg1: i32, %arg2: i32) -> (i32, i32) {
    %c0_i32 = arith.constant 0 : i32
    return %arg0, %arg2 : i32, i32
  }
  func.func @transform_1(%arg0: i32, %arg1: i32, %arg2: i32) -> (i32, i32) {
    %c0_i32 = arith.constant 0 : i32
    return %arg2, %arg1 : i32, i32
  }
  func.func @transform_2(%arg0: i32, %arg1: i32, %arg2: i32) -> (i32, i32) {
    %c0_i32 = arith.constant 0 : i32
    %c0_i32_0 = arith.constant 0 : i32
    return %c0_i32, %arg1 : i32, i32
  }
  func.func @transform_3(%arg0: i32, %arg1: i32, %arg2: i32) -> (i32, i32) {
    %c0_i32 = arith.constant 0 : i32
    return %arg0, %arg1 : i32, i32
  }
}

module attributes {stable_mosaic.version = 11 : i64} {
  func.func @_instance_norm_kernel(%arg0: i32, %arg1: i32, %arg2: memref<1x64x128xf32, #tpu.memory_space<vmem>>, %arg3: memref<1x64x128xf32, #tpu.memory_space<vmem>>) attributes {dimension_semantics = [#tpu.dimension_semantics<parallel>, #tpu.dimension_semantics<parallel>], iteration_bounds = array<i64: 2, 1>, scalar_prefetch = 0 : i64, scratch_operands = 0 : i64, tpu.core_type = #tpu.core_type<tc>, window_params = [{transform_indices = @transform_0, window_bounds = array<i64: 1, 64, 128>}, {transform_indices = @transform_1, window_bounds = array<i64: 1, 64, 128>}]} {
    %c0 = arith.constant 0 : index
    %c0_0 = arith.constant 0 : index
    %c0_1 = arith.constant 0 : index
    %0 = vector.load %arg2[%c0, %c0_0, %c0_1] : memref<1x64x128xf32, #tpu.memory_space<vmem>>, vector<1x64x128xf32>
    %cst = arith.constant dense<0.000000e+00> : vector<1x128xf32>
    %1 = vector.multi_reduction <add>, %0, %cst [1] : vector<1x64x128xf32> to vector<1x128xf32>
    %2 = vector.shape_cast %1 : vector<1x128xf32> to vector<1x1x128xf32>
    %cst_2 = arith.constant 6.400000e+01 : f32
    %3 = vector.broadcast %cst_2 : f32 to vector<1x1x128xf32>
    %4 = arith.divf %2, %3 : vector<1x1x128xf32>
    %5 = vector.broadcast %4 : vector<1x1x128xf32> to vector<1x64x128xf32>
    %6 = arith.subf %0, %5 : vector<1x64x128xf32>
    %7 = arith.mulf %6, %6 : vector<1x64x128xf32>
    %cst_3 = arith.constant dense<0.000000e+00> : vector<1x128xf32>
    %8 = vector.multi_reduction <add>, %7, %cst_3 [1] : vector<1x64x128xf32> to vector<1x128xf32>
    %9 = vector.shape_cast %8 : vector<1x128xf32> to vector<1x1x128xf32>
    %cst_4 = arith.constant 6.400000e+01 : f32
    %10 = vector.broadcast %cst_4 : f32 to vector<1x1x128xf32>
    %11 = arith.divf %9, %10 : vector<1x1x128xf32>
    %12 = vector.broadcast %4 : vector<1x1x128xf32> to vector<1x64x128xf32>
    %13 = arith.subf %0, %12 : vector<1x64x128xf32>
    %cst_5 = arith.constant 9.99999974E-6 : f32
    %14 = vector.broadcast %cst_5 : f32 to vector<1x1x128xf32>
    %15 = arith.addf %11, %14 : vector<1x1x128xf32>
    %16 = math.rsqrt %15 : vector<1x1x128xf32>
    %17 = vector.broadcast %16 : vector<1x1x128xf32> to vector<1x64x128xf32>
    %18 = arith.mulf %13, %17 : vector<1x64x128xf32>
    %cst_6 = arith.constant 0.000000e+00 : f32
    %19 = vector.broadcast %cst_6 : f32 to vector<1x64x128xf32>
    %20 = arith.maximumf %18, %19 : vector<1x64x128xf32>
    %c0_7 = arith.constant 0 : index
    %c0_8 = arith.constant 0 : index
    %c0_9 = arith.constant 0 : index
    %21 = vector.load %arg3[%c0_7, %c0_8, %c0_9] : memref<1x64x128xf32, #tpu.memory_space<vmem>>, vector<1x64x128xf32>
    tpu.vector_store %arg3[%c0_7, %c0_8, %c0_9], %20 {strides = array<i32>} : memref<1x64x128xf32, #tpu.memory_space<vmem>>, vector<1x64x128xf32>,
    return
  }
  func.func @transform_0(%arg0: i32, %arg1: i32) -> (i32, i32, i32) {
    %c0_i32 = arith.constant 0 : i32
    %c0_i32_0 = arith.constant 0 : i32
    return %arg0, %c0_i32, %arg1 : i32, i32, i32
  }
  func.func @transform_1(%arg0: i32, %arg1: i32) -> (i32, i32, i32) {
    %c0_i32 = arith.constant 0 : i32
    %c0_i32_0 = arith.constant 0 : i32
    return %arg0, %c0_i32, %arg1 : i32, i32, i32
  }
}

module attributes {stable_mosaic.version = 11 : i64} {
  func.func @_matmul_bias_kernel(%arg0: i32, %arg1: i32, %arg2: i32, %arg3: memref<128x384xbf16, #tpu.memory_space<vmem>>, %arg4: memref<384x128xbf16, #tpu.memory_space<vmem>>, %arg5: memref<1x128xf32, #tpu.memory_space<vmem>>, %arg6: memref<128x128xf32, #tpu.memory_space<vmem>>, %arg7: memref<128x128xf32, #tpu.memory_space<vmem>>) attributes {dimension_semantics = [#tpu.dimension_semantics<parallel>, #tpu.dimension_semantics<parallel>, #tpu.dimension_semantics<arbitrary>], iteration_bounds = array<i64: 1, 1, 3>, scalar_prefetch = 0 : i64, scratch_operands = 1 : i64, tpu.core_type = #tpu.core_type<tc>, window_params = [{transform_indices = @transform_0, window_bounds = array<i64: 128, 384>}, {transform_indices = @transform_1, window_bounds = array<i64: 384, 128>}, {transform_indices = @transform_2, window_bounds = array<i64: 1, 128>}, {transform_indices = @transform_3, window_bounds = array<i64: 128, 128>}]} {
    %c0_i32 = arith.constant 0 : i32
    %0 = arith.cmpi eq, %arg2, %c0_i32 : i32
    %1 = arith.extui %0 : i1 to i32
    %c0_i32_0 = arith.constant 0 : i32
    %2 = arith.cmpi ne, %1, %c0_i32_0 : i32
    scf.if %2 {
      %cst_9 = arith.constant 0.000000e+00 : f32
      %12 = vector.broadcast %cst_9 : f32 to vector<128x128xf32>
      %c0_10 = arith.constant 0 : index
      %c0_11 = arith.constant 0 : index
      %13 = vector.load %arg7[%c0_10, %c0_11] : memref<128x128xf32, #tpu.memory_space<vmem>>, vector<128x128xf32>
      tpu.vector_store %arg7[%c0_10, %c0_11], %12 {strides = array<i32>} : memref<128x128xf32, #tpu.memory_space<vmem>>, vector<128x128xf32>,
    } else {
    }
    %c0 = arith.constant 0 : index
    %c0_1 = arith.constant 0 : index
    %3 = vector.load %arg7[%c0, %c0_1] : memref<128x128xf32, #tpu.memory_space<vmem>>, vector<128x128xf32>
    %c0_2 = arith.constant 0 : index
    %c0_3 = arith.constant 0 : index
    %4 = vector.load %arg3[%c0_2, %c0_3] : memref<128x384xbf16, #tpu.memory_space<vmem>>, vector<128x384xbf16>
    %c0_4 = arith.constant 0 : index
    %c0_5 = arith.constant 0 : index
    %5 = vector.load %arg4[%c0_4, %c0_5] : memref<384x128xbf16, #tpu.memory_space<vmem>>, vector<384x128xbf16>
    %cst = arith.constant dense<0.000000e+00> : vector<128x128xf32>
    %6 = tpu.matmul %4, %5, %cst {dimension_numbers = #tpu.dot_dimension_numbers<[1], [0], [0], [1], [0, 0, 1, 1], [], []>} : vector<128x384xbf16>, vector<384x128xbf16>, vector<128x128xf32> -> vector<128x128xf32>
    %7 = arith.addf %3, %6 : vector<128x128xf32>
    %c0_6 = arith.constant 0 : index
    %c0_7 = arith.constant 0 : index
    %8 = vector.load %arg7[%c0_6, %c0_7] : memref<128x128xf32, #tpu.memory_space<vmem>>, vector<128x128xf32>
    tpu.vector_store %arg7[%c0_6, %c0_7], %7 {strides = array<i32>} : memref<128x128xf32, #tpu.memory_space<vmem>>, vector<128x128xf32>,
    %c2_i32 = arith.constant 2 : i32
    %9 = arith.cmpi eq, %arg2, %c2_i32 : i32
    %10 = arith.extui %9 : i1 to i32
    %c0_i32_8 = arith.constant 0 : i32
    %11 = arith.cmpi ne, %10, %c0_i32_8 : i32
    scf.if %11 {
      %c0_9 = arith.constant 0 : index
      %c0_10 = arith.constant 0 : index
      %12 = vector.load %arg7[%c0_9, %c0_10] : memref<128x128xf32, #tpu.memory_space<vmem>>, vector<128x128xf32>
      %c0_11 = arith.constant 0 : index
      %c0_12 = arith.constant 0 : index
      %13 = vector.load %arg5[%c0_11, %c0_12] : memref<1x128xf32, #tpu.memory_space<vmem>>, vector<1x128xf32>
      %14 = vector.broadcast %13 : vector<1x128xf32> to vector<128x128xf32>
      %15 = arith.addf %12, %14 : vector<128x128xf32>
      %c0_13 = arith.constant 0 : index
      %c0_14 = arith.constant 0 : index
      %16 = vector.load %arg6[%c0_13, %c0_14] : memref<128x128xf32, #tpu.memory_space<vmem>>, vector<128x128xf32>
      tpu.vector_store %arg6[%c0_13, %c0_14], %15 {strides = array<i32>} : memref<128x128xf32, #tpu.memory_space<vmem>>, vector<128x128xf32>,
    } else {
    }
    return
  }
  func.func @transform_0(%arg0: i32, %arg1: i32, %arg2: i32) -> (i32, i32) {
    %c0_i32 = arith.constant 0 : i32
    return %arg0, %arg2 : i32, i32
  }
  func.func @transform_1(%arg0: i32, %arg1: i32, %arg2: i32) -> (i32, i32) {
    %c0_i32 = arith.constant 0 : i32
    return %arg2, %arg1 : i32, i32
  }
  func.func @transform_2(%arg0: i32, %arg1: i32, %arg2: i32) -> (i32, i32) {
    %c0_i32 = arith.constant 0 : i32
    %c0_i32_0 = arith.constant 0 : i32
    return %c0_i32, %arg1 : i32, i32
  }
  func.func @transform_3(%arg0: i32, %arg1: i32, %arg2: i32) -> (i32, i32) {
    %c0_i32 = arith.constant 0 : i32
    return %arg0, %arg1 : i32, i32
  }
}

module attributes {stable_mosaic.version = 11 : i64} {
  func.func @_matmul_bias_kernel(%arg0: i32, %arg1: i32, %arg2: i32, %arg3: memref<32x384xbf16, #tpu.memory_space<vmem>>, %arg4: memref<384x256xbf16, #tpu.memory_space<vmem>>, %arg5: memref<1x256xf32, #tpu.memory_space<vmem>>, %arg6: memref<32x256xf32, #tpu.memory_space<vmem>>, %arg7: memref<32x256xf32, #tpu.memory_space<vmem>>) attributes {dimension_semantics = [#tpu.dimension_semantics<parallel>, #tpu.dimension_semantics<parallel>, #tpu.dimension_semantics<arbitrary>], iteration_bounds = array<i64: 1, 1, 3>, scalar_prefetch = 0 : i64, scratch_operands = 1 : i64, tpu.core_type = #tpu.core_type<tc>, window_params = [{transform_indices = @transform_0, window_bounds = array<i64: 32, 384>}, {transform_indices = @transform_1, window_bounds = array<i64: 384, 256>}, {transform_indices = @transform_2, window_bounds = array<i64: 1, 256>}, {transform_indices = @transform_3, window_bounds = array<i64: 32, 256>}]} {
    %c0_i32 = arith.constant 0 : i32
    %0 = arith.cmpi eq, %arg2, %c0_i32 : i32
    %1 = arith.extui %0 : i1 to i32
    %c0_i32_0 = arith.constant 0 : i32
    %2 = arith.cmpi ne, %1, %c0_i32_0 : i32
    scf.if %2 {
      %cst_9 = arith.constant 0.000000e+00 : f32
      %12 = vector.broadcast %cst_9 : f32 to vector<32x256xf32>
      %c0_10 = arith.constant 0 : index
      %c0_11 = arith.constant 0 : index
      %13 = vector.load %arg7[%c0_10, %c0_11] : memref<32x256xf32, #tpu.memory_space<vmem>>, vector<32x256xf32>
      tpu.vector_store %arg7[%c0_10, %c0_11], %12 {strides = array<i32>} : memref<32x256xf32, #tpu.memory_space<vmem>>, vector<32x256xf32>,
    } else {
    }
    %c0 = arith.constant 0 : index
    %c0_1 = arith.constant 0 : index
    %3 = vector.load %arg7[%c0, %c0_1] : memref<32x256xf32, #tpu.memory_space<vmem>>, vector<32x256xf32>
    %c0_2 = arith.constant 0 : index
    %c0_3 = arith.constant 0 : index
    %4 = vector.load %arg3[%c0_2, %c0_3] : memref<32x384xbf16, #tpu.memory_space<vmem>>, vector<32x384xbf16>
    %c0_4 = arith.constant 0 : index
    %c0_5 = arith.constant 0 : index
    %5 = vector.load %arg4[%c0_4, %c0_5] : memref<384x256xbf16, #tpu.memory_space<vmem>>, vector<384x256xbf16>
    %cst = arith.constant dense<0.000000e+00> : vector<32x256xf32>
    %6 = tpu.matmul %4, %5, %cst {dimension_numbers = #tpu.dot_dimension_numbers<[1], [0], [0], [1], [0, 0, 1, 1], [], []>} : vector<32x384xbf16>, vector<384x256xbf16>, vector<32x256xf32> -> vector<32x256xf32>
    %7 = arith.addf %3, %6 : vector<32x256xf32>
    %c0_6 = arith.constant 0 : index
    %c0_7 = arith.constant 0 : index
    %8 = vector.load %arg7[%c0_6, %c0_7] : memref<32x256xf32, #tpu.memory_space<vmem>>, vector<32x256xf32>
    tpu.vector_store %arg7[%c0_6, %c0_7], %7 {strides = array<i32>} : memref<32x256xf32, #tpu.memory_space<vmem>>, vector<32x256xf32>,
    %c2_i32 = arith.constant 2 : i32
    %9 = arith.cmpi eq, %arg2, %c2_i32 : i32
    %10 = arith.extui %9 : i1 to i32
    %c0_i32_8 = arith.constant 0 : i32
    %11 = arith.cmpi ne, %10, %c0_i32_8 : i32
    scf.if %11 {
      %c0_9 = arith.constant 0 : index
      %c0_10 = arith.constant 0 : index
      %12 = vector.load %arg7[%c0_9, %c0_10] : memref<32x256xf32, #tpu.memory_space<vmem>>, vector<32x256xf32>
      %c0_11 = arith.constant 0 : index
      %c0_12 = arith.constant 0 : index
      %13 = vector.load %arg5[%c0_11, %c0_12] : memref<1x256xf32, #tpu.memory_space<vmem>>, vector<1x256xf32>
      %14 = vector.broadcast %13 : vector<1x256xf32> to vector<32x256xf32>
      %15 = arith.addf %12, %14 : vector<32x256xf32>
      %c0_13 = arith.constant 0 : index
      %c0_14 = arith.constant 0 : index
      %16 = vector.load %arg6[%c0_13, %c0_14] : memref<32x256xf32, #tpu.memory_space<vmem>>, vector<32x256xf32>
      tpu.vector_store %arg6[%c0_13, %c0_14], %15 {strides = array<i32>} : memref<32x256xf32, #tpu.memory_space<vmem>>, vector<32x256xf32>,
    } else {
    }
    return
  }
  func.func @transform_0(%arg0: i32, %arg1: i32, %arg2: i32) -> (i32, i32) {
    %c0_i32 = arith.constant 0 : i32
    return %arg0, %arg2 : i32, i32
  }
  func.func @transform_1(%arg0: i32, %arg1: i32, %arg2: i32) -> (i32, i32) {
    %c0_i32 = arith.constant 0 : i32
    return %arg2, %arg1 : i32, i32
  }
  func.func @transform_2(%arg0: i32, %arg1: i32, %arg2: i32) -> (i32, i32) {
    %c0_i32 = arith.constant 0 : i32
    %c0_i32_0 = arith.constant 0 : i32
    return %c0_i32, %arg1 : i32, i32
  }
  func.func @transform_3(%arg0: i32, %arg1: i32, %arg2: i32) -> (i32, i32) {
    %c0_i32 = arith.constant 0 : i32
    return %arg0, %arg1 : i32, i32
  }
}

module attributes {stable_mosaic.version = 11 : i64} {
  func.func @_instance_norm_kernel(%arg0: i32, %arg1: i32, %arg2: memref<1x16x256xf32, #tpu.memory_space<vmem>>, %arg3: memref<1x16x256xf32, #tpu.memory_space<vmem>>) attributes {dimension_semantics = [#tpu.dimension_semantics<parallel>, #tpu.dimension_semantics<parallel>], iteration_bounds = array<i64: 2, 1>, scalar_prefetch = 0 : i64, scratch_operands = 0 : i64, tpu.core_type = #tpu.core_type<tc>, window_params = [{transform_indices = @transform_0, window_bounds = array<i64: 1, 16, 256>}, {transform_indices = @transform_1, window_bounds = array<i64: 1, 16, 256>}]} {
    %c0 = arith.constant 0 : index
    %c0_0 = arith.constant 0 : index
    %c0_1 = arith.constant 0 : index
    %0 = vector.load %arg2[%c0, %c0_0, %c0_1] : memref<1x16x256xf32, #tpu.memory_space<vmem>>, vector<1x16x256xf32>
    %cst = arith.constant dense<0.000000e+00> : vector<1x256xf32>
    %1 = vector.multi_reduction <add>, %0, %cst [1] : vector<1x16x256xf32> to vector<1x256xf32>
    %2 = vector.shape_cast %1 : vector<1x256xf32> to vector<1x1x256xf32>
    %cst_2 = arith.constant 1.600000e+01 : f32
    %3 = vector.broadcast %cst_2 : f32 to vector<1x1x256xf32>
    %4 = arith.divf %2, %3 : vector<1x1x256xf32>
    %5 = vector.broadcast %4 : vector<1x1x256xf32> to vector<1x16x256xf32>
    %6 = arith.subf %0, %5 : vector<1x16x256xf32>
    %7 = arith.mulf %6, %6 : vector<1x16x256xf32>
    %cst_3 = arith.constant dense<0.000000e+00> : vector<1x256xf32>
    %8 = vector.multi_reduction <add>, %7, %cst_3 [1] : vector<1x16x256xf32> to vector<1x256xf32>
    %9 = vector.shape_cast %8 : vector<1x256xf32> to vector<1x1x256xf32>
    %cst_4 = arith.constant 1.600000e+01 : f32
    %10 = vector.broadcast %cst_4 : f32 to vector<1x1x256xf32>
    %11 = arith.divf %9, %10 : vector<1x1x256xf32>
    %12 = vector.broadcast %4 : vector<1x1x256xf32> to vector<1x16x256xf32>
    %13 = arith.subf %0, %12 : vector<1x16x256xf32>
    %cst_5 = arith.constant 9.99999974E-6 : f32
    %14 = vector.broadcast %cst_5 : f32 to vector<1x1x256xf32>
    %15 = arith.addf %11, %14 : vector<1x1x256xf32>
    %16 = math.rsqrt %15 : vector<1x1x256xf32>
    %17 = vector.broadcast %16 : vector<1x1x256xf32> to vector<1x16x256xf32>
    %18 = arith.mulf %13, %17 : vector<1x16x256xf32>
    %cst_6 = arith.constant 0.000000e+00 : f32
    %19 = vector.broadcast %cst_6 : f32 to vector<1x16x256xf32>
    %20 = arith.maximumf %18, %19 : vector<1x16x256xf32>
    %c0_7 = arith.constant 0 : index
    %c0_8 = arith.constant 0 : index
    %c0_9 = arith.constant 0 : index
    %21 = vector.load %arg3[%c0_7, %c0_8, %c0_9] : memref<1x16x256xf32, #tpu.memory_space<vmem>>, vector<1x16x256xf32>
    tpu.vector_store %arg3[%c0_7, %c0_8, %c0_9], %20 {strides = array<i32>} : memref<1x16x256xf32, #tpu.memory_space<vmem>>, vector<1x16x256xf32>,
    return
  }
  func.func @transform_0(%arg0: i32, %arg1: i32) -> (i32, i32, i32) {
    %c0_i32 = arith.constant 0 : i32
    %c0_i32_0 = arith.constant 0 : i32
    return %arg0, %c0_i32, %arg1 : i32, i32, i32
  }
  func.func @transform_1(%arg0: i32, %arg1: i32) -> (i32, i32, i32) {
    %c0_i32 = arith.constant 0 : i32
    %c0_i32_0 = arith.constant 0 : i32
    return %arg0, %c0_i32, %arg1 : i32, i32, i32
  }
}

module attributes {stable_mosaic.version = 11 : i64} {
  func.func @_matmul_bias_kernel(%arg0: i32, %arg1: i32, %arg2: i32, %arg3: memref<32x256xbf16, #tpu.memory_space<vmem>>, %arg4: memref<256x128xbf16, #tpu.memory_space<vmem>>, %arg5: memref<1x128xf32, #tpu.memory_space<vmem>>, %arg6: memref<32x128xf32, #tpu.memory_space<vmem>>, %arg7: memref<32x128xf32, #tpu.memory_space<vmem>>) attributes {dimension_semantics = [#tpu.dimension_semantics<parallel>, #tpu.dimension_semantics<parallel>, #tpu.dimension_semantics<arbitrary>], iteration_bounds = array<i64: 1, 1, 1>, scalar_prefetch = 0 : i64, scratch_operands = 1 : i64, tpu.core_type = #tpu.core_type<tc>, window_params = [{transform_indices = @transform_0, window_bounds = array<i64: 32, 256>}, {transform_indices = @transform_1, window_bounds = array<i64: 256, 128>}, {transform_indices = @transform_2, window_bounds = array<i64: 1, 128>}, {transform_indices = @transform_3, window_bounds = array<i64: 32, 128>}]} {
    %c0_i32 = arith.constant 0 : i32
    %0 = arith.cmpi eq, %arg2, %c0_i32 : i32
    %1 = arith.extui %0 : i1 to i32
    %c0_i32_0 = arith.constant 0 : i32
    %2 = arith.cmpi ne, %1, %c0_i32_0 : i32
    scf.if %2 {
      %cst_10 = arith.constant 0.000000e+00 : f32
      %12 = vector.broadcast %cst_10 : f32 to vector<32x128xf32>
      %c0_11 = arith.constant 0 : index
      %c0_12 = arith.constant 0 : index
      %13 = vector.load %arg7[%c0_11, %c0_12] : memref<32x128xf32, #tpu.memory_space<vmem>>, vector<32x128xf32>
      tpu.vector_store %arg7[%c0_11, %c0_12], %12 {strides = array<i32>} : memref<32x128xf32, #tpu.memory_space<vmem>>, vector<32x128xf32>,
    } else {
    }
    %c0 = arith.constant 0 : index
    %c0_1 = arith.constant 0 : index
    %3 = vector.load %arg7[%c0, %c0_1] : memref<32x128xf32, #tpu.memory_space<vmem>>, vector<32x128xf32>
    %c0_2 = arith.constant 0 : index
    %c0_3 = arith.constant 0 : index
    %4 = vector.load %arg3[%c0_2, %c0_3] : memref<32x256xbf16, #tpu.memory_space<vmem>>, vector<32x256xbf16>
    %c0_4 = arith.constant 0 : index
    %c0_5 = arith.constant 0 : index
    %5 = vector.load %arg4[%c0_4, %c0_5] : memref<256x128xbf16, #tpu.memory_space<vmem>>, vector<256x128xbf16>
    %cst = arith.constant dense<0.000000e+00> : vector<32x128xf32>
    %6 = tpu.matmul %4, %5, %cst {dimension_numbers = #tpu.dot_dimension_numbers<[1], [0], [0], [1], [0, 0, 1, 1], [], []>} : vector<32x256xbf16>, vector<256x128xbf16>, vector<32x128xf32> -> vector<32x128xf32>
    %7 = arith.addf %3, %6 : vector<32x128xf32>
    %c0_6 = arith.constant 0 : index
    %c0_7 = arith.constant 0 : index
    %8 = vector.load %arg7[%c0_6, %c0_7] : memref<32x128xf32, #tpu.memory_space<vmem>>, vector<32x128xf32>
    tpu.vector_store %arg7[%c0_6, %c0_7], %7 {strides = array<i32>} : memref<32x128xf32, #tpu.memory_space<vmem>>, vector<32x128xf32>,
    %c0_i32_8 = arith.constant 0 : i32
    %9 = arith.cmpi eq, %arg2, %c0_i32_8 : i32
    %10 = arith.extui %9 : i1 to i32
    %c0_i32_9 = arith.constant 0 : i32
    %11 = arith.cmpi ne, %10, %c0_i32_9 : i32
    scf.if %11 {
      %c0_10 = arith.constant 0 : index
      %c0_11 = arith.constant 0 : index
      %12 = vector.load %arg7[%c0_10, %c0_11] : memref<32x128xf32, #tpu.memory_space<vmem>>, vector<32x128xf32>
      %c0_12 = arith.constant 0 : index
      %c0_13 = arith.constant 0 : index
      %13 = vector.load %arg5[%c0_12, %c0_13] : memref<1x128xf32, #tpu.memory_space<vmem>>, vector<1x128xf32>
      %14 = vector.broadcast %13 : vector<1x128xf32> to vector<32x128xf32>
      %15 = arith.addf %12, %14 : vector<32x128xf32>
      %c0_14 = arith.constant 0 : index
      %c0_15 = arith.constant 0 : index
      %16 = vector.load %arg6[%c0_14, %c0_15] : memref<32x128xf32, #tpu.memory_space<vmem>>, vector<32x128xf32>
      tpu.vector_store %arg6[%c0_14, %c0_15], %15 {strides = array<i32>} : memref<32x128xf32, #tpu.memory_space<vmem>>, vector<32x128xf32>,
    } else {
    }
    return
  }
  func.func @transform_0(%arg0: i32, %arg1: i32, %arg2: i32) -> (i32, i32) {
    %c0_i32 = arith.constant 0 : i32
    return %arg0, %arg2 : i32, i32
  }
  func.func @transform_1(%arg0: i32, %arg1: i32, %arg2: i32) -> (i32, i32) {
    %c0_i32 = arith.constant 0 : i32
    return %arg2, %arg1 : i32, i32
  }
  func.func @transform_2(%arg0: i32, %arg1: i32, %arg2: i32) -> (i32, i32) {
    %c0_i32 = arith.constant 0 : i32
    %c0_i32_0 = arith.constant 0 : i32
    return %c0_i32, %arg1 : i32, i32
  }
  func.func @transform_3(%arg0: i32, %arg1: i32, %arg2: i32) -> (i32, i32) {
    %c0_i32 = arith.constant 0 : i32
    return %arg0, %arg1 : i32, i32
  }
}

module attributes {stable_mosaic.version = 11 : i64} {
  func.func @_instance_norm_res_kernel(%arg0: i32, %arg1: i32, %arg2: memref<1x16x256xf32, #tpu.memory_space<vmem>>, %arg3: memref<1x16x256xf32, #tpu.memory_space<vmem>>, %arg4: memref<1x16x256xf32, #tpu.memory_space<vmem>>) attributes {dimension_semantics = [#tpu.dimension_semantics<parallel>, #tpu.dimension_semantics<parallel>], iteration_bounds = array<i64: 2, 1>, scalar_prefetch = 0 : i64, scratch_operands = 0 : i64, tpu.core_type = #tpu.core_type<tc>, window_params = [{transform_indices = @transform_0, window_bounds = array<i64: 1, 16, 256>}, {transform_indices = @transform_1, window_bounds = array<i64: 1, 16, 256>}, {transform_indices = @transform_2, window_bounds = array<i64: 1, 16, 256>}]} {
    %c0 = arith.constant 0 : index
    %c0_0 = arith.constant 0 : index
    %c0_1 = arith.constant 0 : index
    %0 = vector.load %arg2[%c0, %c0_0, %c0_1] : memref<1x16x256xf32, #tpu.memory_space<vmem>>, vector<1x16x256xf32>
    %cst = arith.constant dense<0.000000e+00> : vector<1x256xf32>
    %1 = vector.multi_reduction <add>, %0, %cst [1] : vector<1x16x256xf32> to vector<1x256xf32>
    %2 = vector.shape_cast %1 : vector<1x256xf32> to vector<1x1x256xf32>
    %cst_2 = arith.constant 1.600000e+01 : f32
    %3 = vector.broadcast %cst_2 : f32 to vector<1x1x256xf32>
    %4 = arith.divf %2, %3 : vector<1x1x256xf32>
    %5 = vector.broadcast %4 : vector<1x1x256xf32> to vector<1x16x256xf32>
    %6 = arith.subf %0, %5 : vector<1x16x256xf32>
    %7 = arith.mulf %6, %6 : vector<1x16x256xf32>
    %cst_3 = arith.constant dense<0.000000e+00> : vector<1x256xf32>
    %8 = vector.multi_reduction <add>, %7, %cst_3 [1] : vector<1x16x256xf32> to vector<1x256xf32>
    %9 = vector.shape_cast %8 : vector<1x256xf32> to vector<1x1x256xf32>
    %cst_4 = arith.constant 1.600000e+01 : f32
    %10 = vector.broadcast %cst_4 : f32 to vector<1x1x256xf32>
    %11 = arith.divf %9, %10 : vector<1x1x256xf32>
    %12 = vector.broadcast %4 : vector<1x1x256xf32> to vector<1x16x256xf32>
    %13 = arith.subf %0, %12 : vector<1x16x256xf32>
    %cst_5 = arith.constant 9.99999974E-6 : f32
    %14 = vector.broadcast %cst_5 : f32 to vector<1x1x256xf32>
    %15 = arith.addf %11, %14 : vector<1x1x256xf32>
    %16 = math.rsqrt %15 : vector<1x1x256xf32>
    %17 = vector.broadcast %16 : vector<1x1x256xf32> to vector<1x16x256xf32>
    %18 = arith.mulf %13, %17 : vector<1x16x256xf32>
    %c0_6 = arith.constant 0 : index
    %c0_7 = arith.constant 0 : index
    %c0_8 = arith.constant 0 : index
    %19 = vector.load %arg3[%c0_6, %c0_7, %c0_8] : memref<1x16x256xf32, #tpu.memory_space<vmem>>, vector<1x16x256xf32>
    %20 = arith.addf %18, %19 : vector<1x16x256xf32>
    %c0_9 = arith.constant 0 : index
    %c0_10 = arith.constant 0 : index
    %c0_11 = arith.constant 0 : index
    %21 = vector.load %arg4[%c0_9, %c0_10, %c0_11] : memref<1x16x256xf32, #tpu.memory_space<vmem>>, vector<1x16x256xf32>
    tpu.vector_store %arg4[%c0_9, %c0_10, %c0_11], %20 {strides = array<i32>} : memref<1x16x256xf32, #tpu.memory_space<vmem>>, vector<1x16x256xf32>,
    return
  }
  func.func @transform_0(%arg0: i32, %arg1: i32) -> (i32, i32, i32) {
    %c0_i32 = arith.constant 0 : i32
    %c0_i32_0 = arith.constant 0 : i32
    return %arg0, %c0_i32, %arg1 : i32, i32, i32
  }
  func.func @transform_1(%arg0: i32, %arg1: i32) -> (i32, i32, i32) {
    %c0_i32 = arith.constant 0 : i32
    %c0_i32_0 = arith.constant 0 : i32
    return %arg0, %c0_i32, %arg1 : i32, i32, i32
  }
  func.func @transform_2(%arg0: i32, %arg1: i32) -> (i32, i32, i32) {
    %c0_i32 = arith.constant 0 : i32
    %c0_i32_0 = arith.constant 0 : i32
    return %arg0, %c0_i32, %arg1 : i32, i32, i32
  }
}

module attributes {stable_mosaic.version = 11 : i64} {
  func.func @_matmul_bias_kernel(%arg0: i32, %arg1: i32, %arg2: i32, %arg3: memref<32x768xbf16, #tpu.memory_space<vmem>>, %arg4: memref<768x256xbf16, #tpu.memory_space<vmem>>, %arg5: memref<1x256xf32, #tpu.memory_space<vmem>>, %arg6: memref<32x256xf32, #tpu.memory_space<vmem>>, %arg7: memref<32x256xf32, #tpu.memory_space<vmem>>) attributes {dimension_semantics = [#tpu.dimension_semantics<parallel>, #tpu.dimension_semantics<parallel>, #tpu.dimension_semantics<arbitrary>], iteration_bounds = array<i64: 1, 1, 3>, scalar_prefetch = 0 : i64, scratch_operands = 1 : i64, tpu.core_type = #tpu.core_type<tc>, window_params = [{transform_indices = @transform_0, window_bounds = array<i64: 32, 768>}, {transform_indices = @transform_1, window_bounds = array<i64: 768, 256>}, {transform_indices = @transform_2, window_bounds = array<i64: 1, 256>}, {transform_indices = @transform_3, window_bounds = array<i64: 32, 256>}]} {
    %c0_i32 = arith.constant 0 : i32
    %0 = arith.cmpi eq, %arg2, %c0_i32 : i32
    %1 = arith.extui %0 : i1 to i32
    %c0_i32_0 = arith.constant 0 : i32
    %2 = arith.cmpi ne, %1, %c0_i32_0 : i32
    scf.if %2 {
      %cst_9 = arith.constant 0.000000e+00 : f32
      %12 = vector.broadcast %cst_9 : f32 to vector<32x256xf32>
      %c0_10 = arith.constant 0 : index
      %c0_11 = arith.constant 0 : index
      %13 = vector.load %arg7[%c0_10, %c0_11] : memref<32x256xf32, #tpu.memory_space<vmem>>, vector<32x256xf32>
      tpu.vector_store %arg7[%c0_10, %c0_11], %12 {strides = array<i32>} : memref<32x256xf32, #tpu.memory_space<vmem>>, vector<32x256xf32>,
    } else {
    }
    %c0 = arith.constant 0 : index
    %c0_1 = arith.constant 0 : index
    %3 = vector.load %arg7[%c0, %c0_1] : memref<32x256xf32, #tpu.memory_space<vmem>>, vector<32x256xf32>
    %c0_2 = arith.constant 0 : index
    %c0_3 = arith.constant 0 : index
    %4 = vector.load %arg3[%c0_2, %c0_3] : memref<32x768xbf16, #tpu.memory_space<vmem>>, vector<32x768xbf16>
    %c0_4 = arith.constant 0 : index
    %c0_5 = arith.constant 0 : index
    %5 = vector.load %arg4[%c0_4, %c0_5] : memref<768x256xbf16, #tpu.memory_space<vmem>>, vector<768x256xbf16>
    %cst = arith.constant dense<0.000000e+00> : vector<32x256xf32>
    %6 = tpu.matmul %4, %5, %cst {dimension_numbers = #tpu.dot_dimension_numbers<[1], [0], [0], [1], [0, 0, 1, 1], [], []>} : vector<32x768xbf16>, vector<768x256xbf16>, vector<32x256xf32> -> vector<32x256xf32>
    %7 = arith.addf %3, %6 : vector<32x256xf32>
    %c0_6 = arith.constant 0 : index
    %c0_7 = arith.constant 0 : index
    %8 = vector.load %arg7[%c0_6, %c0_7] : memref<32x256xf32, #tpu.memory_space<vmem>>, vector<32x256xf32>
    tpu.vector_store %arg7[%c0_6, %c0_7], %7 {strides = array<i32>} : memref<32x256xf32, #tpu.memory_space<vmem>>, vector<32x256xf32>,
    %c2_i32 = arith.constant 2 : i32
    %9 = arith.cmpi eq, %arg2, %c2_i32 : i32
    %10 = arith.extui %9 : i1 to i32
    %c0_i32_8 = arith.constant 0 : i32
    %11 = arith.cmpi ne, %10, %c0_i32_8 : i32
    scf.if %11 {
      %c0_9 = arith.constant 0 : index
      %c0_10 = arith.constant 0 : index
      %12 = vector.load %arg7[%c0_9, %c0_10] : memref<32x256xf32, #tpu.memory_space<vmem>>, vector<32x256xf32>
      %c0_11 = arith.constant 0 : index
      %c0_12 = arith.constant 0 : index
      %13 = vector.load %arg5[%c0_11, %c0_12] : memref<1x256xf32, #tpu.memory_space<vmem>>, vector<1x256xf32>
      %14 = vector.broadcast %13 : vector<1x256xf32> to vector<32x256xf32>
      %15 = arith.addf %12, %14 : vector<32x256xf32>
      %c0_13 = arith.constant 0 : index
      %c0_14 = arith.constant 0 : index
      %16 = vector.load %arg6[%c0_13, %c0_14] : memref<32x256xf32, #tpu.memory_space<vmem>>, vector<32x256xf32>
      tpu.vector_store %arg6[%c0_13, %c0_14], %15 {strides = array<i32>} : memref<32x256xf32, #tpu.memory_space<vmem>>, vector<32x256xf32>,
    } else {
    }
    return
  }
  func.func @transform_0(%arg0: i32, %arg1: i32, %arg2: i32) -> (i32, i32) {
    %c0_i32 = arith.constant 0 : i32
    return %arg0, %arg2 : i32, i32
  }
  func.func @transform_1(%arg0: i32, %arg1: i32, %arg2: i32) -> (i32, i32) {
    %c0_i32 = arith.constant 0 : i32
    return %arg2, %arg1 : i32, i32
  }
  func.func @transform_2(%arg0: i32, %arg1: i32, %arg2: i32) -> (i32, i32) {
    %c0_i32 = arith.constant 0 : i32
    %c0_i32_0 = arith.constant 0 : i32
    return %c0_i32, %arg1 : i32, i32
  }
  func.func @transform_3(%arg0: i32, %arg1: i32, %arg2: i32) -> (i32, i32) {
    %c0_i32 = arith.constant 0 : i32
    return %arg0, %arg1 : i32, i32
  }
}

module attributes {stable_mosaic.version = 11 : i64} {
  func.func @_matmul_bias_kernel(%arg0: i32, %arg1: i32, %arg2: i32, %arg3: memref<32x1024xbf16, #tpu.memory_space<vmem>>, %arg4: memref<1024x128xbf16, #tpu.memory_space<vmem>>, %arg5: memref<1x128xf32, #tpu.memory_space<vmem>>, %arg6: memref<32x128xf32, #tpu.memory_space<vmem>>, %arg7: memref<32x128xf32, #tpu.memory_space<vmem>>) attributes {dimension_semantics = [#tpu.dimension_semantics<parallel>, #tpu.dimension_semantics<parallel>, #tpu.dimension_semantics<arbitrary>], iteration_bounds = array<i64: 1, 1, 1>, scalar_prefetch = 0 : i64, scratch_operands = 1 : i64, tpu.core_type = #tpu.core_type<tc>, window_params = [{transform_indices = @transform_0, window_bounds = array<i64: 32, 1024>}, {transform_indices = @transform_1, window_bounds = array<i64: 1024, 128>}, {transform_indices = @transform_2, window_bounds = array<i64: 1, 128>}, {transform_indices = @transform_3, window_bounds = array<i64: 32, 128>}]} {
    %c0_i32 = arith.constant 0 : i32
    %0 = arith.cmpi eq, %arg2, %c0_i32 : i32
    %1 = arith.extui %0 : i1 to i32
    %c0_i32_0 = arith.constant 0 : i32
    %2 = arith.cmpi ne, %1, %c0_i32_0 : i32
    scf.if %2 {
      %cst_10 = arith.constant 0.000000e+00 : f32
      %12 = vector.broadcast %cst_10 : f32 to vector<32x128xf32>
      %c0_11 = arith.constant 0 : index
      %c0_12 = arith.constant 0 : index
      %13 = vector.load %arg7[%c0_11, %c0_12] : memref<32x128xf32, #tpu.memory_space<vmem>>, vector<32x128xf32>
      tpu.vector_store %arg7[%c0_11, %c0_12], %12 {strides = array<i32>} : memref<32x128xf32, #tpu.memory_space<vmem>>, vector<32x128xf32>,
    } else {
    }
    %c0 = arith.constant 0 : index
    %c0_1 = arith.constant 0 : index
    %3 = vector.load %arg7[%c0, %c0_1] : memref<32x128xf32, #tpu.memory_space<vmem>>, vector<32x128xf32>
    %c0_2 = arith.constant 0 : index
    %c0_3 = arith.constant 0 : index
    %4 = vector.load %arg3[%c0_2, %c0_3] : memref<32x1024xbf16, #tpu.memory_space<vmem>>, vector<32x1024xbf16>
    %c0_4 = arith.constant 0 : index
    %c0_5 = arith.constant 0 : index
    %5 = vector.load %arg4[%c0_4, %c0_5] : memref<1024x128xbf16, #tpu.memory_space<vmem>>, vector<1024x128xbf16>
    %cst = arith.constant dense<0.000000e+00> : vector<32x128xf32>
    %6 = tpu.matmul %4, %5, %cst {dimension_numbers = #tpu.dot_dimension_numbers<[1], [0], [0], [1], [0, 0, 1, 1], [], []>} : vector<32x1024xbf16>, vector<1024x128xbf16>, vector<32x128xf32> -> vector<32x128xf32>
    %7 = arith.addf %3, %6 : vector<32x128xf32>
    %c0_6 = arith.constant 0 : index
    %c0_7 = arith.constant 0 : index
    %8 = vector.load %arg7[%c0_6, %c0_7] : memref<32x128xf32, #tpu.memory_space<vmem>>, vector<32x128xf32>
    tpu.vector_store %arg7[%c0_6, %c0_7], %7 {strides = array<i32>} : memref<32x128xf32, #tpu.memory_space<vmem>>, vector<32x128xf32>,
    %c0_i32_8 = arith.constant 0 : i32
    %9 = arith.cmpi eq, %arg2, %c0_i32_8 : i32
    %10 = arith.extui %9 : i1 to i32
    %c0_i32_9 = arith.constant 0 : i32
    %11 = arith.cmpi ne, %10, %c0_i32_9 : i32
    scf.if %11 {
      %c0_10 = arith.constant 0 : index
      %c0_11 = arith.constant 0 : index
      %12 = vector.load %arg7[%c0_10, %c0_11] : memref<32x128xf32, #tpu.memory_space<vmem>>, vector<32x128xf32>
      %c0_12 = arith.constant 0 : index
      %c0_13 = arith.constant 0 : index
      %13 = vector.load %arg5[%c0_12, %c0_13] : memref<1x128xf32, #tpu.memory_space<vmem>>, vector<1x128xf32>
      %14 = vector.broadcast %13 : vector<1x128xf32> to vector<32x128xf32>
      %15 = arith.addf %12, %14 : vector<32x128xf32>
      %c0_14 = arith.constant 0 : index
      %c0_15 = arith.constant 0 : index
      %16 = vector.load %arg6[%c0_14, %c0_15] : memref<32x128xf32, #tpu.memory_space<vmem>>, vector<32x128xf32>
      tpu.vector_store %arg6[%c0_14, %c0_15], %15 {strides = array<i32>} : memref<32x128xf32, #tpu.memory_space<vmem>>, vector<32x128xf32>,
    } else {
    }
    return
  }
  func.func @transform_0(%arg0: i32, %arg1: i32, %arg2: i32) -> (i32, i32) {
    %c0_i32 = arith.constant 0 : i32
    return %arg0, %arg2 : i32, i32
  }
  func.func @transform_1(%arg0: i32, %arg1: i32, %arg2: i32) -> (i32, i32) {
    %c0_i32 = arith.constant 0 : i32
    return %arg2, %arg1 : i32, i32
  }
  func.func @transform_2(%arg0: i32, %arg1: i32, %arg2: i32) -> (i32, i32) {
    %c0_i32 = arith.constant 0 : i32
    %c0_i32_0 = arith.constant 0 : i32
    return %c0_i32, %arg1 : i32, i32
  }
  func.func @transform_3(%arg0: i32, %arg1: i32, %arg2: i32) -> (i32, i32) {
    %c0_i32 = arith.constant 0 : i32
    return %arg0, %arg1 : i32, i32
  }
}

module attributes {stable_mosaic.version = 11 : i64} {
  func.func @_matmul_bias_kernel(%arg0: i32, %arg1: i32, %arg2: i32, %arg3: memref<128x128xbf16, #tpu.memory_space<vmem>>, %arg4: memref<128x128xbf16, #tpu.memory_space<vmem>>, %arg5: memref<1x128xf32, #tpu.memory_space<vmem>>, %arg6: memref<128x128xf32, #tpu.memory_space<vmem>>, %arg7: memref<128x128xf32, #tpu.memory_space<vmem>>) attributes {dimension_semantics = [#tpu.dimension_semantics<parallel>, #tpu.dimension_semantics<parallel>, #tpu.dimension_semantics<arbitrary>], iteration_bounds = array<i64: 1, 1, 1>, scalar_prefetch = 0 : i64, scratch_operands = 1 : i64, tpu.core_type = #tpu.core_type<tc>, window_params = [{transform_indices = @transform_0, window_bounds = array<i64: 128, 128>}, {transform_indices = @transform_1, window_bounds = array<i64: 128, 128>}, {transform_indices = @transform_2, window_bounds = array<i64: 1, 128>}, {transform_indices = @transform_3, window_bounds = array<i64: 128, 128>}]} {
    %c0_i32 = arith.constant 0 : i32
    %0 = arith.cmpi eq, %arg2, %c0_i32 : i32
    %1 = arith.extui %0 : i1 to i32
    %c0_i32_0 = arith.constant 0 : i32
    %2 = arith.cmpi ne, %1, %c0_i32_0 : i32
    scf.if %2 {
      %cst_10 = arith.constant 0.000000e+00 : f32
      %12 = vector.broadcast %cst_10 : f32 to vector<128x128xf32>
      %c0_11 = arith.constant 0 : index
      %c0_12 = arith.constant 0 : index
      %13 = vector.load %arg7[%c0_11, %c0_12] : memref<128x128xf32, #tpu.memory_space<vmem>>, vector<128x128xf32>
      tpu.vector_store %arg7[%c0_11, %c0_12], %12 {strides = array<i32>} : memref<128x128xf32, #tpu.memory_space<vmem>>, vector<128x128xf32>,
    } else {
    }
    %c0 = arith.constant 0 : index
    %c0_1 = arith.constant 0 : index
    %3 = vector.load %arg7[%c0, %c0_1] : memref<128x128xf32, #tpu.memory_space<vmem>>, vector<128x128xf32>
    %c0_2 = arith.constant 0 : index
    %c0_3 = arith.constant 0 : index
    %4 = vector.load %arg3[%c0_2, %c0_3] : memref<128x128xbf16, #tpu.memory_space<vmem>>, vector<128x128xbf16>
    %c0_4 = arith.constant 0 : index
    %c0_5 = arith.constant 0 : index
    %5 = vector.load %arg4[%c0_4, %c0_5] : memref<128x128xbf16, #tpu.memory_space<vmem>>, vector<128x128xbf16>
    %cst = arith.constant dense<0.000000e+00> : vector<128x128xf32>
    %6 = tpu.matmul %4, %5, %cst {dimension_numbers = #tpu.dot_dimension_numbers<[1], [0], [0], [1], [0, 0, 1, 1], [], []>} : vector<128x128xbf16>, vector<128x128xbf16>, vector<128x128xf32> -> vector<128x128xf32>
    %7 = arith.addf %3, %6 : vector<128x128xf32>
    %c0_6 = arith.constant 0 : index
    %c0_7 = arith.constant 0 : index
    %8 = vector.load %arg7[%c0_6, %c0_7] : memref<128x128xf32, #tpu.memory_space<vmem>>, vector<128x128xf32>
    tpu.vector_store %arg7[%c0_6, %c0_7], %7 {strides = array<i32>} : memref<128x128xf32, #tpu.memory_space<vmem>>, vector<128x128xf32>,
    %c0_i32_8 = arith.constant 0 : i32
    %9 = arith.cmpi eq, %arg2, %c0_i32_8 : i32
    %10 = arith.extui %9 : i1 to i32
    %c0_i32_9 = arith.constant 0 : i32
    %11 = arith.cmpi ne, %10, %c0_i32_9 : i32
    scf.if %11 {
      %c0_10 = arith.constant 0 : index
      %c0_11 = arith.constant 0 : index
      %12 = vector.load %arg7[%c0_10, %c0_11] : memref<128x128xf32, #tpu.memory_space<vmem>>, vector<128x128xf32>
      %c0_12 = arith.constant 0 : index
      %c0_13 = arith.constant 0 : index
      %13 = vector.load %arg5[%c0_12, %c0_13] : memref<1x128xf32, #tpu.memory_space<vmem>>, vector<1x128xf32>
      %14 = vector.broadcast %13 : vector<1x128xf32> to vector<128x128xf32>
      %15 = arith.addf %12, %14 : vector<128x128xf32>
      %c0_14 = arith.constant 0 : index
      %c0_15 = arith.constant 0 : index
      %16 = vector.load %arg6[%c0_14, %c0_15] : memref<128x128xf32, #tpu.memory_space<vmem>>, vector<128x128xf32>
      tpu.vector_store %arg6[%c0_14, %c0_15], %15 {strides = array<i32>} : memref<128x128xf32, #tpu.memory_space<vmem>>, vector<128x128xf32>,
    } else {
    }
    return
  }
  func.func @transform_0(%arg0: i32, %arg1: i32, %arg2: i32) -> (i32, i32) {
    %c0_i32 = arith.constant 0 : i32
    return %arg0, %arg2 : i32, i32
  }
  func.func @transform_1(%arg0: i32, %arg1: i32, %arg2: i32) -> (i32, i32) {
    %c0_i32 = arith.constant 0 : i32
    return %arg2, %arg1 : i32, i32
  }
  func.func @transform_2(%arg0: i32, %arg1: i32, %arg2: i32) -> (i32, i32) {
    %c0_i32 = arith.constant 0 : i32
    %c0_i32_0 = arith.constant 0 : i32
    return %c0_i32, %arg1 : i32, i32
  }
  func.func @transform_3(%arg0: i32, %arg1: i32, %arg2: i32) -> (i32, i32) {
    %c0_i32 = arith.constant 0 : i32
    return %arg0, %arg1 : i32, i32
  }
}

module attributes {stable_mosaic.version = 11 : i64} {
  func.func @_matmul_bias_kernel(%arg0: i32, %arg1: i32, %arg2: i32, %arg3: memref<32x512xbf16, #tpu.memory_space<vmem>>, %arg4: memref<512x128xbf16, #tpu.memory_space<vmem>>, %arg5: memref<1x128xf32, #tpu.memory_space<vmem>>, %arg6: memref<32x128xf32, #tpu.memory_space<vmem>>, %arg7: memref<32x128xf32, #tpu.memory_space<vmem>>) attributes {dimension_semantics = [#tpu.dimension_semantics<parallel>, #tpu.dimension_semantics<parallel>, #tpu.dimension_semantics<arbitrary>], iteration_bounds = array<i64: 1, 1, 1>, scalar_prefetch = 0 : i64, scratch_operands = 1 : i64, tpu.core_type = #tpu.core_type<tc>, window_params = [{transform_indices = @transform_0, window_bounds = array<i64: 32, 512>}, {transform_indices = @transform_1, window_bounds = array<i64: 512, 128>}, {transform_indices = @transform_2, window_bounds = array<i64: 1, 128>}, {transform_indices = @transform_3, window_bounds = array<i64: 32, 128>}]} {
    %c0_i32 = arith.constant 0 : i32
    %0 = arith.cmpi eq, %arg2, %c0_i32 : i32
    %1 = arith.extui %0 : i1 to i32
    %c0_i32_0 = arith.constant 0 : i32
    %2 = arith.cmpi ne, %1, %c0_i32_0 : i32
    scf.if %2 {
      %cst_10 = arith.constant 0.000000e+00 : f32
      %12 = vector.broadcast %cst_10 : f32 to vector<32x128xf32>
      %c0_11 = arith.constant 0 : index
      %c0_12 = arith.constant 0 : index
      %13 = vector.load %arg7[%c0_11, %c0_12] : memref<32x128xf32, #tpu.memory_space<vmem>>, vector<32x128xf32>
      tpu.vector_store %arg7[%c0_11, %c0_12], %12 {strides = array<i32>} : memref<32x128xf32, #tpu.memory_space<vmem>>, vector<32x128xf32>,
    } else {
    }
    %c0 = arith.constant 0 : index
    %c0_1 = arith.constant 0 : index
    %3 = vector.load %arg7[%c0, %c0_1] : memref<32x128xf32, #tpu.memory_space<vmem>>, vector<32x128xf32>
    %c0_2 = arith.constant 0 : index
    %c0_3 = arith.constant 0 : index
    %4 = vector.load %arg3[%c0_2, %c0_3] : memref<32x512xbf16, #tpu.memory_space<vmem>>, vector<32x512xbf16>
    %c0_4 = arith.constant 0 : index
    %c0_5 = arith.constant 0 : index
    %5 = vector.load %arg4[%c0_4, %c0_5] : memref<512x128xbf16, #tpu.memory_space<vmem>>, vector<512x128xbf16>
    %cst = arith.constant dense<0.000000e+00> : vector<32x128xf32>
    %6 = tpu.matmul %4, %5, %cst {dimension_numbers = #tpu.dot_dimension_numbers<[1], [0], [0], [1], [0, 0, 1, 1], [], []>} : vector<32x512xbf16>, vector<512x128xbf16>, vector<32x128xf32> -> vector<32x128xf32>
    %7 = arith.addf %3, %6 : vector<32x128xf32>
    %c0_6 = arith.constant 0 : index
    %c0_7 = arith.constant 0 : index
    %8 = vector.load %arg7[%c0_6, %c0_7] : memref<32x128xf32, #tpu.memory_space<vmem>>, vector<32x128xf32>
    tpu.vector_store %arg7[%c0_6, %c0_7], %7 {strides = array<i32>} : memref<32x128xf32, #tpu.memory_space<vmem>>, vector<32x128xf32>,
    %c0_i32_8 = arith.constant 0 : i32
    %9 = arith.cmpi eq, %arg2, %c0_i32_8 : i32
    %10 = arith.extui %9 : i1 to i32
    %c0_i32_9 = arith.constant 0 : i32
    %11 = arith.cmpi ne, %10, %c0_i32_9 : i32
    scf.if %11 {
      %c0_10 = arith.constant 0 : index
      %c0_11 = arith.constant 0 : index
      %12 = vector.load %arg7[%c0_10, %c0_11] : memref<32x128xf32, #tpu.memory_space<vmem>>, vector<32x128xf32>
      %c0_12 = arith.constant 0 : index
      %c0_13 = arith.constant 0 : index
      %13 = vector.load %arg5[%c0_12, %c0_13] : memref<1x128xf32, #tpu.memory_space<vmem>>, vector<1x128xf32>
      %14 = vector.broadcast %13 : vector<1x128xf32> to vector<32x128xf32>
      %15 = arith.addf %12, %14 : vector<32x128xf32>
      %c0_14 = arith.constant 0 : index
      %c0_15 = arith.constant 0 : index
      %16 = vector.load %arg6[%c0_14, %c0_15] : memref<32x128xf32, #tpu.memory_space<vmem>>, vector<32x128xf32>
      tpu.vector_store %arg6[%c0_14, %c0_15], %15 {strides = array<i32>} : memref<32x128xf32, #tpu.memory_space<vmem>>, vector<32x128xf32>,
    } else {
    }
    return
  }
  func.func @transform_0(%arg0: i32, %arg1: i32, %arg2: i32) -> (i32, i32) {
    %c0_i32 = arith.constant 0 : i32
    return %arg0, %arg2 : i32, i32
  }
  func.func @transform_1(%arg0: i32, %arg1: i32, %arg2: i32) -> (i32, i32) {
    %c0_i32 = arith.constant 0 : i32
    return %arg2, %arg1 : i32, i32
  }
  func.func @transform_2(%arg0: i32, %arg1: i32, %arg2: i32) -> (i32, i32) {
    %c0_i32 = arith.constant 0 : i32
    %c0_i32_0 = arith.constant 0 : i32
    return %c0_i32, %arg1 : i32, i32
  }
  func.func @transform_3(%arg0: i32, %arg1: i32, %arg2: i32) -> (i32, i32) {
    %c0_i32 = arith.constant 0 : i32
    return %arg0, %arg1 : i32, i32
  }
}

module attributes {stable_mosaic.version = 11 : i64} {
  func.func @_matmul_bias_kernel(%arg0: i32, %arg1: i32, %arg2: i32, %arg3: memref<128x512xbf16, #tpu.memory_space<vmem>>, %arg4: memref<512x128xbf16, #tpu.memory_space<vmem>>, %arg5: memref<1x128xf32, #tpu.memory_space<vmem>>, %arg6: memref<128x128xf32, #tpu.memory_space<vmem>>, %arg7: memref<128x128xf32, #tpu.memory_space<vmem>>) attributes {dimension_semantics = [#tpu.dimension_semantics<parallel>, #tpu.dimension_semantics<parallel>, #tpu.dimension_semantics<arbitrary>], iteration_bounds = array<i64: 1, 1, 1>, scalar_prefetch = 0 : i64, scratch_operands = 1 : i64, tpu.core_type = #tpu.core_type<tc>, window_params = [{transform_indices = @transform_0, window_bounds = array<i64: 128, 512>}, {transform_indices = @transform_1, window_bounds = array<i64: 512, 128>}, {transform_indices = @transform_2, window_bounds = array<i64: 1, 128>}, {transform_indices = @transform_3, window_bounds = array<i64: 128, 128>}]} {
    %c0_i32 = arith.constant 0 : i32
    %0 = arith.cmpi eq, %arg2, %c0_i32 : i32
    %1 = arith.extui %0 : i1 to i32
    %c0_i32_0 = arith.constant 0 : i32
    %2 = arith.cmpi ne, %1, %c0_i32_0 : i32
    scf.if %2 {
      %cst_10 = arith.constant 0.000000e+00 : f32
      %12 = vector.broadcast %cst_10 : f32 to vector<128x128xf32>
      %c0_11 = arith.constant 0 : index
      %c0_12 = arith.constant 0 : index
      %13 = vector.load %arg7[%c0_11, %c0_12] : memref<128x128xf32, #tpu.memory_space<vmem>>, vector<128x128xf32>
      tpu.vector_store %arg7[%c0_11, %c0_12], %12 {strides = array<i32>} : memref<128x128xf32, #tpu.memory_space<vmem>>, vector<128x128xf32>,
    } else {
    }
    %c0 = arith.constant 0 : index
    %c0_1 = arith.constant 0 : index
    %3 = vector.load %arg7[%c0, %c0_1] : memref<128x128xf32, #tpu.memory_space<vmem>>, vector<128x128xf32>
    %c0_2 = arith.constant 0 : index
    %c0_3 = arith.constant 0 : index
    %4 = vector.load %arg3[%c0_2, %c0_3] : memref<128x512xbf16, #tpu.memory_space<vmem>>, vector<128x512xbf16>
    %c0_4 = arith.constant 0 : index
    %c0_5 = arith.constant 0 : index
    %5 = vector.load %arg4[%c0_4, %c0_5] : memref<512x128xbf16, #tpu.memory_space<vmem>>, vector<512x128xbf16>
    %cst = arith.constant dense<0.000000e+00> : vector<128x128xf32>
    %6 = tpu.matmul %4, %5, %cst {dimension_numbers = #tpu.dot_dimension_numbers<[1], [0], [0], [1], [0, 0, 1, 1], [], []>} : vector<128x512xbf16>, vector<512x128xbf16>, vector<128x128xf32> -> vector<128x128xf32>
    %7 = arith.addf %3, %6 : vector<128x128xf32>
    %c0_6 = arith.constant 0 : index
    %c0_7 = arith.constant 0 : index
    %8 = vector.load %arg7[%c0_6, %c0_7] : memref<128x128xf32, #tpu.memory_space<vmem>>, vector<128x128xf32>
    tpu.vector_store %arg7[%c0_6, %c0_7], %7 {strides = array<i32>} : memref<128x128xf32, #tpu.memory_space<vmem>>, vector<128x128xf32>,
    %c0_i32_8 = arith.constant 0 : i32
    %9 = arith.cmpi eq, %arg2, %c0_i32_8 : i32
    %10 = arith.extui %9 : i1 to i32
    %c0_i32_9 = arith.constant 0 : i32
    %11 = arith.cmpi ne, %10, %c0_i32_9 : i32
    scf.if %11 {
      %c0_10 = arith.constant 0 : index
      %c0_11 = arith.constant 0 : index
      %12 = vector.load %arg7[%c0_10, %c0_11] : memref<128x128xf32, #tpu.memory_space<vmem>>, vector<128x128xf32>
      %c0_12 = arith.constant 0 : index
      %c0_13 = arith.constant 0 : index
      %13 = vector.load %arg5[%c0_12, %c0_13] : memref<1x128xf32, #tpu.memory_space<vmem>>, vector<1x128xf32>
      %14 = vector.broadcast %13 : vector<1x128xf32> to vector<128x128xf32>
      %15 = arith.addf %12, %14 : vector<128x128xf32>
      %c0_14 = arith.constant 0 : index
      %c0_15 = arith.constant 0 : index
      %16 = vector.load %arg6[%c0_14, %c0_15] : memref<128x128xf32, #tpu.memory_space<vmem>>, vector<128x128xf32>
      tpu.vector_store %arg6[%c0_14, %c0_15], %15 {strides = array<i32>} : memref<128x128xf32, #tpu.memory_space<vmem>>, vector<128x128xf32>,
    } else {
    }
    return
  }
  func.func @transform_0(%arg0: i32, %arg1: i32, %arg2: i32) -> (i32, i32) {
    %c0_i32 = arith.constant 0 : i32
    return %arg0, %arg2 : i32, i32
  }
  func.func @transform_1(%arg0: i32, %arg1: i32, %arg2: i32) -> (i32, i32) {
    %c0_i32 = arith.constant 0 : i32
    return %arg2, %arg1 : i32, i32
  }
  func.func @transform_2(%arg0: i32, %arg1: i32, %arg2: i32) -> (i32, i32) {
    %c0_i32 = arith.constant 0 : i32
    %c0_i32_0 = arith.constant 0 : i32
    return %c0_i32, %arg1 : i32, i32
  }
  func.func @transform_3(%arg0: i32, %arg1: i32, %arg2: i32) -> (i32, i32) {
    %c0_i32 = arith.constant 0 : i32
    return %arg0, %arg1 : i32, i32
  }
}

module attributes {stable_mosaic.version = 11 : i64} {
  func.func @_matmul_bias_kernel(%arg0: i32, %arg1: i32, %arg2: i32, %arg3: memref<128x256xbf16, #tpu.memory_space<vmem>>, %arg4: memref<256x128xbf16, #tpu.memory_space<vmem>>, %arg5: memref<1x128xf32, #tpu.memory_space<vmem>>, %arg6: memref<128x128xf32, #tpu.memory_space<vmem>>, %arg7: memref<128x128xf32, #tpu.memory_space<vmem>>) attributes {dimension_semantics = [#tpu.dimension_semantics<parallel>, #tpu.dimension_semantics<parallel>, #tpu.dimension_semantics<arbitrary>], iteration_bounds = array<i64: 1, 1, 1>, scalar_prefetch = 0 : i64, scratch_operands = 1 : i64, tpu.core_type = #tpu.core_type<tc>, window_params = [{transform_indices = @transform_0, window_bounds = array<i64: 128, 256>}, {transform_indices = @transform_1, window_bounds = array<i64: 256, 128>}, {transform_indices = @transform_2, window_bounds = array<i64: 1, 128>}, {transform_indices = @transform_3, window_bounds = array<i64: 128, 128>}]} {
    %c0_i32 = arith.constant 0 : i32
    %0 = arith.cmpi eq, %arg2, %c0_i32 : i32
    %1 = arith.extui %0 : i1 to i32
    %c0_i32_0 = arith.constant 0 : i32
    %2 = arith.cmpi ne, %1, %c0_i32_0 : i32
    scf.if %2 {
      %cst_10 = arith.constant 0.000000e+00 : f32
      %12 = vector.broadcast %cst_10 : f32 to vector<128x128xf32>
      %c0_11 = arith.constant 0 : index
      %c0_12 = arith.constant 0 : index
      %13 = vector.load %arg7[%c0_11, %c0_12] : memref<128x128xf32, #tpu.memory_space<vmem>>, vector<128x128xf32>
      tpu.vector_store %arg7[%c0_11, %c0_12], %12 {strides = array<i32>} : memref<128x128xf32, #tpu.memory_space<vmem>>, vector<128x128xf32>,
    } else {
    }
    %c0 = arith.constant 0 : index
    %c0_1 = arith.constant 0 : index
    %3 = vector.load %arg7[%c0, %c0_1] : memref<128x128xf32, #tpu.memory_space<vmem>>, vector<128x128xf32>
    %c0_2 = arith.constant 0 : index
    %c0_3 = arith.constant 0 : index
    %4 = vector.load %arg3[%c0_2, %c0_3] : memref<128x256xbf16, #tpu.memory_space<vmem>>, vector<128x256xbf16>
    %c0_4 = arith.constant 0 : index
    %c0_5 = arith.constant 0 : index
    %5 = vector.load %arg4[%c0_4, %c0_5] : memref<256x128xbf16, #tpu.memory_space<vmem>>, vector<256x128xbf16>
    %cst = arith.constant dense<0.000000e+00> : vector<128x128xf32>
    %6 = tpu.matmul %4, %5, %cst {dimension_numbers = #tpu.dot_dimension_numbers<[1], [0], [0], [1], [0, 0, 1, 1], [], []>} : vector<128x256xbf16>, vector<256x128xbf16>, vector<128x128xf32> -> vector<128x128xf32>
    %7 = arith.addf %3, %6 : vector<128x128xf32>
    %c0_6 = arith.constant 0 : index
    %c0_7 = arith.constant 0 : index
    %8 = vector.load %arg7[%c0_6, %c0_7] : memref<128x128xf32, #tpu.memory_space<vmem>>, vector<128x128xf32>
    tpu.vector_store %arg7[%c0_6, %c0_7], %7 {strides = array<i32>} : memref<128x128xf32, #tpu.memory_space<vmem>>, vector<128x128xf32>,
    %c0_i32_8 = arith.constant 0 : i32
    %9 = arith.cmpi eq, %arg2, %c0_i32_8 : i32
    %10 = arith.extui %9 : i1 to i32
    %c0_i32_9 = arith.constant 0 : i32
    %11 = arith.cmpi ne, %10, %c0_i32_9 : i32
    scf.if %11 {
      %c0_10 = arith.constant 0 : index
      %c0_11 = arith.constant 0 : index
      %12 = vector.load %arg7[%c0_10, %c0_11] : memref<128x128xf32, #tpu.memory_space<vmem>>, vector<128x128xf32>
      %c0_12 = arith.constant 0 : index
      %c0_13 = arith.constant 0 : index
      %13 = vector.load %arg5[%c0_12, %c0_13] : memref<1x128xf32, #tpu.memory_space<vmem>>, vector<1x128xf32>
      %14 = vector.broadcast %13 : vector<1x128xf32> to vector<128x128xf32>
      %15 = arith.addf %12, %14 : vector<128x128xf32>
      %c0_14 = arith.constant 0 : index
      %c0_15 = arith.constant 0 : index
      %16 = vector.load %arg6[%c0_14, %c0_15] : memref<128x128xf32, #tpu.memory_space<vmem>>, vector<128x128xf32>
      tpu.vector_store %arg6[%c0_14, %c0_15], %15 {strides = array<i32>} : memref<128x128xf32, #tpu.memory_space<vmem>>, vector<128x128xf32>,
    } else {
    }
    return
  }
  func.func @transform_0(%arg0: i32, %arg1: i32, %arg2: i32) -> (i32, i32) {
    %c0_i32 = arith.constant 0 : i32
    return %arg0, %arg2 : i32, i32
  }
  func.func @transform_1(%arg0: i32, %arg1: i32, %arg2: i32) -> (i32, i32) {
    %c0_i32 = arith.constant 0 : i32
    return %arg2, %arg1 : i32, i32
  }
  func.func @transform_2(%arg0: i32, %arg1: i32, %arg2: i32) -> (i32, i32) {
    %c0_i32 = arith.constant 0 : i32
    %c0_i32_0 = arith.constant 0 : i32
    return %c0_i32, %arg1 : i32, i32
  }
  func.func @transform_3(%arg0: i32, %arg1: i32, %arg2: i32) -> (i32, i32) {
    %c0_i32 = arith.constant 0 : i32
    return %arg0, %arg1 : i32, i32
  }
}

module attributes {stable_mosaic.version = 11 : i64} {
  func.func @_matmul_bias_kernel(%arg0: i32, %arg1: i32, %arg2: i32, %arg3: memref<256x896xbf16, #tpu.memory_space<vmem>>, %arg4: memref<896x128xbf16, #tpu.memory_space<vmem>>, %arg5: memref<1x128xf32, #tpu.memory_space<vmem>>, %arg6: memref<256x128xf32, #tpu.memory_space<vmem>>, %arg7: memref<256x128xf32, #tpu.memory_space<vmem>>) attributes {dimension_semantics = [#tpu.dimension_semantics<parallel>, #tpu.dimension_semantics<parallel>, #tpu.dimension_semantics<arbitrary>], iteration_bounds = array<i64: 2, 1, 7>, scalar_prefetch = 0 : i64, scratch_operands = 1 : i64, tpu.core_type = #tpu.core_type<tc>, window_params = [{transform_indices = @transform_0, window_bounds = array<i64: 256, 896>}, {transform_indices = @transform_1, window_bounds = array<i64: 896, 128>}, {transform_indices = @transform_2, window_bounds = array<i64: 1, 128>}, {transform_indices = @transform_3, window_bounds = array<i64: 256, 128>}]} {
    %c0_i32 = arith.constant 0 : i32
    %0 = arith.cmpi eq, %arg2, %c0_i32 : i32
    %1 = arith.extui %0 : i1 to i32
    %c0_i32_0 = arith.constant 0 : i32
    %2 = arith.cmpi ne, %1, %c0_i32_0 : i32
    scf.if %2 {
      %cst_9 = arith.constant 0.000000e+00 : f32
      %12 = vector.broadcast %cst_9 : f32 to vector<256x128xf32>
      %c0_10 = arith.constant 0 : index
      %c0_11 = arith.constant 0 : index
      %13 = vector.load %arg7[%c0_10, %c0_11] : memref<256x128xf32, #tpu.memory_space<vmem>>, vector<256x128xf32>
      tpu.vector_store %arg7[%c0_10, %c0_11], %12 {strides = array<i32>} : memref<256x128xf32, #tpu.memory_space<vmem>>, vector<256x128xf32>,
    } else {
    }
    %c0 = arith.constant 0 : index
    %c0_1 = arith.constant 0 : index
    %3 = vector.load %arg7[%c0, %c0_1] : memref<256x128xf32, #tpu.memory_space<vmem>>, vector<256x128xf32>
    %c0_2 = arith.constant 0 : index
    %c0_3 = arith.constant 0 : index
    %4 = vector.load %arg3[%c0_2, %c0_3] : memref<256x896xbf16, #tpu.memory_space<vmem>>, vector<256x896xbf16>
    %c0_4 = arith.constant 0 : index
    %c0_5 = arith.constant 0 : index
    %5 = vector.load %arg4[%c0_4, %c0_5] : memref<896x128xbf16, #tpu.memory_space<vmem>>, vector<896x128xbf16>
    %cst = arith.constant dense<0.000000e+00> : vector<256x128xf32>
    %6 = tpu.matmul %4, %5, %cst {dimension_numbers = #tpu.dot_dimension_numbers<[1], [0], [0], [1], [0, 0, 1, 1], [], []>} : vector<256x896xbf16>, vector<896x128xbf16>, vector<256x128xf32> -> vector<256x128xf32>
    %7 = arith.addf %3, %6 : vector<256x128xf32>
    %c0_6 = arith.constant 0 : index
    %c0_7 = arith.constant 0 : index
    %8 = vector.load %arg7[%c0_6, %c0_7] : memref<256x128xf32, #tpu.memory_space<vmem>>, vector<256x128xf32>
    tpu.vector_store %arg7[%c0_6, %c0_7], %7 {strides = array<i32>} : memref<256x128xf32, #tpu.memory_space<vmem>>, vector<256x128xf32>,
    %c6_i32 = arith.constant 6 : i32
    %9 = arith.cmpi eq, %arg2, %c6_i32 : i32
    %10 = arith.extui %9 : i1 to i32
    %c0_i32_8 = arith.constant 0 : i32
    %11 = arith.cmpi ne, %10, %c0_i32_8 : i32
    scf.if %11 {
      %c0_9 = arith.constant 0 : index
      %c0_10 = arith.constant 0 : index
      %12 = vector.load %arg7[%c0_9, %c0_10] : memref<256x128xf32, #tpu.memory_space<vmem>>, vector<256x128xf32>
      %c0_11 = arith.constant 0 : index
      %c0_12 = arith.constant 0 : index
      %13 = vector.load %arg5[%c0_11, %c0_12] : memref<1x128xf32, #tpu.memory_space<vmem>>, vector<1x128xf32>
      %14 = vector.broadcast %13 : vector<1x128xf32> to vector<256x128xf32>
      %15 = arith.addf %12, %14 : vector<256x128xf32>
      %16 = math.tanh %15 : vector<256x128xf32>
      %c0_13 = arith.constant 0 : index
      %c0_14 = arith.constant 0 : index
      %17 = vector.load %arg6[%c0_13, %c0_14] : memref<256x128xf32, #tpu.memory_space<vmem>>, vector<256x128xf32>
      tpu.vector_store %arg6[%c0_13, %c0_14], %16 {strides = array<i32>} : memref<256x128xf32, #tpu.memory_space<vmem>>, vector<256x128xf32>,
    } else {
    }
    return
  }
  func.func @transform_0(%arg0: i32, %arg1: i32, %arg2: i32) -> (i32, i32) {
    %c0_i32 = arith.constant 0 : i32
    return %arg0, %arg2 : i32, i32
  }
  func.func @transform_1(%arg0: i32, %arg1: i32, %arg2: i32) -> (i32, i32) {
    %c0_i32 = arith.constant 0 : i32
    return %arg2, %arg1 : i32, i32
  }
  func.func @transform_2(%arg0: i32, %arg1: i32, %arg2: i32) -> (i32, i32) {
    %c0_i32 = arith.constant 0 : i32
    %c0_i32_0 = arith.constant 0 : i32
    return %c0_i32, %arg1 : i32, i32
  }
  func.func @transform_3(%arg0: i32, %arg1: i32, %arg2: i32) -> (i32, i32) {
    %c0_i32 = arith.constant 0 : i32
    return %arg0, %arg1 : i32, i32
  }
}

</mosaic_0001>

<bundles_post_ra>
// kernel: sketch_translator_forward.56
= control target key start
LH: loop header
LB: loop body
LE: loop exit
PB: predicated region body
PF: predicated region fallthrough
CT: control target
= control target key end

     0   :  { %s383_s6 = smov 0   ;;  %s385_s7 = smov 0   ;;  %s423_s0 = inlined_call_operand.vmem [shape: f32[2,64,128], index: 0, kind: input, shape index: {}]   ;;  %s424_s1 = inlined_call_operand.vmem [shape: f32[2,64,128], index: 1, kind: output, shape index: {}]  }
   0x1   :  { %s387_s8 = smov 0  }
   0x2 LB: > { %s23_s9 = sadd.s32 1, %s367_s7  ;;  %p314_p0 = scmp.ge.s32.totalorder %s371_s8, 1  ;;  %s371_s8 = sphi %s387_s8, %s11_s8   ;;  %s367_s7 = sphi %s385_s7, %s426_s7   ;;  %s363_s6 = sphi %s383_s6, %s425_s6  }
   0x3   : > { %p25_p1 = scmp.ge.s32.totalorder %s23_s9, 2  ;;  %p106_p2 = scmp.lt.s32.totalorder %s371_s8, 3 }
   0x5   : > { %s428_s9 = smov (%p25_p1, %s23_s9), 0  ;;  %p107_p3 = pnand %p314_p0, %p106_p2 }
   0x6   : > { %p132_p4 = scmp.lt.s32.totalorder (!%p107_p3), %s363_s6, 1 }
   0x7   : > { %110 = sbr.rel (%p107_p3) target bundleno = 99 (0x63), region = 24 }
   0xe   : > { %s430_s6 = smov (!%p132_p4, %s363_s6), 1 }
   0xf   : > { %s321_s10 = sshll.u32 %s430_s6, 6 }
  0x10   : > { %s139_s13 = scalar_lea.vmem %s423_s0, %s321_s10  ;;  %s147_s16 = scalar_lea.vmem %s424_s1, %s321_s10 }
  0x11   : > { %v148_v0 = vld [vmem:[%s139_s13] sm:$0xff]  ;;  %v149_v1 = vld [vmem:[%s139_s13 + $0x8] sm:$0xff]  ;;  %v150_v2 = vld [vmem:[%s139_s13 + $0x10] sm:$0xff] }
  0x12   : > { %v156_v3 = vadd.f32 %v149_v1, %v148_v0  ;;  %v151_v4 = vld [vmem:[%s139_s13 + $0x18] sm:$0xff]  ;;  %v152_v6 = vld [vmem:[%s139_s13 + $0x20] sm:$0xff]  ;;  %v153_v8 = vld [vmem:[%s139_s13 + $0x28] sm:$0xff] }
  0x13   : > { %v154_v10 = vld [vmem:[%s139_s13 + $0x30] sm:$0xff]  ;;  %v155_v12 = vld [vmem:[%s139_s13 + $0x38] sm:$0xff] }
  0x14   : > { %v157_v5 = vadd.f32 %v156_v3, %v150_v2 }
  0x16   : > { %v158_v7 = vadd.f32 %v157_v5, %v151_v4 }
  0x18   : > { %v159_v9 = vadd.f32 %v158_v7, %v152_v6 }
  0x1a   : > { %v160_v11 = vadd.f32 %v159_v9, %v153_v8 }
  0x1c   : > { %v161_v13 = vadd.f32 %v160_v11, %v154_v10 }
  0x1e   : > { %v162_v14 = vadd.f32 %v161_v13, %v155_v12 }
  0x20   : > { %v163_v15 = vrot.slane %v162_v14, 4 }
  0x22   : > { %v164_v16 = vadd.f32 %v163_v15, %v162_v14 }
  0x24   : > { %v165_v17 = vrot.slane %v164_v16, 2 }
  0x26   : > { %v166_v18 = vadd.f32 %v165_v17, %v164_v16 }
  0x28   : > { %v167_v19 = vrot.slane %v166_v18, 1 }
  0x2a   : > { %v168_v20 = vadd.f32 %v167_v19, %v166_v18 }
  0x2c   : > { %v170_v21 = vmul.f32 0.015625, %v168_v20 }
  0x2e   : > { %v171_v22 = vsub.f32 %v148_v0, %v170_v21  ;;  %v172_v23 = vsub.f32 %v149_v1, %v170_v21  ;;  %v173_v24 = vsub.f32 %v150_v2, %v170_v21  ;;  %v174_v25 = vsub.f32 %v151_v4, %v170_v21 }
  0x2f   : > { %v175_v26 = vsub.f32 %v152_v6, %v170_v21  ;;  %v176_v30 = vsub.f32 %v153_v8, %v170_v21  ;;  %v177_v33 = vsub.f32 %v154_v10, %v170_v21  ;;  %v178_v36 = vsub.f32 %v155_v12, %v170_v21 }
  0x30   : > { %v179_v27 = vmul.f32 %v171_v22, %v171_v22  ;;  %v180_v28 = vmul.f32 %v172_v23, %v172_v23  ;;  %v181_v29 = vmul.f32 %v173_v24, %v173_v24  ;;  %v182_v31 = vmul.f32 %v174_v25, %v174_v25 }
  0x31   : > { %v183_v34 = vmul.f32 %v175_v26, %v175_v26  ;;  %v184_v37 = vmul.f32 %v176_v30, %v176_v30  ;;  %v185_v39 = vmul.f32 %v177_v33, %v177_v33  ;;  %v186_v41 = vmul.f32 %v178_v36, %v178_v36 }
  0x32   : > { %v187_v32 = vadd.f32 %v180_v28, %v179_v27 }
  0x34   : > { %v188_v35 = vadd.f32 %v187_v32, %v181_v29 }
  0x36   : > { %v189_v38 = vadd.f32 %v188_v35, %v182_v31 }
  0x38   : > { %v190_v40 = vadd.f32 %v189_v38, %v183_v34 }
  0x3a   : > { %v191_v42 = vadd.f32 %v190_v40, %v184_v37 }
  0x3c   : > { %v192_v43 = vadd.f32 %v191_v42, %v185_v39 }
  0x3e   : > { %v193_v44 = vadd.f32 %v192_v43, %v186_v41 }
  0x40   : > { %v194_v45 = vrot.slane %v193_v44, 4 }
  0x42   : > { %v195_v46 = vadd.f32 %v194_v45, %v193_v44 }
  0x44   : > { %v196_v47 = vrot.slane %v195_v46, 2 }
  0x46   : > { %v197_v48 = vadd.f32 %v196_v47, %v195_v46 }
  0x48   : > { %v198_v49 = vrot.slane %v197_v48, 1 }
  0x4a   : > { %v199_v50 = vadd.f32 %v198_v49, %v197_v48 }
  0x4c   : > { %v200_v51 = vmul.f32 0.015625, %v199_v50 }
  0x4e   : > { %v201_v52 = vadd.f32 1e-05, %v200_v51 }
  0x50   : > { %347 = vrsqrt.f32 %v201_v52 }
  0x5a   : > { %v348_v53 = vpop.eup %347 }
  0x5b   : > { %v203_v54 = vmul.f32 %v348_v53, %v171_v22  ;;  %v204_v55 = vmul.f32 %v348_v53, %v172_v23  ;;  %v205_v56 = vmul.f32 %v348_v53, %v173_v24  ;;  %v206_v57 = vmul.f32 %v348_v53, %v174_v25 }
  0x5c   : > { %v207_v58 = vmul.f32 %v348_v53, %v175_v26  ;;  %v208_v59 = vmul.f32 %v348_v53, %v176_v30  ;;  %v209_v60 = vmul.f32 %v348_v53, %v177_v33  ;;  %v210_v61 = vmul.f32 %v348_v53, %v178_v36 }
  0x5d   : > { %v211_v62 = vmax.f32 %v203_v54, 0.0  ;;  %v212_v63 = vmax.f32 %v204_v55, 0.0  ;;  %v213_v0 = vmax.f32 %v205_v56, 0.0  ;;  %v214_v1 = vmax.f32 %v206_v57, 0.0 }
  0x5e   : > { %v215_v2 = vmax.f32 %v207_v58, 0.0  ;;  %v216_v3 = vmax.f32 %v208_v59, 0.0  ;;  %v217_v4 = vmax.f32 %v209_v60, 0.0  ;;  %v218_v5 = vmax.f32 %v210_v61, 0.0 }
  0x5f   : > { %219 = vst [vmem:[%s147_s16] sm:$0xff] %v211_v62  ;;  %220 = vst [vmem:[%s147_s16 + $0x8] sm:$0xff] %v212_v63 }
  0x60   : > { %221 = vst [vmem:[%s147_s16 + $0x10] sm:$0xff] %v213_v0  ;;  %222 = vst [vmem:[%s147_s16 + $0x18] sm:$0xff] %v214_v1 }
  0x61   : > { %223 = vst [vmem:[%s147_s16 + $0x20] sm:$0xff] %v215_v2  ;;  %224 = vst [vmem:[%s147_s16 + $0x28] sm:$0xff] %v216_v3 }
  0x62   : > { %225 = vst [vmem:[%s147_s16 + $0x30] sm:$0xff] %v217_v4  ;;  %226 = vst [vmem:[%s147_s16 + $0x38] sm:$0xff] %v218_v5 }
  0x63 PF: > { %s11_s8 = sadd.s32 1, %s371_s8   ;;  %s425_s6 = smov %s367_s7 }
  0x64   : > { %p8_p5 = scmp.ge.s32.totalorder %s11_s8, 4   ;;  %s426_s7 = smov %s428_s9 }
  0x66   :  { %10 = sbr.rel (!%p8_p5) target bundleno = 2 (0x2), region = 54 }

// kernel: sketch_translator_forward.54
= control target key start
LH: loop header
LB: loop body
LE: loop exit
PB: predicated region body
PF: predicated region fallthrough
CT: control target
= control target key end

     0   :  { %s575_s6 = smov 0   ;;  %s577_s7 = smov 0   ;;  %s1039_s0 = inlined_call_operand.vmem [shape: f32[2,256,128], index: 0, kind: input, shape index: {}]   ;;  %s1040_s1 = inlined_call_operand.vmem [shape: f32[2,256,128], index: 1, kind: output, shape index: {}]  }
   0x1   :  { %s579_s8 = smov 0  }
   0x2 LB: > { %s23_s9 = sadd.s32 1, %s559_s7  ;;  %p506_p0 = scmp.ge.s32.totalorder %s563_s8, 1  ;;  %s563_s8 = sphi %s579_s8, %s11_s8   ;;  %s559_s7 = sphi %s577_s7, %s1042_s7   ;;  %s555_s6 = sphi %s575_s6, %s1041_s6  }
   0x3   : > { %p25_p1 = scmp.ge.s32.totalorder %s23_s9, 2  ;;  %p106_p2 = scmp.lt.s32.totalorder %s563_s8, 3 }
   0x5   : > { %s1044_s9 = smov (%p25_p1, %s23_s9), 0  ;;  %p107_p3 = pnand %p506_p0, %p106_p2 }
   0x6   : > { %p132_p4 = scmp.lt.s32.totalorder (!%p107_p3), %s555_s6, 1 }
   0x7   : > { %110 = sbr.rel (%p107_p3) target bundleno = 208 (0xd0), region = 24 }
   0xe   : > { %s1046_s6 = smov (!%p132_p4, %s555_s6), 1 }
   0xf   : > { %s513_s10 = sshll.u32 %s1046_s6, 8 }
  0x10   : > { %s601_s13 = scalar_lea.vmem %s1039_s0, %s513_s10  ;;  %s940_s16 = scalar_lea.vmem %s1040_s1, %s513_s10 }
  0x11   : > { %v604_v0 = vld [vmem:[%s601_s13] sm:$0xff]  ;;  %v607_v1 = vld [vmem:[%s601_s13 + $0x8] sm:$0xff]  ;;  %v610_v2 = vld [vmem:[%s601_s13 + $0x10] sm:$0xff] }
  0x12   : > { %v180_v3 = vadd.f32 %v607_v1, %v604_v0  ;;  %v615_v4 = vld [vmem:[%s601_s13 + $0x18] sm:$0xff]  ;;  %v619_v6 = vld [vmem:[%s601_s13 + $0x20] sm:$0xff]  ;;  %v623_v8 = vld [vmem:[%s601_s13 + $0x28] sm:$0xff] }
  0x13   : > { %v627_v10 = vld [vmem:[%s601_s13 + $0x30] sm:$0xff]  ;;  %v631_v12 = vld [vmem:[%s601_s13 + $0x38] sm:$0xff]  ;;  %v635_v14 = vld [vmem:[%s601_s13 + $0x40] sm:$0xff] }
  0x14   : > { %v181_v5 = vadd.f32 %v180_v3, %v610_v2  ;;  %v639_v16 = vld [vmem:[%s601_s13 + $0x48] sm:$0xff]  ;;  %v643_v18 = vld [vmem:[%s601_s13 + $0x50] sm:$0xff]  ;;  %v647_v20 = vld [vmem:[%s601_s13 + $0x58] sm:$0xff] }
  0x15   : > { %v651_v22 = vld [vmem:[%s601_s13 + $0x60] sm:$0xff]  ;;  %v655_v24 = vld [vmem:[%s601_s13 + $0x68] sm:$0xff]  ;;  %v659_v26 = vld [vmem:[%s601_s13 + $0x70] sm:$0xff] }
  0x16   : > { %v182_v7 = vadd.f32 %v181_v5, %v615_v4  ;;  %v663_v28 = vld [vmem:[%s601_s13 + $0x78] sm:$0xff]  ;;  %v667_v30 = vld [vmem:[%s601_s13 + $0x80] sm:$0xff]  ;;  %v671_v32 = vld [vmem:[%s601_s13 + $0x88] sm:$0xff] }
  0x17   : > { %v675_v34 = vld [vmem:[%s601_s13 + $0x90] sm:$0xff]  ;;  %v679_v36 = vld [vmem:[%s601_s13 + $0x98] sm:$0xff]  ;;  %v683_v38 = vld [vmem:[%s601_s13 + $0xa0] sm:$0xff] }
  0x18   : > { %v183_v9 = vadd.f32 %v182_v7, %v619_v6  ;;  %v687_v40 = vld [vmem:[%s601_s13 + $0xa8] sm:$0xff]  ;;  %v691_v42 = vld [vmem:[%s601_s13 + $0xb0] sm:$0xff]  ;;  %v695_v44 = vld [vmem:[%s601_s13 + $0xb8] sm:$0xff] }
  0x19   : > { %v699_v46 = vld [vmem:[%s601_s13 + $0xc0] sm:$0xff]  ;;  %v703_v48 = vld [vmem:[%s601_s13 + $0xc8] sm:$0xff]  ;;  %v707_v50 = vld [vmem:[%s601_s13 + $0xd0] sm:$0xff] }
  0x1a   : > { %v184_v11 = vadd.f32 %v183_v9, %v623_v8  ;;  %v711_v52 = vld [vmem:[%s601_s13 + $0xd8] sm:$0xff]  ;;  %v715_v54 = vld [vmem:[%s601_s13 + $0xe0] sm:$0xff]  ;;  %v719_v56 = vld [vmem:[%s601_s13 + $0xe8] sm:$0xff] }
  0x1b   : > { %v723_v58 = vld [vmem:[%s601_s13 + $0xf0] sm:$0xff]  ;;  %v727_v60 = vld [vmem:[%s601_s13 + $0xf8] sm:$0xff] }
  0x1c   : > { %v185_v13 = vadd.f32 %v184_v11, %v627_v10 }
  0x1e   : > { %v186_v15 = vadd.f32 %v185_v13, %v631_v12 }
  0x20   : > { %v187_v17 = vadd.f32 %v186_v15, %v635_v14 }
  0x22   : > { %v188_v19 = vadd.f32 %v187_v17, %v639_v16 }
  0x24   : > { %v189_v21 = vadd.f32 %v188_v19, %v643_v18 }
  0x26   : > { %v190_v23 = vadd.f32 %v189_v21, %v647_v20 }
  0x28   : > { %v191_v25 = vadd.f32 %v190_v23, %v651_v22 }
  0x2a   : > { %v192_v27 = vadd.f32 %v191_v25, %v655_v24 }
  0x2c   : > { %v193_v29 = vadd.f32 %v192_v27, %v659_v26 }
  0x2e   : > { %v194_v31 = vadd.f32 %v193_v29, %v663_v28 }
  0x30   : > { %v195_v33 = vadd.f32 %v194_v31, %v667_v30 }
  0x32   : > { %v196_v35 = vadd.f32 %v195_v33, %v671_v32 }
  0x34   : > { %v197_v37 = vadd.f32 %v196_v35, %v675_v34 }
  0x36   : > { %v198_v39 = vadd.f32 %v197_v37, %v679_v36 }
  0x38   : > { %v199_v41 = vadd.f32 %v198_v39, %v683_v38 }
  0x3a   : > { %v200_v43 = vadd.f32 %v199_v41, %v687_v40 }
  0x3c   : > { %v201_v45 = vadd.f32 %v200_v43, %v691_v42 }
  0x3e   : > { %v202_v47 = vadd.f32 %v201_v45, %v695_v44 }
  0x40   : > { %v203_v49 = vadd.f32 %v202_v47, %v699_v46 }
  0x42   : > { %v204_v51 = vadd.f32 %v203_v49, %v703_v48 }
  0x44   : > { %v205_v53 = vadd.f32 %v204_v51, %v707_v50 }
  0x46   : > { %v206_v55 = vadd.f32 %v205_v53, %v711_v52 }
  0x48   : > { %v207_v57 = vadd.f32 %v206_v55, %v715_v54 }
  0x4a   : > { %v208_v59 = vadd.f32 %v207_v57, %v719_v56 }
  0x4c   : > { %v209_v61 = vadd.f32 %v208_v59, %v723_v58 }
  0x4e   : > { %v210_v62 = vadd.f32 %v209_v61, %v727_v60 }
  0x50   : > { %v211_v63 = vrot.slane %v210_v62, 4 }
  0x52   : > { %v212_v3 = vadd.f32 %v211_v63, %v210_v62 }
  0x54   : > { %v213_v5 = vrot.slane %v212_v3, 2 }
  0x56   : > { %v214_v7 = vadd.f32 %v213_v5, %v212_v3 }
  0x58   : > { %v215_v9 = vrot.slane %v214_v7, 1 }
  0x5a   : > { %v216_v11 = vadd.f32 %v215_v9, %v214_v7 }
  0x5c   : > { %v731_v13 = vmul.f32 0.00390625, %v216_v11 }
  0x5e   : > { %v735_v15 = vsub.f32 %v604_v0, %v731_v13  ;;  %v739_v17 = vsub.f32 %v607_v1, %v731_v13  ;;  %v743_v19 = vsub.f32 %v610_v2, %v731_v13  ;;  %v747_v21 = vsub.f32 %v615_v4, %v731_v13 }
  0x5f   : > { %v755_v0 = vsub.f32 %v619_v6, %v731_v13  ;;  %v761_v2 = vsub.f32 %v623_v8, %v731_v13  ;;  %v767_v29 = vsub.f32 %v627_v10, %v731_v13  ;;  %v773_v33 = vsub.f32 %v631_v12, %v731_v13 }
  0x60   : > { %v251_v23 = vmul.f32 %v735_v15, %v735_v15  ;;  %v252_v25 = vmul.f32 %v739_v17, %v739_v17  ;;  %v253_v1 = vmul.f32 %v743_v19, %v743_v19  ;;  %v254_v4 = vmul.f32 %v747_v21, %v747_v21 }
  0x61   : > { %v255_v31 = vmul.f32 %v755_v0, %v755_v0  ;;  %v256_v8 = vmul.f32 %v761_v2, %v761_v2  ;;  %v779_v37 = vsub.f32 %v635_v14, %v731_v13  ;;  %v257_v10 = vmul.f32 %v767_v29, %v767_v29 }
  0x62   : > { %v283_v27 = vadd.f32 %v252_v25, %v251_v23  ;;  %v785_v41 = vsub.f32 %v639_v16, %v731_v13  ;;  %v258_v12 = vmul.f32 %v773_v33, %v773_v33  ;;  %v791_v45 = vsub.f32 %v643_v18, %v731_v13 }
  0x63   : > { %v259_v14 = vmul.f32 %v779_v37, %v779_v37  ;;  %v797_v49 = vsub.f32 %v647_v20, %v731_v13  ;;  %v803_v53 = vsub.f32 %v651_v22, %v731_v13  ;;  %v809_v57 = vsub.f32 %v655_v24, %v731_v13 }
  0x64   : > { %v284_v6 = vadd.f32 %v283_v27, %v253_v1  ;;  %v260_v16 = vmul.f32 %v785_v41, %v785_v41  ;;  %v261_v18 = vmul.f32 %v791_v45, %v791_v45  ;;  %v815_v61 = vsub.f32 %v659_v26, %v731_v13 }
  0x65   : > { %v262_v20 = vmul.f32 %v797_v49, %v797_v49  ;;  %v263_v22 = vmul.f32 %v803_v53, %v803_v53  ;;  %v821_v63 = vsub.f32 %v663_v28, %v731_v13  ;;  %v264_v24 = vmul.f32 %v809_v57, %v809_v57 }
  0x66   : > { %v285_v35 = vadd.f32 %v284_v6, %v254_v4  ;;  %v827_v5 = vsub.f32 %v667_v30, %v731_v13  ;;  %v265_v26 = vmul.f32 %v815_v61, %v815_v61  ;;  %v833_v9 = vsub.f32 %v671_v32, %v731_v13 }
  0x67   : > { %v266_v28 = vmul.f32 %v821_v63, %v821_v63  ;;  %v839_v23 = vsub.f32 %v675_v34, %v731_v13  ;;  %v845_v1 = vsub.f32 %v679_v36, %v731_v13  ;;  %v851_v27 = vsub.f32 %v683_v38, %v731_v13 }
  0x68   : > { %v286_v39 = vadd.f32 %v285_v35, %v255_v31  ;;  %v267_v30 = vmul.f32 %v827_v5, %v827_v5  ;;  %v268_v32 = vmul.f32 %v833_v9, %v833_v9  ;;  %v857_v6 = vsub.f32 %v687_v40, %v731_v13 }
  0x69   : > { %v269_v34 = vmul.f32 %v839_v23, %v839_v23  ;;  %v270_v36 = vmul.f32 %v845_v1, %v845_v1  ;;  %v863_v35 = vsub.f32 %v691_v42, %v731_v13  ;;  %v271_v38 = vmul.f32 %v851_v27, %v851_v27 }
  0x6a   : > { %v287_v43 = vadd.f32 %v286_v39, %v256_v8  ;;  %v869_v39 = vsub.f32 %v695_v44, %v731_v13  ;;  %v272_v40 = vmul.f32 %v857_v6, %v857_v6 }
  0x6b   : > { %v273_v42 = vmul.f32 %v863_v35, %v863_v35 }
  0x6c   : > { %v288_v47 = vadd.f32 %v287_v43, %v257_v10  ;;  %v875_v43 = vsub.f32 %v699_v46, %v731_v13  ;;  %v274_v44 = vmul.f32 %v869_v39, %v869_v39 }
  0x6e   : > { %v289_v51 = vadd.f32 %v288_v47, %v258_v12  ;;  %v881_v47 = vsub.f32 %v703_v48, %v731_v13  ;;  %v275_v46 = vmul.f32 %v875_v43, %v875_v43 }
  0x70   : > { %v290_v55 = vadd.f32 %v289_v51, %v259_v14  ;;  %v887_v51 = vsub.f32 %v707_v50, %v731_v13  ;;  %v276_v48 = vmul.f32 %v881_v47, %v881_v47 }
  0x72   : > { %v291_v59 = vadd.f32 %v290_v55, %v260_v16  ;;  %v893_v55 = vsub.f32 %v711_v52, %v731_v13  ;;  %v277_v50 = vmul.f32 %v887_v51, %v887_v51 }
  0x74   : > { %v292_v62 = vadd.f32 %v291_v59, %v261_v18  ;;  %v899_v59 = vsub.f32 %v715_v54, %v731_v13  ;;  %v278_v52 = vmul.f32 %v893_v55, %v893_v55 }
  0x76   : > { %v293_v3 = vadd.f32 %v292_v62, %v262_v20  ;;  %v905_v62 = vsub.f32 %v719_v56, %v731_v13  ;;  %v279_v54 = vmul.f32 %v899_v59, %v899_v59 }
  0x78   : > { %v294_v7 = vadd.f32 %v293_v3, %v263_v22  ;;  %v911_v3 = vsub.f32 %v723_v58, %v731_v13  ;;  %v280_v56 = vmul.f32 %v905_v62, %v905_v62 }
  0x7a   : > { %v295_v11 = vadd.f32 %v294_v7, %v264_v24  ;;  %v917_v7 = vsub.f32 %v727_v60, %v731_v13 }
  0x7c   : > { %v296_v25 = vadd.f32 %v295_v11, %v265_v26  ;;  %v281_v11 = vmul.f32 %v911_v3, %v911_v3  ;;  %v282_v58 = vmul.f32 %v917_v7, %v917_v7 }
  0x7e   : > { %v297_v4 = vadd.f32 %v296_v25, %v266_v28 }
  0x80   : > { %v298_v31 = vadd.f32 %v297_v4, %v267_v30 }
  0x82   : > { %v299_v8 = vadd.f32 %v298_v31, %v268_v32 }
  0x84   : > { %v300_v10 = vadd.f32 %v299_v8, %v269_v34 }
  0x86   : > { %v301_v12 = vadd.f32 %v300_v10, %v270_v36 }
  0x88   : > { %v302_v14 = vadd.f32 %v301_v12, %v271_v38 }
  0x8a   : > { %v303_v16 = vadd.f32 %v302_v14, %v272_v40 }
  0x8c   : > { %v304_v18 = vadd.f32 %v303_v16, %v273_v42 }
  0x8e   : > { %v305_v20 = vadd.f32 %v304_v18, %v274_v44 }
  0x90   : > { %v306_v22 = vadd.f32 %v305_v20, %v275_v46 }
  0x92   : > { %v307_v24 = vadd.f32 %v306_v22, %v276_v48 }
  0x94   : > { %v308_v26 = vadd.f32 %v307_v24, %v277_v50 }
  0x96   : > { %v309_v28 = vadd.f32 %v308_v26, %v278_v52 }
  0x98   : > { %v310_v30 = vadd.f32 %v309_v28, %v279_v54 }
  0x9a   : > { %v311_v25 = vadd.f32 %v310_v30, %v280_v56 }
  0x9c   : > { %v312_v32 = vadd.f32 %v311_v25, %v281_v11 }
  0x9e   : > { %v313_v4 = vadd.f32 %v312_v32, %v282_v58 }
  0xa0   : > { %v314_v34 = vrot.slane %v313_v4, 4 }
  0xa2   : > { %v315_v31 = vadd.f32 %v314_v34, %v313_v4 }
  0xa4   : > { %v316_v36 = vrot.slane %v315_v31, 2 }
  0xa6   : > { %v317_v60 = vadd.f32 %v316_v36, %v315_v31 }
  0xa8   : > { %v318_v13 = vrot.slane %v317_v60, 1 }
  0xaa   : > { %v319_v8 = vadd.f32 %v318_v13, %v317_v60 }
  0xac   : > { %v320_v38 = vmul.f32 0.00390625, %v319_v8 }
  0xae   : > { %v321_v10 = vadd.f32 1e-05, %v320_v38 }
  0xb0   : > { %539 = vrsqrt.f32 %v321_v10 }
  0xba   : > { %v925_v40 = vpop.eup %539 }
  0xbb   : > { %v323_v12 = vmul.f32 %v925_v40, %v735_v15  ;;  %v324_v42 = vmul.f32 %v925_v40, %v739_v17  ;;  %v325_v14 = vmul.f32 %v925_v40, %v743_v19  ;;  %v326_v44 = vmul.f32 %v925_v40, %v747_v21 }
  0xbc   : > { %v327_v15 = vmul.f32 %v925_v40, %v755_v0  ;;  %v328_v17 = vmul.f32 %v925_v40, %v761_v2  ;;  %v329_v19 = vmul.f32 %v925_v40, %v767_v29  ;;  %v330_v21 = vmul.f32 %v925_v40, %v773_v33 }
  0xbd   : > { %v355_v16 = vmax.f32 %v323_v12, 0.0  ;;  %v356_v46 = vmax.f32 %v324_v42, 0.0  ;;  %v357_v18 = vmax.f32 %v325_v14, 0.0  ;;  %v358_v48 = vmax.f32 %v326_v44, 0.0 }
  0xbe   : > { %v359_v20 = vmax.f32 %v327_v15, 0.0  ;;  %v360_v50 = vmax.f32 %v328_v17, 0.0  ;;  %v361_v0 = vmax.f32 %v329_v19, 0.0  ;;  %v362_v22 = vmax.f32 %v330_v21, 0.0 }
  0xbf   : > { %387 = vst [vmem:[%s940_s16] sm:$0xff] %v355_v16  ;;  %388 = vst [vmem:[%s940_s16 + $0x8] sm:$0xff] %v356_v46  ;;  %v331_v2 = vmul.f32 %v925_v40, %v779_v37  ;;  %v332_v29 = vmul.f32 %v925_v40, %v785_v41  ;;  %v333_v33 = vmul.f32 %v925_v40, %v791_v45 }
  0xc0   : > { %389 = vst [vmem:[%s940_s16 + $0x10] sm:$0xff] %v357_v18  ;;  %390 = vst [vmem:[%s940_s16 + $0x18] sm:$0xff] %v358_v48  ;;  %v334_v52 = vmul.f32 %v925_v40, %v797_v49  ;;  %v335_v37 = vmul.f32 %v925_v40, %v803_v53  ;;  %v336_v41 = vmul.f32 %v925_v40, %v809_v57 }
  0xc1   : > { %391 = vst [vmem:[%s940_s16 + $0x20] sm:$0xff] %v359_v20  ;;  %392 = vst [vmem:[%s940_s16 + $0x28] sm:$0xff] %v360_v50  ;;  %v337_v45 = vmul.f32 %v925_v40, %v815_v61  ;;  %v338_v49 = vmul.f32 %v925_v40, %v821_v63  ;;  %v363_v24 = vmax.f32 %v331_v2, 0.0  ;;  %v364_v54 = vmax.f32 %v332_v29, 0.0 }
  0xc2   : > { %393 = vst [vmem:[%s940_s16 + $0x30] sm:$0xff] %v361_v0  ;;  %394 = vst [vmem:[%s940_s16 + $0x38] sm:$0xff] %v362_v22  ;;  %v365_v26 = vmax.f32 %v333_v33, 0.0  ;;  %v366_v56 = vmax.f32 %v334_v52, 0.0  ;;  %v367_v28 = vmax.f32 %v335_v37, 0.0  ;;  %v368_v11 = vmax.f32 %v336_v41, 0.0 }
  0xc3   : > { %v369_v53 = vmax.f32 %v337_v45, 0.0  ;;  %v370_v30 = vmax.f32 %v338_v49, 0.0  ;;  %395 = vst [vmem:[%s940_s16 + $0x40] sm:$0xff] %v363_v24  ;;  %396 = vst [vmem:[%s940_s16 + $0x48] sm:$0xff] %v364_v54  ;;  %v339_v57 = vmul.f32 %v925_v40, %v827_v5  ;;  %v340_v61 = vmul.f32 %v925_v40, %v833_v9 }
  0xc4   : > { %397 = vst [vmem:[%s940_s16 + $0x50] sm:$0xff] %v365_v26  ;;  %398 = vst [vmem:[%s940_s16 + $0x58] sm:$0xff] %v366_v56  ;;  %v341_v63 = vmul.f32 %v925_v40, %v839_v23  ;;  %v342_v58 = vmul.f32 %v925_v40, %v845_v1  ;;  %v343_v5 = vmul.f32 %v925_v40, %v851_v27 }
  0xc5   : > { %399 = vst [vmem:[%s940_s16 + $0x60] sm:$0xff] %v367_v28  ;;  %400 = vst [vmem:[%s940_s16 + $0x68] sm:$0xff] %v368_v11  ;;  %v344_v9 = vmul.f32 %v925_v40, %v857_v6  ;;  %v345_v23 = vmul.f32 %v925_v40, %v863_v35  ;;  %v346_v1 = vmul.f32 %v925_v40, %v869_v39  ;;  %v371_v25 = vmax.f32 %v339_v57, 0.0 }
  0xc6   : > { %401 = vst [vmem:[%s940_s16 + $0x70] sm:$0xff] %v369_v53  ;;  %402 = vst [vmem:[%s940_s16 + $0x78] sm:$0xff] %v370_v30  ;;  %v372_v32 = vmax.f32 %v340_v61, 0.0  ;;  %v373_v4 = vmax.f32 %v341_v63, 0.0  ;;  %v374_v34 = vmax.f32 %v342_v58, 0.0  ;;  %v375_v31 = vmax.f32 %v343_v5, 0.0 }
  0xc7   : > { %v376_v36 = vmax.f32 %v344_v9, 0.0  ;;  %v377_v27 = vmax.f32 %v345_v23, 0.0  ;;  %v378_v60 = vmax.f32 %v346_v1, 0.0  ;;  %403 = vst [vmem:[%s940_s16 + $0x80] sm:$0xff] %v371_v25  ;;  %v347_v6 = vmul.f32 %v925_v40, %v875_v43 }
  0xc8   : > { %404 = vst [vmem:[%s940_s16 + $0x88] sm:$0xff] %v372_v32  ;;  %405 = vst [vmem:[%s940_s16 + $0x90] sm:$0xff] %v373_v4  ;;  %v348_v35 = vmul.f32 %v925_v40, %v881_v47  ;;  %v349_v39 = vmul.f32 %v925_v40, %v887_v51  ;;  %v350_v13 = vmul.f32 %v925_v40, %v893_v55 }
  0xc9   : > { %406 = vst [vmem:[%s940_s16 + $0x98] sm:$0xff] %v374_v34  ;;  %407 = vst [vmem:[%s940_s16 + $0xa0] sm:$0xff] %v375_v31  ;;  %v351_v43 = vmul.f32 %v925_v40, %v899_v59  ;;  %v352_v47 = vmul.f32 %v925_v40, %v905_v62  ;;  %v353_v51 = vmul.f32 %v925_v40, %v911_v3  ;;  %v379_v8 = vmax.f32 %v347_v6, 0.0 }
  0xca   : > { %408 = vst [vmem:[%s940_s16 + $0xa8] sm:$0xff] %v376_v36  ;;  %409 = vst [vmem:[%s940_s16 + $0xb0] sm:$0xff] %v377_v27  ;;  %v354_v55 = vmul.f32 %v925_v40, %v917_v7  ;;  %v380_v38 = vmax.f32 %v348_v35, 0.0  ;;  %v381_v10 = vmax.f32 %v349_v39, 0.0  ;;  %v382_v12 = vmax.f32 %v350_v13, 0.0 }
  0xcb   : > { %410 = vst [vmem:[%s940_s16 + $0xb8] sm:$0xff] %v378_v60  ;;  %v383_v42 = vmax.f32 %v351_v43, 0.0  ;;  %v384_v14 = vmax.f32 %v352_v47, 0.0  ;;  %v385_v59 = vmax.f32 %v353_v51, 0.0  ;;  %411 = vst [vmem:[%s940_s16 + $0xc0] sm:$0xff] %v379_v8 }
  0xcc   : > { %v386_v44 = vmax.f32 %v354_v55, 0.0  ;;  %412 = vst [vmem:[%s940_s16 + $0xc8] sm:$0xff] %v380_v38  ;;  %413 = vst [vmem:[%s940_s16 + $0xd0] sm:$0xff] %v381_v10 }
  0xcd   : > { %414 = vst [vmem:[%s940_s16 + $0xd8] sm:$0xff] %v382_v12  ;;  %415 = vst [vmem:[%s940_s16 + $0xe0] sm:$0xff] %v383_v42 }
  0xce   : > { %416 = vst [vmem:[%s940_s16 + $0xe8] sm:$0xff] %v384_v14  ;;  %417 = vst [vmem:[%s940_s16 + $0xf0] sm:$0xff] %v385_v59 }
  0xcf   : > { %418 = vst [vmem:[%s940_s16 + $0xf8] sm:$0xff] %v386_v44 }
  0xd0 PF: > { %s11_s8 = sadd.s32 1, %s563_s8   ;;  %s1041_s6 = smov %s559_s7 }
  0xd1   : > { %p8_p5 = scmp.ge.s32.totalorder %s11_s8, 4   ;;  %s1042_s7 = smov %s1044_s9 }
  0xd3   :  { %10 = sbr.rel (!%p8_p5) target bundleno = 2 (0x2), region = 54 }

// kernel: sketch_translator_forward.53
= control target key start
LH: loop header
LB: loop body
LE: loop exit
PB: predicated region body
PF: predicated region fallthrough
CT: control target
= control target key end

     0   :  { %8 = vsyncpa [#allocation4], 0  ;;  %s1233_s12 = smov 0   ;;  %s1235_s13 = smov 0   ;;  %s1422_s0 = inlined_call_operand.vmem [shape: bf16[512,128], index: 0, kind: input, shape index: {}]   ;;  %s1423_s1 = inlined_call_operand.vmem [shape: bf16[128,128], index: 1, kind: input, shape index: {}]   ;;  %s1424_s2 = inlined_call_operand.hbm [shape: f32[1,128], index: 2, kind: input, shape index: {}]   ;;  %s1425_s3 = inlined_call_operand.vmem [shape: f32[512,128], index: 3, kind: output, shape index: {}]  }
   0x1   :  { %s1237_s14 = smov 0  }
   0x2 LB: > { %s970_s15 = sadd.s32 4294967295, %s1210_s14   ;;  %s33_s16 = sadd.s32 1, %s1206_s13  ;;  %s1210_s14 = sphi %s1237_s14, %s14_s14   ;;  %s1206_s13 = sphi %s1235_s13, %s1435_s13   ;;  %s1202_s12 = sphi %s1233_s12, %s1434_s12  }
   0x3   : > { %p35_p0 = scmp.ge.s32.totalorder %s33_s16, 2  ;;  %p972_p1 = scmp.ge.s32.totalorder %s1210_s14, 1 }
   0x4   : > { %p148_p2 = scmp.lt.s32.totalorder %s1210_s14, 3  ;;  %p1258_p4 = scmp.eq.s32.totalorder %s970_s15, 0 }
   0x5   : > { %s1437_s16 = smov (%p35_p0, %s33_s16), 0  ;;  %s1212_s19 = smov [#allocation3]  }
   0x6   : > { %p1254_p3 = pnand %p972_p1, %p148_p2  ;;  %s175_s20 = sshll.u32 %s1212_s19, 4  ;;  %s176_s20 = int_to_ptr.vmem [resolvable:$true] %s175_s20 }
   0x7   : > { %s1430_s18 = scalar_select %p1258_p4, 1, 0 }
   0x8   : > { %s1429_s17 = scalar_select %p1254_p3, 1, 0 }
   0x9   : > { %p1101_p5 = pneg %p1254_p3  ;;  %s1156_s24 = scalar_lea.hbm %s1424_s2, 16 }
   0xa   : > { %p1157_p7 = scmp.ne.s32.totalorder %s1424_s2, %s1156_s24  ;;  %p1163_p11 = scmp.lt.u32.totalorder %s1156_s24, %s1424_s2 }
   0xb   : > { %p1266_p6 = pnand %p1258_p4, %p1101_p5 }
   0xd   : > { %p1158_p8 = pneg %p1266_p6 }
   0xf   : > { %p1159_p9 = pnand %p1158_p8, %p1157_p7 }
  0x11   : > { %p1160_p10 = pneg %p1159_p9 }
  0x13   : > { %p1165_p12 = pnand %p1163_p11, %p1160_p10 }
  0x15   : > { %1168 = shalt.err (!%p1165_p12)
}
  0x16   : > { %s1169_s29 = scalar_lea.vmem %s176_s20, 16  ;;  %s1176_s30 = scalar_lea.vmem %s176_s20, 32 }
  0x17   : > { %p1170_p13 = scmp.ne.s32.totalorder %s176_s20, %s1169_s29  ;;  %p1177_p2 = scmp.lt.s32.totalorder %s176_s20, %s176_s20 }
  0x18   : > { %p1178_p5 = scmp.lt.s32.totalorder %s1176_s30, %s1169_s29 }
  0x19   : > { %p1172_p0 = pnand %p1170_p13, %p1158_p8 }
  0x1a   : > { %p1179_p4 = por %p1178_p5, %p1177_p2 }
  0x1b   : > { %p1173_p1 = pneg %p1172_p0 }
  0x1d   : > { %p1180_p3 = pnand %p1179_p4, %p1173_p1 }
  0x1f   : > { %1183 = shalt.err (!%p1180_p3)
}
  0x20   : > { %1104 = dma.hbm_to_vmem [thread:$0]  (!%p1266_p6), %s1424_s2, 16, %s176_s20, [#allocation4]  }
  0x21   : > { %p1432_p7 = scmp.ne.s32.totalorder %s1429_s17, 0 }
  0x22   : > { %p1433_p9 = scmp.ne.s32.totalorder (!%p1432_p7), %s1430_s18, 0 }
  0x23   : > { %200 = sbr.rel (%p1432_p7) target bundleno = 318 (0x13e), region = 32 }
  0x2a   : > { %1197 = dma.done.wait (%p1433_p9), [#allocation4], 16  }
  0x2b   : > { %1199 = vsyncadd (%p1433_p9), [#allocation4], 4294967280  ;;  %s978_s6 = sshll.u32 %s1202_s12, 5  ;;  %v1132_v0 = vld [vmem:[%s1423_s1] sm:$0xff]   ;;  %v1133_v1 = vld [vmem:[%s1423_s1 + $0x8] sm:$0xff]  }
  0x2c   : > { %p239_p8 = scmp.lt.s32.totalorder %s978_s6, 63  ;;  %1033 = vmatprep.subr.bf16.mxu0 %v1132_v0  ;;  %1081 = vmatprep.subr.bf16.mxu1 %v1132_v0  ;;  %v1134_v2 = vld [vmem:[%s1423_s1 + $0x10] sm:$0xff]   ;;  %v1135_v3 = vld [vmem:[%s1423_s1 + $0x18] sm:$0xff]   ;;  %v1136_v6 = vld [vmem:[%s1423_s1 + $0x20] sm:$0xff]  }
  0x2d   : > { %1034 = vmatpush3.bf16.msra.mxu0 %v1132_v0  ;;  %1089 = vmatpush3.bf16.msra.mxu1 %v1132_v0  ;;  %v1137_v7 = vld [vmem:[%s1423_s1 + $0x28] sm:$0xff]   ;;  %v1138_v8 = vld [vmem:[%s1423_s1 + $0x30] sm:$0xff]   ;;  %v1139_v9 = vld [vmem:[%s1423_s1 + $0x38] sm:$0xff]  }
  0x2e   : > { %s1439_s6 = smov (!%p239_p8, %s978_s6), 63  ;;  %1035 = vmatprep.subr.bf16.mxu0 %v1133_v1  ;;  %1082 = vmatprep.subr.bf16.mxu1 %v1133_v1  ;;  %v1342_v24 = vld [vmem:[#allocation3] ss:$0 sm:$0xff] }
  0x2f   : > { %s979_s11 = sshll.u32 %s1439_s6, 2  ;;  %s981_s30 = sshll.u32 %s1439_s6, 3 }
  0x30   : > { %s1308_s19 = scalar_lea.vmem %s1422_s0, %s979_s11  ;;  %s1347_s7 = scalar_lea.vmem %s1425_s3, %s981_s30 }
  0x31   : > { %1036 = vmatpush3.bf16.msra.mxu0 %v1133_v1  ;;  %1090 = vmatpush3.bf16.msra.mxu1 %v1133_v1  ;;  %v1140_v4 = vld [vmem:[%s1308_s19] sm:$0xff]   ;;  %v1142_v10 = vld [vmem:[%s1308_s19 + $0x8] sm:$0xff]   ;;  %v1144_v12 = vld [vmem:[%s1308_s19 + $0x10] sm:$0xff]  }
  0x32   : > { %1037 = vmatprep.subr.bf16.mxu0 %v1134_v2  ;;  %1083 = vmatprep.subr.bf16.mxu1 %v1134_v2  ;;  %v1141_v5 = vld [vmem:[%s1308_s19 + $0x40] sm:$0xff]   ;;  %v1143_v11 = vld [vmem:[%s1308_s19 + $0x48] sm:$0xff]   ;;  %v1145_v13 = vld [vmem:[%s1308_s19 + $0x50] sm:$0xff]  }
  0x33   : > { %1049 = vmatprep.mubr.bf16.mxu0 %v1140_v4  ;;  %1065 = vmatprep.mubr.bf16.mxu1 %v1141_v5  ;;  %v1146_v14 = vld [vmem:[%s1308_s19 + $0x18] sm:$0xff]   ;;  %v1148_v16 = vld [vmem:[%s1308_s19 + $0x20] sm:$0xff]   ;;  %v1150_v18 = vld [vmem:[%s1308_s19 + $0x28] sm:$0xff]  }
  0x34   : > { %v1147_v15 = vld [vmem:[%s1308_s19 + $0x58] sm:$0xff]   ;;  %v1149_v17 = vld [vmem:[%s1308_s19 + $0x60] sm:$0xff]   ;;  %v1151_v19 = vld [vmem:[%s1308_s19 + $0x68] sm:$0xff]  }
  0x35   : > { %1038 = vmatpush3.bf16.msra.mxu0 %v1134_v2  ;;  %1091 = vmatpush3.bf16.msra.mxu1 %v1134_v2  ;;  %v1152_v20 = vld [vmem:[%s1308_s19 + $0x30] sm:$0xff]   ;;  %v1154_v22 = vld [vmem:[%s1308_s19 + $0x38] sm:$0xff]  }
  0x36   : > { %1039 = vmatprep.subr.bf16.mxu0 %v1135_v3  ;;  %1084 = vmatprep.subr.bf16.mxu1 %v1135_v3  ;;  %v1153_v21 = vld [vmem:[%s1308_s19 + $0x70] sm:$0xff]   ;;  %v1155_v23 = vld [vmem:[%s1308_s19 + $0x78] sm:$0xff]  }
  0x39   : > { %1040 = vmatpush3.bf16.msra.mxu0 %v1135_v3  ;;  %1092 = vmatpush3.bf16.msra.mxu1 %v1135_v3 }
  0x3a   : > { %1041 = vmatprep.subr.bf16.mxu0 %v1136_v6  ;;  %1085 = vmatprep.subr.bf16.mxu1 %v1136_v6 }
  0x3d   : > { %1042 = vmatpush3.bf16.msra.mxu0 %v1136_v6  ;;  %1093 = vmatpush3.bf16.msra.mxu1 %v1136_v6 }
  0x3e   : > { %1043 = vmatprep.subr.bf16.mxu0 %v1137_v7  ;;  %1086 = vmatprep.subr.bf16.mxu1 %v1137_v7 }
  0x41   : > { %1044 = vmatpush3.bf16.msra.mxu0 %v1137_v7  ;;  %1094 = vmatpush3.bf16.msra.mxu1 %v1137_v7 }
  0x42   : > { %1045 = vmatprep.subr.bf16.mxu0 %v1138_v8  ;;  %1087 = vmatprep.subr.bf16.mxu1 %v1138_v8 }
  0x45   : > { %1046 = vmatpush3.bf16.msra.mxu0 %v1138_v8  ;;  %1095 = vmatpush3.bf16.msra.mxu1 %v1138_v8 }
  0x46   : > { %1047 = vmatprep.subr.bf16.mxu0 %v1139_v9  ;;  %1088 = vmatprep.subr.bf16.mxu1 %v1139_v9 }
  0x49   : > { %1048 = vmatpush3.bf16.msra.mxu0 %v1139_v9  ;;  %1096 = vmatpush3.bf16.msra.mxu1 %v1139_v9 }
  0x4c   : > { %1050 = vmatmul.mubr.bf16.vlgmr.msra.gmra.mrb[0].mxu0 %v1142_v10  ;;  %1066 = vmatmul.mubr.bf16.vlgmr.msra.gmra.mrb[0].mxu1 %v1143_v11 }
  0x4d   : > { %1053 = vmatprep.mubr.bf16.mxu0 %v1144_v12  ;;  %1069 = vmatprep.mubr.bf16.mxu1 %v1145_v13 }
  0x54   : > { %1054 = vmatmul.mubr.bf16.gmra.mrb[4].mxu0 %v1146_v14  ;;  %1070 = vmatmul.mubr.bf16.gmra.mrb[4].mxu1 %v1147_v15 }
  0x55   : > { %1057 = vmatprep.mubr.bf16.mxu0 %v1148_v16  ;;  %1073 = vmatprep.mubr.bf16.mxu1 %v1149_v17 }
  0x5c   : > { %1058 = vmatmul.mubr.bf16.gmra.mrb[8].mxu0 %v1150_v18  ;;  %1074 = vmatmul.mubr.bf16.gmra.mrb[8].mxu1 %v1151_v19 }
  0x5d   : > { %1061 = vmatprep.mubr.bf16.mxu0 %v1152_v20  ;;  %1077 = vmatprep.mubr.bf16.mxu1 %v1153_v21 }
  0x64   : > { %1062 = vmatmul.mubr.bf16.gmra.mrb[12].mxu0 %v1154_v22  ;;  %1078 = vmatmul.mubr.bf16.gmra.mrb[12].mxu1 %v1155_v23 }
 0x11f   : > { %v1051_v25 = vpop.f32.mrb[0].mxu0  ;;  %v1067_v26 = vpop.f32.mrb[0].mxu1 }
 0x120   : > { %v795_v27 = vadd.f32 %v1051_v25, %v1342_v24  ;;  %v811_v28 = vadd.f32 %v1067_v26, %v1342_v24  ;;  %v560_v29 = vpop.f32.mrb[1].mxu0  ;;  %v624_v30 = vpop.f32.mrb[1].mxu1 }
 0x121   : > { %v793_v31 = vadd.f32 %v1342_v24, %v560_v29  ;;  %v809_v32 = vadd.f32 %v1342_v24, %v624_v30  ;;  %v1052_v33 = vpop.f32.mrb[2].mxu0  ;;  %v1068_v34 = vpop.f32.mrb[2].mxu1 }
 0x122   : > { %827 = vst [vmem:[%s1347_s7 + $0x10] sm:$0xff] %v795_v27  ;;  %843 = vst [vmem:[%s1347_s7 + $0x90] sm:$0xff] %v811_v28  ;;  %v796_v35 = vadd.f32 %v1052_v33, %v1342_v24  ;;  %v812_v36 = vadd.f32 %v1068_v34, %v1342_v24  ;;  %v563_v37 = vpop.f32.mrb[3].mxu0  ;;  %v627_v38 = vpop.f32.mrb[3].mxu1 }
 0x123   : > { %825 = vst [vmem:[%s1347_s7] sm:$0xff] %v793_v31  ;;  %841 = vst [vmem:[%s1347_s7 + $0x80] sm:$0xff] %v809_v32  ;;  %v794_v39 = vadd.f32 %v1342_v24, %v563_v37  ;;  %v810_v40 = vadd.f32 %v1342_v24, %v627_v38 }
 0x124   : > { %828 = vst [vmem:[%s1347_s7 + $0x18] sm:$0xff] %v796_v35  ;;  %844 = vst [vmem:[%s1347_s7 + $0x98] sm:$0xff] %v812_v36 }
 0x125   : > { %826 = vst [vmem:[%s1347_s7 + $0x8] sm:$0xff] %v794_v39  ;;  %842 = vst [vmem:[%s1347_s7 + $0x88] sm:$0xff] %v810_v40 }
 0x127   : > { %v1055_v41 = vpop.f32.mrb[4].mxu0  ;;  %v1071_v42 = vpop.f32.mrb[4].mxu1 }
 0x128   : > { %v799_v43 = vadd.f32 %v1055_v41, %v1342_v24  ;;  %v815_v44 = vadd.f32 %v1071_v42, %v1342_v24  ;;  %v576_v45 = vpop.f32.mrb[5].mxu0  ;;  %v640_v46 = vpop.f32.mrb[5].mxu1 }
 0x129   : > { %v797_v47 = vadd.f32 %v1342_v24, %v576_v45  ;;  %v813_v48 = vadd.f32 %v1342_v24, %v640_v46  ;;  %v1056_v49 = vpop.f32.mrb[6].mxu0  ;;  %v1072_v50 = vpop.f32.mrb[6].mxu1 }
 0x12a   : > { %831 = vst [vmem:[%s1347_s7 + $0x30] sm:$0xff] %v799_v43  ;;  %847 = vst [vmem:[%s1347_s7 + $0xb0] sm:$0xff] %v815_v44  ;;  %v800_v51 = vadd.f32 %v1056_v49, %v1342_v24  ;;  %v816_v52 = vadd.f32 %v1072_v50, %v1342_v24  ;;  %v579_v53 = vpop.f32.mrb[7].mxu0  ;;  %v643_v54 = vpop.f32.mrb[7].mxu1 }
 0x12b   : > { %829 = vst [vmem:[%s1347_s7 + $0x20] sm:$0xff] %v797_v47  ;;  %845 = vst [vmem:[%s1347_s7 + $0xa0] sm:$0xff] %v813_v48  ;;  %v798_v55 = vadd.f32 %v1342_v24, %v579_v53  ;;  %v814_v56 = vadd.f32 %v1342_v24, %v643_v54 }
 0x12c   : > { %832 = vst [vmem:[%s1347_s7 + $0x38] sm:$0xff] %v800_v51  ;;  %848 = vst [vmem:[%s1347_s7 + $0xb8] sm:$0xff] %v816_v52 }
 0x12d   : > { %830 = vst [vmem:[%s1347_s7 + $0x28] sm:$0xff] %v798_v55  ;;  %846 = vst [vmem:[%s1347_s7 + $0xa8] sm:$0xff] %v814_v56 }
 0x12f   : > { %v1059_v57 = vpop.f32.mrb[8].mxu0  ;;  %v1075_v58 = vpop.f32.mrb[8].mxu1 }
 0x130   : > { %v803_v59 = vadd.f32 %v1059_v57, %v1342_v24  ;;  %v819_v60 = vadd.f32 %v1075_v58, %v1342_v24  ;;  %v592_v61 = vpop.f32.mrb[9].mxu0  ;;  %v656_v62 = vpop.f32.mrb[9].mxu1 }
 0x131   : > { %v801_v63 = vadd.f32 %v1342_v24, %v592_v61  ;;  %v817_v0 = vadd.f32 %v1342_v24, %v656_v62  ;;  %v1060_v1 = vpop.f32.mrb[10].mxu0  ;;  %v1076_v2 = vpop.f32.mrb[10].mxu1 }
 0x132   : > { %835 = vst [vmem:[%s1347_s7 + $0x50] sm:$0xff] %v803_v59  ;;  %851 = vst [vmem:[%s1347_s7 + $0xd0] sm:$0xff] %v819_v60  ;;  %v804_v3 = vadd.f32 %v1060_v1, %v1342_v24  ;;  %v820_v4 = vadd.f32 %v1076_v2, %v1342_v24  ;;  %v595_v5 = vpop.f32.mrb[11].mxu0  ;;  %v659_v6 = vpop.f32.mrb[11].mxu1 }
 0x133   : > { %833 = vst [vmem:[%s1347_s7 + $0x40] sm:$0xff] %v801_v63  ;;  %849 = vst [vmem:[%s1347_s7 + $0xc0] sm:$0xff] %v817_v0  ;;  %v802_v7 = vadd.f32 %v1342_v24, %v595_v5  ;;  %v818_v8 = vadd.f32 %v1342_v24, %v659_v6 }
 0x134   : > { %836 = vst [vmem:[%s1347_s7 + $0x58] sm:$0xff] %v804_v3  ;;  %852 = vst [vmem:[%s1347_s7 + $0xd8] sm:$0xff] %v820_v4 }
 0x135   : > { %834 = vst [vmem:[%s1347_s7 + $0x48] sm:$0xff] %v802_v7  ;;  %850 = vst [vmem:[%s1347_s7 + $0xc8] sm:$0xff] %v818_v8 }
 0x137   : > { %v1063_v9 = vpop.f32.mrb[12].mxu0  ;;  %v1079_v10 = vpop.f32.mrb[12].mxu1 }
 0x138   : > { %v807_v11 = vadd.f32 %v1063_v9, %v1342_v24  ;;  %v823_v12 = vadd.f32 %v1079_v10, %v1342_v24  ;;  %v608_v13 = vpop.f32.mrb[13].mxu0  ;;  %v672_v14 = vpop.f32.mrb[13].mxu1 }
 0x139   : > { %v805_v15 = vadd.f32 %v1342_v24, %v608_v13  ;;  %v821_v16 = vadd.f32 %v1342_v24, %v672_v14  ;;  %v1064_v17 = vpop.f32.mrb[14].mxu0  ;;  %v1080_v18 = vpop.f32.mrb[14].mxu1 }
 0x13a   : > { %839 = vst [vmem:[%s1347_s7 + $0x70] sm:$0xff] %v807_v11  ;;  %855 = vst [vmem:[%s1347_s7 + $0xf0] sm:$0xff] %v823_v12  ;;  %v808_v19 = vadd.f32 %v1064_v17, %v1342_v24  ;;  %v824_v20 = vadd.f32 %v1080_v18, %v1342_v24  ;;  %v611_v21 = vpop.f32.mrb[15].mxu0  ;;  %v675_v22 = vpop.f32.mrb[15].mxu1 }
 0x13b   : > { %837 = vst [vmem:[%s1347_s7 + $0x60] sm:$0xff] %v805_v15  ;;  %853 = vst [vmem:[%s1347_s7 + $0xe0] sm:$0xff] %v821_v16  ;;  %v806_v23 = vadd.f32 %v1342_v24, %v611_v21  ;;  %v822_v25 = vadd.f32 %v1342_v24, %v675_v22 }
 0x13c   : > { %840 = vst [vmem:[%s1347_s7 + $0x78] sm:$0xff] %v808_v19  ;;  %856 = vst [vmem:[%s1347_s7 + $0xf8] sm:$0xff] %v824_v20 }
 0x13d   : > { %838 = vst [vmem:[%s1347_s7 + $0x68] sm:$0xff] %v806_v23  ;;  %854 = vst [vmem:[%s1347_s7 + $0xe8] sm:$0xff] %v822_v25 }
 0x13e PF: > { %s14_s14 = sadd.s32 1, %s1210_s14   ;;  %s1434_s12 = smov %s1206_s13 }
 0x13f   : > { %p11_p3 = scmp.ge.s32.totalorder %s14_s14, 4   ;;  %s1435_s13 = smov %s1437_s16 }
 0x141   :  { %13 = sbr.rel (!%p11_p3) target bundleno = 2 (0x2), region = 79 }
 0x148   :  { %885 = vsyncpa [#allocation4], 1 }
 0x149   :  { %887 = vsyncpa [#allocation4 + $0x1], 1 }

// kernel: sketch_translator_forward.55
= control target key start
LH: loop header
LB: loop body
LE: loop exit
PB: predicated region body
PF: predicated region fallthrough
CT: control target
= control target key end

     0   :  { %8 = vsyncpa [#allocation5], 0  ;;  %s1955_s0 = inlined_call_operand.vmem [shape: bf16[128,1152], index: 0, kind: input, shape index: {}]   ;;  %s1956_s1 = inlined_call_operand.hbm [shape: bf16[1152,128], index: 1, kind: input, shape index: {}]   ;;  %s1957_s2 = inlined_call_operand.hbm [shape: f32[1,128], index: 2, kind: input, shape index: {}]   ;;  %s1958_s3 = inlined_call_operand.vmem [shape: f32[128,128], index: 3, kind: output, shape index: {}]  }
   0x1   :  { %10 = vsyncpa [#allocation5 + $0x1], 0 }
   0x2   :  { %11 = vsyncpa [#allocation7], 0  ;;  %s1629_s12 = smov 0   ;;  %s1631_s13 = smov 0  }
   0x3   :  { %s1633_s14 = smov 0   ;;  %s1635_s15 = smov 0  }
   0x4   :  { %s1637_s16 = smov 0   ;;  %s1639_s17 = smov 0  }
   0x5 LB: > { %s1160_s18 = sadd.s32 4294967295, %s1602_s17   ;;  %s29_s19 = sadd.s32 1, %s1598_s16  ;;  %s1602_s17 = sphi %s1639_s17, %s17_s17   ;;  %s1598_s16 = sphi %s1637_s16, %s1978_s16   ;;  %s1594_s15 = sphi %s1635_s15, %s1977_s15   ;;  %s1590_s14 = sphi %s1633_s14, %s1976_s14   ;;  %s1586_s13 = sphi %s1631_s13, %s1975_s13   ;;  %s1582_s12 = sphi %s1629_s12, %s1974_s12  }
   0x6   : > { %p30_p0 = scmp.ge.s32.totalorder %s29_s19, 3  ;;  %s45_s20 = sadd.s32 1, %s1590_s14 }
   0x7   : > { %p52_p1 = scmp.ne.s32.totalorder %s1590_s14, %s1586_s13  ;;  %p53_p2 = scmp.eq.s32.totalorder %s1602_s17, 0 }
   0x8   : > { %s1980_s19 = smov (%p30_p0, %s29_s19), 0  ;;  %p86_p4 = scmp.ne.s32.totalorder %s1586_s13, %s1582_s12 }
   0x9   : > { %p1665_p3 = por %p53_p2, %p52_p1  ;;  %s41_s22 = ssub.s32 %s1598_s16, %s1980_s19 }
   0xa   : > { %p1672_p5 = scmp.eq.s32.totalorder %s1160_s18, 0  ;;  %p43_p6 = scmp.eq.s32.totalorder %s41_s22, 0 }
   0xb   : > { %s1964_s21 = scalar_select %p1665_p3, 1, 0 }
   0xc   : > { %s1965_s23 = scalar_select %p1672_p5, 1, 0 }
   0xd   : > { %p1161_p7 = scmp.ge.s32.totalorder %s1602_s17, 1  ;;  %p1679_p8 = por %p1672_p5, %p86_p4 }
   0xe   : > { %p151_p9 = scmp.lt.s32.totalorder %s1602_s17, 4  ;;  %s1604_s27 = smov [#allocation6]  }
   0xf   : > { %s1966_s24 = scalar_select %p1679_p8, 1, 0 }
  0x10   : > { %s1685_s25 = scalar_select %p43_p6, %s1590_s14, %s45_s20  }
  0x11   : > { %p1687_p10 = pnand %p1161_p7, %p151_p9  ;;  %s166_s28 = sshll.u32 %s1604_s27, 4  ;;  %s167_s28 = int_to_ptr.vmem [resolvable:$true] %s166_s28 }
  0x12   : > { %s1492_s5 = scalar_lea.hbm %s1957_s2, 16 }
  0x13   : > { %s1967_s26 = scalar_select %p1687_p10, 1, 0 }
  0x14   : > { %p1378_p11 = pneg %p1687_p10  ;;  %p1493_p13 = scmp.ne.s32.totalorder %s1957_s2, %s1492_s5 }
  0x15   : > { %p1499_p4 = scmp.lt.u32.totalorder %s1492_s5, %s1957_s2 }
  0x16   : > { %p1695_p12 = pnand %p1378_p11, %p1672_p5 }
  0x18   : > { %p1494_p0 = pneg %p1695_p12 }
  0x1a   : > { %p1495_p1 = pnand %p1494_p0, %p1493_p13 }
  0x1c   : > { %p1496_p2 = pneg %p1495_p1 }
  0x1e   : > { %p1501_p6 = pnand %p1499_p4, %p1496_p2 }
  0x20   : > { %1504 = shalt.err (!%p1501_p6)
}
  0x21   : > { %s1505_s10 = scalar_lea.vmem %s167_s28, 16  ;;  %s1512_s11 = scalar_lea.vmem %s167_s28, 32 }
  0x22   : > { %p1506_p7 = scmp.ne.s32.totalorder %s167_s28, %s1505_s10  ;;  %p1513_p5 = scmp.lt.s32.totalorder %s167_s28, %s167_s28 }
  0x23   : > { %p1514_p8 = scmp.lt.s32.totalorder %s1512_s11, %s1505_s10 }
  0x24   : > { %p1508_p9 = pnand %p1506_p7, %p1494_p0 }
  0x25   : > { %p1515_p10 = por %p1514_p8, %p1513_p5 }
  0x26   : > { %p1509_p11 = pneg %p1508_p9 }
  0x28   : > { %p1516_p3 = pnand %p1515_p10, %p1509_p11 }
  0x2a   : > { %1519 = shalt.err (!%p1516_p3)
}
  0x2b   : > { %1381 = dma.hbm_to_vmem [thread:$0]  (!%p1695_p12), %s1957_s2, 16, %s167_s28, [#allocation7]  }
  0x2c   : > { %p1163_p13 = scmp.ge.s32.totalorder %s1602_s17, 3 }
  0x2d   : > { %p1969_p1 = scmp.ne.s32.totalorder (!%p1163_p13), %s1964_s21, 0 }
  0x2e   : > { %173 = sbr.rel (%p1163_p13) target bundleno = 103 (0x67), region = 20 }
  0x35   : > { %176 = sbr.rel (!%p1969_p1) target bundleno = 76 (0x4c), region = 24  ;;  %s178_s20 = sand.u32 (%p1969_p1), 1, %s1590_s14  }
  0x36   : > { %s1255_s22 = smul.u32 (%p1969_p1), 12, %s1598_s16 }
  0x37   : > { %s1369_s27 = smul.u32 (%p1969_p1), 192, %s178_s20 }
  0x38   : > { %s1723_s5 = scalar_lea.vmem (%p1969_p1), %s1955_s0, %s1255_s22 }
  0x39   : > { %v201_v0 = vld [vmem:[%s1723_s5] sm:$0xff] (%p1969_p1)  ;;  %v205_v2 = vld [vmem:[%s1723_s5 + $0x48] sm:$0xff] (%p1969_p1)  ;;  %s1728_s28 = scalar_lea.vmem (%p1969_p1), [#allocation3], %s1369_s27  ;;  %v209_v4 = vld [vmem:[%s1723_s5 + $0x90] sm:$0xff] (%p1969_p1) }
  0x3a   : > { %v203_v1 = vld [vmem:[%s1723_s5 + $0x24] sm:$0xff] (%p1969_p1)  ;;  %202 = vst [vmem:[%s1728_s28] sm:$0xff] (%p1969_p1), %v201_v0  ;;  %206 = vst [vmem:[%s1728_s28 + $0x18] sm:$0xff] (%p1969_p1), %v205_v2  ;;  %v207_v3 = vld [vmem:[%s1723_s5 + $0x6c] sm:$0xff] (%p1969_p1) }
  0x3b   : > { %204 = vst [vmem:[%s1728_s28 + $0xc] sm:$0xff] (%p1969_p1), %v203_v1  ;;  %v211_v5 = vld [vmem:[%s1723_s5 + $0xb4] sm:$0xff] (%p1969_p1)  ;;  %208 = vst [vmem:[%s1728_s28 + $0x24] sm:$0xff] (%p1969_p1), %v207_v3  ;;  %v215_v7 = vld [vmem:[%s1723_s5 + $0xfc] sm:$0xff] (%p1969_p1) }
  0x3c   : > { %210 = vst [vmem:[%s1728_s28 + $0x30] sm:$0xff] %v209_v4  ;;  %212 = vst [vmem:[%s1728_s28 + $0x3c] sm:$0xff] %v211_v5  ;;  %v213_v6 = vld [vmem:[%s1723_s5 + $0xd8] sm:$0xff]  ;;  %v217_v8 = vld [vmem:[%s1723_s5 + $0x120] sm:$0xff] }
  0x3d   : > { %214 = vst [vmem:[%s1728_s28 + $0x48] sm:$0xff] %v213_v6  ;;  %216 = vst [vmem:[%s1728_s28 + $0x54] sm:$0xff] %v215_v7  ;;  %v219_v9 = vld [vmem:[%s1723_s5 + $0x144] sm:$0xff]  ;;  %v223_v11 = vld [vmem:[%s1723_s5 + $0x18c] sm:$0xff] }
  0x3e   : > { %218 = vst [vmem:[%s1728_s28 + $0x60] sm:$0xff] %v217_v8  ;;  %v221_v10 = vld [vmem:[%s1723_s5 + $0x168] sm:$0xff]  ;;  %220 = vst [vmem:[%s1728_s28 + $0x6c] sm:$0xff] %v219_v9  ;;  %v225_v12 = vld [vmem:[%s1723_s5 + $0x1b0] sm:$0xff] }
  0x3f   : > { %222 = vst [vmem:[%s1728_s28 + $0x78] sm:$0xff] %v221_v10  ;;  %224 = vst [vmem:[%s1728_s28 + $0x84] sm:$0xff] %v223_v11  ;;  %v227_v13 = vld [vmem:[%s1723_s5 + $0x1d4] sm:$0xff]  ;;  %v231_v15 = vld [vmem:[%s1723_s5 + $0x21c] sm:$0xff] }
  0x40   : > { %v229_v14 = vld [vmem:[%s1723_s5 + $0x1f8] sm:$0xff]  ;;  %226 = vst [vmem:[%s1728_s28 + $0x90] sm:$0xff] %v225_v12  ;;  %228 = vst [vmem:[%s1728_s28 + $0x9c] sm:$0xff] %v227_v13  ;;  %v1165_v16 = vld [vmem:[%s1723_s5 + $0x8] sm:$0xf] }
  0x41   : > { %230 = vst [vmem:[%s1728_s28 + $0xa8] sm:$0xff] %v229_v14  ;;  %v1167_v17 = vld [vmem:[%s1723_s5 + $0x2c] sm:$0xf]  ;;  %232 = vst [vmem:[%s1728_s28 + $0xb4] sm:$0xff] %v231_v15  ;;  %v1169_v18 = vld [vmem:[%s1723_s5 + $0x50] sm:$0xf] }
  0x42   : > { %1166 = vst [vmem:[%s1728_s28 + $0x8] sm:$0xf] %v1165_v16  ;;  %1168 = vst [vmem:[%s1728_s28 + $0x14] sm:$0xf] %v1167_v17  ;;  %v1171_v19 = vld [vmem:[%s1723_s5 + $0x74] sm:$0xf] }
  0x43   : > { %v1173_v20 = vld [vmem:[%s1723_s5 + $0x98] sm:$0xf]  ;;  %1170 = vst [vmem:[%s1728_s28 + $0x20] sm:$0xf] %v1169_v18  ;;  %1172 = vst [vmem:[%s1728_s28 + $0x2c] sm:$0xf] %v1171_v19 }
  0x44   : > { %1174 = vst [vmem:[%s1728_s28 + $0x38] sm:$0xf] %v1173_v20  ;;  %v1175_v21 = vld [vmem:[%s1723_s5 + $0xbc] sm:$0xf]  ;;  %v1177_v22 = vld [vmem:[%s1723_s5 + $0xe0] sm:$0xf] }
  0x45   : > { %v1179_v23 = vld [vmem:[%s1723_s5 + $0x104] sm:$0xf]  ;;  %1176 = vst [vmem:[%s1728_s28 + $0x44] sm:$0xf] %v1175_v21  ;;  %1178 = vst [vmem:[%s1728_s28 + $0x50] sm:$0xf] %v1177_v22 }
  0x46   : > { %1180 = vst [vmem:[%s1728_s28 + $0x5c] sm:$0xf] %v1179_v23  ;;  %v1181_v24 = vld [vmem:[%s1723_s5 + $0x128] sm:$0xf]  ;;  %v1183_v25 = vld [vmem:[%s1723_s5 + $0x14c] sm:$0xf] }
  0x47   : > { %v1185_v26 = vld [vmem:[%s1723_s5 + $0x170] sm:$0xf]  ;;  %1182 = vst [vmem:[%s1728_s28 + $0x68] sm:$0xf] %v1181_v24  ;;  %1184 = vst [vmem:[%s1728_s28 + $0x74] sm:$0xf] %v1183_v25 }
  0x48   : > { %1186 = vst [vmem:[%s1728_s28 + $0x80] sm:$0xf] %v1185_v26  ;;  %v1187_v27 = vld [vmem:[%s1723_s5 + $0x194] sm:$0xf]  ;;  %v1189_v28 = vld [vmem:[%s1723_s5 + $0x1b8] sm:$0xf] }
  0x49   : > { %v1191_v29 = vld [vmem:[%s1723_s5 + $0x1dc] sm:$0xf]  ;;  %1188 = vst [vmem:[%s1728_s28 + $0x8c] sm:$0xf] %v1187_v27  ;;  %1190 = vst [vmem:[%s1728_s28 + $0x98] sm:$0xf] %v1189_v28 }
  0x4a   : > { %1192 = vst [vmem:[%s1728_s28 + $0xa4] sm:$0xf] %v1191_v29  ;;  %v1193_v30 = vld [vmem:[%s1723_s5 + $0x200] sm:$0xf]  ;;  %v1195_v31 = vld [vmem:[%s1723_s5 + $0x224] sm:$0xf] }
  0x4b   : > { %1194 = vst [vmem:[%s1728_s28 + $0xb0] sm:$0xf] %v1193_v30  ;;  %1196 = vst [vmem:[%s1728_s28 + $0xbc] sm:$0xf] %v1195_v31 }
  0x4c PF: > { %s278_s29 = sand.u32 1, %s1590_s14   ;;  %s1256_s6 = smul.u32 3072, %s1598_s16 }
  0x4d   : > { %s1370_s7 = smul.u32 192, %s278_s29  ;;  %s1800_s18 = scalar_lea.sflag [#allocation5], %s278_s29 }
  0x4e   : > { %s1796_s10 = scalar_lea.hbm %s1956_s1, %s1256_s6  ;;  %p1970_p5 = scmp.ne.s32.totalorder %s1964_s21, 0 }
  0x4f   : > { %s282_s11 = scalar_lea.vmem [#allocation4], %s1370_s7  ;;  %s1520_s20 = scalar_lea.hbm %s1796_s10, 3072 }
  0x50   : > { %s290_s12 = sshll.u32 %s282_s11, 4  ;;  %p1521_p3 = scmp.ne.s32.totalorder %s1796_s10, %s1520_s20  ;;  %s1798_s12 = int_to_ptr.vmem [resolvable:$true] %s290_s12 }
  0x51   : > { %s1524_s30 = scalar_lea.hbm %s1956_s1, 9216  ;;  %p1525_p12 = scmp.lt.u32.totalorder %s1796_s10, %s1956_s1 }
  0x52   : > { %p1522_p8 = pnand %p1521_p3, %p1970_p5  ;;  %p1526_p0 = scmp.lt.u32.totalorder %s1524_s30, %s1520_s20 }
  0x53   : > { %p1528_p4 = scmp.lt.u32.totalorder %s1520_s20, %s1796_s10 }
  0x54   : > { %p1523_p10 = pneg %p1522_p8  ;;  %p1527_p2 = por %p1526_p0, %p1525_p12 }
  0x56   : > { %p1529_p6 = por %p1528_p4, %p1527_p2 }
  0x58   : > { %p1530_p7 = pnand %p1529_p6, %p1523_p10 }
  0x5a   : > { %1533 = shalt.err (!%p1530_p7)
}
  0x5b   : > { %s1534_s28 = scalar_lea.vmem %s1798_s12, 3072  ;;  %s1605_s29 = smov [#allocation4]  }
  0x5c   : > { %p1535_p9 = scmp.ne.s32.totalorder %s1798_s12, %s1534_s28  ;;  %s1538_s6 = sshll.u32 %s1605_s29, 4  ;;  %s1539_s6 = int_to_ptr.vmem [resolvable:$false] %s1538_s6 }
  0x5d   : > { %s1540_s7 = scalar_lea.vmem %s1539_s6, 6144  ;;  %p1541_p1 = scmp.lt.s32.totalorder %s1798_s12, %s1539_s6 }
  0x5e   : > { %p1536_p11 = pnand %p1535_p9, %p1970_p5  ;;  %p1542_p3 = scmp.lt.s32.totalorder %s1540_s7, %s1534_s28 }
  0x60   : > { %p1537_p13 = pneg %p1536_p11  ;;  %p1543_p8 = por %p1542_p3, %p1541_p1 }
  0x62   : > { %p1544_p12 = pnand %p1543_p8, %p1537_p13 }
  0x64   : > { %1547 = shalt.err (!%p1544_p12)
}
  0x65   : > { %s1606_s8 = smov 64   ;;  %s1607_s9 = smov 4  }
  0x66   : > { %1374 = dma.hbm_to_vmem [thread:$0]  (%p1970_p5), %s1796_s10, 3072, %s1798_s12, %s1800_s18, %s1606_s8, %s1606_s8, %s1607_s9  }
  0x67 PF: > { %p1971_p10 = scmp.ne.s32.totalorder %s1967_s26, 0 }
  0x68   : > { %s305_s11 = sand.u32 (!%p1971_p10), 1, %s1586_s13   ;;  %p1972_p0 = scmp.ne.s32.totalorder (!%p1971_p10), %s1966_s24, 0 }
  0x69   : > { %302 = sbr.rel (%p1971_p10) target bundleno = 447 (0x1bf), region = 54  ;;  %s312_s27 = scalar_lea.sflag (!%p1971_p10), [#allocation5], %s305_s11 }
  0x6a   : > { %s1371_s20 = smul.u32 (!%p1971_p10), 192, %s305_s11 }
  0x6c   : > { %s1827_s22 = scalar_lea.vmem (!%p1971_p10), [#allocation3], %s1371_s20  ;;  %s1829_s30 = scalar_lea.vmem (!%p1971_p10), [#allocation4], %s1371_s20 }
  0x70   : > { %1573 = dma.done.wait (%p1972_p0), %s312_s27, 3072  }
  0x71   : > { %1575 = vsyncadd (%p1972_p0), %s312_s27, 4294964224  ;;  %p1973_p5 = scmp.ne.s32.totalorder %s1965_s23, 0 }
  0x73   : > { %1577 = dma.done.wait (%p1973_p5), [#allocation7], 16  }
  0x74   : > { %1579 = vsyncadd (%p1973_p5), [#allocation7], 4294967280  ;;  %p1200_p2 = scmp.ne.s32.totalorder %s1594_s15, 0 }
  0x75   : > { %v1608_v32 = vmov (!%p1200_p2), 0.0  }
  0x76   : > { %365 = sbr.rel (%p1200_p2) target bundleno = 126 (0x7e), region = 70  ;;  %366 = vst [vmem:[#allocation2] sm:$0xff] (!%p1200_p2), %v1608_v32  ;;  %367 = vst [vmem:[#allocation2 + $0x8] sm:$0xff] (!%p1200_p2), %v1608_v32 }
  0x77   : > { %368 = vst [vmem:[#allocation2 + $0x10] sm:$0xff] (!%p1200_p2), %v1608_v32  ;;  %369 = vst [vmem:[#allocation2 + $0x18] sm:$0xff] (!%p1200_p2), %v1608_v32 }
  0x78   : > { %370 = vst [vmem:[#allocation2 + $0x20] sm:$0xff] (!%p1200_p2), %v1608_v32  ;;  %371 = vst [vmem:[#allocation2 + $0x28] sm:$0xff] (!%p1200_p2), %v1608_v32 }
  0x79   : > { %372 = vst [vmem:[#allocation2 + $0x30] sm:$0xff] (!%p1200_p2), %v1608_v32  ;;  %373 = vst [vmem:[#allocation2 + $0x38] sm:$0xff] (!%p1200_p2), %v1608_v32 }
  0x7a   : > { %374 = vst [vmem:[#allocation2 + $0x40] sm:$0xff] (!%p1200_p2), %v1608_v32  ;;  %375 = vst [vmem:[#allocation2 + $0x48] sm:$0xff] (!%p1200_p2), %v1608_v32 }
  0x7b   : > { %376 = vst [vmem:[#allocation2 + $0x50] sm:$0xff] (!%p1200_p2), %v1608_v32  ;;  %377 = vst [vmem:[#allocation2 + $0x58] sm:$0xff] (!%p1200_p2), %v1608_v32 }
  0x7c   : > { %378 = vst [vmem:[#allocation2 + $0x60] sm:$0xff] (!%p1200_p2), %v1608_v32  ;;  %379 = vst [vmem:[#allocation2 + $0x68] sm:$0xff] (!%p1200_p2), %v1608_v32 }
  0x7d   : > { %380 = vst [vmem:[#allocation2 + $0x70] sm:$0xff] %v1608_v32  ;;  %381 = vst [vmem:[#allocation2 + $0x78] sm:$0xff] %v1608_v32 }
  0x7e PF: > { %v1436_v33 = vld [vmem:[%s1829_s30 + $0x40] sm:$0xff]   ;;  %v1439_v36 = vld [vmem:[%s1829_s30 + $0x48] sm:$0xff]   ;;  %v1442_v39 = vld [vmem:[%s1829_s30 + $0x50] sm:$0xff]   ;;  %p1249_p4 = scmp.ne.s32.totalorder %s1594_s15, 2 }
  0x7f   : > { %v1437_v34 = vld [vmem:[%s1829_s30] sm:$0xff]   ;;  %1257 = vmatprep.subr.bf16.mxu0 %v1436_v33  ;;  %v1440_v37 = vld [vmem:[%s1829_s30 + $0x8] sm:$0xff]   ;;  %v1443_v40 = vld [vmem:[%s1829_s30 + $0x10] sm:$0xff]  }
  0x80   : > { %v1438_v35 = vld [vmem:[%s1829_s30 + $0x80] sm:$0xff]   ;;  %1258 = vmatpush3.bf16.msra.mxu0 %v1437_v34  ;;  %v1441_v38 = vld [vmem:[%s1829_s30 + $0x88] sm:$0xff]   ;;  %v1444_v41 = vld [vmem:[%s1829_s30 + $0x90] sm:$0xff]  }
  0x81   : > { %1337 = vmatprep.subr.bf16.mxu1 %v1438_v35  ;;  %1259 = vmatprep.subr.bf16.mxu0 %v1439_v36  ;;  %v1445_v42 = vld [vmem:[%s1829_s30 + $0x58] sm:$0xff]   ;;  %v1448_v45 = vld [vmem:[%s1829_s30 + $0x60] sm:$0xff]   ;;  %v1451_v48 = vld [vmem:[%s1829_s30 + $0x68] sm:$0xff]  }
  0x82   : > { %1338 = vmatpush3.bf16.msra.mxu1 %v1438_v35  ;;  %v1446_v43 = vld [vmem:[%s1829_s30 + $0x18] sm:$0xff]   ;;  %v1450_v46 = vld [vmem:[%s1829_s30 + $0xa0] sm:$0xff]   ;;  %v1453_v49 = vld [vmem:[%s1829_s30 + $0xa8] sm:$0xff]  }
  0x83   : > { %1339 = vmatprep.subr.bf16.mxu1 %v1441_v38  ;;  %v1447_v44 = vld [vmem:[%s1829_s30 + $0x98] sm:$0xff]   ;;  %v1449_v47 = vld [vmem:[%s1829_s30 + $0x20] sm:$0xff]   ;;  %v1452_v50 = vld [vmem:[%s1829_s30 + $0x28] sm:$0xff]  }
  0x84   : > { %1260 = vmatpush3.bf16.msra.mxu0 %v1440_v37  ;;  %v1454_v51 = vld [vmem:[%s1829_s30 + $0x70] sm:$0xff]   ;;  %v1457_v54 = vld [vmem:[%s1829_s30 + $0x78] sm:$0xff]   ;;  %v1460_v59 = vld [vmem:[%s1827_s22] ss:$12 sps:$4 sm:$0xff]  }
  0x85   : > { %1261 = vmatprep.subr.bf16.mxu0 %v1442_v39  ;;  %v1455_v52 = vld [vmem:[%s1829_s30 + $0x30] sm:$0xff]   ;;  %v1459_v55 = vld [vmem:[%s1829_s30 + $0xb8] sm:$0xff]   ;;  %v1464_v61 = vld [vmem:[%s1827_s22 + $0x20] ss:$12 sps:$4 sm:$0xff]  }
  0x86   : > { %1340 = vmatpush3.bf16.msra.mxu1 %v1441_v38  ;;  %v1456_v53 = vld [vmem:[%s1829_s30 + $0xb0] sm:$0xff]   ;;  %v1458_v58 = vld [vmem:[%s1829_s30 + $0x38] sm:$0xff]   ;;  %v1480_v5 = vld [vmem:[%s1827_s22 + $0x80] ss:$12 sps:$4 sm:$0xff]  }
  0x87   : > { %1341 = vmatprep.subr.bf16.mxu1 %v1444_v41  ;;  %v1462_v56 = vld [vmem:[%s1827_s22 + $0x4] ss:$12 sps:$4 sm:$0xff]   ;;  %v1463_v57 = vld [vmem:[%s1827_s22 + $0x8] ss:$12 sps:$4 sm:$0xff]   ;;  %v1473_v4 = vld [vmem:[%s1827_s22 + $0x4c] ss:$12 sps:$4 sm:$0xff]  }
  0x88   : > { %1262 = vmatpush3.bf16.msra.mxu0 %v1443_v40  ;;  %782 = vmatprep.mubr.bf16.mxu0 %v1462_v56  ;;  %v1465_v60 = vld [vmem:[%s1827_s22 + $0x1c] ss:$12 sps:$4 sm:$0xff]   ;;  %v1471_v62 = vld [vmem:[%s1827_s22 + $0x38] ss:$12 sps:$4 sm:$0xff]   ;;  %v1468_v0 = vld [vmem:[%s1827_s22 + $0x34] ss:$12 sps:$4 sm:$0xff]  }
  0x89   : > { %1263 = vmatprep.subr.bf16.mxu0 %v1445_v42  ;;  %1353 = vmatprep.mubr.bf16.mxu1 %v1463_v57  ;;  %v1467_v63 = vld [vmem:[%s1827_s22 + $0x18] ss:$12 sps:$4 sm:$0xff]   ;;  %v1472_v1 = vld [vmem:[%s1827_s22 + $0x50] ss:$12 sps:$4 sm:$0xff]   ;;  %v1479_v2 = vld [vmem:[%s1827_s22 + $0x68] ss:$12 sps:$4 sm:$0xff]  }
  0x8a   : > { %1342 = vmatpush3.bf16.msra.mxu1 %v1444_v41  ;;  %v1470_v3 = vld [vmem:[%s1827_s22 + $0x30] ss:$12 sps:$4 sm:$0xff]   ;;  %v1487_v6 = vld [vmem:[%s1827_s22 + $0x98] ss:$12 sps:$4 sm:$0xff]   ;;  %v1475_v7 = vld [vmem:[%s1827_s22 + $0x48] ss:$12 sps:$4 sm:$0xff]  }
  0x8b   : > { %1343 = vmatprep.subr.bf16.mxu1 %v1447_v44  ;;  %v1476_v8 = vld [vmem:[%s1827_s22 + $0x64] ss:$12 sps:$4 sm:$0xff]   ;;  %v1478_v10 = vld [vmem:[%s1827_s22 + $0x60] ss:$12 sps:$4 sm:$0xff]   ;;  %v1481_v11 = vld [vmem:[%s1827_s22 + $0x7c] ss:$12 sps:$4 sm:$0xff]  }
  0x8c   : > { %1264 = vmatpush3.bf16.msra.mxu0 %v1446_v43  ;;  %v1488_v9 = vld [vmem:[%s1827_s22 + $0xb0] ss:$12 sps:$4 sm:$0xff]   ;;  %v1483_v12 = vld [vmem:[%s1827_s22 + $0x78] ss:$12 sps:$4 sm:$0xff]   ;;  %v1484_v13 = vld [vmem:[%s1827_s22 + $0x94] ss:$12 sps:$4 sm:$0xff]  }
  0x8d   : > { %1265 = vmatprep.subr.bf16.mxu0 %v1448_v45  ;;  %v1486_v14 = vld [vmem:[%s1827_s22 + $0x90] ss:$12 sps:$4 sm:$0xff]   ;;  %v1489_v15 = vld [vmem:[%s1827_s22 + $0xac] ss:$12 sps:$4 sm:$0xff]   ;;  %v1491_v16 = vld [vmem:[%s1827_s22 + $0xa8] ss:$12 sps:$4 sm:$0xff]  }
  0x8e   : > { %1344 = vmatpush3.bf16.msra.mxu1 %v1447_v44  ;;  %v382_v23 = vld [vmem:[#allocation2] sm:$0xff]  ;;  %v383_v28 = vld [vmem:[#allocation2 + $0x8] sm:$0xff]  ;;  %v384_v38 = vld [vmem:[#allocation2 + $0x10] sm:$0xff] }
  0x8f   : > { %1345 = vmatprep.subr.bf16.mxu1 %v1450_v46  ;;  %v385_v44 = vld [vmem:[#allocation2 + $0x18] sm:$0xff] }
  0x90   : > { %1266 = vmatpush3.bf16.msra.mxu0 %v1449_v47 }
  0x91   : > { %1267 = vmatprep.subr.bf16.mxu0 %v1451_v48 }
  0x92   : > { %1346 = vmatpush3.bf16.msra.mxu1 %v1450_v46 }
  0x93   : > { %1347 = vmatprep.subr.bf16.mxu1 %v1453_v49 }
  0x94   : > { %1268 = vmatpush3.bf16.msra.mxu0 %v1452_v50 }
  0x95   : > { %1269 = vmatprep.subr.bf16.mxu0 %v1454_v51 }
  0x96   : > { %1348 = vmatpush3.bf16.msra.mxu1 %v1453_v49 }
  0x97   : > { %1349 = vmatprep.subr.bf16.mxu1 %v1456_v53 }
  0x98   : > { %1270 = vmatpush3.bf16.msra.mxu0 %v1455_v52 }
  0x99   : > { %1271 = vmatprep.subr.bf16.mxu0 %v1457_v54 }
  0x9a   : > { %1350 = vmatpush3.bf16.msra.mxu1 %v1456_v53 }
  0x9b   : > { %1351 = vmatprep.subr.bf16.mxu1 %v1459_v55 }
  0x9c   : > { %1272 = vmatpush3.bf16.msra.mxu0 %v1458_v58 }
  0x9e   : > { %1352 = vmatpush3.bf16.msra.mxu1 %v1459_v55  ;;  %v386_v55 = vld [vmem:[#allocation2 + $0x20] sm:$0xff] }
  0x9f   : > { %783 = vmatmul.mubr.bf16.vlgmr.msra.gmra.mrb[0].mxu0 %v1460_v59 }
  0xa0   : > { %790 = vmatprep.mubr.bf16.mxu0 %v1465_v60  ;;  %v387_v60 = vld [vmem:[#allocation2 + $0x28] sm:$0xff] }
  0xa1   : > { %1354 = vmatmul.mubr.bf16.vlgmr.msra.gmra.mrb[0].mxu1 %v1464_v61 }
  0xa2   : > { %1357 = vmatprep.mubr.bf16.mxu1 %v1471_v62 }
  0xa7   : > { %791 = vmatmul.mubr.bf16.gmra.mrb[4].mxu0 %v1467_v63 }
  0xa8   : > { %798 = vmatprep.mubr.bf16.mxu0 %v1468_v0 }
  0xa9   : > { %1358 = vmatmul.mubr.bf16.gmra.mrb[4].mxu1 %v1472_v1 }
  0xaa   : > { %1361 = vmatprep.mubr.bf16.mxu1 %v1479_v2 }
  0xaf   : > { %799 = vmatmul.mubr.bf16.gmra.mrb[8].mxu0 %v1470_v3 }
  0xb0   : > { %806 = vmatprep.mubr.bf16.mxu0 %v1473_v4 }
  0xb1   : > { %1362 = vmatmul.mubr.bf16.gmra.mrb[8].mxu1 %v1480_v5 }
  0xb2   : > { %1365 = vmatprep.mubr.bf16.mxu1 %v1487_v6  ;;  %v388_v6 = vld [vmem:[#allocation2 + $0x30] sm:$0xff] }
  0xb7   : > { %807 = vmatmul.mubr.bf16.gmra.mrb[12].mxu0 %v1475_v7 }
  0xb8   : > { %814 = vmatprep.mubr.bf16.mxu0 %v1476_v8 }
  0xb9   : > { %1366 = vmatmul.mubr.bf16.gmra.mrb[12].mxu1 %v1488_v9 }
  0xbf   : > { %815 = vmatmul.mubr.bf16.gmra.mrb[16].mxu0 %v1478_v10 }
  0xc0   : > { %822 = vmatprep.mubr.bf16.mxu0 %v1481_v11 }
  0xc7   : > { %823 = vmatmul.mubr.bf16.gmra.mrb[20].mxu0 %v1483_v12  ;;  %v389_v12 = vld [vmem:[#allocation2 + $0x38] sm:$0xff] }
  0xc8   : > { %830 = vmatprep.mubr.bf16.mxu0 %v1484_v13 }
  0xcf   : > { %831 = vmatmul.mubr.bf16.gmra.mrb[24].mxu0 %v1486_v14 }
  0xd0   : > { %838 = vmatprep.mubr.bf16.mxu0 %v1489_v15 }
  0xd7   : > { %839 = vmatmul.mubr.bf16.gmra.mrb[28].mxu0 %v1491_v16 }
 0x172   : > { %v1273_v17 = vpop.f32.mrb[0].mxu0 }
 0x173   : > { %v1274_v18 = vpop.f32.mrb[1].mxu0 }
 0x174   : > { %v1275_v19 = vadd.f32 %v1274_v18, %v1273_v17  ;;  %v1276_v20 = vpop.f32.mrb[2].mxu0  ;;  %v1355_v21 = vpop.f32.mrb[0].mxu1 }
 0x175   : > { %v1277_v22 = vpop.f32.mrb[3].mxu0  ;;  %v881_v24 = vpop.f32.mrb[1].mxu1 }
 0x176   : > { %v1278_v25 = vadd.f32 %v1277_v22, %v1276_v20  ;;  %v882_v26 = vadd.f32 %v1275_v19, %v881_v24  ;;  %v1356_v27 = vpop.f32.mrb[2].mxu1  ;;  %v390_v22 = vld [vmem:[#allocation2 + $0x40] sm:$0xff] }
 0x177   : > { %v884_v29 = vpop.f32.mrb[3].mxu1 }
 0x178   : > { %v944_v30 = vadd.f32 %v882_v26, %v382_v23  ;;  %v885_v31 = vadd.f32 %v1278_v25, %v884_v29  ;;  %v391_v25 = vld [vmem:[#allocation2 + $0x48] sm:$0xff] }
 0x17a   : > { %960 = vst [vmem:[#allocation2] sm:$0xff] %v944_v30  ;;  %v945_v32 = vadd.f32 %v885_v31, %v383_v28  ;;  %v1279_v33 = vpop.f32.mrb[4].mxu0 }
 0x17b   : > { %v1280_v34 = vpop.f32.mrb[5].mxu0 }
 0x17c   : > { %961 = vst [vmem:[#allocation2 + $0x8] sm:$0xff] %v945_v32  ;;  %v1281_v35 = vadd.f32 %v1280_v34, %v1279_v33  ;;  %v1282_v36 = vpop.f32.mrb[6].mxu0  ;;  %v1359_v37 = vpop.f32.mrb[4].mxu1  ;;  %v392_v33 = vld [vmem:[#allocation2 + $0x50] sm:$0xff] }
 0x17d   : > { %v1283_v39 = vpop.f32.mrb[7].mxu0  ;;  %v897_v40 = vpop.f32.mrb[5].mxu1 }
 0x17e   : > { %v890_v41 = vadd.f32 %v1355_v21, %v1281_v35  ;;  %v1284_v42 = vadd.f32 %v1283_v39, %v1282_v36  ;;  %v1360_v43 = vpop.f32.mrb[6].mxu1 }
 0x17f   : > { %v900_v45 = vpop.f32.mrb[7].mxu1 }
 0x180   : > { %v946_v46 = vadd.f32 %v890_v41, %v384_v38  ;;  %v893_v47 = vadd.f32 %v1356_v27, %v1284_v42 }
 0x182   : > { %962 = vst [vmem:[#allocation2 + $0x10] sm:$0xff] %v946_v46  ;;  %v947_v48 = vadd.f32 %v893_v47, %v385_v44  ;;  %v1285_v49 = vpop.f32.mrb[8].mxu0  ;;  %v394_v46 = vld [vmem:[#allocation2 + $0x60] sm:$0xff] }
 0x183   : > { %v1286_v50 = vpop.f32.mrb[9].mxu0 }
 0x184   : > { %963 = vst [vmem:[#allocation2 + $0x18] sm:$0xff] %v947_v48  ;;  %v1287_v51 = vadd.f32 %v1286_v50, %v1285_v49  ;;  %v1288_v52 = vpop.f32.mrb[10].mxu0  ;;  %v1363_v53 = vpop.f32.mrb[8].mxu1  ;;  %v395_v49 = vld [vmem:[#allocation2 + $0x68] sm:$0xff] }
 0x185   : > { %v1289_v54 = vpop.f32.mrb[11].mxu0  ;;  %v913_v56 = vpop.f32.mrb[9].mxu1 }
 0x186   : > { %v1290_v57 = vadd.f32 %v1289_v54, %v1288_v52  ;;  %v898_v58 = vadd.f32 %v1287_v51, %v897_v40  ;;  %v1364_v59 = vpop.f32.mrb[10].mxu1 }
 0x187   : > { %v916_v61 = vpop.f32.mrb[11].mxu1 }
 0x188   : > { %v948_v62 = vadd.f32 %v898_v58, %v386_v55  ;;  %v901_v63 = vadd.f32 %v1290_v57, %v900_v45  ;;  %v396_v57 = vld [vmem:[#allocation2 + $0x70] sm:$0xff] }
 0x18a   : > { %964 = vst [vmem:[#allocation2 + $0x20] sm:$0xff] %v948_v62  ;;  %v949_v0 = vadd.f32 %v901_v63, %v387_v60  ;;  %v1291_v1 = vpop.f32.mrb[12].mxu0 }
 0x18b   : > { %v1292_v2 = vpop.f32.mrb[13].mxu0 }
 0x18c   : > { %965 = vst [vmem:[#allocation2 + $0x28] sm:$0xff] %v949_v0  ;;  %v1293_v3 = vadd.f32 %v1292_v2, %v1291_v1  ;;  %v1294_v4 = vpop.f32.mrb[14].mxu0  ;;  %v1367_v5 = vpop.f32.mrb[12].mxu1  ;;  %v980_v1 = vld [vmem:[#allocation2] sm:$0xff] (!%p1249_p4) }
 0x18d   : > { %v1295_v7 = vpop.f32.mrb[15].mxu0  ;;  %v929_v8 = vpop.f32.mrb[13].mxu1  ;;  %v1250_v2 = vld [vmem:[#allocation6] ss:$0 sm:$0xff] (!%p1249_p4) }
 0x18e   : > { %v906_v9 = vadd.f32 %v1359_v37, %v1293_v3  ;;  %v1296_v10 = vadd.f32 %v1295_v7, %v1294_v4  ;;  %v1368_v11 = vpop.f32.mrb[14].mxu1  ;;  %v393_v37 = vld [vmem:[#allocation2 + $0x58] sm:$0xff]  ;;  %v981_v3 = vld [vmem:[#allocation2 + $0x8] sm:$0xff] (!%p1249_p4)  ;;  %v1003_v4 = vadd.f32 (!%p1249_p4), %v1250_v2, %v980_v1  ;;  %v982_v7 = vld [vmem:[#allocation2 + $0x10] sm:$0xff] (!%p1249_p4) }
 0x18f   : > { %v932_v13 = vpop.f32.mrb[15].mxu1 }
 0x190   : > { %v950_v14 = vadd.f32 %v906_v9, %v388_v6  ;;  %v909_v15 = vadd.f32 %v1360_v43, %v1296_v10  ;;  %v1004_v6 = vadd.f32 (!%p1249_p4), %v1250_v2, %v981_v3  ;;  %v1005_v10 = vadd.f32 (!%p1249_p4), %v1250_v2, %v982_v7  ;;  %1019 = vst [vmem:[%s1958_s3] sm:$0xff] (!%p1249_p4), %v1003_v4 }
 0x191   : > { %v984_v9 = vld [vmem:[#allocation2 + $0x20] sm:$0xff] (!%p1249_p4) }
 0x192   : > { %966 = vst [vmem:[#allocation2 + $0x30] sm:$0xff] %v950_v14  ;;  %v951_v16 = vadd.f32 %v909_v15, %v389_v12  ;;  %v1297_v17 = vpop.f32.mrb[16].mxu0  ;;  %v1007_v12 = vadd.f32 (!%p1249_p4), %v1250_v2, %v984_v9  ;;  %1020 = vst [vmem:[%s1958_s3 + $0x8] sm:$0xff] (!%p1249_p4), %v1004_v6 }
 0x193   : > { %v1298_v18 = vpop.f32.mrb[17].mxu0  ;;  %1021 = vst [vmem:[%s1958_s3 + $0x10] sm:$0xff] (!%p1249_p4), %v1005_v10 }
 0x194   : > { %967 = vst [vmem:[#allocation2 + $0x38] sm:$0xff] %v951_v16  ;;  %v1299_v19 = vadd.f32 %v1298_v18, %v1297_v17  ;;  %v1300_v20 = vpop.f32.mrb[18].mxu0  ;;  %1023 = vst [vmem:[%s1958_s3 + $0x20] sm:$0xff] (!%p1249_p4), %v1007_v12 }
 0x195   : > { %v1301_v21 = vpop.f32.mrb[19].mxu0 }
 0x196   : > { %v1302_v23 = vadd.f32 %v1301_v21, %v1300_v20  ;;  %v914_v24 = vadd.f32 %v1299_v19, %v913_v56 }
 0x198   : > { %v952_v26 = vadd.f32 %v914_v24, %v390_v22  ;;  %v917_v27 = vadd.f32 %v1302_v23, %v916_v61  ;;  %v397_v61 = vld [vmem:[#allocation2 + $0x78] sm:$0xff] }
 0x199   : > { %v986_v14 = vld [vmem:[#allocation2 + $0x30] sm:$0xff] (!%p1249_p4) }
 0x19a   : > { %968 = vst [vmem:[#allocation2 + $0x40] sm:$0xff] %v952_v26  ;;  %v953_v28 = vadd.f32 %v917_v27, %v391_v25  ;;  %v1303_v29 = vpop.f32.mrb[20].mxu0  ;;  %v1009_v16 = vadd.f32 (!%p1249_p4), %v1250_v2, %v986_v14 }
 0x19b   : > { %v1304_v30 = vpop.f32.mrb[21].mxu0 }
 0x19c   : > { %969 = vst [vmem:[#allocation2 + $0x48] sm:$0xff] %v953_v28  ;;  %v1305_v31 = vadd.f32 %v1304_v30, %v1303_v29  ;;  %v1306_v32 = vpop.f32.mrb[22].mxu0  ;;  %1025 = vst [vmem:[%s1958_s3 + $0x30] sm:$0xff] (!%p1249_p4), %v1009_v16 }
 0x19d   : > { %v1307_v34 = vpop.f32.mrb[23].mxu0 }
 0x19e   : > { %v922_v35 = vadd.f32 %v1363_v53, %v1305_v31  ;;  %v1308_v36 = vadd.f32 %v1307_v34, %v1306_v32 }
 0x1a0   : > { %v954_v38 = vadd.f32 %v922_v35, %v392_v33  ;;  %v925_v39 = vadd.f32 %v1364_v59, %v1308_v36 }
 0x1a1   : > { %v988_v18 = vld [vmem:[#allocation2 + $0x40] sm:$0xff] (!%p1249_p4) }
 0x1a2   : > { %970 = vst [vmem:[#allocation2 + $0x50] sm:$0xff] %v954_v38  ;;  %v955_v40 = vadd.f32 %v925_v39, %v393_v37  ;;  %v1309_v41 = vpop.f32.mrb[24].mxu0  ;;  %v1011_v21 = vadd.f32 (!%p1249_p4), %v1250_v2, %v988_v18 }
 0x1a3   : > { %v1310_v42 = vpop.f32.mrb[25].mxu0  ;;  %v989_v19 = vld [vmem:[#allocation2 + $0x48] sm:$0xff] (!%p1249_p4) }
 0x1a4   : > { %971 = vst [vmem:[#allocation2 + $0x58] sm:$0xff] %v955_v40  ;;  %v1311_v43 = vadd.f32 %v1310_v42, %v1309_v41  ;;  %v1312_v44 = vpop.f32.mrb[26].mxu0  ;;  %v1012_v22 = vadd.f32 (!%p1249_p4), %v1250_v2, %v989_v19  ;;  %1027 = vst [vmem:[%s1958_s3 + $0x40] sm:$0xff] (!%p1249_p4), %v1011_v21 }
 0x1a5   : > { %v1313_v45 = vpop.f32.mrb[27].mxu0 }
 0x1a6   : > { %v1314_v47 = vadd.f32 %v1313_v45, %v1312_v44  ;;  %v930_v48 = vadd.f32 %v1311_v43, %v929_v8  ;;  %v983_v8 = vld [vmem:[#allocation2 + $0x18] sm:$0xff] (!%p1249_p4)  ;;  %1028 = vst [vmem:[%s1958_s3 + $0x48] sm:$0xff] (!%p1249_p4), %v1012_v22 }
 0x1a8   : > { %v956_v50 = vadd.f32 %v930_v48, %v394_v46  ;;  %v933_v51 = vadd.f32 %v1314_v47, %v932_v13  ;;  %v985_v13 = vld [vmem:[#allocation2 + $0x28] sm:$0xff] (!%p1249_p4) }
 0x1a9   : > { %v1008_v15 = vadd.f32 (!%p1249_p4), %v1250_v2, %v985_v13  ;;  %v990_v20 = vld [vmem:[#allocation2 + $0x50] sm:$0xff] (!%p1249_p4) }
 0x1aa   : > { %972 = vst [vmem:[#allocation2 + $0x60] sm:$0xff] %v956_v50  ;;  %v957_v52 = vadd.f32 %v933_v51, %v395_v49  ;;  %v1315_v53 = vpop.f32.mrb[28].mxu0  ;;  %v1013_v23 = vadd.f32 (!%p1249_p4), %v1250_v2, %v990_v20 }
 0x1ab   : > { %v1316_v54 = vpop.f32.mrb[29].mxu0  ;;  %v991_v24 = vld [vmem:[#allocation2 + $0x58] sm:$0xff] (!%p1249_p4)  ;;  %1024 = vst [vmem:[%s1958_s3 + $0x28] sm:$0xff] (!%p1249_p4), %v1008_v15 }
 0x1ac   : > { %973 = vst [vmem:[#allocation2 + $0x68] sm:$0xff] %v957_v52  ;;  %v1317_v55 = vadd.f32 %v1316_v54, %v1315_v53  ;;  %v1318_v56 = vpop.f32.mrb[30].mxu0  ;;  %v1014_v27 = vadd.f32 (!%p1249_p4), %v1250_v2, %v991_v24  ;;  %1029 = vst [vmem:[%s1958_s3 + $0x50] sm:$0xff] (!%p1249_p4), %v1013_v23 }
 0x1ad   : > { %v1319_v58 = vpop.f32.mrb[31].mxu0 }
 0x1ae   : > { %v938_v59 = vadd.f32 %v1367_v5, %v1317_v55  ;;  %v1320_v60 = vadd.f32 %v1319_v58, %v1318_v56  ;;  %979 = sbr.rel (%p1249_p4) target bundleno = 447 (0x1bf), region = 74  ;;  %v1006_v5 = vadd.f32 (!%p1249_p4), %v1250_v2, %v983_v8  ;;  %1030 = vst [vmem:[%s1958_s3 + $0x58] sm:$0xff] (!%p1249_p4), %v1014_v27 }
 0x1b0   : > { %v958_v62 = vadd.f32 %v938_v59, %v396_v57  ;;  %v941_v63 = vadd.f32 %v1368_v11, %v1320_v60  ;;  %v987_v11 = vld [vmem:[#allocation2 + $0x38] sm:$0xff] (!%p1249_p4)  ;;  %1022 = vst [vmem:[%s1958_s3 + $0x18] sm:$0xff] (!%p1249_p4), %v1006_v5 }
 0x1b1   : > { %v1010_v17 = vadd.f32 (!%p1249_p4), %v1250_v2, %v987_v11  ;;  %v992_v25 = vld [vmem:[#allocation2 + $0x60] sm:$0xff] (!%p1249_p4) }
 0x1b2   : > { %974 = vst [vmem:[#allocation2 + $0x70] sm:$0xff] %v958_v62  ;;  %v959_v0 = vadd.f32 %v941_v63, %v397_v61  ;;  %v1015_v28 = vadd.f32 (!%p1249_p4), %v1250_v2, %v992_v25 }
 0x1b3   : > { %v993_v26 = vld [vmem:[#allocation2 + $0x68] sm:$0xff] (!%p1249_p4)  ;;  %1026 = vst [vmem:[%s1958_s3 + $0x38] sm:$0xff] (!%p1249_p4), %v1010_v17 }
 0x1b4   : > { %975 = vst [vmem:[#allocation2 + $0x78] sm:$0xff] %v959_v0  ;;  %v1016_v29 = vadd.f32 (!%p1249_p4), %v1250_v2, %v993_v26  ;;  %1031 = vst [vmem:[%s1958_s3 + $0x60] sm:$0xff] (!%p1249_p4), %v1015_v28 }
 0x1b6   : > { %1032 = vst [vmem:[%s1958_s3 + $0x68] sm:$0xff] %v1016_v29 }
 0x1b9   : > { %v994_v30 = vld [vmem:[#allocation2 + $0x70] sm:$0xff] }
 0x1ba   : > { %v1017_v32 = vadd.f32 %v1250_v2, %v994_v30 }
 0x1bb   : > { %v995_v31 = vld [vmem:[#allocation2 + $0x78] sm:$0xff] }
 0x1bc   : > { %v1018_v33 = vadd.f32 %v1250_v2, %v995_v31  ;;  %1033 = vst [vmem:[%s1958_s3 + $0x70] sm:$0xff] %v1017_v32 }
 0x1be   : > { %1034 = vst [vmem:[%s1958_s3 + $0x78] sm:$0xff] %v1018_v33 }
 0x1bf PF: > { %s17_s17 = sadd.s32 1, %s1602_s17   ;;  %s1974_s12 = smov %s1586_s13 }
 0x1c0   : > { %p14_p6 = scmp.ge.s32.totalorder %s17_s17, 5   ;;  %s1975_s13 = smov %s1590_s14 }
 0x1c1   : > { %s1976_s14 = smov %s1685_s25  ;;  %s1977_s15 = smov %s1598_s16 }
 0x1c2   : > { %s1978_s16 = smov %s1980_s19  ;;  %16 = sbr.rel (!%p14_p6) target bundleno = 5 (0x5), region = 125 }
 0x1c9   :  { %1063 = vsyncpa [#allocation5], 1 }
 0x1ca   :  { %1065 = vsyncpa [#allocation5 + $0x1], 1 }
 0x1cb   :  { %1066 = vsyncpa [#allocation7], 1 }

// kernel: sketch_translator_forward.58
= control target key start
LH: loop header
LB: loop body
LE: loop exit
PB: predicated region body
PF: predicated region fallthrough
CT: control target
= control target key end

     0   :  { %s379_s6 = smov 0   ;;  %s381_s7 = smov 0   ;;  %s419_s0 = inlined_call_operand.vmem [shape: f32[2,16,256], index: 0, kind: input, shape index: {}]   ;;  %s420_s1 = inlined_call_operand.vmem [shape: f32[2,16,256], index: 1, kind: output, shape index: {}]  }
   0x1   :  { %s383_s8 = smov 0  }
   0x2 LB: > { %s23_s9 = sadd.s32 1, %s363_s7  ;;  %p308_p0 = scmp.ge.s32.totalorder %s367_s8, 1  ;;  %s367_s8 = sphi %s383_s8, %s11_s8   ;;  %s363_s7 = sphi %s381_s7, %s422_s7   ;;  %s359_s6 = sphi %s379_s6, %s421_s6  }
   0x3   : > { %p25_p1 = scmp.ge.s32.totalorder %s23_s9, 2  ;;  %p108_p2 = scmp.lt.s32.totalorder %s367_s8, 3 }
   0x5   : > { %s424_s9 = smov (%p25_p1, %s23_s9), 0  ;;  %p109_p3 = pnand %p308_p0, %p108_p2 }
   0x6   : > { %p137_p4 = scmp.lt.s32.totalorder (!%p109_p3), %s359_s6, 1 }
   0x7   : > { %112 = sbr.rel (%p109_p3) target bundleno = 73 (0x49), region = 24 }
   0xe   : > { %s426_s6 = smov (!%p137_p4, %s359_s6), 1 }
   0xf   : > { %s315_s10 = sshll.u32 %s426_s6, 5 }
  0x10   : > { %s144_s13 = scalar_lea.vmem %s419_s0, %s315_s10  ;;  %s154_s16 = scalar_lea.vmem %s420_s1, %s315_s10 }
  0x11   : > { %v156_v0 = vld [vmem:[%s144_s13] sm:$0xff]  ;;  %v158_v1 = vld [vmem:[%s144_s13 + $0x10] sm:$0xff]  ;;  %v157_v2 = vld [vmem:[%s144_s13 + $0x8] sm:$0xff] }
  0x12   : > { %v160_v3 = vadd.f32 %v158_v1, %v156_v0  ;;  %v159_v4 = vld [vmem:[%s144_s13 + $0x18] sm:$0xff] }
  0x13   : > { %v167_v5 = vadd.f32 %v159_v4, %v157_v2 }
  0x14   : > { %v161_v6 = vrot.slane %v160_v3, 4 }
  0x15   : > { %v168_v7 = vrot.slane %v167_v5, 4 }
  0x16   : > { %v162_v8 = vadd.f32 %v161_v6, %v160_v3 }
  0x17   : > { %v169_v9 = vadd.f32 %v168_v7, %v167_v5 }
  0x18   : > { %v163_v10 = vrot.slane %v162_v8, 2 }
  0x19   : > { %v170_v11 = vrot.slane %v169_v9, 2 }
  0x1a   : > { %v164_v12 = vadd.f32 %v163_v10, %v162_v8 }
  0x1b   : > { %v171_v13 = vadd.f32 %v170_v11, %v169_v9 }
  0x1c   : > { %v165_v14 = vrot.slane %v164_v12, 1 }
  0x1d   : > { %v172_v15 = vrot.slane %v171_v13, 1 }
  0x1e   : > { %v166_v16 = vadd.f32 %v165_v14, %v164_v12 }
  0x1f   : > { %v173_v17 = vadd.f32 %v172_v15, %v171_v13 }
  0x20   : > { %v175_v18 = vmul.f32 0.0625, %v166_v16 }
  0x21   : > { %v176_v19 = vmul.f32 0.0625, %v173_v17 }
  0x22   : > { %v177_v20 = vsub.f32 %v156_v0, %v175_v18  ;;  %v179_v21 = vsub.f32 %v158_v1, %v175_v18 }
  0x23   : > { %v178_v22 = vsub.f32 %v157_v2, %v176_v19  ;;  %v180_v23 = vsub.f32 %v159_v4, %v176_v19 }
  0x24   : > { %v181_v24 = vmul.f32 %v177_v20, %v177_v20  ;;  %v183_v25 = vmul.f32 %v179_v21, %v179_v21 }
  0x25   : > { %v182_v26 = vmul.f32 %v178_v22, %v178_v22  ;;  %v184_v27 = vmul.f32 %v180_v23, %v180_v23 }
  0x26   : > { %v185_v28 = vadd.f32 %v183_v25, %v181_v24 }
  0x27   : > { %v192_v29 = vadd.f32 %v184_v27, %v182_v26 }
  0x28   : > { %v186_v30 = vrot.slane %v185_v28, 4 }
  0x29   : > { %v193_v31 = vrot.slane %v192_v29, 4 }
  0x2a   : > { %v187_v32 = vadd.f32 %v186_v30, %v185_v28 }
  0x2b   : > { %v194_v33 = vadd.f32 %v193_v31, %v192_v29 }
  0x2c   : > { %v188_v34 = vrot.slane %v187_v32, 2 }
  0x2d   : > { %v195_v35 = vrot.slane %v194_v33, 2 }
  0x2e   : > { %v189_v36 = vadd.f32 %v188_v34, %v187_v32 }
  0x2f   : > { %v196_v37 = vadd.f32 %v195_v35, %v194_v33 }
  0x30   : > { %v190_v38 = vrot.slane %v189_v36, 1 }
  0x31   : > { %v197_v39 = vrot.slane %v196_v37, 1 }
  0x32   : > { %v191_v40 = vadd.f32 %v190_v38, %v189_v36 }
  0x33   : > { %v198_v41 = vadd.f32 %v197_v39, %v196_v37 }
  0x34   : > { %v199_v42 = vmul.f32 0.0625, %v191_v40 }
  0x35   : > { %v200_v43 = vmul.f32 0.0625, %v198_v41 }
  0x36   : > { %v201_v44 = vadd.f32 1e-05, %v199_v42 }
  0x37   : > { %v202_v45 = vadd.f32 1e-05, %v200_v43 }
  0x38   : > { %341 = vrsqrt.f32 %v201_v44 }
  0x39   : > { %343 = vrsqrt.f32 %v202_v45 }
  0x42   : > { %v342_v46 = vpop.eup %341 }
  0x43   : > { %v344_v47 = vpop.eup %343  ;;  %v205_v48 = vmul.f32 %v342_v46, %v177_v20  ;;  %v207_v49 = vmul.f32 %v342_v46, %v179_v21 }
  0x44   : > { %v206_v50 = vmul.f32 %v344_v47, %v178_v22  ;;  %v208_v51 = vmul.f32 %v344_v47, %v180_v23 }
  0x45   : > { %v209_v52 = vmax.f32 %v205_v48, 0.0  ;;  %v211_v53 = vmax.f32 %v207_v49, 0.0 }
  0x46   : > { %v210_v54 = vmax.f32 %v206_v50, 0.0  ;;  %v212_v55 = vmax.f32 %v208_v51, 0.0 }
  0x47   : > { %213 = vst [vmem:[%s154_s16] sm:$0xff] %v209_v52  ;;  %215 = vst [vmem:[%s154_s16 + $0x10] sm:$0xff] %v211_v53 }
  0x48   : > { %214 = vst [vmem:[%s154_s16 + $0x8] sm:$0xff] %v210_v54  ;;  %216 = vst [vmem:[%s154_s16 + $0x18] sm:$0xff] %v212_v55 }
  0x49 PF: > { %s11_s8 = sadd.s32 1, %s367_s8   ;;  %s421_s6 = smov %s363_s7 }
  0x4a   : > { %p8_p5 = scmp.ge.s32.totalorder %s11_s8, 4   ;;  %s422_s7 = smov %s424_s9 }
  0x4c   :  { %10 = sbr.rel (!%p8_p5) target bundleno = 2 (0x2), region = 54 }

// kernel: sketch_translator_forward.57
= control target key start
LH: loop header
LB: loop body
LE: loop exit
PB: predicated region body
PF: predicated region fallthrough
CT: control target
= control target key end

     0   :  { %s1224_s12 = smov 0   ;;  %s1226_s13 = smov 0   ;;  %s1378_s0 = inlined_call_operand.vmem [shape: bf16[32,1152], index: 0, kind: input, shape index: {}]   ;;  %s1379_s1 = inlined_call_operand.vmem [shape: bf16[1152,256], index: 1, kind: input, shape index: {}]   ;;  %s1380_s2 = inlined_call_operand.vmem [shape: f32[1,256], index: 2, kind: input, shape index: {}]   ;;  %s1381_s3 = inlined_call_operand.vmem [shape: f32[32,256], index: 3, kind: output, shape index: {}]  }
   0x1   :  { %s1228_s14 = smov 0   ;;  %s1230_s15 = smov 0  }
   0x2   :  { %s1232_s16 = smov 0  }
   0x3 LB: > { %s25_s17 = sadd.s32 1, %s1196_s15  ;;  %p48_p1 = scmp.ne.s32.totalorder %s1188_s13, %s1184_s12  ;;  %s1200_s16 = sphi %s1232_s16, %s13_s16   ;;  %s1196_s15 = sphi %s1230_s15, %s1385_s15   ;;  %s1192_s14 = sphi %s1228_s14, %s1384_s14   ;;  %s1188_s13 = sphi %s1226_s13, %s1383_s13   ;;  %s1184_s12 = sphi %s1224_s12, %s1382_s12  }
   0x4   : > { %p26_p0 = scmp.ge.s32.totalorder %s25_s17, 3  ;;  %p49_p2 = scmp.eq.s32.totalorder %s1200_s16, 0 }
   0x5   : > { %s41_s19 = sadd.s32 1, %s1188_s13  ;;  %p955_p5 = scmp.ge.s32.totalorder %s1200_s16, 3 }
   0x6   : > { %s1387_s17 = smov (%p26_p0, %s25_s17), 0  ;;  %p50_p3 = por %p49_p2, %p48_p1 }
   0x7   : > { %s37_s18 = ssub.s32 %s1196_s15, %s1387_s17  ;;  %164 = sbr.rel (%p955_p5) target bundleno = 23 (0x17), region = 20 }
   0x8   : > { %p39_p4 = scmp.eq.s32.totalorder %s37_s18, 0 }
   0xa   : > { %s1259_s20 = scalar_select %p39_p4, %s1188_s13, %s41_s19  }
   0xe   : > { %167 = sbr.rel (!%p50_p3) target bundleno = 23 (0x17), region = 24  ;;  %s169_s21 = sand.u32 (%p50_p3), 1, %s1188_s13  }
   0xf   : > { %s1028_s22 = smul.u32 (%p50_p3), 12, %s1196_s15 }
  0x10   : > { %s1038_s23 = smul.u32 (%p50_p3), 48, %s169_s21 }
  0x11   : > { %s177_s26 = scalar_lea.vmem (%p50_p3), %s1378_s0, %s1028_s22 }
  0x12   : > { %v192_v0 = vld [vmem:[%s177_s26] sm:$0xff] (%p50_p3)  ;;  %v196_v2 = vld [vmem:[%s177_s26 + $0x48] sm:$0xff] (%p50_p3)  ;;  %s171_s27 = scalar_lea.vmem (%p50_p3), [#allocation3], %s1038_s23  ;;  %v961_v6 = vld [vmem:[%s177_s26 + $0x50] sm:$0xf] (%p50_p3) }
  0x13   : > { %v194_v1 = vld [vmem:[%s177_s26 + $0x24] sm:$0xff] (%p50_p3)  ;;  %193 = vst [vmem:[%s171_s27] sm:$0xff] (%p50_p3), %v192_v0  ;;  %197 = vst [vmem:[%s171_s27 + $0x18] sm:$0xff] (%p50_p3), %v196_v2  ;;  %v198_v3 = vld [vmem:[%s177_s26 + $0x6c] sm:$0xff] (%p50_p3) }
  0x14   : > { %195 = vst [vmem:[%s171_s27 + $0xc] sm:$0xff] (%p50_p3), %v194_v1  ;;  %v957_v4 = vld [vmem:[%s177_s26 + $0x8] sm:$0xf] (%p50_p3)  ;;  %v959_v5 = vld [vmem:[%s177_s26 + $0x2c] sm:$0xf] (%p50_p3)  ;;  %199 = vst [vmem:[%s171_s27 + $0x24] sm:$0xff] (%p50_p3), %v198_v3 }
  0x15   : > { %958 = vst [vmem:[%s171_s27 + $0x8] sm:$0xf] %v957_v4  ;;  %960 = vst [vmem:[%s171_s27 + $0x14] sm:$0xf] %v959_v5  ;;  %v963_v7 = vld [vmem:[%s177_s26 + $0x74] sm:$0xf] }
  0x16   : > { %962 = vst [vmem:[%s171_s27 + $0x20] sm:$0xf] %v961_v6  ;;  %964 = vst [vmem:[%s171_s27 + $0x2c] sm:$0xf] %v963_v7 }
  0x17 PF: > { %p965_p6 = scmp.ge.s32.totalorder %s1200_s16, 1  ;;  %p234_p7 = scmp.lt.s32.totalorder %s1200_s16, 4 }
  0x19   : > { %p235_p8 = pnand %p965_p6, %p234_p7 }
  0x1a   : > { %s241_s28 = sand.u32 (!%p235_p8), 1, %s1184_s12   ;;  %s285_s29 = smul.u32 (!%p235_p8), 48, %s1192_s14 }
  0x1b   : > { %238 = sbr.rel (%p235_p8) target bundleno = 344 (0x158), region = 54  ;;  %p968_p10 = scmp.ne.s32.totalorder (!%p235_p8), %s1192_s14, 0 }
  0x1c   : > { %s1039_s30 = smul.u32 (!%p235_p8), 48, %s241_s28  ;;  %p287_p9 = scmp.lt.s32.totalorder (!%p235_p8), %s285_s29, 143 }
  0x1e   : > { %s1276_s8 = scalar_lea.vmem (!%p235_p8), [#allocation3], %s1039_s30 }
  0x22   : > { %s1389_s29 = smov (!%p287_p9, %s285_s29), 143  ;;  %318 = sbr.rel (%p968_p10) target bundleno = 41 (0x29), region = 62 }
  0x23   : > { %s1029_s4 = sshll.u32 %s1389_s29, 3  ;;  %v1202_v8 = vmov (!%p968_p10), 0.0  }
  0x24   : > { %s1274_s7 = scalar_lea.vmem %s1379_s1, %s1029_s4  ;;  %319 = vst [vmem:[#allocation2] sm:$0xff] (!%p968_p10), %v1202_v8  ;;  %320 = vst [vmem:[#allocation2 + $0x8] sm:$0xff] (!%p968_p10), %v1202_v8 }
  0x25   : > { %321 = vst [vmem:[#allocation2 + $0x10] sm:$0xff] (!%p968_p10), %v1202_v8  ;;  %322 = vst [vmem:[#allocation2 + $0x18] sm:$0xff] (!%p968_p10), %v1202_v8 }
  0x26   : > { %323 = vst [vmem:[#allocation2 + $0x20] sm:$0xff] (!%p968_p10), %v1202_v8  ;;  %324 = vst [vmem:[#allocation2 + $0x28] sm:$0xff] (!%p968_p10), %v1202_v8 }
  0x27   : > { %325 = vst [vmem:[#allocation2 + $0x30] sm:$0xff] (!%p968_p10), %v1202_v8  ;;  %326 = vst [vmem:[#allocation2 + $0x38] sm:$0xff] (!%p968_p10), %v1202_v8 }
  0x29 PF: > { %v1082_v9 = vld [vmem:[%s1274_s7 + $0x4] ss:$8 sps:$4 sm:$0xff]   ;;  %v1084_v10 = vld [vmem:[%s1274_s7] ss:$8 sps:$4 sm:$0xff]   ;;  %v1203_v11 = vmov 0   ;;  %p1023_p11 = scmp.ne.s32.totalorder %s1192_s14, 2 }
  0x2a   : > { %748 = vmatprep.mubr.bf16.mxu0 %v1203_v11  ;;  %663 = vmatprep.subr.bf16.mxu1 %v1082_v9  ;;  %v1085_v12 = vld [vmem:[%s1274_s7 + $0x14] ss:$8 sps:$4 sm:$0xff]   ;;  %v1087_v13 = vld [vmem:[%s1274_s7 + $0x10] ss:$8 sps:$4 sm:$0xff]   ;;  %v1088_v14 = vld [vmem:[%s1274_s7 + $0x24] ss:$8 sps:$4 sm:$0xff]  }
  0x2b   : > { %664 = vmatpush1.bf16.msra.mxu1 %v1084_v10  ;;  %v1090_v15 = vld [vmem:[%s1274_s7 + $0x20] ss:$8 sps:$4 sm:$0xff]   ;;  %v1091_v16 = vld [vmem:[%s1274_s7 + $0x34] ss:$8 sps:$4 sm:$0xff]   ;;  %v1093_v17 = vld [vmem:[%s1274_s7 + $0x30] ss:$8 sps:$4 sm:$0xff]  }
  0x2c   : > { %665 = vmatprep.subr.bf16.mxu1 %v1085_v12  ;;  %v1106_v18 = vld [vmem:[%s1274_s7 + $0x104] ss:$8 sps:$4 sm:$0xff]   ;;  %v1108_v19 = vld [vmem:[%s1274_s7 + $0x100] ss:$8 sps:$4 sm:$0xff]   ;;  %v1112_v21 = vld [vmem:[%s1274_s7 + $0x114] ss:$8 sps:$4 sm:$0xff]  }
  0x2d   : > { %v1094_v20 = vld [vmem:[%s1274_s7 + $0x44] ss:$8 sps:$4 sm:$0xff]   ;;  %716 = vmatprep.subr.bf16.mxu0 %v1106_v18  ;;  %v1114_v22 = vld [vmem:[%s1274_s7 + $0x110] ss:$8 sps:$4 sm:$0xff]   ;;  %v1096_v23 = vld [vmem:[%s1274_s7 + $0x40] ss:$8 sps:$4 sm:$0xff]  }
  0x2e   : > { %717 = vmatpush1.bf16.msra.mxu0 %v1108_v19  ;;  %v1097_v24 = vld [vmem:[%s1274_s7 + $0x54] ss:$8 sps:$4 sm:$0xff]   ;;  %v1118_v25 = vld [vmem:[%s1274_s7 + $0x124] ss:$8 sps:$4 sm:$0xff]   ;;  %v1120_v26 = vld [vmem:[%s1274_s7 + $0x120] ss:$8 sps:$4 sm:$0xff]  }
  0x2f   : > { %666 = vmatpush1.bf16.msra.mxu1 %v1087_v13  ;;  %718 = vmatprep.subr.bf16.mxu0 %v1112_v21  ;;  %v1099_v27 = vld [vmem:[%s1274_s7 + $0x50] ss:$8 sps:$4 sm:$0xff]   ;;  %v1124_v28 = vld [vmem:[%s1274_s7 + $0x134] ss:$8 sps:$4 sm:$0xff]   ;;  %v1100_v29 = vld [vmem:[%s1274_s7 + $0x64] ss:$8 sps:$4 sm:$0xff]  }
  0x30   : > { %667 = vmatprep.subr.bf16.mxu1 %v1088_v14  ;;  %v1126_v30 = vld [vmem:[%s1274_s7 + $0x130] ss:$8 sps:$4 sm:$0xff]   ;;  %v1102_v31 = vld [vmem:[%s1274_s7 + $0x60] ss:$8 sps:$4 sm:$0xff]   ;;  %v1130_v32 = vld [vmem:[%s1274_s7 + $0x144] ss:$8 sps:$4 sm:$0xff]  }
  0x31   : > { %v1103_v33 = vld [vmem:[%s1274_s7 + $0x74] ss:$8 sps:$4 sm:$0xff]   ;;  %v1132_v34 = vld [vmem:[%s1274_s7 + $0x140] ss:$8 sps:$4 sm:$0xff]   ;;  %v1105_v35 = vld [vmem:[%s1274_s7 + $0x70] ss:$8 sps:$4 sm:$0xff]  }
  0x32   : > { %719 = vmatpush1.bf16.msra.mxu0 %v1114_v22  ;;  %v1136_v36 = vld [vmem:[%s1274_s7 + $0x154] ss:$8 sps:$4 sm:$0xff]   ;;  %v1109_v37 = vld [vmem:[%s1274_s7 + $0x84] ss:$8 sps:$4 sm:$0xff]   ;;  %v1138_v38 = vld [vmem:[%s1274_s7 + $0x150] ss:$8 sps:$4 sm:$0xff]  }
  0x33   : > { %668 = vmatpush1.bf16.msra.mxu1 %v1090_v15  ;;  %720 = vmatprep.subr.bf16.mxu0 %v1118_v25  ;;  %v1111_v39 = vld [vmem:[%s1274_s7 + $0x80] ss:$8 sps:$4 sm:$0xff]   ;;  %v1142_v40 = vld [vmem:[%s1274_s7 + $0x164] ss:$8 sps:$4 sm:$0xff]   ;;  %v1115_v41 = vld [vmem:[%s1274_s7 + $0x94] ss:$8 sps:$4 sm:$0xff]  }
  0x34   : > { %669 = vmatprep.subr.bf16.mxu1 %v1091_v16  ;;  %v1117_v42 = vld [vmem:[%s1274_s7 + $0x90] ss:$8 sps:$4 sm:$0xff]   ;;  %v1144_v43 = vld [vmem:[%s1274_s7 + $0x160] ss:$8 sps:$4 sm:$0xff]   ;;  %v1148_v45 = vld [vmem:[%s1274_s7 + $0x174] ss:$8 sps:$4 sm:$0xff]  }
  0x35   : > { %v1157_v44 = vld [vmem:[%s1276_s8 + $0x4] ss:$12 sps:$4 sm:$0xff]   ;;  %v1154_v50 = vld [vmem:[%s1276_s8 + $0x8] ss:$12 sps:$4 sm:$0xff]   ;;  %v1158_v55 = vld [vmem:[%s1276_s8 + $0x20] ss:$12 sps:$4 sm:$0xff]  }
  0x36   : > { %721 = vmatpush1.bf16.msra.mxu0 %v1120_v26  ;;  %v1121_v46 = vld [vmem:[%s1274_s7 + $0xa4] ss:$8 sps:$4 sm:$0xff]   ;;  %695 = vmatprep.mubr.bf16.mxu1 %v1157_v44  ;;  %v1150_v47 = vld [vmem:[%s1274_s7 + $0x170] ss:$8 sps:$4 sm:$0xff]   ;;  %v1123_v48 = vld [vmem:[%s1274_s7 + $0xa0] ss:$8 sps:$4 sm:$0xff]  }
  0x37   : > { %670 = vmatpush1.bf16.msra.mxu1 %v1093_v17  ;;  %722 = vmatprep.subr.bf16.mxu0 %v1124_v28  ;;  %v1127_v49 = vld [vmem:[%s1274_s7 + $0xb4] ss:$8 sps:$4 sm:$0xff]   ;;  %v1129_v51 = vld [vmem:[%s1274_s7 + $0xb0] ss:$8 sps:$4 sm:$0xff]   ;;  %v1133_v52 = vld [vmem:[%s1274_s7 + $0xc4] ss:$8 sps:$4 sm:$0xff]  }
  0x38   : > { %671 = vmatprep.subr.bf16.mxu1 %v1094_v20  ;;  %v1135_v53 = vld [vmem:[%s1274_s7 + $0xc0] ss:$8 sps:$4 sm:$0xff]   ;;  %v1139_v54 = vld [vmem:[%s1274_s7 + $0xd4] ss:$8 sps:$4 sm:$0xff]   ;;  %v1141_v56 = vld [vmem:[%s1274_s7 + $0xd0] ss:$8 sps:$4 sm:$0xff]  }
  0x39   : > { %v1145_v57 = vld [vmem:[%s1274_s7 + $0xe4] ss:$8 sps:$4 sm:$0xff]   ;;  %v1147_v58 = vld [vmem:[%s1274_s7 + $0xe0] ss:$8 sps:$4 sm:$0xff]   ;;  %v1151_v59 = vld [vmem:[%s1274_s7 + $0xf4] ss:$8 sps:$4 sm:$0xff]  }
  0x3a   : > { %723 = vmatpush1.bf16.msra.mxu0 %v1126_v30  ;;  %v1153_v60 = vld [vmem:[%s1274_s7 + $0xf0] ss:$8 sps:$4 sm:$0xff]   ;;  %v327_v8 = vld [vmem:[#allocation2] sm:$0xff] }
  0x3b   : > { %672 = vmatpush1.bf16.msra.mxu1 %v1096_v23  ;;  %724 = vmatprep.subr.bf16.mxu0 %v1130_v32  ;;  %v1155_v61 = vld [vmem:[%s1276_s8] ss:$12 sps:$4 sm:$0xff]   ;;  %v1159_v62 = vld [vmem:[%s1276_s8 + $0x1c] ss:$12 sps:$4 sm:$0xff]   ;;  %v1161_v63 = vld [vmem:[%s1276_s8 + $0x18] ss:$12 sps:$4 sm:$0xff]  }
  0x3c   : > { %673 = vmatprep.subr.bf16.mxu1 %v1097_v24  ;;  %v329_v14 = vld [vmem:[#allocation2 + $0x10] sm:$0xff]  ;;  %v330_v18 = vld [vmem:[#allocation2 + $0x18] sm:$0xff]  ;;  %v331_v24 = vld [vmem:[#allocation2 + $0x20] sm:$0xff] }
  0x3d   : > { %v333_v30 = vld [vmem:[#allocation2 + $0x30] sm:$0xff] }
  0x3e   : > { %725 = vmatpush1.bf16.msra.mxu0 %v1132_v34  ;;  %v334_v34 = vld [vmem:[#allocation2 + $0x38] sm:$0xff] }
  0x3f   : > { %674 = vmatpush1.bf16.msra.mxu1 %v1099_v27  ;;  %726 = vmatprep.subr.bf16.mxu0 %v1136_v36  ;;  %v332_v27 = vld [vmem:[#allocation2 + $0x28] sm:$0xff] }
  0x40   : > { %675 = vmatprep.subr.bf16.mxu1 %v1100_v29 }
  0x42   : > { %727 = vmatpush1.bf16.msra.mxu0 %v1138_v38 }
  0x43   : > { %676 = vmatpush1.bf16.msra.mxu1 %v1102_v31  ;;  %728 = vmatprep.subr.bf16.mxu0 %v1142_v40  ;;  %v799_v40 = vlaneseq (!%p1023_p11) }
  0x44   : > { %677 = vmatprep.subr.bf16.mxu1 %v1103_v33 }
  0x46   : > { %729 = vmatpush1.bf16.msra.mxu0 %v1144_v43 }
  0x47   : > { %678 = vmatpush1.bf16.msra.mxu1 %v1105_v35  ;;  %730 = vmatprep.subr.bf16.mxu0 %v1148_v45 }
  0x48   : > { %679 = vmatprep.subr.bf16.mxu1 %v1109_v37 }
  0x4a   : > { %731 = vmatpush1.bf16.msra.mxu0 %v1150_v47 }
  0x4b   : > { %680 = vmatpush1.bf16.msra.mxu1 %v1111_v39 }
  0x4c   : > { %681 = vmatprep.subr.bf16.mxu1 %v1115_v41  ;;  %v800_v41 = vshrl.u32 (!%p1023_p11), %v799_v40, 7 }
  0x4d   : > { %749 = vmatmul.mubr.bf16.vlgmr.msra.gmra.mrb[0].mxu0 %v1154_v50 }
  0x4e   : > { %758 = vmatprep.mubr.bf16.mxu0 %v1203_v11  ;;  %v328_v11 = vld [vmem:[#allocation2 + $0x8] sm:$0xff]  ;;  %v801_v44 = vsub.s32 (!%p1023_p11), 0, %v800_v41 }
  0x4f   : > { %682 = vmatpush1.bf16.msra.mxu1 %v1117_v42  ;;  %v797_v42 = vld [vmem:[%s1380_s2] sm:$0x3] (!%p1023_p11) }
  0x50   : > { %683 = vmatprep.subr.bf16.mxu1 %v1121_v46  ;;  %v805_v46 = vsub.s32 (!%p1023_p11), 1, %v800_v41  ;;  %v802_v50 = vrot.slane (!%p1023_p11), %v797_v42, %v801_v44 }
  0x53   : > { %684 = vmatpush1.bf16.msra.mxu1 %v1123_v48 }
  0x54   : > { %685 = vmatprep.subr.bf16.mxu1 %v1127_v49 }
  0x55   : > { %759 = vmatmul.mubr.bf16.gmra.mrb[4].mxu0 %v1158_v55 }
  0x57   : > { %686 = vmatpush1.bf16.msra.mxu1 %v1129_v51  ;;  %v806_v51 = vrot.slane (!%p1023_p11), %v797_v42, %v805_v46 }
  0x58   : > { %687 = vmatprep.subr.bf16.mxu1 %v1133_v52 }
  0x5b   : > { %688 = vmatpush1.bf16.msra.mxu1 %v1135_v53 }
  0x5c   : > { %689 = vmatprep.subr.bf16.mxu1 %v1139_v54 }
  0x5f   : > { %690 = vmatpush1.bf16.msra.mxu1 %v1141_v56 }
  0x60   : > { %691 = vmatprep.subr.bf16.mxu1 %v1145_v57 }
  0x63   : > { %692 = vmatpush1.bf16.msra.mxu1 %v1147_v58 }
  0x64   : > { %693 = vmatprep.subr.bf16.mxu1 %v1151_v59 }
  0x67   : > { %694 = vmatpush1.bf16.msra.mxu1 %v1153_v60 }
  0x6a   : > { %696 = vmatmul.mubr.bf16.vlgmr.msra.gmra.mrb[0].mxu1 %v1155_v61 }
  0x6b   : > { %705 = vmatprep.mubr.bf16.mxu1 %v1159_v62 }
  0x72   : > { %706 = vmatmul.mubr.bf16.gmra.mrb[4].mxu1 %v1161_v63 }
 0x120   : > { %v750_v0 = vpop.f32.mrb[0].mxu0 }
 0x121   : > { %v752_v1 = vpop.f32.mrb[1].mxu0 }
 0x122   : > { %v754_v2 = vpop.f32.mrb[2].mxu0 }
 0x123   : > { %v756_v3 = vpop.f32.mrb[3].mxu0 }
 0x128   : > { %v760_v4 = vpop.f32.mrb[4].mxu0 }
 0x129   : > { %v762_v5 = vpop.f32.mrb[5].mxu0 }
 0x12a   : > { %v764_v6 = vpop.f32.mrb[6].mxu0 }
 0x12b   : > { %v766_v7 = vpop.f32.mrb[7].mxu0 }
 0x13d   : > { %v697_v9 = vpop.f32.mrb[0].mxu1 }
 0x13e   : > { %v751_v10 = vadd.f32 %v750_v0, %v697_v9  ;;  %v699_v12 = vpop.f32.mrb[1].mxu1 }
 0x13f   : > { %v753_v13 = vadd.f32 %v752_v1, %v699_v12  ;;  %v701_v15 = vpop.f32.mrb[2].mxu1 }
 0x140   : > { %v769_v16 = vadd.f32 %v751_v10, %v327_v8  ;;  %v755_v17 = vadd.f32 %v754_v2, %v701_v15  ;;  %v703_v19 = vpop.f32.mrb[3].mxu1 }
 0x141   : > { %v770_v20 = vadd.f32 %v753_v13, %v328_v11  ;;  %v757_v21 = vadd.f32 %v756_v3, %v703_v19 }
 0x142   : > { %777 = vst [vmem:[#allocation2] sm:$0xff] %v769_v16  ;;  %v771_v22 = vadd.f32 %v755_v17, %v329_v14 }
 0x143   : > { %778 = vst [vmem:[#allocation2 + $0x8] sm:$0xff] %v770_v20  ;;  %v772_v23 = vadd.f32 %v757_v21, %v330_v18 }
 0x144   : > { %779 = vst [vmem:[#allocation2 + $0x10] sm:$0xff] %v771_v22 }
 0x145   : > { %780 = vst [vmem:[#allocation2 + $0x18] sm:$0xff] %v772_v23  ;;  %v707_v25 = vpop.f32.mrb[4].mxu1 }
 0x146   : > { %v761_v26 = vadd.f32 %v760_v4, %v707_v25  ;;  %v709_v28 = vpop.f32.mrb[5].mxu1 }
 0x147   : > { %v763_v29 = vadd.f32 %v762_v5, %v709_v28  ;;  %v711_v31 = vpop.f32.mrb[6].mxu1  ;;  %788 = sbr.rel (%p1023_p11) target bundleno = 344 (0x158), region = 66 }
 0x148   : > { %v773_v32 = vadd.f32 %v761_v26, %v331_v24  ;;  %v765_v33 = vadd.f32 %v764_v6, %v711_v31  ;;  %v713_v35 = vpop.f32.mrb[7].mxu1 }
 0x149   : > { %v774_v36 = vadd.f32 %v763_v29, %v332_v27  ;;  %v767_v37 = vadd.f32 %v766_v7, %v713_v35  ;;  %v789_v43 = vld [vmem:[#allocation2] sm:$0xff] (!%p1023_p11) }
 0x14a   : > { %781 = vst [vmem:[#allocation2 + $0x20] sm:$0xff] %v773_v32  ;;  %v775_v38 = vadd.f32 %v765_v33, %v333_v30  ;;  %v790_v45 = vld [vmem:[#allocation2 + $0x8] sm:$0xff] (!%p1023_p11)  ;;  %v809_v55 = vadd.f32 (!%p1023_p11), %v802_v50, %v789_v43 }
 0x14b   : > { %782 = vst [vmem:[#allocation2 + $0x28] sm:$0xff] %v774_v36  ;;  %v776_v39 = vadd.f32 %v767_v37, %v334_v34  ;;  %v791_v47 = vld [vmem:[#allocation2 + $0x10] sm:$0xff] (!%p1023_p11)  ;;  %v810_v56 = vadd.f32 (!%p1023_p11), %v806_v51, %v790_v45 }
 0x14c   : > { %783 = vst [vmem:[#allocation2 + $0x30] sm:$0xff] %v775_v38  ;;  %v792_v48 = vld [vmem:[#allocation2 + $0x18] sm:$0xff] (!%p1023_p11)  ;;  %v811_v57 = vadd.f32 (!%p1023_p11), %v802_v50, %v791_v47  ;;  %817 = vst [vmem:[%s1381_s3] sm:$0xff] (!%p1023_p11), %v809_v55 }
 0x14d   : > { %784 = vst [vmem:[#allocation2 + $0x38] sm:$0xff] %v776_v39  ;;  %v812_v58 = vadd.f32 (!%p1023_p11), %v806_v51, %v792_v48  ;;  %818 = vst [vmem:[%s1381_s3 + $0x8] sm:$0xff] (!%p1023_p11), %v810_v56 }
 0x14e   : > { %819 = vst [vmem:[%s1381_s3 + $0x10] sm:$0xff] %v811_v57 }
 0x14f   : > { %820 = vst [vmem:[%s1381_s3 + $0x18] sm:$0xff] %v812_v58 }
 0x151   : > { %v793_v49 = vld [vmem:[#allocation2 + $0x20] sm:$0xff] }
 0x152   : > { %v794_v52 = vld [vmem:[#allocation2 + $0x28] sm:$0xff]  ;;  %v813_v59 = vadd.f32 %v802_v50, %v793_v49 }
 0x153   : > { %v795_v53 = vld [vmem:[#allocation2 + $0x30] sm:$0xff]  ;;  %v814_v60 = vadd.f32 %v806_v51, %v794_v52 }
 0x154   : > { %v796_v54 = vld [vmem:[#allocation2 + $0x38] sm:$0xff]  ;;  %v815_v61 = vadd.f32 %v802_v50, %v795_v53  ;;  %821 = vst [vmem:[%s1381_s3 + $0x20] sm:$0xff] %v813_v59 }
 0x155   : > { %v816_v62 = vadd.f32 %v806_v51, %v796_v54  ;;  %822 = vst [vmem:[%s1381_s3 + $0x28] sm:$0xff] %v814_v60 }
 0x156   : > { %823 = vst [vmem:[%s1381_s3 + $0x30] sm:$0xff] %v815_v61 }
 0x157   : > { %824 = vst [vmem:[%s1381_s3 + $0x38] sm:$0xff] %v816_v62 }
 0x158 PF: > { %s13_s16 = sadd.s32 1, %s1200_s16   ;;  %s1382_s12 = smov %s1188_s13 }
 0x159   : > { %p10_p12 = scmp.ge.s32.totalorder %s13_s16, 5   ;;  %s1383_s13 = smov %s1259_s20 }
 0x15a   : > { %s1384_s14 = smov %s1196_s15  ;;  %s1385_s15 = smov %s1387_s17 }
 0x15b   :  { %12 = sbr.rel (!%p10_p12) target bundleno = 3 (0x3), region = 113 }

// kernel: sketch_translator_forward.95
= control target key start
LH: loop header
LB: loop body
LE: loop exit
PB: predicated region body
PF: predicated region fallthrough
CT: control target
= control target key end

     0   :  { %s444_s1 = inlined_call_operand.vmem [shape: bf16[256,128], index: 1, kind: input, shape index: {}]   ;;  %s445_s0 = inlined_call_operand.vmem [shape: bf16[32,256], index: 0, kind: input, shape index: {}]   ;;  %s446_s2 = inlined_call_operand.vmem [shape: f32[1,128], index: 2, kind: input, shape index: {}]   ;;  %s447_s3 = inlined_call_operand.vmem [shape: f32[32,128], index: 3, kind: output, shape index: {}]  }
   0x1   :  { %v327_v0 = vld [vmem:[%s444_s1 + $0x40] sm:$0xff]   ;;  %v329_v2 = vld [vmem:[%s444_s1 + $0x48] sm:$0xff]   ;;  %v331_v4 = vld [vmem:[%s444_s1 + $0x50] sm:$0xff]  }
   0x2   :  { %v328_v1 = vld [vmem:[%s444_s1] sm:$0xff]   ;;  %283 = vmatprep.subr.bf16.mxu0 %v327_v0  ;;  %311 = vmatprep.subr.bf16.mxu1 %v327_v0  ;;  %v330_v3 = vld [vmem:[%s444_s1 + $0x8] sm:$0xff]   ;;  %v332_v5 = vld [vmem:[%s444_s1 + $0x10] sm:$0xff]  }
   0x3   :  { %284 = vmatpush3.bf16.msra.mxu0 %v328_v1  ;;  %319 = vmatpush3.bf16.msra.mxu1 %v328_v1  ;;  %v333_v6 = vld [vmem:[%s444_s1 + $0x58] sm:$0xff]   ;;  %v335_v8 = vld [vmem:[%s444_s1 + $0x60] sm:$0xff]   ;;  %v337_v10 = vld [vmem:[%s444_s1 + $0x68] sm:$0xff]  }
   0x4   :  { %285 = vmatprep.subr.bf16.mxu0 %v329_v2  ;;  %312 = vmatprep.subr.bf16.mxu1 %v329_v2  ;;  %v334_v7 = vld [vmem:[%s444_s1 + $0x18] sm:$0xff]   ;;  %v336_v9 = vld [vmem:[%s444_s1 + $0x20] sm:$0xff]   ;;  %v338_v13 = vld [vmem:[%s444_s1 + $0x28] sm:$0xff]  }
   0x5   :  { %v345_v11 = vld [vmem:[%s445_s0 + $0x4] ss:$8 sps:$4 sm:$0xff]   ;;  %v348_v12 = vld [vmem:[%s445_s0 + $0x14] ss:$8 sps:$4 sm:$0xff]   ;;  %v343_v18 = vld [vmem:[%s445_s0] ss:$8 sps:$4 sm:$0xff]  }
   0x6   :  { %v339_v14 = vld [vmem:[%s444_s1 + $0x70] sm:$0xff]   ;;  %211 = vmatprep.mubr.bf16.mxu0 %v345_v11  ;;  %219 = vmatprep.mubr.bf16.mxu1 %v348_v12  ;;  %v341_v16 = vld [vmem:[%s444_s1 + $0x78] sm:$0xff]   ;;  %v282_v23 = vld [vmem:[%s446_s2] ss:$0 sm:$0xff] }
   0x7   :  { %286 = vmatpush3.bf16.msra.mxu0 %v330_v3  ;;  %320 = vmatpush3.bf16.msra.mxu1 %v330_v3  ;;  %v340_v15 = vld [vmem:[%s444_s1 + $0x30] sm:$0xff]   ;;  %v342_v17 = vld [vmem:[%s444_s1 + $0x38] sm:$0xff]  }
   0x8   :  { %287 = vmatprep.subr.bf16.mxu0 %v331_v4  ;;  %313 = vmatprep.subr.bf16.mxu1 %v331_v4  ;;  %v346_v19 = vld [vmem:[%s445_s0 + $0x10] ss:$8 sps:$4 sm:$0xff]  }
   0xb   :  { %288 = vmatpush3.bf16.msra.mxu0 %v332_v5  ;;  %321 = vmatpush3.bf16.msra.mxu1 %v332_v5 }
   0xc   :  { %289 = vmatprep.subr.bf16.mxu0 %v333_v6  ;;  %314 = vmatprep.subr.bf16.mxu1 %v333_v6 }
   0xf   :  { %290 = vmatpush3.bf16.msra.mxu0 %v334_v7  ;;  %322 = vmatpush3.bf16.msra.mxu1 %v334_v7 }
  0x10   :  { %291 = vmatprep.subr.bf16.mxu0 %v335_v8  ;;  %315 = vmatprep.subr.bf16.mxu1 %v335_v8 }
  0x13   :  { %292 = vmatpush3.bf16.msra.mxu0 %v336_v9  ;;  %323 = vmatpush3.bf16.msra.mxu1 %v336_v9 }
  0x14   :  { %293 = vmatprep.subr.bf16.mxu0 %v337_v10  ;;  %316 = vmatprep.subr.bf16.mxu1 %v337_v10 }
  0x17   :  { %294 = vmatpush3.bf16.msra.mxu0 %v338_v13  ;;  %324 = vmatpush3.bf16.msra.mxu1 %v338_v13 }
  0x18   :  { %295 = vmatprep.subr.bf16.mxu0 %v339_v14  ;;  %317 = vmatprep.subr.bf16.mxu1 %v339_v14 }
  0x1b   :  { %296 = vmatpush3.bf16.msra.mxu0 %v340_v15  ;;  %325 = vmatpush3.bf16.msra.mxu1 %v340_v15 }
  0x1c   :  { %297 = vmatprep.subr.bf16.mxu0 %v341_v16  ;;  %318 = vmatprep.subr.bf16.mxu1 %v341_v16 }
  0x1f   :  { %298 = vmatpush3.bf16.msra.mxu0 %v342_v17  ;;  %326 = vmatpush3.bf16.msra.mxu1 %v342_v17 }
  0x22   :  { %212 = vmatmul.mubr.bf16.vlgmr.msra.gmra.mrb[0].mxu0 %v343_v18  ;;  %220 = vmatmul.mubr.bf16.vlgmr.msra.gmra.mrb[0].mxu1 %v346_v19 }
  0xf5   :  { %v299_v20 = vpop.f32.mrb[0].mxu0  ;;  %v305_v21 = vpop.f32.mrb[0].mxu1 }
  0xf6   :  { %v300_v22 = vpop.f32.mrb[1].mxu0  ;;  %v306_v24 = vpop.f32.mrb[1].mxu1 }
  0xf7   :  { %v301_v25 = vadd.f32 %v300_v22, %v299_v20  ;;  %v307_v26 = vadd.f32 %v306_v24, %v305_v21  ;;  %v302_v27 = vpop.f32.mrb[2].mxu0  ;;  %v308_v28 = vpop.f32.mrb[2].mxu1 }
  0xf8   :  { %v303_v29 = vpop.f32.mrb[3].mxu0  ;;  %v309_v30 = vpop.f32.mrb[3].mxu1 }
  0xf9   :  { %v250_v31 = vadd.f32 %v301_v25, %v282_v23  ;;  %v252_v32 = vadd.f32 %v307_v26, %v282_v23  ;;  %v304_v33 = vadd.f32 %v303_v29, %v302_v27  ;;  %v310_v34 = vadd.f32 %v309_v30, %v308_v28 }
  0xfb   :  { %254 = vst [vmem:[%s447_s3] sm:$0xff] %v250_v31  ;;  %256 = vst [vmem:[%s447_s3 + $0x10] sm:$0xff] %v252_v32  ;;  %v251_v35 = vadd.f32 %v304_v33, %v282_v23  ;;  %v253_v36 = vadd.f32 %v310_v34, %v282_v23 }
  0xfd   :  { %255 = vst [vmem:[%s447_s3 + $0x8] sm:$0xff] %v251_v35  ;;  %257 = vst [vmem:[%s447_s3 + $0x18] sm:$0xff] %v253_v36 }

// kernel: sketch_translator_forward.62
= control target key start
LH: loop header
LB: loop body
LE: loop exit
PB: predicated region body
PF: predicated region fallthrough
CT: control target
= control target key end

     0   :  { %s472_s9 = smov 0   ;;  %s474_s10 = smov 0   ;;  %s513_s0 = inlined_call_operand.vmem [shape: f32[2,16,256], index: 0, kind: input, shape index: {}]   ;;  %s514_s1 = inlined_call_operand.vmem [shape: f32[2,16,256], index: 1, kind: input, shape index: {}]   ;;  %s515_s2 = inlined_call_operand.vmem [shape: f32[2,16,256], index: 2, kind: output, shape index: {}]  }
   0x1   :  { %s476_s11 = smov 0  }
   0x2 LB: > { %s24_s12 = sadd.s32 1, %s451_s10  ;;  %p393_p0 = scmp.ge.s32.totalorder %s455_s11, 1  ;;  %s455_s11 = sphi %s476_s11, %s12_s11   ;;  %s451_s10 = sphi %s474_s10, %s517_s10   ;;  %s447_s9 = sphi %s472_s9, %s516_s9  }
   0x3   : > { %p26_p1 = scmp.ge.s32.totalorder %s24_s12, 2  ;;  %p150_p2 = scmp.lt.s32.totalorder %s455_s11, 3 }
   0x5   : > { %s519_s12 = smov (%p26_p1, %s24_s12), 0  ;;  %p151_p3 = pnand %p393_p0, %p150_p2 }
   0x6   : > { %p190_p4 = scmp.lt.s32.totalorder (!%p151_p3), %s447_s9, 1 }
   0x7   : > { %154 = sbr.rel (%p151_p3) target bundleno = 73 (0x49), region = 28 }
   0xe   : > { %s521_s9 = smov (!%p190_p4, %s447_s9), 1 }
   0xf   : > { %s490_s13 = sshll.u32 %s521_s9, 5 }
  0x10   : > { %s197_s16 = scalar_lea.vmem %s513_s0, %s490_s13  ;;  %s207_s19 = scalar_lea.vmem %s514_s1, %s490_s13 }
  0x11   : > { %v219_v0 = vld [vmem:[%s197_s16] sm:$0xff]  ;;  %v221_v1 = vld [vmem:[%s197_s16 + $0x10] sm:$0xff]  ;;  %v220_v3 = vld [vmem:[%s197_s16 + $0x8] sm:$0xff]  ;;  %s217_s22 = scalar_lea.vmem %s515_s2, %s490_s13 }
  0x12   : > { %v223_v2 = vadd.f32 %v221_v1, %v219_v0  ;;  %v222_v4 = vld [vmem:[%s197_s16 + $0x18] sm:$0xff]  ;;  %v272_v47 = vld [vmem:[%s207_s19] sm:$0xff]  ;;  %v274_v48 = vld [vmem:[%s207_s19 + $0x10] sm:$0xff] }
  0x13   : > { %v230_v5 = vadd.f32 %v222_v4, %v220_v3  ;;  %v273_v51 = vld [vmem:[%s207_s19 + $0x8] sm:$0xff]  ;;  %v275_v53 = vld [vmem:[%s207_s19 + $0x18] sm:$0xff] }
  0x14   : > { %v224_v6 = vrot.slane %v223_v2, 4 }
  0x15   : > { %v231_v7 = vrot.slane %v230_v5, 4 }
  0x16   : > { %v225_v8 = vadd.f32 %v224_v6, %v223_v2 }
  0x17   : > { %v232_v9 = vadd.f32 %v231_v7, %v230_v5 }
  0x18   : > { %v226_v10 = vrot.slane %v225_v8, 2 }
  0x19   : > { %v233_v11 = vrot.slane %v232_v9, 2 }
  0x1a   : > { %v227_v12 = vadd.f32 %v226_v10, %v225_v8 }
  0x1b   : > { %v234_v13 = vadd.f32 %v233_v11, %v232_v9 }
  0x1c   : > { %v228_v14 = vrot.slane %v227_v12, 1 }
  0x1d   : > { %v235_v15 = vrot.slane %v234_v13, 1 }
  0x1e   : > { %v229_v16 = vadd.f32 %v228_v14, %v227_v12 }
  0x1f   : > { %v236_v17 = vadd.f32 %v235_v15, %v234_v13 }
  0x20   : > { %v238_v18 = vmul.f32 0.0625, %v229_v16 }
  0x21   : > { %v239_v19 = vmul.f32 0.0625, %v236_v17 }
  0x22   : > { %v240_v20 = vsub.f32 %v219_v0, %v238_v18  ;;  %v242_v21 = vsub.f32 %v221_v1, %v238_v18 }
  0x23   : > { %v241_v22 = vsub.f32 %v220_v3, %v239_v19  ;;  %v243_v23 = vsub.f32 %v222_v4, %v239_v19 }
  0x24   : > { %v244_v24 = vmul.f32 %v240_v20, %v240_v20  ;;  %v246_v25 = vmul.f32 %v242_v21, %v242_v21 }
  0x25   : > { %v245_v26 = vmul.f32 %v241_v22, %v241_v22  ;;  %v247_v27 = vmul.f32 %v243_v23, %v243_v23 }
  0x26   : > { %v248_v28 = vadd.f32 %v246_v25, %v244_v24 }
  0x27   : > { %v255_v29 = vadd.f32 %v247_v27, %v245_v26 }
  0x28   : > { %v249_v30 = vrot.slane %v248_v28, 4 }
  0x29   : > { %v256_v31 = vrot.slane %v255_v29, 4 }
  0x2a   : > { %v250_v32 = vadd.f32 %v249_v30, %v248_v28 }
  0x2b   : > { %v257_v33 = vadd.f32 %v256_v31, %v255_v29 }
  0x2c   : > { %v251_v34 = vrot.slane %v250_v32, 2 }
  0x2d   : > { %v258_v35 = vrot.slane %v257_v33, 2 }
  0x2e   : > { %v252_v36 = vadd.f32 %v251_v34, %v250_v32 }
  0x2f   : > { %v259_v37 = vadd.f32 %v258_v35, %v257_v33 }
  0x30   : > { %v253_v38 = vrot.slane %v252_v36, 1 }
  0x31   : > { %v260_v39 = vrot.slane %v259_v37, 1 }
  0x32   : > { %v254_v40 = vadd.f32 %v253_v38, %v252_v36 }
  0x33   : > { %v261_v41 = vadd.f32 %v260_v39, %v259_v37 }
  0x34   : > { %v262_v42 = vmul.f32 0.0625, %v254_v40 }
  0x35   : > { %v263_v43 = vmul.f32 0.0625, %v261_v41 }
  0x36   : > { %v264_v44 = vadd.f32 1e-05, %v262_v42 }
  0x37   : > { %v265_v45 = vadd.f32 1e-05, %v263_v43 }
  0x38   : > { %429 = vrsqrt.f32 %v264_v44 }
  0x39   : > { %431 = vrsqrt.f32 %v265_v45 }
  0x42   : > { %v430_v46 = vpop.eup %429 }
  0x43   : > { %v432_v49 = vpop.eup %431  ;;  %v268_v50 = vmul.f32 %v430_v46, %v240_v20  ;;  %v270_v52 = vmul.f32 %v430_v46, %v242_v21 }
  0x44   : > { %v269_v54 = vmul.f32 %v432_v49, %v241_v22  ;;  %v271_v55 = vmul.f32 %v432_v49, %v243_v23 }
  0x45   : > { %v276_v56 = vadd.f32 %v272_v47, %v268_v50  ;;  %v278_v57 = vadd.f32 %v274_v48, %v270_v52 }
  0x46   : > { %v277_v58 = vadd.f32 %v273_v51, %v269_v54  ;;  %v279_v59 = vadd.f32 %v275_v53, %v271_v55 }
  0x47   : > { %280 = vst [vmem:[%s217_s22] sm:$0xff] %v276_v56  ;;  %282 = vst [vmem:[%s217_s22 + $0x10] sm:$0xff] %v278_v57 }
  0x48   : > { %281 = vst [vmem:[%s217_s22 + $0x8] sm:$0xff] %v277_v58  ;;  %283 = vst [vmem:[%s217_s22 + $0x18] sm:$0xff] %v279_v59 }
  0x49 PF: > { %s12_s11 = sadd.s32 1, %s455_s11   ;;  %s516_s9 = smov %s451_s10 }
  0x4a   : > { %p9_p5 = scmp.ge.s32.totalorder %s12_s11, 4   ;;  %s517_s10 = smov %s519_s12 }
  0x4c   :  { %11 = sbr.rel (!%p9_p5) target bundleno = 2 (0x2), region = 61 }

// kernel: sketch_translator_forward.59
= control target key start
LH: loop header
LB: loop body
LE: loop exit
PB: predicated region body
PF: predicated region fallthrough
CT: control target
= control target key end

     0   :  { %s1757_s12 = smov 0   ;;  %s1759_s13 = smov 0   ;;  %s1963_s0 = inlined_call_operand.vmem [shape: bf16[32,2304], index: 0, kind: input, shape index: {}]   ;;  %s1964_s1 = inlined_call_operand.vmem [shape: bf16[2304,256], index: 1, kind: input, shape index: {}]   ;;  %s1965_s2 = inlined_call_operand.vmem [shape: f32[1,256], index: 2, kind: input, shape index: {}]   ;;  %s1966_s3 = inlined_call_operand.vmem [shape: f32[32,256], index: 3, kind: output, shape index: {}]  }
   0x1   :  { %s1761_s14 = smov 0   ;;  %s1763_s15 = smov 0  }
   0x2   :  { %s1765_s16 = smov 0  }
   0x3 LB: > { %s25_s17 = sadd.s32 1, %s1730_s15  ;;  %p48_p1 = scmp.ne.s32.totalorder %s1722_s13, %s1718_s12  ;;  %s1734_s16 = sphi %s1765_s16, %s13_s16   ;;  %s1730_s15 = sphi %s1763_s15, %s1970_s15   ;;  %s1726_s14 = sphi %s1761_s14, %s1969_s14   ;;  %s1722_s13 = sphi %s1759_s13, %s1968_s13   ;;  %s1718_s12 = sphi %s1757_s12, %s1967_s12  }
   0x4   : > { %p26_p0 = scmp.ge.s32.totalorder %s25_s17, 3  ;;  %p49_p2 = scmp.eq.s32.totalorder %s1734_s16, 0 }
   0x5   : > { %s41_s19 = sadd.s32 1, %s1722_s13  ;;  %p1322_p5 = scmp.ge.s32.totalorder %s1734_s16, 3 }
   0x6   : > { %s1972_s17 = smov (%p26_p0, %s25_s17), 0  ;;  %p50_p3 = por %p49_p2, %p48_p1 }
   0x7   : > { %s37_s18 = ssub.s32 %s1730_s15, %s1972_s17  ;;  %164 = sbr.rel (%p1322_p5) target bundleno = 25 (0x19), region = 20 }
   0x8   : > { %p39_p4 = scmp.eq.s32.totalorder %s37_s18, 0 }
   0xa   : > { %s1792_s20 = scalar_select %p39_p4, %s1722_s13, %s41_s19  }
   0xe   : > { %167 = sbr.rel (!%p50_p3) target bundleno = 25 (0x19), region = 24  ;;  %s169_s21 = sand.u32 (%p50_p3), 1, %s1722_s13  }
   0xf   : > { %s1441_s22 = smul.u32 (%p50_p3), 24, %s1730_s15 }
  0x10   : > { %s1491_s23 = smul.u32 (%p50_p3), 96, %s169_s21 }
  0x11   : > { %s177_s26 = scalar_lea.vmem (%p50_p3), %s1963_s0, %s1441_s22 }
  0x12   : > { %v190_v0 = vld [vmem:[%s177_s26] sm:$0xff] (%p50_p3)  ;;  %v192_v1 = vld [vmem:[%s177_s26 + $0x8] sm:$0xff] (%p50_p3)  ;;  %v194_v2 = vld [vmem:[%s177_s26 + $0x10] sm:$0xff] (%p50_p3)  ;;  %s171_s27 = scalar_lea.vmem (%p50_p3), [#allocation3], %s1491_s23 }
  0x13   : > { %191 = vst [vmem:[%s171_s27] sm:$0xff] (%p50_p3), %v190_v0  ;;  %193 = vst [vmem:[%s171_s27 + $0x8] sm:$0xff] (%p50_p3), %v192_v1  ;;  %v196_v3 = vld [vmem:[%s177_s26 + $0x48] sm:$0xff] (%p50_p3)  ;;  %v198_v4 = vld [vmem:[%s177_s26 + $0x50] sm:$0xff] (%p50_p3) }
  0x14   : > { %195 = vst [vmem:[%s171_s27 + $0x10] sm:$0xff] (%p50_p3), %v194_v2  ;;  %v200_v5 = vld [vmem:[%s177_s26 + $0x58] sm:$0xff] (%p50_p3)  ;;  %197 = vst [vmem:[%s171_s27 + $0x18] sm:$0xff] (%p50_p3), %v196_v3  ;;  %v202_v6 = vld [vmem:[%s177_s26 + $0x90] sm:$0xff] (%p50_p3) }
  0x15   : > { %199 = vst [vmem:[%s171_s27 + $0x20] sm:$0xff] %v198_v4  ;;  %201 = vst [vmem:[%s171_s27 + $0x28] sm:$0xff] %v200_v5  ;;  %v204_v7 = vld [vmem:[%s177_s26 + $0x98] sm:$0xff]  ;;  %v206_v8 = vld [vmem:[%s177_s26 + $0xa0] sm:$0xff] }
  0x16   : > { %203 = vst [vmem:[%s171_s27 + $0x30] sm:$0xff] %v202_v6  ;;  %205 = vst [vmem:[%s171_s27 + $0x38] sm:$0xff] %v204_v7  ;;  %v208_v9 = vld [vmem:[%s177_s26 + $0xd8] sm:$0xff]  ;;  %v210_v10 = vld [vmem:[%s177_s26 + $0xe0] sm:$0xff] }
  0x17   : > { %207 = vst [vmem:[%s171_s27 + $0x40] sm:$0xff] %v206_v8  ;;  %v212_v11 = vld [vmem:[%s177_s26 + $0xe8] sm:$0xff]  ;;  %209 = vst [vmem:[%s171_s27 + $0x48] sm:$0xff] %v208_v9 }
  0x18   : > { %211 = vst [vmem:[%s171_s27 + $0x50] sm:$0xff] %v210_v10  ;;  %213 = vst [vmem:[%s171_s27 + $0x58] sm:$0xff] %v212_v11 }
  0x19 PF: > { %p1324_p6 = scmp.ge.s32.totalorder %s1734_s16, 1  ;;  %p233_p7 = scmp.lt.s32.totalorder %s1734_s16, 4 }
  0x1b   : > { %p234_p8 = pnand %p1324_p6, %p233_p7 }
  0x1c   : > { %s240_s28 = sand.u32 (!%p234_p8), 1, %s1718_s12   ;;  %s284_s29 = smul.u32 (!%p234_p8), 96, %s1726_s14 }
  0x1d   : > { %237 = sbr.rel (%p234_p8) target bundleno = 403 (0x193), region = 51  ;;  %p1327_p10 = scmp.ne.s32.totalorder (!%p234_p8), %s1726_s14, 0 }
  0x1e   : > { %s1492_s30 = smul.u32 (!%p234_p8), 96, %s240_s28  ;;  %p286_p9 = scmp.lt.s32.totalorder (!%p234_p8), %s284_s29, 287 }
  0x20   : > { %s1809_s8 = scalar_lea.vmem (!%p234_p8), [#allocation3], %s1492_s30 }
  0x24   : > { %s1974_s29 = smov (!%p286_p9, %s284_s29), 287  ;;  %316 = sbr.rel (%p1327_p10) target bundleno = 43 (0x2b), region = 59 }
  0x25   : > { %s1442_s4 = sshll.u32 %s1974_s29, 3  ;;  %v1736_v12 = vmov (!%p1327_p10), 0.0  }
  0x26   : > { %s1807_s7 = scalar_lea.vmem %s1964_s1, %s1442_s4  ;;  %317 = vst [vmem:[#allocation2] sm:$0xff] (!%p1327_p10), %v1736_v12  ;;  %318 = vst [vmem:[#allocation2 + $0x8] sm:$0xff] (!%p1327_p10), %v1736_v12 }
  0x27   : > { %319 = vst [vmem:[#allocation2 + $0x10] sm:$0xff] (!%p1327_p10), %v1736_v12  ;;  %320 = vst [vmem:[#allocation2 + $0x18] sm:$0xff] (!%p1327_p10), %v1736_v12 }
  0x28   : > { %321 = vst [vmem:[#allocation2 + $0x20] sm:$0xff] (!%p1327_p10), %v1736_v12  ;;  %322 = vst [vmem:[#allocation2 + $0x28] sm:$0xff] (!%p1327_p10), %v1736_v12 }
  0x29   : > { %323 = vst [vmem:[#allocation2 + $0x30] sm:$0xff] (!%p1327_p10), %v1736_v12  ;;  %324 = vst [vmem:[#allocation2 + $0x38] sm:$0xff] (!%p1327_p10), %v1736_v12 }
  0x2b PF: > { %v1534_v13 = vld [vmem:[%s1807_s7 + $0x4] ss:$8 sps:$4 sm:$0xff]   ;;  %v1538_v15 = vld [vmem:[%s1807_s7] ss:$8 sps:$4 sm:$0xff]   ;;  %v1540_v17 = vld [vmem:[%s1807_s7 + $0x14] ss:$8 sps:$4 sm:$0xff]  }
  0x2c   : > { %v1536_v14 = vld [vmem:[%s1807_s7 + $0x104] ss:$8 sps:$4 sm:$0xff]   ;;  %981 = vmatprep.subr.bf16.mxu1 %v1534_v13  ;;  %v1539_v16 = vld [vmem:[%s1807_s7 + $0x100] ss:$8 sps:$4 sm:$0xff]   ;;  %v1542_v18 = vld [vmem:[%s1807_s7 + $0x114] ss:$8 sps:$4 sm:$0xff]  }
  0x2d   : > { %1034 = vmatprep.subr.bf16.mxu0 %v1536_v14  ;;  %982 = vmatpush1.bf16.msra.mxu1 %v1538_v15  ;;  %v1544_v19 = vld [vmem:[%s1807_s7 + $0x10] ss:$8 sps:$4 sm:$0xff]   ;;  %v1546_v21 = vld [vmem:[%s1807_s7 + $0x24] ss:$8 sps:$4 sm:$0xff]   ;;  %v1550_v23 = vld [vmem:[%s1807_s7 + $0x20] ss:$8 sps:$4 sm:$0xff]  }
  0x2e   : > { %1035 = vmatpush1.bf16.msra.mxu0 %v1539_v16  ;;  %983 = vmatprep.subr.bf16.mxu1 %v1540_v17  ;;  %v1545_v20 = vld [vmem:[%s1807_s7 + $0x110] ss:$8 sps:$4 sm:$0xff]   ;;  %v1548_v22 = vld [vmem:[%s1807_s7 + $0x124] ss:$8 sps:$4 sm:$0xff]   ;;  %v1551_v24 = vld [vmem:[%s1807_s7 + $0x120] ss:$8 sps:$4 sm:$0xff]  }
  0x2f   : > { %1036 = vmatprep.subr.bf16.mxu0 %v1542_v18  ;;  %v1552_v25 = vld [vmem:[%s1807_s7 + $0x34] ss:$8 sps:$4 sm:$0xff]   ;;  %v1556_v27 = vld [vmem:[%s1807_s7 + $0x30] ss:$8 sps:$4 sm:$0xff]   ;;  %v1558_v29 = vld [vmem:[%s1807_s7 + $0x44] ss:$8 sps:$4 sm:$0xff]  }
  0x30   : > { %v1554_v26 = vld [vmem:[%s1807_s7 + $0x134] ss:$8 sps:$4 sm:$0xff]   ;;  %v1557_v28 = vld [vmem:[%s1807_s7 + $0x130] ss:$8 sps:$4 sm:$0xff]   ;;  %v1560_v30 = vld [vmem:[%s1807_s7 + $0x144] ss:$8 sps:$4 sm:$0xff]  }
  0x31   : > { %984 = vmatpush1.bf16.msra.mxu1 %v1544_v19  ;;  %v1562_v31 = vld [vmem:[%s1807_s7 + $0x40] ss:$8 sps:$4 sm:$0xff]   ;;  %v1564_v33 = vld [vmem:[%s1807_s7 + $0x54] ss:$8 sps:$4 sm:$0xff]   ;;  %v1568_v35 = vld [vmem:[%s1807_s7 + $0x50] ss:$8 sps:$4 sm:$0xff]  }
  0x32   : > { %1037 = vmatpush1.bf16.msra.mxu0 %v1545_v20  ;;  %985 = vmatprep.subr.bf16.mxu1 %v1546_v21  ;;  %v1563_v32 = vld [vmem:[%s1807_s7 + $0x140] ss:$8 sps:$4 sm:$0xff]   ;;  %v1566_v34 = vld [vmem:[%s1807_s7 + $0x154] ss:$8 sps:$4 sm:$0xff]   ;;  %v1569_v36 = vld [vmem:[%s1807_s7 + $0x150] ss:$8 sps:$4 sm:$0xff]  }
  0x33   : > { %1038 = vmatprep.subr.bf16.mxu0 %v1548_v22  ;;  %v1570_v37 = vld [vmem:[%s1807_s7 + $0x64] ss:$8 sps:$4 sm:$0xff]   ;;  %v1574_v39 = vld [vmem:[%s1807_s7 + $0x60] ss:$8 sps:$4 sm:$0xff]   ;;  %v1576_v41 = vld [vmem:[%s1807_s7 + $0x74] ss:$8 sps:$4 sm:$0xff]  }
  0x34   : > { %v1572_v38 = vld [vmem:[%s1807_s7 + $0x164] ss:$8 sps:$4 sm:$0xff]   ;;  %v1575_v40 = vld [vmem:[%s1807_s7 + $0x160] ss:$8 sps:$4 sm:$0xff]   ;;  %v1578_v42 = vld [vmem:[%s1807_s7 + $0x174] ss:$8 sps:$4 sm:$0xff]  }
  0x35   : > { %986 = vmatpush1.bf16.msra.mxu1 %v1550_v23  ;;  %v1580_v43 = vld [vmem:[%s1807_s7 + $0x70] ss:$8 sps:$4 sm:$0xff]   ;;  %v1582_v45 = vld [vmem:[%s1807_s7 + $0x84] ss:$8 sps:$4 sm:$0xff]   ;;  %v1586_v47 = vld [vmem:[%s1807_s7 + $0x80] ss:$8 sps:$4 sm:$0xff]  }
  0x36   : > { %1039 = vmatpush1.bf16.msra.mxu0 %v1551_v24  ;;  %987 = vmatprep.subr.bf16.mxu1 %v1552_v25  ;;  %v1581_v44 = vld [vmem:[%s1807_s7 + $0x170] ss:$8 sps:$4 sm:$0xff]   ;;  %v1584_v46 = vld [vmem:[%s1807_s7 + $0x184] ss:$8 sps:$4 sm:$0xff]   ;;  %v1587_v48 = vld [vmem:[%s1807_s7 + $0x180] ss:$8 sps:$4 sm:$0xff]  }
  0x37   : > { %1040 = vmatprep.subr.bf16.mxu0 %v1554_v26  ;;  %v1588_v49 = vld [vmem:[%s1807_s7 + $0x94] ss:$8 sps:$4 sm:$0xff]   ;;  %v1592_v51 = vld [vmem:[%s1807_s7 + $0x90] ss:$8 sps:$4 sm:$0xff]   ;;  %v1594_v53 = vld [vmem:[%s1807_s7 + $0xa4] ss:$8 sps:$4 sm:$0xff]  }
  0x38   : > { %v1590_v50 = vld [vmem:[%s1807_s7 + $0x194] ss:$8 sps:$4 sm:$0xff]   ;;  %v1593_v52 = vld [vmem:[%s1807_s7 + $0x190] ss:$8 sps:$4 sm:$0xff]   ;;  %v1596_v54 = vld [vmem:[%s1807_s7 + $0x1a4] ss:$8 sps:$4 sm:$0xff]  }
  0x39   : > { %988 = vmatpush1.bf16.msra.mxu1 %v1556_v27  ;;  %v1598_v55 = vld [vmem:[%s1807_s7 + $0xa0] ss:$8 sps:$4 sm:$0xff]   ;;  %v1600_v57 = vld [vmem:[%s1807_s7 + $0xb4] ss:$8 sps:$4 sm:$0xff]   ;;  %v1604_v59 = vld [vmem:[%s1807_s7 + $0xb0] ss:$8 sps:$4 sm:$0xff]  }
  0x3a   : > { %1041 = vmatpush1.bf16.msra.mxu0 %v1557_v28  ;;  %989 = vmatprep.subr.bf16.mxu1 %v1558_v29  ;;  %v1599_v56 = vld [vmem:[%s1807_s7 + $0x1a0] ss:$8 sps:$4 sm:$0xff]   ;;  %v1602_v58 = vld [vmem:[%s1807_s7 + $0x1b4] ss:$8 sps:$4 sm:$0xff]   ;;  %v1605_v60 = vld [vmem:[%s1807_s7 + $0x1b0] ss:$8 sps:$4 sm:$0xff]  }
  0x3b   : > { %1042 = vmatprep.subr.bf16.mxu0 %v1560_v30  ;;  %v1606_v61 = vld [vmem:[%s1807_s7 + $0xc4] ss:$8 sps:$4 sm:$0xff]   ;;  %v1610_v1 = vld [vmem:[%s1807_s7 + $0xc0] ss:$8 sps:$4 sm:$0xff]   ;;  %v1612_v3 = vld [vmem:[%s1807_s7 + $0xd4] ss:$8 sps:$4 sm:$0xff]  }
  0x3c   : > { %v1632_v62 = vld [vmem:[%s1809_s8 + $0x4] ss:$24 sps:$4 sm:$0xff]   ;;  %v1611_v2 = vld [vmem:[%s1807_s7 + $0x1c0] ss:$8 sps:$4 sm:$0xff]   ;;  %v1616_v5 = vld [vmem:[%s1807_s7 + $0xd0] ss:$8 sps:$4 sm:$0xff]  }
  0x3d   : > { %990 = vmatpush1.bf16.msra.mxu1 %v1562_v31  ;;  %v1608_v63 = vld [vmem:[%s1807_s7 + $0x1c4] ss:$8 sps:$4 sm:$0xff]   ;;  %1013 = vmatprep.mubr.bf16.mxu1 %v1632_v62  ;;  %v1614_v4 = vld [vmem:[%s1807_s7 + $0x1d4] ss:$8 sps:$4 sm:$0xff]   ;;  %v1617_v6 = vld [vmem:[%s1807_s7 + $0x1d0] ss:$8 sps:$4 sm:$0xff]  }
  0x3e   : > { %1043 = vmatpush1.bf16.msra.mxu0 %v1563_v32  ;;  %991 = vmatprep.subr.bf16.mxu1 %v1564_v33  ;;  %v1635_v0 = vld [vmem:[%s1809_s8 + $0xc] ss:$24 sps:$4 sm:$0xff]   ;;  %v1622_v9 = vld [vmem:[%s1807_s7 + $0xe0] ss:$8 sps:$4 sm:$0xff]   ;;  %v1624_v11 = vld [vmem:[%s1807_s7 + $0xf4] ss:$8 sps:$4 sm:$0xff]  }
  0x3f   : > { %1044 = vmatprep.subr.bf16.mxu0 %v1566_v34  ;;  %1066 = vmatprep.mubr.bf16.mxu0 %v1635_v0  ;;  %v1618_v7 = vld [vmem:[%s1807_s7 + $0xe4] ss:$8 sps:$4 sm:$0xff]   ;;  %v1623_v10 = vld [vmem:[%s1807_s7 + $0x1e0] ss:$8 sps:$4 sm:$0xff]   ;;  %v1626_v12 = vld [vmem:[%s1807_s7 + $0x1f4] ss:$8 sps:$4 sm:$0xff]  }
  0x40   : > { %v1620_v8 = vld [vmem:[%s1807_s7 + $0x1e4] ss:$8 sps:$4 sm:$0xff]   ;;  %v1628_v13 = vld [vmem:[%s1807_s7 + $0xf0] ss:$8 sps:$4 sm:$0xff]   ;;  %v1633_v17 = vld [vmem:[%s1809_s8 + $0x8] ss:$24 sps:$4 sm:$0xff]  }
  0x41   : > { %992 = vmatpush1.bf16.msra.mxu1 %v1568_v35  ;;  %v1629_v14 = vld [vmem:[%s1807_s7 + $0x1f0] ss:$8 sps:$4 sm:$0xff]   ;;  %v1638_v15 = vld [vmem:[%s1807_s7 + $0x204] ss:$8 sps:$4 sm:$0xff]   ;;  %v1636_v18 = vld [vmem:[%s1807_s7 + $0x200] ss:$8 sps:$4 sm:$0xff]  }
  0x42   : > { %1045 = vmatpush1.bf16.msra.mxu0 %v1569_v36  ;;  %993 = vmatprep.subr.bf16.mxu1 %v1570_v37  ;;  %v1630_v16 = vld [vmem:[%s1809_s8] ss:$24 sps:$4 sm:$0xff]   ;;  %v1641_v19 = vld [vmem:[%s1807_s7 + $0x214] ss:$8 sps:$4 sm:$0xff]   ;;  %v1644_v23 = vld [vmem:[%s1807_s7 + $0x224] ss:$8 sps:$4 sm:$0xff]  }
  0x43   : > { %1046 = vmatprep.subr.bf16.mxu0 %v1572_v38  ;;  %v1675_v20 = vld [vmem:[%s1809_s8 + $0x34] ss:$24 sps:$4 sm:$0xff]   ;;  %v1639_v22 = vld [vmem:[%s1807_s7 + $0x210] ss:$8 sps:$4 sm:$0xff]   ;;  %v1642_v26 = vld [vmem:[%s1807_s7 + $0x220] ss:$8 sps:$4 sm:$0xff]  }
  0x44   : > { %v1677_v21 = vld [vmem:[%s1809_s8 + $0x3c] ss:$24 sps:$4 sm:$0xff]   ;;  %v1682_v24 = vld [vmem:[%s1809_s8 + $0x30] ss:$24 sps:$4 sm:$0xff]   ;;  %v1650_v31 = vld [vmem:[%s1807_s7 + $0x244] ss:$8 sps:$4 sm:$0xff]  }
  0x45   : > { %994 = vmatpush1.bf16.msra.mxu1 %v1574_v39  ;;  %v1683_v25 = vld [vmem:[%s1809_s8 + $0x38] ss:$24 sps:$4 sm:$0xff]   ;;  %v1647_v27 = vld [vmem:[%s1807_s7 + $0x234] ss:$8 sps:$4 sm:$0xff]   ;;  %v1648_v32 = vld [vmem:[%s1807_s7 + $0x240] ss:$8 sps:$4 sm:$0xff]  }
  0x46   : > { %1047 = vmatpush1.bf16.msra.mxu0 %v1575_v40  ;;  %995 = vmatprep.subr.bf16.mxu1 %v1576_v41  ;;  %v1692_v28 = vld [vmem:[%s1809_s8 + $0x14] ss:$24 sps:$4 sm:$0xff]   ;;  %v1695_v29 = vld [vmem:[%s1809_s8 + $0x44] ss:$24 sps:$4 sm:$0xff]   ;;  %v1645_v30 = vld [vmem:[%s1807_s7 + $0x230] ss:$8 sps:$4 sm:$0xff]  }
  0x47   : > { %1048 = vmatprep.subr.bf16.mxu0 %v1578_v42  ;;  %v1653_v33 = vld [vmem:[%s1807_s7 + $0x254] ss:$8 sps:$4 sm:$0xff]   ;;  %v1651_v34 = vld [vmem:[%s1807_s7 + $0x250] ss:$8 sps:$4 sm:$0xff]   ;;  %v1656_v35 = vld [vmem:[%s1807_s7 + $0x264] ss:$8 sps:$4 sm:$0xff]  }
  0x48   : > { %v1654_v36 = vld [vmem:[%s1807_s7 + $0x260] ss:$8 sps:$4 sm:$0xff]   ;;  %v1659_v37 = vld [vmem:[%s1807_s7 + $0x274] ss:$8 sps:$4 sm:$0xff]   ;;  %v1657_v38 = vld [vmem:[%s1807_s7 + $0x270] ss:$8 sps:$4 sm:$0xff]  }
  0x49   : > { %996 = vmatpush1.bf16.msra.mxu1 %v1580_v43  ;;  %v1662_v39 = vld [vmem:[%s1807_s7 + $0x284] ss:$8 sps:$4 sm:$0xff]   ;;  %v1660_v40 = vld [vmem:[%s1807_s7 + $0x280] ss:$8 sps:$4 sm:$0xff]   ;;  %v1665_v41 = vld [vmem:[%s1807_s7 + $0x294] ss:$8 sps:$4 sm:$0xff]  }
  0x4a   : > { %1049 = vmatpush1.bf16.msra.mxu0 %v1581_v44  ;;  %997 = vmatprep.subr.bf16.mxu1 %v1582_v45  ;;  %v1663_v42 = vld [vmem:[%s1807_s7 + $0x290] ss:$8 sps:$4 sm:$0xff]   ;;  %v1668_v43 = vld [vmem:[%s1807_s7 + $0x2a4] ss:$8 sps:$4 sm:$0xff]   ;;  %v1666_v44 = vld [vmem:[%s1807_s7 + $0x2a0] ss:$8 sps:$4 sm:$0xff]  }
  0x4b   : > { %1050 = vmatprep.subr.bf16.mxu0 %v1584_v46  ;;  %v1671_v45 = vld [vmem:[%s1807_s7 + $0x2b4] ss:$8 sps:$4 sm:$0xff]   ;;  %v1669_v46 = vld [vmem:[%s1807_s7 + $0x2b0] ss:$8 sps:$4 sm:$0xff]   ;;  %p1436_p11 = scmp.ne.s32.totalorder %s1726_s14, 2 }
  0x4d   : > { %998 = vmatpush1.bf16.msra.mxu1 %v1586_v47  ;;  %v1674_v47 = vld [vmem:[%s1807_s7 + $0x2c4] ss:$8 sps:$4 sm:$0xff]  }
  0x4e   : > { %1051 = vmatpush1.bf16.msra.mxu0 %v1587_v48  ;;  %999 = vmatprep.subr.bf16.mxu1 %v1588_v49  ;;  %v1672_v48 = vld [vmem:[%s1807_s7 + $0x2c0] ss:$8 sps:$4 sm:$0xff]   ;;  %v1681_v49 = vld [vmem:[%s1807_s7 + $0x2d4] ss:$8 sps:$4 sm:$0xff]  }
  0x4f   : > { %1052 = vmatprep.subr.bf16.mxu0 %v1590_v50  ;;  %v1679_v50 = vld [vmem:[%s1807_s7 + $0x2d0] ss:$8 sps:$4 sm:$0xff]  }
  0x51   : > { %1000 = vmatpush1.bf16.msra.mxu1 %v1592_v51  ;;  %v1686_v51 = vld [vmem:[%s1807_s7 + $0x2e4] ss:$8 sps:$4 sm:$0xff]  }
  0x52   : > { %1053 = vmatpush1.bf16.msra.mxu0 %v1593_v52  ;;  %1001 = vmatprep.subr.bf16.mxu1 %v1594_v53  ;;  %v1684_v52 = vld [vmem:[%s1807_s7 + $0x2e0] ss:$8 sps:$4 sm:$0xff]   ;;  %v1689_v53 = vld [vmem:[%s1807_s7 + $0x2f4] ss:$8 sps:$4 sm:$0xff]  }
  0x53   : > { %1054 = vmatprep.subr.bf16.mxu0 %v1596_v54  ;;  %v1687_v54 = vld [vmem:[%s1807_s7 + $0x2f0] ss:$8 sps:$4 sm:$0xff]  }
  0x55   : > { %1002 = vmatpush1.bf16.msra.mxu1 %v1598_v55  ;;  %v1690_v55 = vld [vmem:[%s1809_s8 + $0x10] ss:$24 sps:$4 sm:$0xff]  }
  0x56   : > { %1055 = vmatpush1.bf16.msra.mxu0 %v1599_v56  ;;  %1003 = vmatprep.subr.bf16.mxu1 %v1600_v57  ;;  %v1693_v56 = vld [vmem:[%s1809_s8 + $0x40] ss:$24 sps:$4 sm:$0xff]  }
  0x57   : > { %1056 = vmatprep.subr.bf16.mxu0 %v1602_v58 }
  0x59   : > { %1004 = vmatpush1.bf16.msra.mxu1 %v1604_v59 }
  0x5a   : > { %1057 = vmatpush1.bf16.msra.mxu0 %v1605_v60  ;;  %1005 = vmatprep.subr.bf16.mxu1 %v1606_v61 }
  0x5b   : > { %1058 = vmatprep.subr.bf16.mxu0 %v1608_v63 }
  0x5d   : > { %1006 = vmatpush1.bf16.msra.mxu1 %v1610_v1 }
  0x5e   : > { %1059 = vmatpush1.bf16.msra.mxu0 %v1611_v2  ;;  %1007 = vmatprep.subr.bf16.mxu1 %v1612_v3 }
  0x5f   : > { %1060 = vmatprep.subr.bf16.mxu0 %v1614_v4 }
  0x61   : > { %1008 = vmatpush1.bf16.msra.mxu1 %v1616_v5 }
  0x62   : > { %1061 = vmatpush1.bf16.msra.mxu0 %v1617_v6  ;;  %1009 = vmatprep.subr.bf16.mxu1 %v1618_v7 }
  0x63   : > { %1062 = vmatprep.subr.bf16.mxu0 %v1620_v8 }
  0x65   : > { %1010 = vmatpush1.bf16.msra.mxu1 %v1622_v9  ;;  %v325_v9 = vld [vmem:[#allocation2] sm:$0xff] }
  0x66   : > { %1063 = vmatpush1.bf16.msra.mxu0 %v1623_v10  ;;  %1011 = vmatprep.subr.bf16.mxu1 %v1624_v11  ;;  %v329_v11 = vld [vmem:[#allocation2 + $0x20] sm:$0xff] }
  0x67   : > { %1064 = vmatprep.subr.bf16.mxu0 %v1626_v12 }
  0x69   : > { %1012 = vmatpush1.bf16.msra.mxu1 %v1628_v13 }
  0x6a   : > { %1065 = vmatpush1.bf16.msra.mxu0 %v1629_v14  ;;  %1443 = vmatprep.subr.bf16.mxu1 %v1638_v15 }
  0x6b   : > { %1087 = vmatprep.subr.bf16.mxu0 %v1638_v15  ;;  %v326_v15 = vld [vmem:[#allocation2 + $0x8] sm:$0xff] }
  0x6c   : > { %1014 = vmatmul.mubr.bf16.vlgmr.msra.gmra.mrb[0].mxu1 %v1630_v16 }
  0x6d   : > { %1067 = vmatmul.mubr.bf16.vlgmr.msra.gmra.mrb[0].mxu0 %v1633_v17  ;;  %1459 = vmatpush1.bf16.msra.mxu1 %v1636_v18  ;;  %v330_v17 = vld [vmem:[#allocation2 + $0x28] sm:$0xff] }
  0x6e   : > { %1088 = vmatpush1.bf16.msra.mxu0 %v1636_v18  ;;  %1444 = vmatprep.subr.bf16.mxu1 %v1641_v19 }
  0x6f   : > { %1089 = vmatprep.subr.bf16.mxu0 %v1641_v19  ;;  %1023 = vmatprep.mubr.bf16.mxu1 %v1675_v20 }
  0x70   : > { %1076 = vmatprep.mubr.bf16.mxu0 %v1677_v21  ;;  %v327_v21 = vld [vmem:[#allocation2 + $0x10] sm:$0xff] }
  0x71   : > { %1460 = vmatpush1.bf16.msra.mxu1 %v1639_v22 }
  0x72   : > { %1090 = vmatpush1.bf16.msra.mxu0 %v1639_v22  ;;  %1445 = vmatprep.subr.bf16.mxu1 %v1644_v23 }
  0x73   : > { %1091 = vmatprep.subr.bf16.mxu0 %v1644_v23  ;;  %v331_v23 = vld [vmem:[#allocation2 + $0x30] sm:$0xff] }
  0x74   : > { %1024 = vmatmul.mubr.bf16.gmra.mrb[4].mxu1 %v1682_v24 }
  0x75   : > { %1077 = vmatmul.mubr.bf16.gmra.mrb[4].mxu0 %v1683_v25  ;;  %1461 = vmatpush1.bf16.msra.mxu1 %v1642_v26 }
  0x76   : > { %1092 = vmatpush1.bf16.msra.mxu0 %v1642_v26  ;;  %1446 = vmatprep.subr.bf16.mxu1 %v1647_v27 }
  0x77   : > { %1093 = vmatprep.subr.bf16.mxu0 %v1647_v27  ;;  %1119 = vmatprep.mubr.bf16.mxu0 %v1692_v28 }
  0x78   : > { %1129 = vmatprep.mubr.bf16.mxu1 %v1695_v29  ;;  %v328_v29 = vld [vmem:[#allocation2 + $0x18] sm:$0xff] }
  0x79   : > { %1462 = vmatpush1.bf16.msra.mxu1 %v1645_v30 }
  0x7a   : > { %1094 = vmatpush1.bf16.msra.mxu0 %v1645_v30  ;;  %1447 = vmatprep.subr.bf16.mxu1 %v1650_v31 }
  0x7b   : > { %1095 = vmatprep.subr.bf16.mxu0 %v1650_v31  ;;  %v332_v31 = vld [vmem:[#allocation2 + $0x38] sm:$0xff] }
  0x7d   : > { %1463 = vmatpush1.bf16.msra.mxu1 %v1648_v32 }
  0x7e   : > { %1096 = vmatpush1.bf16.msra.mxu0 %v1648_v32  ;;  %1448 = vmatprep.subr.bf16.mxu1 %v1653_v33 }
  0x7f   : > { %1097 = vmatprep.subr.bf16.mxu0 %v1653_v33 }
  0x81   : > { %1464 = vmatpush1.bf16.msra.mxu1 %v1651_v34 }
  0x82   : > { %1098 = vmatpush1.bf16.msra.mxu0 %v1651_v34  ;;  %1449 = vmatprep.subr.bf16.mxu1 %v1656_v35 }
  0x83   : > { %1099 = vmatprep.subr.bf16.mxu0 %v1656_v35 }
  0x85   : > { %1465 = vmatpush1.bf16.msra.mxu1 %v1654_v36 }
  0x86   : > { %1100 = vmatpush1.bf16.msra.mxu0 %v1654_v36  ;;  %1450 = vmatprep.subr.bf16.mxu1 %v1659_v37 }
  0x87   : > { %1101 = vmatprep.subr.bf16.mxu0 %v1659_v37 }
  0x89   : > { %1466 = vmatpush1.bf16.msra.mxu1 %v1657_v38 }
  0x8a   : > { %1102 = vmatpush1.bf16.msra.mxu0 %v1657_v38  ;;  %1451 = vmatprep.subr.bf16.mxu1 %v1662_v39 }
  0x8b   : > { %1103 = vmatprep.subr.bf16.mxu0 %v1662_v39 }
  0x8d   : > { %1467 = vmatpush1.bf16.msra.mxu1 %v1660_v40 }
  0x8e   : > { %1104 = vmatpush1.bf16.msra.mxu0 %v1660_v40  ;;  %1452 = vmatprep.subr.bf16.mxu1 %v1665_v41 }
  0x8f   : > { %1105 = vmatprep.subr.bf16.mxu0 %v1665_v41  ;;  %v1170_v41 = vlaneseq (!%p1436_p11) }
  0x91   : > { %1468 = vmatpush1.bf16.msra.mxu1 %v1663_v42 }
  0x92   : > { %1106 = vmatpush1.bf16.msra.mxu0 %v1663_v42  ;;  %1453 = vmatprep.subr.bf16.mxu1 %v1668_v43  ;;  %v1171_v42 = vshrl.u32 (!%p1436_p11), %v1170_v41, 7 }
  0x93   : > { %1107 = vmatprep.subr.bf16.mxu0 %v1668_v43  ;;  %v1168_v43 = vld [vmem:[%s1965_s2] sm:$0x3] (!%p1436_p11) }
  0x95   : > { %1469 = vmatpush1.bf16.msra.mxu1 %v1666_v44 }
  0x96   : > { %1108 = vmatpush1.bf16.msra.mxu0 %v1666_v44  ;;  %1454 = vmatprep.subr.bf16.mxu1 %v1671_v45 }
  0x97   : > { %1109 = vmatprep.subr.bf16.mxu0 %v1671_v45  ;;  %v1172_v45 = vsub.s32 (!%p1436_p11), 0, %v1171_v42 }
  0x99   : > { %1470 = vmatpush1.bf16.msra.mxu1 %v1669_v46 }
  0x9a   : > { %1110 = vmatpush1.bf16.msra.mxu0 %v1669_v46  ;;  %1455 = vmatprep.subr.bf16.mxu1 %v1674_v47 }
  0x9b   : > { %1111 = vmatprep.subr.bf16.mxu0 %v1674_v47  ;;  %v1176_v47 = vsub.s32 (!%p1436_p11), 1, %v1171_v42 }
  0x9d   : > { %1471 = vmatpush1.bf16.msra.mxu1 %v1672_v48 }
  0x9e   : > { %1112 = vmatpush1.bf16.msra.mxu0 %v1672_v48  ;;  %1456 = vmatprep.subr.bf16.mxu1 %v1681_v49 }
  0x9f   : > { %1113 = vmatprep.subr.bf16.mxu0 %v1681_v49 }
  0xa1   : > { %1472 = vmatpush1.bf16.msra.mxu1 %v1679_v50 }
  0xa2   : > { %1114 = vmatpush1.bf16.msra.mxu0 %v1679_v50  ;;  %1457 = vmatprep.subr.bf16.mxu1 %v1686_v51 }
  0xa3   : > { %1115 = vmatprep.subr.bf16.mxu0 %v1686_v51  ;;  %v1173_v51 = vrot.slane (!%p1436_p11), %v1168_v43, %v1172_v45 }
  0xa5   : > { %1473 = vmatpush1.bf16.msra.mxu1 %v1684_v52 }
  0xa6   : > { %1116 = vmatpush1.bf16.msra.mxu0 %v1684_v52  ;;  %1458 = vmatprep.subr.bf16.mxu1 %v1689_v53  ;;  %v1177_v52 = vrot.slane (!%p1436_p11), %v1168_v43, %v1176_v47 }
  0xa7   : > { %1117 = vmatprep.subr.bf16.mxu0 %v1689_v53 }
  0xa9   : > { %1474 = vmatpush1.bf16.msra.mxu1 %v1687_v54 }
  0xaa   : > { %1118 = vmatpush1.bf16.msra.mxu0 %v1687_v54 }
  0xac   : > { %1130 = vmatmul.mubr.bf16.vlgmr.msra.gmra.mrb[8].mxu1 %v1693_v56 }
  0xad   : > { %1120 = vmatmul.mubr.bf16.vlgmr.msra.gmra.mrb[0].mxu0 %v1690_v55 }
 0x13f   : > { %v1015_v57 = vpop.f32.mrb[0].mxu1 }
 0x140   : > { %v1017_v58 = vpop.f32.mrb[1].mxu1 }
 0x141   : > { %v1019_v59 = vpop.f32.mrb[2].mxu1 }
 0x142   : > { %v1021_v60 = vpop.f32.mrb[3].mxu1 }
 0x147   : > { %v1025_v61 = vpop.f32.mrb[4].mxu1 }
 0x148   : > { %v1078_v62 = vpop.f32.mrb[4].mxu0  ;;  %v1027_v0 = vpop.f32.mrb[5].mxu1 }
 0x149   : > { %v1079_v63 = vadd.f32 %v1078_v62, %v1025_v61  ;;  %v1080_v1 = vpop.f32.mrb[5].mxu0  ;;  %v1029_v3 = vpop.f32.mrb[6].mxu1 }
 0x14a   : > { %v1081_v2 = vadd.f32 %v1080_v1, %v1027_v0  ;;  %v1082_v4 = vpop.f32.mrb[6].mxu0  ;;  %v1031_v6 = vpop.f32.mrb[7].mxu1 }
 0x14b   : > { %v1083_v5 = vadd.f32 %v1082_v4, %v1029_v3  ;;  %v1084_v7 = vpop.f32.mrb[7].mxu0 }
 0x14c   : > { %v1085_v8 = vadd.f32 %v1084_v7, %v1031_v6 }
 0x17f   : > { %v1131_v12 = vpop.f32.mrb[8].mxu1 }
 0x180   : > { %v1121_v10 = vpop.f32.mrb[0].mxu0  ;;  %v1132_v14 = vadd.f32 %v1131_v12, %v1079_v63  ;;  %v1133_v18 = vpop.f32.mrb[9].mxu1 }
 0x181   : > { %v1475_v13 = vadd.f32 %v1121_v10, %v1015_v57  ;;  %v1123_v16 = vpop.f32.mrb[1].mxu0  ;;  %v1134_v20 = vadd.f32 %v1133_v18, %v1081_v2  ;;  %v1135_v24 = vpop.f32.mrb[10].mxu1 }
 0x182   : > { %v1476_v19 = vadd.f32 %v1123_v16, %v1017_v58  ;;  %v1125_v22 = vpop.f32.mrb[2].mxu0  ;;  %v1144_v26 = vadd.f32 %v1132_v14, %v329_v11  ;;  %v1136_v28 = vadd.f32 %v1135_v24, %v1083_v5  ;;  %v1137_v32 = vpop.f32.mrb[11].mxu1  ;;  %1159 = sbr.rel (%p1436_p11) target bundleno = 403 (0x193), region = 63 }
 0x183   : > { %v1140_v25 = vadd.f32 %v1475_v13, %v325_v9  ;;  %v1477_v27 = vadd.f32 %v1125_v22, %v1019_v59  ;;  %v1127_v30 = vpop.f32.mrb[3].mxu0  ;;  %v1145_v34 = vadd.f32 %v1134_v20, %v330_v17  ;;  %v1138_v36 = vadd.f32 %v1137_v32, %v1085_v8 }
 0x184   : > { %v1141_v33 = vadd.f32 %v1476_v19, %v326_v15  ;;  %v1478_v35 = vadd.f32 %v1127_v30, %v1021_v60  ;;  %1152 = vst [vmem:[#allocation2 + $0x20] sm:$0xff] %v1144_v26  ;;  %v1146_v38 = vadd.f32 %v1136_v28, %v331_v23 }
 0x185   : > { %1148 = vst [vmem:[#allocation2] sm:$0xff] %v1140_v25  ;;  %v1142_v37 = vadd.f32 %v1477_v27, %v327_v21  ;;  %1153 = vst [vmem:[#allocation2 + $0x28] sm:$0xff] %v1145_v34  ;;  %v1147_v40 = vadd.f32 %v1138_v36, %v332_v31 }
 0x186   : > { %1149 = vst [vmem:[#allocation2 + $0x8] sm:$0xff] %v1141_v33  ;;  %v1143_v39 = vadd.f32 %v1478_v35, %v328_v29  ;;  %1154 = vst [vmem:[#allocation2 + $0x30] sm:$0xff] %v1146_v38 }
 0x187   : > { %1150 = vst [vmem:[#allocation2 + $0x10] sm:$0xff] %v1142_v37  ;;  %1155 = vst [vmem:[#allocation2 + $0x38] sm:$0xff] %v1147_v40 }
 0x188   : > { %1151 = vst [vmem:[#allocation2 + $0x18] sm:$0xff] %v1143_v39 }
 0x18b   : > { %v1164_v50 = vld [vmem:[#allocation2 + $0x20] sm:$0xff] }
 0x18c   : > { %v1160_v44 = vld [vmem:[#allocation2] sm:$0xff]  ;;  %v1165_v53 = vld [vmem:[#allocation2 + $0x28] sm:$0xff]  ;;  %v1184_v60 = vadd.f32 %v1173_v51, %v1164_v50 }
 0x18d   : > { %v1161_v46 = vld [vmem:[#allocation2 + $0x8] sm:$0xff]  ;;  %v1166_v54 = vld [vmem:[#allocation2 + $0x30] sm:$0xff]  ;;  %v1180_v56 = vadd.f32 %v1173_v51, %v1160_v44  ;;  %v1185_v61 = vadd.f32 %v1177_v52, %v1165_v53 }
 0x18e   : > { %v1162_v48 = vld [vmem:[#allocation2 + $0x10] sm:$0xff]  ;;  %v1167_v55 = vld [vmem:[#allocation2 + $0x38] sm:$0xff]  ;;  %v1181_v57 = vadd.f32 %v1177_v52, %v1161_v46  ;;  %v1186_v62 = vadd.f32 %v1173_v51, %v1166_v54  ;;  %1192 = vst [vmem:[%s1966_s3 + $0x20] sm:$0xff] %v1184_v60 }
 0x18f   : > { %v1163_v49 = vld [vmem:[#allocation2 + $0x18] sm:$0xff]  ;;  %v1182_v58 = vadd.f32 %v1173_v51, %v1162_v48  ;;  %v1187_v63 = vadd.f32 %v1177_v52, %v1167_v55  ;;  %1188 = vst [vmem:[%s1966_s3] sm:$0xff] %v1180_v56  ;;  %1193 = vst [vmem:[%s1966_s3 + $0x28] sm:$0xff] %v1185_v61 }
 0x190   : > { %v1183_v59 = vadd.f32 %v1177_v52, %v1163_v49  ;;  %1189 = vst [vmem:[%s1966_s3 + $0x8] sm:$0xff] %v1181_v57  ;;  %1194 = vst [vmem:[%s1966_s3 + $0x30] sm:$0xff] %v1186_v62 }
 0x191   : > { %1190 = vst [vmem:[%s1966_s3 + $0x10] sm:$0xff] %v1182_v58  ;;  %1195 = vst [vmem:[%s1966_s3 + $0x38] sm:$0xff] %v1187_v63 }
 0x192   : > { %1191 = vst [vmem:[%s1966_s3 + $0x18] sm:$0xff] %v1183_v59 }
 0x193 PF: > { %s13_s16 = sadd.s32 1, %s1734_s16   ;;  %s1967_s12 = smov %s1722_s13 }
 0x194   : > { %p10_p12 = scmp.ge.s32.totalorder %s13_s16, 5   ;;  %s1968_s13 = smov %s1792_s20 }
 0x195   : > { %s1969_s14 = smov %s1730_s15  ;;  %s1970_s15 = smov %s1972_s17 }
 0x196   :  { %12 = sbr.rel (!%p10_p12) target bundleno = 3 (0x3), region = 104 }

// kernel: sketch_translator_forward.100
= control target key start
LH: loop header
LB: loop body
LE: loop exit
PB: predicated region body
PF: predicated region fallthrough
CT: control target
= control target key end

     0   :  { %s586_s1 = inlined_call_operand.vmem [shape: bf16[128,128], index: 1, kind: input, shape index: {}]   ;;  %s587_s0 = inlined_call_operand.vmem [shape: bf16[128,128], index: 0, kind: input, shape index: {}]   ;;  %s588_s2 = inlined_call_operand.vmem [shape: f32[1,128], index: 2, kind: input, shape index: {}]   ;;  %s589_s3 = inlined_call_operand.vmem [shape: f32[128,128], index: 3, kind: output, shape index: {}]  }
   0x1   :  { %v451_v0 = vld [vmem:[%s586_s1] sm:$0xff]   ;;  %v452_v1 = vld [vmem:[%s586_s1 + $0x8] sm:$0xff]   ;;  %v453_v2 = vld [vmem:[%s586_s1 + $0x10] sm:$0xff]  }
   0x2   :  { %403 = vmatprep.subr.bf16.mxu0 %v451_v0  ;;  %435 = vmatprep.subr.bf16.mxu1 %v451_v0  ;;  %v454_v3 = vld [vmem:[%s586_s1 + $0x18] sm:$0xff]   ;;  %v459_v4 = vld [vmem:[%s587_s0] sm:$0xff]   ;;  %v456_v7 = vld [vmem:[%s586_s1 + $0x28] sm:$0xff]  }
   0x3   :  { %404 = vmatpush3.bf16.msra.mxu0 %v451_v0  ;;  %443 = vmatpush3.bf16.msra.mxu1 %v451_v0  ;;  %v460_v5 = vld [vmem:[%s587_s0 + $0x20] sm:$0xff]   ;;  %v457_v8 = vld [vmem:[%s586_s1 + $0x30] sm:$0xff]   ;;  %v458_v9 = vld [vmem:[%s586_s1 + $0x38] sm:$0xff]  }
   0x4   :  { %405 = vmatprep.subr.bf16.mxu0 %v452_v1  ;;  %436 = vmatprep.subr.bf16.mxu1 %v452_v1  ;;  %v455_v6 = vld [vmem:[%s586_s1 + $0x20] sm:$0xff]   ;;  %v461_v10 = vld [vmem:[%s587_s0 + $0x8] sm:$0xff]   ;;  %v463_v12 = vld [vmem:[%s587_s0 + $0x10] sm:$0xff]  }
   0x5   :  { %419 = vmatprep.mubr.bf16.mxu0 %v459_v4  ;;  %427 = vmatprep.mubr.bf16.mxu1 %v460_v5  ;;  %v462_v11 = vld [vmem:[%s587_s0 + $0x28] sm:$0xff]   ;;  %v464_v13 = vld [vmem:[%s587_s0 + $0x30] sm:$0xff]   ;;  %v465_v14 = vld [vmem:[%s587_s0 + $0x18] sm:$0xff]  }
   0x6   :  { %v466_v15 = vld [vmem:[%s587_s0 + $0x38] sm:$0xff]   ;;  %v386_v16 = vld [vmem:[%s588_s2] ss:$0 sm:$0xff] }
   0x7   :  { %406 = vmatpush3.bf16.msra.mxu0 %v452_v1  ;;  %444 = vmatpush3.bf16.msra.mxu1 %v452_v1 }
   0x8   :  { %407 = vmatprep.subr.bf16.mxu0 %v453_v2  ;;  %437 = vmatprep.subr.bf16.mxu1 %v453_v2 }
   0xb   :  { %408 = vmatpush3.bf16.msra.mxu0 %v453_v2  ;;  %445 = vmatpush3.bf16.msra.mxu1 %v453_v2 }
   0xc   :  { %409 = vmatprep.subr.bf16.mxu0 %v454_v3  ;;  %438 = vmatprep.subr.bf16.mxu1 %v454_v3 }
   0xf   :  { %410 = vmatpush3.bf16.msra.mxu0 %v454_v3  ;;  %446 = vmatpush3.bf16.msra.mxu1 %v454_v3 }
  0x10   :  { %411 = vmatprep.subr.bf16.mxu0 %v455_v6  ;;  %439 = vmatprep.subr.bf16.mxu1 %v455_v6 }
  0x13   :  { %412 = vmatpush3.bf16.msra.mxu0 %v455_v6  ;;  %447 = vmatpush3.bf16.msra.mxu1 %v455_v6 }
  0x14   :  { %413 = vmatprep.subr.bf16.mxu0 %v456_v7  ;;  %440 = vmatprep.subr.bf16.mxu1 %v456_v7 }
  0x17   :  { %414 = vmatpush3.bf16.msra.mxu0 %v456_v7  ;;  %448 = vmatpush3.bf16.msra.mxu1 %v456_v7 }
  0x18   :  { %415 = vmatprep.subr.bf16.mxu0 %v457_v8  ;;  %441 = vmatprep.subr.bf16.mxu1 %v457_v8 }
  0x1b   :  { %416 = vmatpush3.bf16.msra.mxu0 %v457_v8  ;;  %449 = vmatpush3.bf16.msra.mxu1 %v457_v8 }
  0x1c   :  { %417 = vmatprep.subr.bf16.mxu0 %v458_v9  ;;  %442 = vmatprep.subr.bf16.mxu1 %v458_v9 }
  0x1f   :  { %418 = vmatpush3.bf16.msra.mxu0 %v458_v9  ;;  %450 = vmatpush3.bf16.msra.mxu1 %v458_v9 }
  0x22   :  { %420 = vmatmul.mubr.bf16.vlgmr.msra.gmra.mrb[0].mxu0 %v461_v10  ;;  %428 = vmatmul.mubr.bf16.vlgmr.msra.gmra.mrb[0].mxu1 %v462_v11 }
  0x23   :  { %423 = vmatprep.mubr.bf16.mxu0 %v463_v12  ;;  %431 = vmatprep.mubr.bf16.mxu1 %v464_v13 }
  0x2a   :  { %424 = vmatmul.mubr.bf16.gmra.mrb[4].mxu0 %v465_v14  ;;  %432 = vmatmul.mubr.bf16.gmra.mrb[4].mxu1 %v466_v15 }
  0xf5   :  { %v421_v17 = vpop.f32.mrb[0].mxu0  ;;  %v429_v18 = vpop.f32.mrb[0].mxu1 }
  0xf6   :  { %v336_v19 = vadd.f32 %v421_v17, %v386_v16  ;;  %v344_v20 = vadd.f32 %v429_v18, %v386_v16  ;;  %v213_v21 = vpop.f32.mrb[1].mxu0  ;;  %v245_v22 = vpop.f32.mrb[1].mxu1 }
  0xf7   :  { %v334_v23 = vadd.f32 %v386_v16, %v213_v21  ;;  %v342_v24 = vadd.f32 %v386_v16, %v245_v22  ;;  %v422_v25 = vpop.f32.mrb[2].mxu0  ;;  %v430_v26 = vpop.f32.mrb[2].mxu1 }
  0xf8   :  { %352 = vst [vmem:[%s589_s3 + $0x10] sm:$0xff] %v336_v19  ;;  %360 = vst [vmem:[%s589_s3 + $0x50] sm:$0xff] %v344_v20  ;;  %v337_v27 = vadd.f32 %v422_v25, %v386_v16  ;;  %v345_v28 = vadd.f32 %v430_v26, %v386_v16  ;;  %v216_v29 = vpop.f32.mrb[3].mxu0  ;;  %v248_v30 = vpop.f32.mrb[3].mxu1 }
  0xf9   :  { %350 = vst [vmem:[%s589_s3] sm:$0xff] %v334_v23  ;;  %358 = vst [vmem:[%s589_s3 + $0x40] sm:$0xff] %v342_v24  ;;  %v335_v31 = vadd.f32 %v386_v16, %v216_v29  ;;  %v343_v32 = vadd.f32 %v386_v16, %v248_v30 }
  0xfa   :  { %353 = vst [vmem:[%s589_s3 + $0x18] sm:$0xff] %v337_v27  ;;  %361 = vst [vmem:[%s589_s3 + $0x58] sm:$0xff] %v345_v28 }
  0xfb   :  { %351 = vst [vmem:[%s589_s3 + $0x8] sm:$0xff] %v335_v31  ;;  %359 = vst [vmem:[%s589_s3 + $0x48] sm:$0xff] %v343_v32 }
  0xfd   :  { %v425_v33 = vpop.f32.mrb[4].mxu0  ;;  %v433_v34 = vpop.f32.mrb[4].mxu1 }
  0xfe   :  { %v340_v35 = vadd.f32 %v425_v33, %v386_v16  ;;  %v348_v36 = vadd.f32 %v433_v34, %v386_v16  ;;  %v229_v37 = vpop.f32.mrb[5].mxu0  ;;  %v261_v38 = vpop.f32.mrb[5].mxu1 }
  0xff   :  { %v338_v39 = vadd.f32 %v386_v16, %v229_v37  ;;  %v346_v40 = vadd.f32 %v386_v16, %v261_v38  ;;  %v426_v41 = vpop.f32.mrb[6].mxu0  ;;  %v434_v42 = vpop.f32.mrb[6].mxu1 }
 0x100   :  { %356 = vst [vmem:[%s589_s3 + $0x30] sm:$0xff] %v340_v35  ;;  %364 = vst [vmem:[%s589_s3 + $0x70] sm:$0xff] %v348_v36  ;;  %v341_v43 = vadd.f32 %v426_v41, %v386_v16  ;;  %v349_v44 = vadd.f32 %v434_v42, %v386_v16  ;;  %v232_v45 = vpop.f32.mrb[7].mxu0  ;;  %v264_v46 = vpop.f32.mrb[7].mxu1 }
 0x101   :  { %354 = vst [vmem:[%s589_s3 + $0x20] sm:$0xff] %v338_v39  ;;  %362 = vst [vmem:[%s589_s3 + $0x60] sm:$0xff] %v346_v40  ;;  %v339_v47 = vadd.f32 %v386_v16, %v232_v45  ;;  %v347_v48 = vadd.f32 %v386_v16, %v264_v46 }
 0x102   :  { %357 = vst [vmem:[%s589_s3 + $0x38] sm:$0xff] %v341_v43  ;;  %365 = vst [vmem:[%s589_s3 + $0x78] sm:$0xff] %v349_v44 }
 0x103   :  { %355 = vst [vmem:[%s589_s3 + $0x28] sm:$0xff] %v339_v47  ;;  %363 = vst [vmem:[%s589_s3 + $0x68] sm:$0xff] %v347_v48 }

// kernel: sketch_translator_forward.98
= control target key start
LH: loop header
LB: loop body
LE: loop exit
PB: predicated region body
PF: predicated region fallthrough
CT: control target
= control target key end

     0   :  { %s1397_s1 = inlined_call_operand.vmem [shape: bf16[1024,128], index: 1, kind: input, shape index: {}]   ;;  %s1398_s0 = inlined_call_operand.vmem [shape: bf16[32,1024], index: 0, kind: input, shape index: {}]   ;;  %s1399_s2 = inlined_call_operand.vmem [shape: f32[1,128], index: 2, kind: input, shape index: {}]   ;;  %s1400_s3 = inlined_call_operand.vmem [shape: f32[32,128], index: 3, kind: output, shape index: {}]  }
   0x1   :  { %v1058_v0 = vld [vmem:[%s1397_s1 + $0x40] sm:$0xff]   ;;  %v1062_v4 = vld [vmem:[%s1397_s1 + $0x48] sm:$0xff]   ;;  %v1066_v8 = vld [vmem:[%s1397_s1 + $0x50] sm:$0xff]  }
   0x2   :  { %v1059_v1 = vld [vmem:[%s1397_s1 + $0xc0] sm:$0xff]   ;;  %946 = vmatprep.subr.bf16.mxu0 %v1058_v0  ;;  %v1063_v5 = vld [vmem:[%s1397_s1 + $0xc8] sm:$0xff]   ;;  %v1067_v9 = vld [vmem:[%s1397_s1 + $0xd0] sm:$0xff]  }
   0x3   :  { %v1060_v2 = vld [vmem:[%s1397_s1] sm:$0xff]   ;;  %974 = vmatprep.subr.bf16.mxu1 %v1059_v1  ;;  %v1064_v6 = vld [vmem:[%s1397_s1 + $0x8] sm:$0xff]   ;;  %v1068_v10 = vld [vmem:[%s1397_s1 + $0x10] sm:$0xff]  }
   0x4   :  { %v1061_v3 = vld [vmem:[%s1397_s1 + $0x80] sm:$0xff]   ;;  %947 = vmatpush3.bf16.msra.mxu0 %v1060_v2  ;;  %v1065_v7 = vld [vmem:[%s1397_s1 + $0x88] sm:$0xff]   ;;  %v1069_v11 = vld [vmem:[%s1397_s1 + $0x90] sm:$0xff]  }
   0x5   :  { %975 = vmatpush3.bf16.msra.mxu1 %v1061_v3  ;;  %948 = vmatprep.subr.bf16.mxu0 %v1062_v4  ;;  %v1070_v12 = vld [vmem:[%s1397_s1 + $0x58] sm:$0xff]   ;;  %v1074_v16 = vld [vmem:[%s1397_s1 + $0x60] sm:$0xff]   ;;  %v1078_v20 = vld [vmem:[%s1397_s1 + $0x68] sm:$0xff]  }
   0x6   :  { %976 = vmatprep.subr.bf16.mxu1 %v1063_v5  ;;  %v1071_v13 = vld [vmem:[%s1397_s1 + $0xd8] sm:$0xff]   ;;  %v1075_v17 = vld [vmem:[%s1397_s1 + $0xe0] sm:$0xff]   ;;  %v1079_v21 = vld [vmem:[%s1397_s1 + $0xe8] sm:$0xff]  }
   0x7   :  { %v1072_v14 = vld [vmem:[%s1397_s1 + $0x18] sm:$0xff]   ;;  %v1076_v18 = vld [vmem:[%s1397_s1 + $0x20] sm:$0xff]   ;;  %v1080_v22 = vld [vmem:[%s1397_s1 + $0x28] sm:$0xff]  }
   0x8   :  { %949 = vmatpush3.bf16.msra.mxu0 %v1064_v6  ;;  %v1073_v15 = vld [vmem:[%s1397_s1 + $0x98] sm:$0xff]   ;;  %v1077_v19 = vld [vmem:[%s1397_s1 + $0xa0] sm:$0xff]   ;;  %v1081_v23 = vld [vmem:[%s1397_s1 + $0xa8] sm:$0xff]  }
   0x9   :  { %977 = vmatpush3.bf16.msra.mxu1 %v1065_v7  ;;  %950 = vmatprep.subr.bf16.mxu0 %v1066_v8  ;;  %v1082_v24 = vld [vmem:[%s1397_s1 + $0x70] sm:$0xff]   ;;  %v1086_v28 = vld [vmem:[%s1397_s1 + $0x78] sm:$0xff]   ;;  %v27_v32 = vld [vmem:[%s1398_s0] sm:$0xff] }
   0xa   :  { %978 = vmatprep.subr.bf16.mxu1 %v1067_v9  ;;  %v1083_v25 = vld [vmem:[%s1397_s1 + $0xf0] sm:$0xff]   ;;  %v1087_v29 = vld [vmem:[%s1397_s1 + $0xf8] sm:$0xff]   ;;  %v31_v33 = vld [vmem:[%s1398_s0 + $0x20] sm:$0xff] }
   0xb   :  { %v1084_v26 = vld [vmem:[%s1397_s1 + $0x30] sm:$0xff]   ;;  %v1088_v30 = vld [vmem:[%s1397_s1 + $0x38] sm:$0xff]   ;;  %v28_v34 = vld [vmem:[%s1398_s0 + $0x8] sm:$0xff]  ;;  %v865_v35 = vcombine.low %v27_v32, %v31_v33  ;;  %v866_v36 = vcombine.high %v27_v32, %v31_v33 }
   0xc   :  { %951 = vmatpush3.bf16.msra.mxu0 %v1068_v10  ;;  %v1085_v27 = vld [vmem:[%s1397_s1 + $0xb0] sm:$0xff]   ;;  %v1089_v31 = vld [vmem:[%s1397_s1 + $0xb8] sm:$0xff]   ;;  %v32_v37 = vld [vmem:[%s1398_s0 + $0x28] sm:$0xff] }
   0xd   :  { %979 = vmatpush3.bf16.msra.mxu1 %v1069_v11  ;;  %952 = vmatprep.subr.bf16.mxu0 %v1070_v12  ;;  %v867_v38 = vcombine.low %v28_v34, %v32_v37  ;;  %v868_v39 = vcombine.high %v28_v34, %v32_v37  ;;  %v1090_v40 = vld [vmem:[%s1397_s1 + $0x140] sm:$0xff]   ;;  %v1094_v44 = vld [vmem:[%s1397_s1 + $0x148] sm:$0xff]   ;;  %v1098_v48 = vld [vmem:[%s1397_s1 + $0x150] sm:$0xff]  }
   0xe   :  { %980 = vmatprep.subr.bf16.mxu1 %v1071_v13  ;;  %667 = vmatprep.mubr.bf16.mxu0 %v866_v36  ;;  %v1091_v41 = vld [vmem:[%s1397_s1 + $0x1c0] sm:$0xff]   ;;  %v1095_v45 = vld [vmem:[%s1397_s1 + $0x1c8] sm:$0xff]   ;;  %v1099_v49 = vld [vmem:[%s1397_s1 + $0x1d0] sm:$0xff]  }
   0xf   :  { %716 = vmatprep.mubr.bf16.mxu1 %v868_v39  ;;  %v1092_v42 = vld [vmem:[%s1397_s1 + $0x100] sm:$0xff]   ;;  %v1096_v46 = vld [vmem:[%s1397_s1 + $0x108] sm:$0xff]   ;;  %v1100_v50 = vld [vmem:[%s1397_s1 + $0x110] sm:$0xff]  }
  0x10   :  { %953 = vmatpush3.bf16.msra.mxu0 %v1072_v14  ;;  %v1093_v43 = vld [vmem:[%s1397_s1 + $0x180] sm:$0xff]   ;;  %v1097_v47 = vld [vmem:[%s1397_s1 + $0x188] sm:$0xff]   ;;  %v1101_v51 = vld [vmem:[%s1397_s1 + $0x190] sm:$0xff]  }
  0x11   :  { %981 = vmatpush3.bf16.msra.mxu1 %v1073_v15  ;;  %954 = vmatprep.subr.bf16.mxu0 %v1074_v16  ;;  %v1102_v52 = vld [vmem:[%s1397_s1 + $0x158] sm:$0xff]   ;;  %v1106_v56 = vld [vmem:[%s1397_s1 + $0x160] sm:$0xff]   ;;  %v36_v63 = vld [vmem:[%s1398_s0 + $0x48] sm:$0xff] }
  0x12   :  { %982 = vmatprep.subr.bf16.mxu1 %v1075_v17  ;;  %v1103_v53 = vld [vmem:[%s1397_s1 + $0x1d8] sm:$0xff]   ;;  %v1107_v57 = vld [vmem:[%s1397_s1 + $0x1e0] sm:$0xff]   ;;  %v40_v0 = vld [vmem:[%s1398_s0 + $0x68] sm:$0xff] }
  0x13   :  { %v1104_v54 = vld [vmem:[%s1397_s1 + $0x118] sm:$0xff]   ;;  %v1108_v58 = vld [vmem:[%s1397_s1 + $0x120] sm:$0xff]   ;;  %v876_v2 = vcombine.high %v36_v63, %v40_v0  ;;  %v1110_v3 = vld [vmem:[%s1397_s1 + $0x168] sm:$0xff]   ;;  %v875_v4 = vcombine.low %v36_v63, %v40_v0 }
  0x14   :  { %955 = vmatpush3.bf16.msra.mxu0 %v1076_v18  ;;  %v1105_v55 = vld [vmem:[%s1397_s1 + $0x198] sm:$0xff]   ;;  %v1109_v59 = vld [vmem:[%s1397_s1 + $0x1a0] sm:$0xff]   ;;  %v1111_v5 = vld [vmem:[%s1397_s1 + $0x1e8] sm:$0xff]  }
  0x15   :  { %983 = vmatpush3.bf16.msra.mxu1 %v1077_v19  ;;  %956 = vmatprep.subr.bf16.mxu0 %v1078_v20  ;;  %v35_v60 = vld [vmem:[%s1398_s0 + $0x40] sm:$0xff]  ;;  %v1112_v6 = vld [vmem:[%s1397_s1 + $0x128] sm:$0xff]   ;;  %v1114_v8 = vld [vmem:[%s1397_s1 + $0x170] sm:$0xff]  }
  0x16   :  { %984 = vmatprep.subr.bf16.mxu1 %v1079_v21  ;;  %v39_v61 = vld [vmem:[%s1398_s0 + $0x60] sm:$0xff]  ;;  %v1113_v7 = vld [vmem:[%s1397_s1 + $0x1a8] sm:$0xff]   ;;  %v1115_v9 = vld [vmem:[%s1397_s1 + $0x1f0] sm:$0xff]  }
  0x17   :  { %v874_v62 = vcombine.high %v35_v60, %v39_v61  ;;  %v873_v1 = vcombine.low %v35_v60, %v39_v61  ;;  %v1116_v10 = vld [vmem:[%s1397_s1 + $0x130] sm:$0xff]   ;;  %v1118_v12 = vld [vmem:[%s1397_s1 + $0x178] sm:$0xff]  }
  0x18   :  { %957 = vmatpush3.bf16.msra.mxu0 %v1080_v22  ;;  %v1117_v11 = vld [vmem:[%s1397_s1 + $0x1b0] sm:$0xff]   ;;  %v1119_v13 = vld [vmem:[%s1397_s1 + $0x1f8] sm:$0xff]  }
  0x19   :  { %985 = vmatpush3.bf16.msra.mxu1 %v1081_v23  ;;  %958 = vmatprep.subr.bf16.mxu0 %v1082_v24  ;;  %v1120_v14 = vld [vmem:[%s1397_s1 + $0x138] sm:$0xff]   ;;  %v29_v16 = vld [vmem:[%s1398_s0 + $0x10] sm:$0xff] }
  0x1a   :  { %986 = vmatprep.subr.bf16.mxu1 %v1083_v25  ;;  %v1121_v15 = vld [vmem:[%s1397_s1 + $0x1b8] sm:$0xff]   ;;  %v33_v17 = vld [vmem:[%s1398_s0 + $0x30] sm:$0xff] }
  0x1b   :  { %v30_v18 = vld [vmem:[%s1398_s0 + $0x18] sm:$0xff]  ;;  %v869_v20 = vcombine.low %v29_v16, %v33_v17  ;;  %v870_v21 = vcombine.high %v29_v16, %v33_v17  ;;  %v37_v24 = vld [vmem:[%s1398_s0 + $0x50] sm:$0xff] }
  0x1c   :  { %959 = vmatpush3.bf16.msra.mxu0 %v1084_v26  ;;  %v34_v19 = vld [vmem:[%s1398_s0 + $0x38] sm:$0xff]  ;;  %v41_v25 = vld [vmem:[%s1398_s0 + $0x70] sm:$0xff] }
  0x1d   :  { %987 = vmatpush3.bf16.msra.mxu1 %v1085_v27  ;;  %960 = vmatprep.subr.bf16.mxu0 %v1086_v28  ;;  %v871_v22 = vcombine.low %v30_v18, %v34_v19  ;;  %v872_v23 = vcombine.high %v30_v18, %v34_v19  ;;  %v38_v26 = vld [vmem:[%s1398_s0 + $0x58] sm:$0xff]  ;;  %v878_v27 = vcombine.high %v37_v24, %v41_v25 }
  0x1e   :  { %988 = vmatprep.subr.bf16.mxu1 %v1087_v29  ;;  %v42_v28 = vld [vmem:[%s1398_s0 + $0x78] sm:$0xff] }
  0x1f   :  { %v880_v29 = vcombine.high %v38_v26, %v42_v28 }
  0x20   :  { %961 = vmatpush3.bf16.msra.mxu0 %v1088_v30  ;;  %v877_v30 = vcombine.low %v37_v24, %v41_v25 }
  0x21   :  { %989 = vmatpush3.bf16.msra.mxu1 %v1089_v31  ;;  %1002 = vmatprep.subr.bf16.mxu0 %v1090_v40  ;;  %v879_v31 = vcombine.low %v38_v26, %v42_v28 }
  0x22   :  { %1030 = vmatprep.subr.bf16.mxu1 %v1091_v41 }
  0x23   :  { %668 = vmatmul.mubr.bf16.vlgmr.msra.gmra.mrb[0].mxu0 %v865_v35 }
  0x24   :  { %717 = vmatmul.mubr.bf16.vlgmr.msra.gmra.mrb[0].mxu1 %v867_v38  ;;  %1003 = vmatpush3.bf16.msra.mxu0 %v1092_v42 }
  0x25   :  { %1031 = vmatpush3.bf16.msra.mxu1 %v1093_v43  ;;  %1004 = vmatprep.subr.bf16.mxu0 %v1094_v44 }
  0x26   :  { %1032 = vmatprep.subr.bf16.mxu1 %v1095_v45  ;;  %675 = vmatprep.mubr.bf16.mxu0 %v874_v62 }
  0x27   :  { %724 = vmatprep.mubr.bf16.mxu1 %v876_v2 }
  0x28   :  { %1005 = vmatpush3.bf16.msra.mxu0 %v1096_v46 }
  0x29   :  { %1033 = vmatpush3.bf16.msra.mxu1 %v1097_v47  ;;  %1006 = vmatprep.subr.bf16.mxu0 %v1098_v48 }
  0x2a   :  { %1034 = vmatprep.subr.bf16.mxu1 %v1099_v49 }
  0x2b   :  { %676 = vmatmul.mubr.bf16.gmra.mrb[4].mxu0 %v873_v1 }
  0x2c   :  { %1007 = vmatpush3.bf16.msra.mxu0 %v1100_v50  ;;  %725 = vmatmul.mubr.bf16.gmra.mrb[4].mxu1 %v875_v4 }
  0x2d   :  { %1035 = vmatpush3.bf16.msra.mxu1 %v1101_v51  ;;  %1008 = vmatprep.subr.bf16.mxu0 %v1102_v52 }
  0x2e   :  { %1036 = vmatprep.subr.bf16.mxu1 %v1103_v53  ;;  %765 = vmatprep.mubr.bf16.mxu0 %v870_v21 }
  0x2f   :  { %814 = vmatprep.mubr.bf16.mxu1 %v872_v23 }
  0x30   :  { %1009 = vmatpush3.bf16.msra.mxu0 %v1104_v54 }
  0x31   :  { %1037 = vmatpush3.bf16.msra.mxu1 %v1105_v55  ;;  %1010 = vmatprep.subr.bf16.mxu0 %v1106_v56 }
  0x32   :  { %1038 = vmatprep.subr.bf16.mxu1 %v1107_v57 }
  0x34   :  { %1011 = vmatpush3.bf16.msra.mxu0 %v1108_v58 }
  0x35   :  { %1039 = vmatpush3.bf16.msra.mxu1 %v1109_v59  ;;  %1012 = vmatprep.subr.bf16.mxu0 %v1110_v3 }
  0x36   :  { %1040 = vmatprep.subr.bf16.mxu1 %v1111_v5 }
  0x38   :  { %1013 = vmatpush3.bf16.msra.mxu0 %v1112_v6 }
  0x39   :  { %1041 = vmatpush3.bf16.msra.mxu1 %v1113_v7  ;;  %1014 = vmatprep.subr.bf16.mxu0 %v1114_v8 }
  0x3a   :  { %1042 = vmatprep.subr.bf16.mxu1 %v1115_v9  ;;  %v945_v9 = vld [vmem:[%s1399_s2] ss:$0 sm:$0xff] }
  0x3c   :  { %1015 = vmatpush3.bf16.msra.mxu0 %v1116_v10 }
  0x3d   :  { %1043 = vmatpush3.bf16.msra.mxu1 %v1117_v11  ;;  %1016 = vmatprep.subr.bf16.mxu0 %v1118_v12 }
  0x3e   :  { %1044 = vmatprep.subr.bf16.mxu1 %v1119_v13 }
  0x40   :  { %1017 = vmatpush3.bf16.msra.mxu0 %v1120_v14 }
  0x41   :  { %1045 = vmatpush3.bf16.msra.mxu1 %v1121_v15 }
  0x43   :  { %766 = vmatmul.mubr.bf16.vlgmr.msra.gmra.mrb[8].mxu0 %v869_v20 }
  0x44   :  { %815 = vmatmul.mubr.bf16.vlgmr.msra.gmra.mrb[8].mxu1 %v871_v22  ;;  %773 = vmatprep.mubr.bf16.mxu0 %v878_v27 }
  0x45   :  { %822 = vmatprep.mubr.bf16.mxu1 %v880_v29 }
  0x4b   :  { %774 = vmatmul.mubr.bf16.gmra.mrb[12].mxu0 %v877_v30 }
  0x4c   :  { %823 = vmatmul.mubr.bf16.gmra.mrb[12].mxu1 %v879_v31 }
  0xf6   :  { %v962_v32 = vpop.f32.mrb[0].mxu0 }
  0xf7   :  { %v990_v33 = vpop.f32.mrb[0].mxu1  ;;  %v963_v34 = vpop.f32.mrb[1].mxu0 }
  0xf8   :  { %v964_v35 = vadd.f32 %v963_v34, %v962_v32  ;;  %v991_v36 = vpop.f32.mrb[1].mxu1  ;;  %v965_v37 = vpop.f32.mrb[2].mxu0 }
  0xf9   :  { %v992_v38 = vadd.f32 %v991_v36, %v990_v33  ;;  %v993_v39 = vpop.f32.mrb[2].mxu1  ;;  %v966_v40 = vpop.f32.mrb[3].mxu0 }
  0xfa   :  { %v967_v41 = vadd.f32 %v966_v40, %v965_v37  ;;  %v994_v42 = vpop.f32.mrb[3].mxu1 }
  0xfb   :  { %v719_v43 = vadd.f32 %v992_v38, %v964_v35  ;;  %v995_v44 = vadd.f32 %v994_v42, %v993_v39 }
  0xfd   :  { %v722_v45 = vadd.f32 %v995_v44, %v967_v41 }
  0xfe   :  { %v968_v46 = vpop.f32.mrb[4].mxu0 }
  0xff   :  { %v996_v47 = vpop.f32.mrb[4].mxu1  ;;  %v969_v48 = vpop.f32.mrb[5].mxu0 }
 0x100   :  { %v970_v49 = vadd.f32 %v969_v48, %v968_v46  ;;  %v997_v50 = vpop.f32.mrb[5].mxu1  ;;  %v971_v51 = vpop.f32.mrb[6].mxu0 }
 0x101   :  { %v998_v52 = vadd.f32 %v997_v50, %v996_v47  ;;  %v999_v53 = vpop.f32.mrb[6].mxu1  ;;  %v972_v54 = vpop.f32.mrb[7].mxu0 }
 0x102   :  { %v973_v55 = vadd.f32 %v972_v54, %v971_v51  ;;  %v1000_v56 = vpop.f32.mrb[7].mxu1 }
 0x103   :  { %v727_v57 = vadd.f32 %v998_v52, %v970_v49  ;;  %v1001_v58 = vadd.f32 %v1000_v56, %v999_v53 }
 0x105   :  { %v730_v59 = vadd.f32 %v1001_v58, %v973_v55 }
 0x116   :  { %v1018_v60 = vpop.f32.mrb[8].mxu0 }
 0x117   :  { %v1046_v61 = vpop.f32.mrb[8].mxu1  ;;  %v1019_v62 = vpop.f32.mrb[9].mxu0 }
 0x118   :  { %v1047_v63 = vpop.f32.mrb[9].mxu1  ;;  %v1020_v0 = vadd.f32 %v1019_v62, %v1018_v60  ;;  %v1021_v2 = vpop.f32.mrb[10].mxu0 }
 0x119   :  { %v1048_v1 = vadd.f32 %v1047_v63, %v1046_v61  ;;  %v1049_v3 = vpop.f32.mrb[10].mxu1  ;;  %v1022_v4 = vpop.f32.mrb[11].mxu0 }
 0x11a   :  { %v1050_v5 = vpop.f32.mrb[11].mxu1  ;;  %v768_v6 = vadd.f32 %v1020_v0, %v719_v43  ;;  %v1023_v7 = vadd.f32 %v1022_v4, %v1021_v2 }
 0x11b   :  { %v1051_v8 = vadd.f32 %v1050_v5, %v1049_v3 }
 0x11c   :  { %v817_v10 = vadd.f32 %v1048_v1, %v768_v6  ;;  %v771_v11 = vadd.f32 %v1023_v7, %v722_v45 }
 0x11e   :  { %v853_v12 = vadd.f32 %v945_v9, %v817_v10  ;;  %v820_v13 = vadd.f32 %v1051_v8, %v771_v11  ;;  %v1024_v14 = vpop.f32.mrb[12].mxu0 }
 0x11f   :  { %v1052_v15 = vpop.f32.mrb[12].mxu1  ;;  %v1025_v16 = vpop.f32.mrb[13].mxu0 }
 0x120   :  { %v1053_v17 = vpop.f32.mrb[13].mxu1  ;;  %857 = vst [vmem:[%s1400_s3] sm:$0xff] %v853_v12  ;;  %v854_v18 = vadd.f32 %v945_v9, %v820_v13  ;;  %v1026_v19 = vadd.f32 %v1025_v16, %v1024_v14  ;;  %v1027_v21 = vpop.f32.mrb[14].mxu0 }
 0x121   :  { %v1054_v20 = vadd.f32 %v1053_v17, %v1052_v15  ;;  %v1055_v22 = vpop.f32.mrb[14].mxu1  ;;  %v1028_v23 = vpop.f32.mrb[15].mxu0 }
 0x122   :  { %v1056_v24 = vpop.f32.mrb[15].mxu1  ;;  %858 = vst [vmem:[%s1400_s3 + $0x8] sm:$0xff] %v854_v18  ;;  %v776_v25 = vadd.f32 %v1026_v19, %v727_v57  ;;  %v1029_v26 = vadd.f32 %v1028_v23, %v1027_v21 }
 0x123   :  { %v1057_v27 = vadd.f32 %v1056_v24, %v1055_v22 }
 0x124   :  { %v825_v28 = vadd.f32 %v1054_v20, %v776_v25  ;;  %v779_v29 = vadd.f32 %v1029_v26, %v730_v59 }
 0x126   :  { %v855_v30 = vadd.f32 %v945_v9, %v825_v28  ;;  %v828_v31 = vadd.f32 %v1057_v27, %v779_v29 }
 0x128   :  { %859 = vst [vmem:[%s1400_s3 + $0x10] sm:$0xff] %v855_v30  ;;  %v856_v32 = vadd.f32 %v945_v9, %v828_v31 }
 0x12a   :  { %860 = vst [vmem:[%s1400_s3 + $0x18] sm:$0xff] %v856_v32 }

// kernel: sketch_translator_forward.97
= control target key start
LH: loop header
LB: loop body
LE: loop exit
PB: predicated region body
PF: predicated region fallthrough
CT: control target
= control target key end

     0   :  { %s759_s1 = inlined_call_operand.vmem [shape: bf16[512,128], index: 1, kind: input, shape index: {}]   ;;  %s760_s0 = inlined_call_operand.vmem [shape: bf16[32,512], index: 0, kind: input, shape index: {}]   ;;  %s761_s2 = inlined_call_operand.vmem [shape: f32[1,128], index: 2, kind: input, shape index: {}]   ;;  %s762_s3 = inlined_call_operand.vmem [shape: f32[32,128], index: 3, kind: output, shape index: {}]  }
   0x1   :  { %v560_v0 = vld [vmem:[%s759_s1 + $0x40] sm:$0xff]   ;;  %v564_v4 = vld [vmem:[%s759_s1 + $0x48] sm:$0xff]   ;;  %v568_v8 = vld [vmem:[%s759_s1 + $0x50] sm:$0xff]  }
   0x2   :  { %v561_v1 = vld [vmem:[%s759_s1 + $0xc0] sm:$0xff]   ;;  %504 = vmatprep.subr.bf16.mxu0 %v560_v0  ;;  %v565_v5 = vld [vmem:[%s759_s1 + $0xc8] sm:$0xff]   ;;  %v569_v9 = vld [vmem:[%s759_s1 + $0xd0] sm:$0xff]  }
   0x3   :  { %v562_v2 = vld [vmem:[%s759_s1] sm:$0xff]   ;;  %532 = vmatprep.subr.bf16.mxu1 %v561_v1  ;;  %v566_v6 = vld [vmem:[%s759_s1 + $0x8] sm:$0xff]   ;;  %v570_v10 = vld [vmem:[%s759_s1 + $0x10] sm:$0xff]  }
   0x4   :  { %v563_v3 = vld [vmem:[%s759_s1 + $0x80] sm:$0xff]   ;;  %505 = vmatpush3.bf16.msra.mxu0 %v562_v2  ;;  %v567_v7 = vld [vmem:[%s759_s1 + $0x88] sm:$0xff]   ;;  %v571_v11 = vld [vmem:[%s759_s1 + $0x90] sm:$0xff]  }
   0x5   :  { %533 = vmatpush3.bf16.msra.mxu1 %v563_v3  ;;  %506 = vmatprep.subr.bf16.mxu0 %v564_v4  ;;  %v572_v12 = vld [vmem:[%s759_s1 + $0x58] sm:$0xff]   ;;  %v576_v16 = vld [vmem:[%s759_s1 + $0x60] sm:$0xff]   ;;  %v580_v20 = vld [vmem:[%s759_s1 + $0x68] sm:$0xff]  }
   0x6   :  { %534 = vmatprep.subr.bf16.mxu1 %v565_v5  ;;  %v573_v13 = vld [vmem:[%s759_s1 + $0xd8] sm:$0xff]   ;;  %v577_v17 = vld [vmem:[%s759_s1 + $0xe0] sm:$0xff]   ;;  %v581_v21 = vld [vmem:[%s759_s1 + $0xe8] sm:$0xff]  }
   0x7   :  { %v574_v14 = vld [vmem:[%s759_s1 + $0x18] sm:$0xff]   ;;  %v578_v18 = vld [vmem:[%s759_s1 + $0x20] sm:$0xff]   ;;  %v582_v22 = vld [vmem:[%s759_s1 + $0x28] sm:$0xff]  }
   0x8   :  { %507 = vmatpush3.bf16.msra.mxu0 %v566_v6  ;;  %v575_v15 = vld [vmem:[%s759_s1 + $0x98] sm:$0xff]   ;;  %v579_v19 = vld [vmem:[%s759_s1 + $0xa0] sm:$0xff]   ;;  %v583_v23 = vld [vmem:[%s759_s1 + $0xa8] sm:$0xff]  }
   0x9   :  { %535 = vmatpush3.bf16.msra.mxu1 %v567_v7  ;;  %508 = vmatprep.subr.bf16.mxu0 %v568_v8  ;;  %v584_v24 = vld [vmem:[%s759_s1 + $0x70] sm:$0xff]   ;;  %v588_v28 = vld [vmem:[%s759_s1 + $0x78] sm:$0xff]   ;;  %v503_v49 = vld [vmem:[%s761_s2] ss:$0 sm:$0xff] }
   0xa   :  { %536 = vmatprep.subr.bf16.mxu1 %v569_v9  ;;  %v585_v25 = vld [vmem:[%s759_s1 + $0xf0] sm:$0xff]   ;;  %v589_v29 = vld [vmem:[%s759_s1 + $0xf8] sm:$0xff]  }
   0xb   :  { %v586_v26 = vld [vmem:[%s759_s1 + $0x30] sm:$0xff]   ;;  %v590_v30 = vld [vmem:[%s759_s1 + $0x38] sm:$0xff]  }
   0xc   :  { %509 = vmatpush3.bf16.msra.mxu0 %v570_v10  ;;  %v587_v27 = vld [vmem:[%s759_s1 + $0xb0] sm:$0xff]   ;;  %v591_v31 = vld [vmem:[%s759_s1 + $0xb8] sm:$0xff]  }
   0xd   :  { %537 = vmatpush3.bf16.msra.mxu1 %v571_v11  ;;  %510 = vmatprep.subr.bf16.mxu0 %v572_v12  ;;  %v592_v32 = vld [vmem:[%s760_s0] ss:$16 sps:$4 sm:$0xff]   ;;  %v594_v33 = vld [vmem:[%s760_s0 + $0x4] ss:$16 sps:$4 sm:$0xff]   ;;  %v595_v34 = vld [vmem:[%s760_s0 + $0x8] ss:$16 sps:$4 sm:$0xff]  }
   0xe   :  { %538 = vmatprep.subr.bf16.mxu1 %v573_v13  ;;  %v597_v35 = vld [vmem:[%s760_s0 + $0xc] ss:$16 sps:$4 sm:$0xff]   ;;  %363 = vmatprep.mubr.bf16.mxu0 %v594_v33  ;;  %v598_v36 = vld [vmem:[%s760_s0 + $0x24] ss:$16 sps:$4 sm:$0xff]   ;;  %v602_v38 = vld [vmem:[%s760_s0 + $0x20] ss:$16 sps:$4 sm:$0xff]  }
   0xf   :  { %412 = vmatprep.mubr.bf16.mxu1 %v597_v35  ;;  %v600_v37 = vld [vmem:[%s760_s0 + $0x2c] ss:$16 sps:$4 sm:$0xff]   ;;  %v603_v39 = vld [vmem:[%s760_s0 + $0x28] ss:$16 sps:$4 sm:$0xff]  }
  0x10   :  { %511 = vmatpush3.bf16.msra.mxu0 %v574_v14 }
  0x11   :  { %539 = vmatpush3.bf16.msra.mxu1 %v575_v15  ;;  %512 = vmatprep.subr.bf16.mxu0 %v576_v16 }
  0x12   :  { %540 = vmatprep.subr.bf16.mxu1 %v577_v17 }
  0x14   :  { %513 = vmatpush3.bf16.msra.mxu0 %v578_v18 }
  0x15   :  { %541 = vmatpush3.bf16.msra.mxu1 %v579_v19  ;;  %514 = vmatprep.subr.bf16.mxu0 %v580_v20 }
  0x16   :  { %542 = vmatprep.subr.bf16.mxu1 %v581_v21 }
  0x18   :  { %515 = vmatpush3.bf16.msra.mxu0 %v582_v22 }
  0x19   :  { %543 = vmatpush3.bf16.msra.mxu1 %v583_v23  ;;  %516 = vmatprep.subr.bf16.mxu0 %v584_v24 }
  0x1a   :  { %544 = vmatprep.subr.bf16.mxu1 %v585_v25 }
  0x1c   :  { %517 = vmatpush3.bf16.msra.mxu0 %v586_v26 }
  0x1d   :  { %545 = vmatpush3.bf16.msra.mxu1 %v587_v27  ;;  %518 = vmatprep.subr.bf16.mxu0 %v588_v28 }
  0x1e   :  { %546 = vmatprep.subr.bf16.mxu1 %v589_v29 }
  0x20   :  { %519 = vmatpush3.bf16.msra.mxu0 %v590_v30 }
  0x21   :  { %547 = vmatpush3.bf16.msra.mxu1 %v591_v31 }
  0x23   :  { %364 = vmatmul.mubr.bf16.vlgmr.msra.gmra.mrb[0].mxu0 %v592_v32 }
  0x24   :  { %413 = vmatmul.mubr.bf16.vlgmr.msra.gmra.mrb[0].mxu1 %v595_v34  ;;  %371 = vmatprep.mubr.bf16.mxu0 %v598_v36 }
  0x25   :  { %420 = vmatprep.mubr.bf16.mxu1 %v600_v37 }
  0x2b   :  { %372 = vmatmul.mubr.bf16.gmra.mrb[4].mxu0 %v602_v38 }
  0x2c   :  { %421 = vmatmul.mubr.bf16.gmra.mrb[4].mxu1 %v603_v39 }
  0xf6   :  { %v520_v40 = vpop.f32.mrb[0].mxu0 }
  0xf7   :  { %v548_v41 = vpop.f32.mrb[0].mxu1  ;;  %v521_v42 = vpop.f32.mrb[1].mxu0 }
  0xf8   :  { %v522_v43 = vadd.f32 %v521_v42, %v520_v40  ;;  %v549_v44 = vpop.f32.mrb[1].mxu1  ;;  %v523_v45 = vpop.f32.mrb[2].mxu0 }
  0xf9   :  { %v550_v46 = vadd.f32 %v549_v44, %v548_v41  ;;  %v551_v47 = vpop.f32.mrb[2].mxu1  ;;  %v524_v48 = vpop.f32.mrb[3].mxu0 }
  0xfa   :  { %v525_v50 = vadd.f32 %v524_v48, %v523_v45  ;;  %v552_v51 = vpop.f32.mrb[3].mxu1 }
  0xfb   :  { %v415_v52 = vadd.f32 %v550_v46, %v522_v43  ;;  %v553_v53 = vadd.f32 %v552_v51, %v551_v47 }
  0xfd   :  { %v451_v54 = vadd.f32 %v503_v49, %v415_v52  ;;  %v418_v55 = vadd.f32 %v553_v53, %v525_v50 }
  0xfe   :  { %v526_v56 = vpop.f32.mrb[4].mxu0 }
  0xff   :  { %455 = vst [vmem:[%s762_s3] sm:$0xff] %v451_v54  ;;  %v452_v57 = vadd.f32 %v503_v49, %v418_v55  ;;  %v554_v58 = vpop.f32.mrb[4].mxu1  ;;  %v527_v59 = vpop.f32.mrb[5].mxu0 }
 0x100   :  { %v528_v60 = vadd.f32 %v527_v59, %v526_v56  ;;  %v555_v61 = vpop.f32.mrb[5].mxu1  ;;  %v529_v62 = vpop.f32.mrb[6].mxu0 }
 0x101   :  { %456 = vst [vmem:[%s762_s3 + $0x8] sm:$0xff] %v452_v57  ;;  %v556_v63 = vadd.f32 %v555_v61, %v554_v58  ;;  %v557_v0 = vpop.f32.mrb[6].mxu1  ;;  %v530_v1 = vpop.f32.mrb[7].mxu0 }
 0x102   :  { %v531_v2 = vadd.f32 %v530_v1, %v529_v62  ;;  %v558_v3 = vpop.f32.mrb[7].mxu1 }
 0x103   :  { %v423_v4 = vadd.f32 %v556_v63, %v528_v60  ;;  %v559_v5 = vadd.f32 %v558_v3, %v557_v0 }
 0x105   :  { %v453_v6 = vadd.f32 %v503_v49, %v423_v4  ;;  %v426_v7 = vadd.f32 %v559_v5, %v531_v2 }
 0x107   :  { %457 = vst [vmem:[%s762_s3 + $0x10] sm:$0xff] %v453_v6  ;;  %v454_v8 = vadd.f32 %v503_v49, %v426_v7 }
 0x109   :  { %458 = vst [vmem:[%s762_s3 + $0x18] sm:$0xff] %v454_v8 }

// kernel: sketch_translator_forward.103
= control target key start
LH: loop header
LB: loop body
LE: loop exit
PB: predicated region body
PF: predicated region fallthrough
CT: control target
= control target key end

     0   :  { %s1341_s1 = inlined_call_operand.vmem [shape: bf16[512,128], index: 1, kind: input, shape index: {}]   ;;  %s1342_s0 = inlined_call_operand.vmem [shape: bf16[128,512], index: 0, kind: input, shape index: {}]   ;;  %s1343_s2 = inlined_call_operand.vmem [shape: f32[1,128], index: 2, kind: input, shape index: {}]   ;;  %s1344_s3 = inlined_call_operand.vmem [shape: f32[128,128], index: 3, kind: output, shape index: {}]  }
   0x1   :  { %v980_v0 = vld [vmem:[%s1341_s1 + $0x40] sm:$0xff]   ;;  %v984_v4 = vld [vmem:[%s1341_s1 + $0x48] sm:$0xff]   ;;  %v988_v8 = vld [vmem:[%s1341_s1 + $0x50] sm:$0xff]  }
   0x2   :  { %v981_v1 = vld [vmem:[%s1341_s1 + $0xc0] sm:$0xff]   ;;  %852 = vmatprep.subr.bf16.mxu0 %v980_v0  ;;  %v985_v5 = vld [vmem:[%s1341_s1 + $0xc8] sm:$0xff]   ;;  %v989_v9 = vld [vmem:[%s1341_s1 + $0xd0] sm:$0xff]  }
   0x3   :  { %v982_v2 = vld [vmem:[%s1341_s1] sm:$0xff]   ;;  %916 = vmatprep.subr.bf16.mxu1 %v981_v1  ;;  %v986_v6 = vld [vmem:[%s1341_s1 + $0x8] sm:$0xff]   ;;  %v990_v10 = vld [vmem:[%s1341_s1 + $0x10] sm:$0xff]  }
   0x4   :  { %v983_v3 = vld [vmem:[%s1341_s1 + $0x80] sm:$0xff]   ;;  %853 = vmatpush3.bf16.msra.mxu0 %v982_v2  ;;  %v987_v7 = vld [vmem:[%s1341_s1 + $0x88] sm:$0xff]   ;;  %v991_v11 = vld [vmem:[%s1341_s1 + $0x90] sm:$0xff]  }
   0x5   :  { %917 = vmatpush3.bf16.msra.mxu1 %v983_v3  ;;  %854 = vmatprep.subr.bf16.mxu0 %v984_v4  ;;  %v992_v12 = vld [vmem:[%s1341_s1 + $0x58] sm:$0xff]   ;;  %v996_v16 = vld [vmem:[%s1341_s1 + $0x60] sm:$0xff]   ;;  %v1000_v20 = vld [vmem:[%s1341_s1 + $0x68] sm:$0xff]  }
   0x6   :  { %918 = vmatprep.subr.bf16.mxu1 %v985_v5  ;;  %v993_v13 = vld [vmem:[%s1341_s1 + $0xd8] sm:$0xff]   ;;  %v997_v17 = vld [vmem:[%s1341_s1 + $0xe0] sm:$0xff]   ;;  %v1001_v21 = vld [vmem:[%s1341_s1 + $0xe8] sm:$0xff]  }
   0x7   :  { %v994_v14 = vld [vmem:[%s1341_s1 + $0x18] sm:$0xff]   ;;  %v998_v18 = vld [vmem:[%s1341_s1 + $0x20] sm:$0xff]   ;;  %v1002_v22 = vld [vmem:[%s1341_s1 + $0x28] sm:$0xff]  }
   0x8   :  { %855 = vmatpush3.bf16.msra.mxu0 %v986_v6  ;;  %v995_v15 = vld [vmem:[%s1341_s1 + $0x98] sm:$0xff]   ;;  %v999_v19 = vld [vmem:[%s1341_s1 + $0xa0] sm:$0xff]   ;;  %v1003_v23 = vld [vmem:[%s1341_s1 + $0xa8] sm:$0xff]  }
   0x9   :  { %919 = vmatpush3.bf16.msra.mxu1 %v987_v7  ;;  %856 = vmatprep.subr.bf16.mxu0 %v988_v8  ;;  %v1004_v24 = vld [vmem:[%s1341_s1 + $0x70] sm:$0xff]   ;;  %v1008_v28 = vld [vmem:[%s1341_s1 + $0x78] sm:$0xff]  }
   0xa   :  { %920 = vmatprep.subr.bf16.mxu1 %v989_v9  ;;  %v1005_v25 = vld [vmem:[%s1341_s1 + $0xf0] sm:$0xff]   ;;  %v1009_v29 = vld [vmem:[%s1341_s1 + $0xf8] sm:$0xff]   ;;  %v1275_v9 = vld [vmem:[%s1343_s2] ss:$0 sm:$0xff] }
   0xb   :  { %v1006_v26 = vld [vmem:[%s1341_s1 + $0x30] sm:$0xff]   ;;  %v1010_v30 = vld [vmem:[%s1341_s1 + $0x38] sm:$0xff]  }
   0xc   :  { %857 = vmatpush3.bf16.msra.mxu0 %v990_v10  ;;  %v1007_v27 = vld [vmem:[%s1341_s1 + $0xb0] sm:$0xff]   ;;  %v1011_v31 = vld [vmem:[%s1341_s1 + $0xb8] sm:$0xff]  }
   0xd   :  { %921 = vmatpush3.bf16.msra.mxu1 %v991_v11  ;;  %858 = vmatprep.subr.bf16.mxu0 %v992_v12  ;;  %v1012_v32 = vld [vmem:[%s1342_s0] ss:$16 sps:$4 sm:$0xff]   ;;  %v1014_v33 = vld [vmem:[%s1342_s0 + $0x4] ss:$16 sps:$4 sm:$0xff]   ;;  %v1015_v34 = vld [vmem:[%s1342_s0 + $0x8] ss:$16 sps:$4 sm:$0xff]  }
   0xe   :  { %922 = vmatprep.subr.bf16.mxu1 %v993_v13  ;;  %v1017_v35 = vld [vmem:[%s1342_s0 + $0xc] ss:$16 sps:$4 sm:$0xff]   ;;  %531 = vmatprep.mubr.bf16.mxu0 %v1014_v33  ;;  %v1018_v36 = vld [vmem:[%s1342_s0 + $0x24] ss:$16 sps:$4 sm:$0xff]   ;;  %v1022_v38 = vld [vmem:[%s1342_s0 + $0x20] ss:$16 sps:$4 sm:$0xff]  }
   0xf   :  { %628 = vmatprep.mubr.bf16.mxu1 %v1017_v35  ;;  %v1020_v37 = vld [vmem:[%s1342_s0 + $0x2c] ss:$16 sps:$4 sm:$0xff]   ;;  %v1023_v39 = vld [vmem:[%s1342_s0 + $0x28] ss:$16 sps:$4 sm:$0xff]   ;;  %v1024_v40 = vld [vmem:[%s1342_s0 + $0x44] ss:$16 sps:$4 sm:$0xff]  }
  0x10   :  { %859 = vmatpush3.bf16.msra.mxu0 %v994_v14  ;;  %v1026_v41 = vld [vmem:[%s1342_s0 + $0x4c] ss:$16 sps:$4 sm:$0xff]   ;;  %v1028_v42 = vld [vmem:[%s1342_s0 + $0x40] ss:$16 sps:$4 sm:$0xff]   ;;  %v1029_v43 = vld [vmem:[%s1342_s0 + $0x48] ss:$16 sps:$4 sm:$0xff]  }
  0x11   :  { %923 = vmatpush3.bf16.msra.mxu1 %v995_v15  ;;  %860 = vmatprep.subr.bf16.mxu0 %v996_v16  ;;  %v1030_v44 = vld [vmem:[%s1342_s0 + $0x64] ss:$16 sps:$4 sm:$0xff]   ;;  %v1032_v45 = vld [vmem:[%s1342_s0 + $0x6c] ss:$16 sps:$4 sm:$0xff]   ;;  %v1034_v46 = vld [vmem:[%s1342_s0 + $0x60] ss:$16 sps:$4 sm:$0xff]  }
  0x12   :  { %924 = vmatprep.subr.bf16.mxu1 %v997_v17  ;;  %v1035_v47 = vld [vmem:[%s1342_s0 + $0x68] ss:$16 sps:$4 sm:$0xff]   ;;  %v1036_v48 = vld [vmem:[%s1342_s0 + $0x84] ss:$16 sps:$4 sm:$0xff]   ;;  %v1038_v49 = vld [vmem:[%s1342_s0 + $0x8c] ss:$16 sps:$4 sm:$0xff]  }
  0x13   :  { %v1040_v50 = vld [vmem:[%s1342_s0 + $0x80] ss:$16 sps:$4 sm:$0xff]   ;;  %v1041_v51 = vld [vmem:[%s1342_s0 + $0x88] ss:$16 sps:$4 sm:$0xff]   ;;  %v1042_v52 = vld [vmem:[%s1342_s0 + $0xa4] ss:$16 sps:$4 sm:$0xff]  }
  0x14   :  { %861 = vmatpush3.bf16.msra.mxu0 %v998_v18  ;;  %v1044_v53 = vld [vmem:[%s1342_s0 + $0xac] ss:$16 sps:$4 sm:$0xff]   ;;  %v1046_v54 = vld [vmem:[%s1342_s0 + $0xa0] ss:$16 sps:$4 sm:$0xff]   ;;  %v1047_v55 = vld [vmem:[%s1342_s0 + $0xa8] ss:$16 sps:$4 sm:$0xff]  }
  0x15   :  { %925 = vmatpush3.bf16.msra.mxu1 %v999_v19  ;;  %862 = vmatprep.subr.bf16.mxu0 %v1000_v20  ;;  %v1048_v56 = vld [vmem:[%s1342_s0 + $0xc4] ss:$16 sps:$4 sm:$0xff]   ;;  %v1050_v57 = vld [vmem:[%s1342_s0 + $0xcc] ss:$16 sps:$4 sm:$0xff]   ;;  %v1052_v58 = vld [vmem:[%s1342_s0 + $0xc0] ss:$16 sps:$4 sm:$0xff]  }
  0x16   :  { %926 = vmatprep.subr.bf16.mxu1 %v1001_v21  ;;  %v1053_v59 = vld [vmem:[%s1342_s0 + $0xc8] ss:$16 sps:$4 sm:$0xff]   ;;  %v1054_v60 = vld [vmem:[%s1342_s0 + $0xe4] ss:$16 sps:$4 sm:$0xff]   ;;  %v1056_v61 = vld [vmem:[%s1342_s0 + $0xec] ss:$16 sps:$4 sm:$0xff]  }
  0x17   :  { %v1058_v62 = vld [vmem:[%s1342_s0 + $0xe0] ss:$16 sps:$4 sm:$0xff]   ;;  %v1059_v63 = vld [vmem:[%s1342_s0 + $0xe8] ss:$16 sps:$4 sm:$0xff]  }
  0x18   :  { %863 = vmatpush3.bf16.msra.mxu0 %v1002_v22 }
  0x19   :  { %927 = vmatpush3.bf16.msra.mxu1 %v1003_v23  ;;  %864 = vmatprep.subr.bf16.mxu0 %v1004_v24 }
  0x1a   :  { %928 = vmatprep.subr.bf16.mxu1 %v1005_v25 }
  0x1c   :  { %865 = vmatpush3.bf16.msra.mxu0 %v1006_v26 }
  0x1d   :  { %929 = vmatpush3.bf16.msra.mxu1 %v1007_v27  ;;  %866 = vmatprep.subr.bf16.mxu0 %v1008_v28 }
  0x1e   :  { %930 = vmatprep.subr.bf16.mxu1 %v1009_v29 }
  0x20   :  { %867 = vmatpush3.bf16.msra.mxu0 %v1010_v30 }
  0x21   :  { %931 = vmatpush3.bf16.msra.mxu1 %v1011_v31 }
  0x23   :  { %532 = vmatmul.mubr.bf16.vlgmr.msra.gmra.mrb[0].mxu0 %v1012_v32 }
  0x24   :  { %629 = vmatmul.mubr.bf16.vlgmr.msra.gmra.mrb[0].mxu1 %v1015_v34  ;;  %539 = vmatprep.mubr.bf16.mxu0 %v1018_v36 }
  0x25   :  { %636 = vmatprep.mubr.bf16.mxu1 %v1020_v37 }
  0x2b   :  { %540 = vmatmul.mubr.bf16.gmra.mrb[4].mxu0 %v1022_v38 }
  0x2c   :  { %637 = vmatmul.mubr.bf16.gmra.mrb[4].mxu1 %v1023_v39  ;;  %547 = vmatprep.mubr.bf16.mxu0 %v1024_v40 }
  0x2d   :  { %644 = vmatprep.mubr.bf16.mxu1 %v1026_v41 }
  0x33   :  { %548 = vmatmul.mubr.bf16.gmra.mrb[8].mxu0 %v1028_v42 }
  0x34   :  { %645 = vmatmul.mubr.bf16.gmra.mrb[8].mxu1 %v1029_v43  ;;  %555 = vmatprep.mubr.bf16.mxu0 %v1030_v44 }
  0x35   :  { %652 = vmatprep.mubr.bf16.mxu1 %v1032_v45 }
  0x3b   :  { %556 = vmatmul.mubr.bf16.gmra.mrb[12].mxu0 %v1034_v46 }
  0x3c   :  { %653 = vmatmul.mubr.bf16.gmra.mrb[12].mxu1 %v1035_v47  ;;  %563 = vmatprep.mubr.bf16.mxu0 %v1036_v48 }
  0x3d   :  { %660 = vmatprep.mubr.bf16.mxu1 %v1038_v49 }
  0x43   :  { %564 = vmatmul.mubr.bf16.gmra.mrb[16].mxu0 %v1040_v50 }
  0x44   :  { %661 = vmatmul.mubr.bf16.gmra.mrb[16].mxu1 %v1041_v51  ;;  %571 = vmatprep.mubr.bf16.mxu0 %v1042_v52 }
  0x45   :  { %668 = vmatprep.mubr.bf16.mxu1 %v1044_v53 }
  0x4b   :  { %572 = vmatmul.mubr.bf16.gmra.mrb[20].mxu0 %v1046_v54 }
  0x4c   :  { %669 = vmatmul.mubr.bf16.gmra.mrb[20].mxu1 %v1047_v55  ;;  %579 = vmatprep.mubr.bf16.mxu0 %v1048_v56 }
  0x4d   :  { %676 = vmatprep.mubr.bf16.mxu1 %v1050_v57 }
  0x53   :  { %580 = vmatmul.mubr.bf16.gmra.mrb[24].mxu0 %v1052_v58 }
  0x54   :  { %677 = vmatmul.mubr.bf16.gmra.mrb[24].mxu1 %v1053_v59  ;;  %587 = vmatprep.mubr.bf16.mxu0 %v1054_v60 }
  0x55   :  { %684 = vmatprep.mubr.bf16.mxu1 %v1056_v61 }
  0x5b   :  { %588 = vmatmul.mubr.bf16.gmra.mrb[28].mxu0 %v1058_v62 }
  0x5c   :  { %685 = vmatmul.mubr.bf16.gmra.mrb[28].mxu1 %v1059_v63 }
  0xf6   :  { %v868_v0 = vpop.f32.mrb[0].mxu0 }
  0xf7   :  { %v932_v1 = vpop.f32.mrb[0].mxu1  ;;  %v869_v2 = vpop.f32.mrb[1].mxu0 }
  0xf8   :  { %v870_v3 = vadd.f32 %v869_v2, %v868_v0  ;;  %v933_v4 = vpop.f32.mrb[1].mxu1  ;;  %v871_v5 = vpop.f32.mrb[2].mxu0 }
  0xf9   :  { %v934_v6 = vadd.f32 %v933_v4, %v932_v1  ;;  %v935_v7 = vpop.f32.mrb[2].mxu1  ;;  %v872_v8 = vpop.f32.mrb[3].mxu0 }
  0xfa   :  { %v873_v10 = vadd.f32 %v872_v8, %v871_v5  ;;  %v936_v11 = vpop.f32.mrb[3].mxu1 }
  0xfb   :  { %v631_v12 = vadd.f32 %v934_v6, %v870_v3  ;;  %v937_v13 = vadd.f32 %v936_v11, %v935_v7 }
  0xfd   :  { %v751_v14 = vadd.f32 %v1275_v9, %v631_v12  ;;  %v634_v15 = vadd.f32 %v937_v13, %v873_v10 }
  0xfe   :  { %v874_v16 = vpop.f32.mrb[4].mxu0 }
  0xff   :  { %767 = vst [vmem:[%s1344_s3] sm:$0xff] %v751_v14  ;;  %v752_v17 = vadd.f32 %v1275_v9, %v634_v15  ;;  %v938_v18 = vpop.f32.mrb[4].mxu1  ;;  %v875_v19 = vpop.f32.mrb[5].mxu0 }
 0x100   :  { %v876_v20 = vadd.f32 %v875_v19, %v874_v16  ;;  %v939_v21 = vpop.f32.mrb[5].mxu1  ;;  %v877_v22 = vpop.f32.mrb[6].mxu0 }
 0x101   :  { %768 = vst [vmem:[%s1344_s3 + $0x8] sm:$0xff] %v752_v17  ;;  %v940_v23 = vadd.f32 %v939_v21, %v938_v18  ;;  %v941_v24 = vpop.f32.mrb[6].mxu1  ;;  %v878_v25 = vpop.f32.mrb[7].mxu0 }
 0x102   :  { %v879_v26 = vadd.f32 %v878_v25, %v877_v22  ;;  %v942_v27 = vpop.f32.mrb[7].mxu1 }
 0x103   :  { %v639_v28 = vadd.f32 %v940_v23, %v876_v20  ;;  %v943_v29 = vadd.f32 %v942_v27, %v941_v24 }
 0x105   :  { %v753_v30 = vadd.f32 %v1275_v9, %v639_v28  ;;  %v642_v31 = vadd.f32 %v943_v29, %v879_v26 }
 0x106   :  { %v880_v32 = vpop.f32.mrb[8].mxu0 }
 0x107   :  { %769 = vst [vmem:[%s1344_s3 + $0x10] sm:$0xff] %v753_v30  ;;  %v754_v33 = vadd.f32 %v1275_v9, %v642_v31  ;;  %v944_v34 = vpop.f32.mrb[8].mxu1  ;;  %v881_v35 = vpop.f32.mrb[9].mxu0 }
 0x108   :  { %v882_v36 = vadd.f32 %v881_v35, %v880_v32  ;;  %v945_v37 = vpop.f32.mrb[9].mxu1  ;;  %v883_v38 = vpop.f32.mrb[10].mxu0 }
 0x109   :  { %770 = vst [vmem:[%s1344_s3 + $0x18] sm:$0xff] %v754_v33  ;;  %v946_v39 = vadd.f32 %v945_v37, %v944_v34  ;;  %v947_v40 = vpop.f32.mrb[10].mxu1  ;;  %v884_v41 = vpop.f32.mrb[11].mxu0 }
 0x10a   :  { %v885_v42 = vadd.f32 %v884_v41, %v883_v38  ;;  %v948_v43 = vpop.f32.mrb[11].mxu1 }
 0x10b   :  { %v647_v44 = vadd.f32 %v946_v39, %v882_v36  ;;  %v949_v45 = vadd.f32 %v948_v43, %v947_v40 }
 0x10d   :  { %v755_v46 = vadd.f32 %v1275_v9, %v647_v44  ;;  %v650_v47 = vadd.f32 %v949_v45, %v885_v42 }
 0x10e   :  { %v886_v48 = vpop.f32.mrb[12].mxu0 }
 0x10f   :  { %771 = vst [vmem:[%s1344_s3 + $0x20] sm:$0xff] %v755_v46  ;;  %v756_v49 = vadd.f32 %v1275_v9, %v650_v47  ;;  %v950_v50 = vpop.f32.mrb[12].mxu1  ;;  %v887_v51 = vpop.f32.mrb[13].mxu0 }
 0x110   :  { %v888_v52 = vadd.f32 %v887_v51, %v886_v48  ;;  %v951_v53 = vpop.f32.mrb[13].mxu1  ;;  %v889_v54 = vpop.f32.mrb[14].mxu0 }
 0x111   :  { %772 = vst [vmem:[%s1344_s3 + $0x28] sm:$0xff] %v756_v49  ;;  %v952_v55 = vadd.f32 %v951_v53, %v950_v50  ;;  %v953_v56 = vpop.f32.mrb[14].mxu1  ;;  %v890_v57 = vpop.f32.mrb[15].mxu0 }
 0x112   :  { %v891_v58 = vadd.f32 %v890_v57, %v889_v54  ;;  %v954_v59 = vpop.f32.mrb[15].mxu1 }
 0x113   :  { %v655_v60 = vadd.f32 %v952_v55, %v888_v52  ;;  %v955_v61 = vadd.f32 %v954_v59, %v953_v56 }
 0x115   :  { %v757_v62 = vadd.f32 %v1275_v9, %v655_v60  ;;  %v658_v63 = vadd.f32 %v955_v61, %v891_v58 }
 0x116   :  { %v892_v0 = vpop.f32.mrb[16].mxu0 }
 0x117   :  { %773 = vst [vmem:[%s1344_s3 + $0x30] sm:$0xff] %v757_v62  ;;  %v758_v1 = vadd.f32 %v1275_v9, %v658_v63  ;;  %v956_v2 = vpop.f32.mrb[16].mxu1  ;;  %v893_v3 = vpop.f32.mrb[17].mxu0 }
 0x118   :  { %v894_v4 = vadd.f32 %v893_v3, %v892_v0  ;;  %v957_v5 = vpop.f32.mrb[17].mxu1  ;;  %v895_v6 = vpop.f32.mrb[18].mxu0 }
 0x119   :  { %774 = vst [vmem:[%s1344_s3 + $0x38] sm:$0xff] %v758_v1  ;;  %v958_v7 = vadd.f32 %v957_v5, %v956_v2  ;;  %v959_v8 = vpop.f32.mrb[18].mxu1  ;;  %v896_v10 = vpop.f32.mrb[19].mxu0 }
 0x11a   :  { %v897_v11 = vadd.f32 %v896_v10, %v895_v6  ;;  %v960_v12 = vpop.f32.mrb[19].mxu1 }
 0x11b   :  { %v663_v13 = vadd.f32 %v958_v7, %v894_v4  ;;  %v961_v14 = vadd.f32 %v960_v12, %v959_v8 }
 0x11d   :  { %v759_v15 = vadd.f32 %v1275_v9, %v663_v13  ;;  %v666_v16 = vadd.f32 %v961_v14, %v897_v11 }
 0x11e   :  { %v898_v17 = vpop.f32.mrb[20].mxu0 }
 0x11f   :  { %775 = vst [vmem:[%s1344_s3 + $0x40] sm:$0xff] %v759_v15  ;;  %v760_v18 = vadd.f32 %v1275_v9, %v666_v16  ;;  %v962_v19 = vpop.f32.mrb[20].mxu1  ;;  %v899_v20 = vpop.f32.mrb[21].mxu0 }
 0x120   :  { %v900_v21 = vadd.f32 %v899_v20, %v898_v17  ;;  %v963_v22 = vpop.f32.mrb[21].mxu1  ;;  %v901_v23 = vpop.f32.mrb[22].mxu0 }
 0x121   :  { %776 = vst [vmem:[%s1344_s3 + $0x48] sm:$0xff] %v760_v18  ;;  %v964_v24 = vadd.f32 %v963_v22, %v962_v19  ;;  %v965_v25 = vpop.f32.mrb[22].mxu1  ;;  %v902_v26 = vpop.f32.mrb[23].mxu0 }
 0x122   :  { %v903_v27 = vadd.f32 %v902_v26, %v901_v23  ;;  %v966_v28 = vpop.f32.mrb[23].mxu1 }
 0x123   :  { %v671_v29 = vadd.f32 %v964_v24, %v900_v21  ;;  %v967_v30 = vadd.f32 %v966_v28, %v965_v25 }
 0x125   :  { %v761_v31 = vadd.f32 %v1275_v9, %v671_v29  ;;  %v674_v32 = vadd.f32 %v967_v30, %v903_v27 }
 0x126   :  { %v904_v33 = vpop.f32.mrb[24].mxu0 }
 0x127   :  { %777 = vst [vmem:[%s1344_s3 + $0x50] sm:$0xff] %v761_v31  ;;  %v762_v34 = vadd.f32 %v1275_v9, %v674_v32  ;;  %v968_v35 = vpop.f32.mrb[24].mxu1  ;;  %v905_v36 = vpop.f32.mrb[25].mxu0 }
 0x128   :  { %v906_v37 = vadd.f32 %v905_v36, %v904_v33  ;;  %v969_v38 = vpop.f32.mrb[25].mxu1  ;;  %v907_v39 = vpop.f32.mrb[26].mxu0 }
 0x129   :  { %778 = vst [vmem:[%s1344_s3 + $0x58] sm:$0xff] %v762_v34  ;;  %v970_v40 = vadd.f32 %v969_v38, %v968_v35  ;;  %v971_v41 = vpop.f32.mrb[26].mxu1  ;;  %v908_v42 = vpop.f32.mrb[27].mxu0 }
 0x12a   :  { %v909_v43 = vadd.f32 %v908_v42, %v907_v39  ;;  %v972_v44 = vpop.f32.mrb[27].mxu1 }
 0x12b   :  { %v679_v45 = vadd.f32 %v970_v40, %v906_v37  ;;  %v973_v46 = vadd.f32 %v972_v44, %v971_v41 }
 0x12d   :  { %v763_v47 = vadd.f32 %v1275_v9, %v679_v45  ;;  %v682_v48 = vadd.f32 %v973_v46, %v909_v43 }
 0x12e   :  { %v910_v49 = vpop.f32.mrb[28].mxu0 }
 0x12f   :  { %779 = vst [vmem:[%s1344_s3 + $0x60] sm:$0xff] %v763_v47  ;;  %v764_v50 = vadd.f32 %v1275_v9, %v682_v48  ;;  %v974_v51 = vpop.f32.mrb[28].mxu1  ;;  %v911_v52 = vpop.f32.mrb[29].mxu0 }
 0x130   :  { %v912_v53 = vadd.f32 %v911_v52, %v910_v49  ;;  %v975_v54 = vpop.f32.mrb[29].mxu1  ;;  %v913_v55 = vpop.f32.mrb[30].mxu0 }
 0x131   :  { %780 = vst [vmem:[%s1344_s3 + $0x68] sm:$0xff] %v764_v50  ;;  %v976_v56 = vadd.f32 %v975_v54, %v974_v51  ;;  %v977_v57 = vpop.f32.mrb[30].mxu1  ;;  %v914_v58 = vpop.f32.mrb[31].mxu0 }
 0x132   :  { %v915_v59 = vadd.f32 %v914_v58, %v913_v55  ;;  %v978_v60 = vpop.f32.mrb[31].mxu1 }
 0x133   :  { %v687_v61 = vadd.f32 %v976_v56, %v912_v53  ;;  %v979_v62 = vadd.f32 %v978_v60, %v977_v57 }
 0x135   :  { %v765_v63 = vadd.f32 %v1275_v9, %v687_v61  ;;  %v690_v0 = vadd.f32 %v979_v62, %v915_v59 }
 0x137   :  { %781 = vst [vmem:[%s1344_s3 + $0x70] sm:$0xff] %v765_v63  ;;  %v766_v1 = vadd.f32 %v1275_v9, %v690_v0 }
 0x139   :  { %782 = vst [vmem:[%s1344_s3 + $0x78] sm:$0xff] %v766_v1 }

// kernel: sketch_translator_forward.102
= control target key start
LH: loop header
LB: loop body
LE: loop exit
PB: predicated region body
PF: predicated region fallthrough
CT: control target
= control target key end

     0   :  { %s804_s1 = inlined_call_operand.vmem [shape: bf16[256,128], index: 1, kind: input, shape index: {}]   ;;  %s805_s0 = inlined_call_operand.vmem [shape: bf16[128,256], index: 0, kind: input, shape index: {}]   ;;  %s806_s2 = inlined_call_operand.vmem [shape: f32[1,128], index: 2, kind: input, shape index: {}]   ;;  %s807_s3 = inlined_call_operand.vmem [shape: f32[128,128], index: 3, kind: output, shape index: {}]  }
   0x1   :  { %v579_v0 = vld [vmem:[%s804_s1 + $0x40] sm:$0xff]   ;;  %v581_v2 = vld [vmem:[%s804_s1 + $0x48] sm:$0xff]   ;;  %v583_v4 = vld [vmem:[%s804_s1 + $0x50] sm:$0xff]  }
   0x2   :  { %v580_v1 = vld [vmem:[%s804_s1] sm:$0xff]   ;;  %499 = vmatprep.subr.bf16.mxu0 %v579_v0  ;;  %563 = vmatprep.subr.bf16.mxu1 %v579_v0  ;;  %v582_v3 = vld [vmem:[%s804_s1 + $0x8] sm:$0xff]   ;;  %v584_v5 = vld [vmem:[%s804_s1 + $0x10] sm:$0xff]  }
   0x3   :  { %500 = vmatpush3.bf16.msra.mxu0 %v580_v1  ;;  %571 = vmatpush3.bf16.msra.mxu1 %v580_v1  ;;  %v585_v6 = vld [vmem:[%s804_s1 + $0x58] sm:$0xff]   ;;  %v587_v8 = vld [vmem:[%s804_s1 + $0x60] sm:$0xff]   ;;  %v589_v10 = vld [vmem:[%s804_s1 + $0x68] sm:$0xff]  }
   0x4   :  { %501 = vmatprep.subr.bf16.mxu0 %v581_v2  ;;  %564 = vmatprep.subr.bf16.mxu1 %v581_v2  ;;  %v586_v7 = vld [vmem:[%s804_s1 + $0x18] sm:$0xff]   ;;  %v588_v9 = vld [vmem:[%s804_s1 + $0x20] sm:$0xff]   ;;  %v590_v13 = vld [vmem:[%s804_s1 + $0x28] sm:$0xff]  }
   0x5   :  { %v597_v11 = vld [vmem:[%s805_s0 + $0x4] ss:$8 sps:$4 sm:$0xff]   ;;  %v591_v14 = vld [vmem:[%s804_s1 + $0x70] sm:$0xff]   ;;  %v593_v16 = vld [vmem:[%s804_s1 + $0x78] sm:$0xff]  }
   0x6   :  { %v600_v12 = vld [vmem:[%s805_s0 + $0x44] ss:$8 sps:$4 sm:$0xff]   ;;  %307 = vmatprep.mubr.bf16.mxu0 %v597_v11  ;;  %v592_v15 = vld [vmem:[%s804_s1 + $0x30] sm:$0xff]   ;;  %v594_v17 = vld [vmem:[%s804_s1 + $0x38] sm:$0xff]  }
   0x7   :  { %502 = vmatpush3.bf16.msra.mxu0 %v582_v3  ;;  %572 = vmatpush3.bf16.msra.mxu1 %v582_v3  ;;  %v595_v18 = vld [vmem:[%s805_s0] ss:$8 sps:$4 sm:$0xff]   ;;  %v601_v20 = vld [vmem:[%s805_s0 + $0x14] ss:$8 sps:$4 sm:$0xff]   ;;  %v605_v22 = vld [vmem:[%s805_s0 + $0x10] ss:$8 sps:$4 sm:$0xff]  }
   0x8   :  { %503 = vmatprep.subr.bf16.mxu0 %v583_v4  ;;  %565 = vmatprep.subr.bf16.mxu1 %v583_v4  ;;  %v598_v19 = vld [vmem:[%s805_s0 + $0x40] ss:$8 sps:$4 sm:$0xff]   ;;  %v603_v21 = vld [vmem:[%s805_s0 + $0x54] ss:$8 sps:$4 sm:$0xff]   ;;  %v606_v23 = vld [vmem:[%s805_s0 + $0x50] ss:$8 sps:$4 sm:$0xff]  }
   0x9   :  { %339 = vmatprep.mubr.bf16.mxu1 %v600_v12  ;;  %v607_v24 = vld [vmem:[%s805_s0 + $0x24] ss:$8 sps:$4 sm:$0xff]   ;;  %v611_v26 = vld [vmem:[%s805_s0 + $0x20] ss:$8 sps:$4 sm:$0xff]   ;;  %v613_v28 = vld [vmem:[%s805_s0 + $0x34] ss:$8 sps:$4 sm:$0xff]  }
   0xa   :  { %v609_v25 = vld [vmem:[%s805_s0 + $0x64] ss:$8 sps:$4 sm:$0xff]   ;;  %v612_v27 = vld [vmem:[%s805_s0 + $0x60] ss:$8 sps:$4 sm:$0xff]   ;;  %v615_v29 = vld [vmem:[%s805_s0 + $0x74] ss:$8 sps:$4 sm:$0xff]  }
   0xb   :  { %504 = vmatpush3.bf16.msra.mxu0 %v584_v5  ;;  %573 = vmatpush3.bf16.msra.mxu1 %v584_v5  ;;  %v617_v30 = vld [vmem:[%s805_s0 + $0x30] ss:$8 sps:$4 sm:$0xff]   ;;  %v738_v35 = vld [vmem:[%s806_s2] ss:$0 sm:$0xff] }
   0xc   :  { %505 = vmatprep.subr.bf16.mxu0 %v585_v6  ;;  %566 = vmatprep.subr.bf16.mxu1 %v585_v6  ;;  %v618_v31 = vld [vmem:[%s805_s0 + $0x70] ss:$8 sps:$4 sm:$0xff]  }
   0xf   :  { %506 = vmatpush3.bf16.msra.mxu0 %v586_v7  ;;  %574 = vmatpush3.bf16.msra.mxu1 %v586_v7 }
  0x10   :  { %507 = vmatprep.subr.bf16.mxu0 %v587_v8  ;;  %567 = vmatprep.subr.bf16.mxu1 %v587_v8 }
  0x13   :  { %508 = vmatpush3.bf16.msra.mxu0 %v588_v9  ;;  %575 = vmatpush3.bf16.msra.mxu1 %v588_v9 }
  0x14   :  { %509 = vmatprep.subr.bf16.mxu0 %v589_v10  ;;  %568 = vmatprep.subr.bf16.mxu1 %v589_v10 }
  0x17   :  { %510 = vmatpush3.bf16.msra.mxu0 %v590_v13  ;;  %576 = vmatpush3.bf16.msra.mxu1 %v590_v13 }
  0x18   :  { %511 = vmatprep.subr.bf16.mxu0 %v591_v14  ;;  %569 = vmatprep.subr.bf16.mxu1 %v591_v14 }
  0x1b   :  { %512 = vmatpush3.bf16.msra.mxu0 %v592_v15  ;;  %577 = vmatpush3.bf16.msra.mxu1 %v592_v15 }
  0x1c   :  { %513 = vmatprep.subr.bf16.mxu0 %v593_v16  ;;  %570 = vmatprep.subr.bf16.mxu1 %v593_v16 }
  0x1f   :  { %514 = vmatpush3.bf16.msra.mxu0 %v594_v17  ;;  %578 = vmatpush3.bf16.msra.mxu1 %v594_v17 }
  0x22   :  { %308 = vmatmul.mubr.bf16.vlgmr.msra.gmra.mrb[0].mxu0 %v595_v18  ;;  %340 = vmatmul.mubr.bf16.vlgmr.msra.gmra.mrb[0].mxu1 %v598_v19 }
  0x23   :  { %315 = vmatprep.mubr.bf16.mxu0 %v601_v20  ;;  %347 = vmatprep.mubr.bf16.mxu1 %v603_v21 }
  0x2a   :  { %316 = vmatmul.mubr.bf16.gmra.mrb[4].mxu0 %v605_v22  ;;  %348 = vmatmul.mubr.bf16.gmra.mrb[4].mxu1 %v606_v23 }
  0x2b   :  { %323 = vmatprep.mubr.bf16.mxu0 %v607_v24  ;;  %355 = vmatprep.mubr.bf16.mxu1 %v609_v25 }
  0x32   :  { %324 = vmatmul.mubr.bf16.gmra.mrb[8].mxu0 %v611_v26  ;;  %356 = vmatmul.mubr.bf16.gmra.mrb[8].mxu1 %v612_v27 }
  0x33   :  { %331 = vmatprep.mubr.bf16.mxu0 %v613_v28  ;;  %363 = vmatprep.mubr.bf16.mxu1 %v615_v29 }
  0x3a   :  { %332 = vmatmul.mubr.bf16.gmra.mrb[12].mxu0 %v617_v30  ;;  %364 = vmatmul.mubr.bf16.gmra.mrb[12].mxu1 %v618_v31 }
  0xf5   :  { %v515_v32 = vpop.f32.mrb[0].mxu0  ;;  %v539_v33 = vpop.f32.mrb[0].mxu1 }
  0xf6   :  { %v516_v34 = vpop.f32.mrb[1].mxu0  ;;  %v540_v36 = vpop.f32.mrb[1].mxu1 }
  0xf7   :  { %v517_v37 = vadd.f32 %v516_v34, %v515_v32  ;;  %v541_v38 = vadd.f32 %v540_v36, %v539_v33  ;;  %v518_v39 = vpop.f32.mrb[2].mxu0  ;;  %v542_v40 = vpop.f32.mrb[2].mxu1 }
  0xf8   :  { %v519_v41 = vpop.f32.mrb[3].mxu0  ;;  %v543_v42 = vpop.f32.mrb[3].mxu1 }
  0xf9   :  { %v430_v43 = vadd.f32 %v517_v37, %v738_v35  ;;  %v438_v44 = vadd.f32 %v541_v38, %v738_v35  ;;  %v520_v45 = vadd.f32 %v519_v41, %v518_v39  ;;  %v544_v46 = vadd.f32 %v543_v42, %v542_v40 }
  0xfb   :  { %446 = vst [vmem:[%s807_s3] sm:$0xff] %v430_v43  ;;  %454 = vst [vmem:[%s807_s3 + $0x40] sm:$0xff] %v438_v44  ;;  %v431_v47 = vadd.f32 %v520_v45, %v738_v35  ;;  %v439_v48 = vadd.f32 %v544_v46, %v738_v35 }
  0xfd   :  { %447 = vst [vmem:[%s807_s3 + $0x8] sm:$0xff] %v431_v47  ;;  %455 = vst [vmem:[%s807_s3 + $0x48] sm:$0xff] %v439_v48  ;;  %v521_v49 = vpop.f32.mrb[4].mxu0  ;;  %v545_v50 = vpop.f32.mrb[4].mxu1 }
  0xfe   :  { %v522_v51 = vpop.f32.mrb[5].mxu0  ;;  %v546_v52 = vpop.f32.mrb[5].mxu1 }
  0xff   :  { %v523_v53 = vadd.f32 %v522_v51, %v521_v49  ;;  %v547_v54 = vadd.f32 %v546_v52, %v545_v50  ;;  %v524_v55 = vpop.f32.mrb[6].mxu0  ;;  %v548_v56 = vpop.f32.mrb[6].mxu1 }
 0x100   :  { %v525_v57 = vpop.f32.mrb[7].mxu0  ;;  %v549_v58 = vpop.f32.mrb[7].mxu1 }
 0x101   :  { %v432_v59 = vadd.f32 %v523_v53, %v738_v35  ;;  %v440_v60 = vadd.f32 %v547_v54, %v738_v35  ;;  %v526_v61 = vadd.f32 %v525_v57, %v524_v55  ;;  %v550_v62 = vadd.f32 %v549_v58, %v548_v56 }
 0x103   :  { %448 = vst [vmem:[%s807_s3 + $0x10] sm:$0xff] %v432_v59  ;;  %456 = vst [vmem:[%s807_s3 + $0x50] sm:$0xff] %v440_v60  ;;  %v433_v63 = vadd.f32 %v526_v61, %v738_v35  ;;  %v441_v0 = vadd.f32 %v550_v62, %v738_v35 }
 0x105   :  { %449 = vst [vmem:[%s807_s3 + $0x18] sm:$0xff] %v433_v63  ;;  %457 = vst [vmem:[%s807_s3 + $0x58] sm:$0xff] %v441_v0  ;;  %v527_v1 = vpop.f32.mrb[8].mxu0  ;;  %v551_v2 = vpop.f32.mrb[8].mxu1 }
 0x106   :  { %v528_v3 = vpop.f32.mrb[9].mxu0  ;;  %v552_v4 = vpop.f32.mrb[9].mxu1 }
 0x107   :  { %v529_v5 = vadd.f32 %v528_v3, %v527_v1  ;;  %v553_v6 = vadd.f32 %v552_v4, %v551_v2  ;;  %v530_v7 = vpop.f32.mrb[10].mxu0  ;;  %v554_v8 = vpop.f32.mrb[10].mxu1 }
 0x108   :  { %v531_v9 = vpop.f32.mrb[11].mxu0  ;;  %v555_v10 = vpop.f32.mrb[11].mxu1 }
 0x109   :  { %v434_v11 = vadd.f32 %v529_v5, %v738_v35  ;;  %v442_v12 = vadd.f32 %v553_v6, %v738_v35  ;;  %v532_v13 = vadd.f32 %v531_v9, %v530_v7  ;;  %v556_v14 = vadd.f32 %v555_v10, %v554_v8 }
 0x10b   :  { %450 = vst [vmem:[%s807_s3 + $0x20] sm:$0xff] %v434_v11  ;;  %458 = vst [vmem:[%s807_s3 + $0x60] sm:$0xff] %v442_v12  ;;  %v435_v15 = vadd.f32 %v532_v13, %v738_v35  ;;  %v443_v16 = vadd.f32 %v556_v14, %v738_v35 }
 0x10d   :  { %451 = vst [vmem:[%s807_s3 + $0x28] sm:$0xff] %v435_v15  ;;  %459 = vst [vmem:[%s807_s3 + $0x68] sm:$0xff] %v443_v16  ;;  %v533_v17 = vpop.f32.mrb[12].mxu0  ;;  %v557_v18 = vpop.f32.mrb[12].mxu1 }
 0x10e   :  { %v534_v19 = vpop.f32.mrb[13].mxu0  ;;  %v558_v20 = vpop.f32.mrb[13].mxu1 }
 0x10f   :  { %v535_v21 = vadd.f32 %v534_v19, %v533_v17  ;;  %v559_v22 = vadd.f32 %v558_v20, %v557_v18  ;;  %v536_v23 = vpop.f32.mrb[14].mxu0  ;;  %v560_v24 = vpop.f32.mrb[14].mxu1 }
 0x110   :  { %v537_v25 = vpop.f32.mrb[15].mxu0  ;;  %v561_v26 = vpop.f32.mrb[15].mxu1 }
 0x111   :  { %v436_v27 = vadd.f32 %v535_v21, %v738_v35  ;;  %v444_v28 = vadd.f32 %v559_v22, %v738_v35  ;;  %v538_v29 = vadd.f32 %v537_v25, %v536_v23  ;;  %v562_v30 = vadd.f32 %v561_v26, %v560_v24 }
 0x113   :  { %452 = vst [vmem:[%s807_s3 + $0x30] sm:$0xff] %v436_v27  ;;  %460 = vst [vmem:[%s807_s3 + $0x70] sm:$0xff] %v444_v28  ;;  %v437_v31 = vadd.f32 %v538_v29, %v738_v35  ;;  %v445_v32 = vadd.f32 %v562_v30, %v738_v35 }
 0x115   :  { %453 = vst [vmem:[%s807_s3 + $0x38] sm:$0xff] %v437_v31  ;;  %461 = vst [vmem:[%s807_s3 + $0x78] sm:$0xff] %v445_v32 }

// kernel: sketch_translator_forward.105
= control target key start
LH: loop header
LB: loop body
LE: loop exit
PB: predicated region body
PF: predicated region fallthrough
CT: control target
= control target key end

     0   :  { %s3815_s12 = smov 0   ;;  %s3817_s13 = smov 0   ;;  %s4613_s0 = inlined_call_operand.vmem [shape: bf16[512,6272], index: 0, kind: input, shape index: {}]   ;;  %s4614_s1 = inlined_call_operand.vmem [shape: bf16[6272,128], index: 1, kind: input, shape index: {}]   ;;  %s4615_s2 = inlined_call_operand.vmem [shape: f32[1,128], index: 2, kind: input, shape index: {}]   ;;  %s4616_s3 = inlined_call_operand.vmem [shape: f32[512,128], index: 3, kind: output, shape index: {}]  }
   0x1   :  { %s3819_s14 = smov 0   ;;  %s3821_s15 = smov 0  }
   0x2   :  { %s3823_s16 = smov 0   ;;  %s3825_s17 = smov 0  }
   0x3   :  { %s3827_s18 = smov 0  }
   0x4 LB: > { %s25_s19 = sadd.s32 1, %s3784_s16  ;;  %s32_s20 = sadd.s32 1, %s3788_s17  ;;  %s3792_s18 = sphi %s3827_s18, %s13_s18   ;;  %s3788_s17 = sphi %s3825_s17, %s4622_s17   ;;  %s3784_s16 = sphi %s3823_s16, %s4621_s16   ;;  %s3780_s15 = sphi %s3821_s15, %s4620_s15   ;;  %s3776_s14 = sphi %s3819_s14, %s4619_s14   ;;  %s3772_s13 = sphi %s3817_s13, %s4618_s13   ;;  %s3768_s12 = sphi %s3815_s12, %s4617_s12  }
   0x5   : > { %p26_p0 = scmp.ge.s32.totalorder %s25_s19, 7  ;;  %p48_p1 = scmp.ne.s32.totalorder %s3772_s13, %s3768_s12 }
   0x6   : > { %p49_p2 = scmp.eq.s32.totalorder %s3792_s18, 0  ;;  %s41_s24 = sadd.s32 1, %s3772_s13 }
   0x7   : > { %s4624_s19 = smov (%p26_p0, %s25_s19), 0  ;;  %s4626_s20 = smov (!%p26_p0, %s32_s20), %s3788_s17 }
   0x8   : > { %p50_p3 = por %p49_p2, %p48_p1  ;;  %p34_p4 = scmp.ge.s32.totalorder %s4626_s20, 2 }
   0x9   : > { %s37_s21 = ssub.s32 %s3784_s16, %s4624_s19  ;;  %p2729_p6 = scmp.ge.s32.totalorder %s3792_s18, 14 }
   0xa   : > { %s4628_s20 = smov (%p34_p4, %s4626_s20), 0 }
   0xb   : > { %s36_s22 = ssub.s32 %s3788_s17, %s4628_s20  ;;  %162 = sbr.rel (%p2729_p6) target bundleno = 96 (0x60), region = 20 }
   0xc   : > { %s38_s23 = sor.u32 %s37_s21, %s36_s22 }
   0xd   : > { %p39_p5 = scmp.eq.s32.totalorder %s38_s23, 0 }
   0xf   : > { %s3866_s25 = scalar_select %p39_p5, %s3772_s13, %s41_s24  }
  0x12   : > { %165 = sbr.rel (!%p50_p3) target bundleno = 96 (0x60), region = 24  ;;  %s167_s26 = sand.u32 (%p50_p3), 1, %s3772_s13  }
  0x13   : > { %s171_s27 = smul.u32 (%p50_p3), 7, %s3784_s16 }
  0x14   : > { %s3398_s28 = smul.u32 (%p50_p3), 896, %s167_s26 }
  0x15   : > { %s3399_s29 = smul.u32 (%p50_p3), 1568, %s3788_s17 }
  0x16   : > { %s3880_s8 = scalar_lea.vmem (%p50_p3), [#allocation3], %s3398_s28 }
  0x17   : > { %s173_s30 = sadd.s32 (%p50_p3), %s3399_s29, %s171_s27 }
  0x18   : > { %s2732_s4 = sshll.u32 (%p50_p3), %s173_s30, 2 }
  0x19   : > { %s3875_s7 = scalar_lea.vmem %s4613_s0, %s2732_s4 }
  0x1a   : > { %v190_v0 = vld [vmem:[%s3875_s7] sm:$0xff]  ;;  %v192_v1 = vld [vmem:[%s3875_s7 + $0x8] sm:$0xff]  ;;  %v194_v2 = vld [vmem:[%s3875_s7 + $0x10] sm:$0xff] }
  0x1b   : > { %191 = vst [vmem:[%s3880_s8] sm:$0xff] %v190_v0  ;;  %193 = vst [vmem:[%s3880_s8 + $0x8] sm:$0xff] %v192_v1  ;;  %v196_v3 = vld [vmem:[%s3875_s7 + $0xc4] sm:$0xff]  ;;  %v198_v4 = vld [vmem:[%s3875_s7 + $0xcc] sm:$0xff] }
  0x1c   : > { %195 = vst [vmem:[%s3880_s8 + $0x10] sm:$0xff] %v194_v2  ;;  %v200_v5 = vld [vmem:[%s3875_s7 + $0xd4] sm:$0xff]  ;;  %197 = vst [vmem:[%s3880_s8 + $0x1c] sm:$0xff] %v196_v3  ;;  %v202_v6 = vld [vmem:[%s3875_s7 + $0x188] sm:$0xff] }
  0x1d   : > { %199 = vst [vmem:[%s3880_s8 + $0x24] sm:$0xff] %v198_v4  ;;  %201 = vst [vmem:[%s3880_s8 + $0x2c] sm:$0xff] %v200_v5  ;;  %v204_v7 = vld [vmem:[%s3875_s7 + $0x190] sm:$0xff]  ;;  %v206_v8 = vld [vmem:[%s3875_s7 + $0x198] sm:$0xff] }
  0x1e   : > { %203 = vst [vmem:[%s3880_s8 + $0x38] sm:$0xff] %v202_v6  ;;  %205 = vst [vmem:[%s3880_s8 + $0x40] sm:$0xff] %v204_v7  ;;  %v208_v9 = vld [vmem:[%s3875_s7 + $0x24c] sm:$0xff]  ;;  %v210_v10 = vld [vmem:[%s3875_s7 + $0x254] sm:$0xff] }
  0x1f   : > { %207 = vst [vmem:[%s3880_s8 + $0x48] sm:$0xff] %v206_v8  ;;  %v212_v11 = vld [vmem:[%s3875_s7 + $0x25c] sm:$0xff]  ;;  %209 = vst [vmem:[%s3880_s8 + $0x54] sm:$0xff] %v208_v9  ;;  %v214_v12 = vld [vmem:[%s3875_s7 + $0x310] sm:$0xff] }
  0x20   : > { %211 = vst [vmem:[%s3880_s8 + $0x5c] sm:$0xff] %v210_v10  ;;  %213 = vst [vmem:[%s3880_s8 + $0x64] sm:$0xff] %v212_v11  ;;  %v216_v13 = vld [vmem:[%s3875_s7 + $0x318] sm:$0xff]  ;;  %v218_v14 = vld [vmem:[%s3875_s7 + $0x320] sm:$0xff] }
  0x21   : > { %215 = vst [vmem:[%s3880_s8 + $0x70] sm:$0xff] %v214_v12  ;;  %217 = vst [vmem:[%s3880_s8 + $0x78] sm:$0xff] %v216_v13  ;;  %v220_v15 = vld [vmem:[%s3875_s7 + $0x3d4] sm:$0xff]  ;;  %v222_v16 = vld [vmem:[%s3875_s7 + $0x3dc] sm:$0xff] }
  0x22   : > { %219 = vst [vmem:[%s3880_s8 + $0x80] sm:$0xff] %v218_v14  ;;  %v224_v17 = vld [vmem:[%s3875_s7 + $0x3e4] sm:$0xff]  ;;  %221 = vst [vmem:[%s3880_s8 + $0x8c] sm:$0xff] %v220_v15  ;;  %v226_v18 = vld [vmem:[%s3875_s7 + $0x498] sm:$0xff] }
  0x23   : > { %223 = vst [vmem:[%s3880_s8 + $0x94] sm:$0xff] %v222_v16  ;;  %225 = vst [vmem:[%s3880_s8 + $0x9c] sm:$0xff] %v224_v17  ;;  %v228_v19 = vld [vmem:[%s3875_s7 + $0x4a0] sm:$0xff]  ;;  %v230_v20 = vld [vmem:[%s3875_s7 + $0x4a8] sm:$0xff] }
  0x24   : > { %227 = vst [vmem:[%s3880_s8 + $0xa8] sm:$0xff] %v226_v18  ;;  %229 = vst [vmem:[%s3880_s8 + $0xb0] sm:$0xff] %v228_v19  ;;  %v232_v21 = vld [vmem:[%s3875_s7 + $0x55c] sm:$0xff]  ;;  %v234_v22 = vld [vmem:[%s3875_s7 + $0x564] sm:$0xff] }
  0x25   : > { %231 = vst [vmem:[%s3880_s8 + $0xb8] sm:$0xff] %v230_v20  ;;  %v236_v23 = vld [vmem:[%s3875_s7 + $0x56c] sm:$0xff]  ;;  %233 = vst [vmem:[%s3880_s8 + $0xc4] sm:$0xff] %v232_v21  ;;  %v238_v24 = vld [vmem:[%s3875_s7 + $0x620] sm:$0xff] }
  0x26   : > { %235 = vst [vmem:[%s3880_s8 + $0xcc] sm:$0xff] %v234_v22  ;;  %237 = vst [vmem:[%s3880_s8 + $0xd4] sm:$0xff] %v236_v23  ;;  %v240_v25 = vld [vmem:[%s3875_s7 + $0x628] sm:$0xff]  ;;  %v242_v26 = vld [vmem:[%s3875_s7 + $0x630] sm:$0xff] }
  0x27   : > { %239 = vst [vmem:[%s3880_s8 + $0xe0] sm:$0xff] %v238_v24  ;;  %241 = vst [vmem:[%s3880_s8 + $0xe8] sm:$0xff] %v240_v25  ;;  %v244_v27 = vld [vmem:[%s3875_s7 + $0x6e4] sm:$0xff]  ;;  %v246_v28 = vld [vmem:[%s3875_s7 + $0x6ec] sm:$0xff] }
  0x28   : > { %243 = vst [vmem:[%s3880_s8 + $0xf0] sm:$0xff] %v242_v26  ;;  %v248_v29 = vld [vmem:[%s3875_s7 + $0x6f4] sm:$0xff]  ;;  %245 = vst [vmem:[%s3880_s8 + $0xfc] sm:$0xff] %v244_v27  ;;  %v250_v30 = vld [vmem:[%s3875_s7 + $0x7a8] sm:$0xff] }
  0x29   : > { %247 = vst [vmem:[%s3880_s8 + $0x104] sm:$0xff] %v246_v28  ;;  %249 = vst [vmem:[%s3880_s8 + $0x10c] sm:$0xff] %v248_v29  ;;  %v252_v31 = vld [vmem:[%s3875_s7 + $0x7b0] sm:$0xff]  ;;  %v254_v32 = vld [vmem:[%s3875_s7 + $0x7b8] sm:$0xff] }
  0x2a   : > { %251 = vst [vmem:[%s3880_s8 + $0x118] sm:$0xff] %v250_v30  ;;  %253 = vst [vmem:[%s3880_s8 + $0x120] sm:$0xff] %v252_v31  ;;  %v256_v33 = vld [vmem:[%s3875_s7 + $0x86c] sm:$0xff]  ;;  %v258_v34 = vld [vmem:[%s3875_s7 + $0x874] sm:$0xff] }
  0x2b   : > { %255 = vst [vmem:[%s3880_s8 + $0x128] sm:$0xff] %v254_v32  ;;  %v260_v35 = vld [vmem:[%s3875_s7 + $0x87c] sm:$0xff]  ;;  %257 = vst [vmem:[%s3880_s8 + $0x134] sm:$0xff] %v256_v33  ;;  %v262_v36 = vld [vmem:[%s3875_s7 + $0x930] sm:$0xff] }
  0x2c   : > { %259 = vst [vmem:[%s3880_s8 + $0x13c] sm:$0xff] %v258_v34  ;;  %261 = vst [vmem:[%s3880_s8 + $0x144] sm:$0xff] %v260_v35  ;;  %v264_v37 = vld [vmem:[%s3875_s7 + $0x938] sm:$0xff]  ;;  %v266_v38 = vld [vmem:[%s3875_s7 + $0x940] sm:$0xff] }
  0x2d   : > { %263 = vst [vmem:[%s3880_s8 + $0x150] sm:$0xff] %v262_v36  ;;  %265 = vst [vmem:[%s3880_s8 + $0x158] sm:$0xff] %v264_v37  ;;  %v268_v39 = vld [vmem:[%s3875_s7 + $0x9f4] sm:$0xff]  ;;  %v270_v40 = vld [vmem:[%s3875_s7 + $0x9fc] sm:$0xff] }
  0x2e   : > { %267 = vst [vmem:[%s3880_s8 + $0x160] sm:$0xff] %v266_v38  ;;  %v272_v41 = vld [vmem:[%s3875_s7 + $0xa04] sm:$0xff]  ;;  %269 = vst [vmem:[%s3880_s8 + $0x16c] sm:$0xff] %v268_v39  ;;  %v274_v42 = vld [vmem:[%s3875_s7 + $0xab8] sm:$0xff] }
  0x2f   : > { %271 = vst [vmem:[%s3880_s8 + $0x174] sm:$0xff] %v270_v40  ;;  %273 = vst [vmem:[%s3880_s8 + $0x17c] sm:$0xff] %v272_v41  ;;  %v276_v43 = vld [vmem:[%s3875_s7 + $0xac0] sm:$0xff]  ;;  %v278_v44 = vld [vmem:[%s3875_s7 + $0xac8] sm:$0xff] }
  0x30   : > { %275 = vst [vmem:[%s3880_s8 + $0x188] sm:$0xff] %v274_v42  ;;  %277 = vst [vmem:[%s3880_s8 + $0x190] sm:$0xff] %v276_v43  ;;  %v280_v45 = vld [vmem:[%s3875_s7 + $0xb7c] sm:$0xff]  ;;  %v282_v46 = vld [vmem:[%s3875_s7 + $0xb84] sm:$0xff] }
  0x31   : > { %279 = vst [vmem:[%s3880_s8 + $0x198] sm:$0xff] %v278_v44  ;;  %v284_v47 = vld [vmem:[%s3875_s7 + $0xb8c] sm:$0xff]  ;;  %281 = vst [vmem:[%s3880_s8 + $0x1a4] sm:$0xff] %v280_v45  ;;  %v286_v48 = vld [vmem:[%s3875_s7 + $0xc40] sm:$0xff] }
  0x32   : > { %283 = vst [vmem:[%s3880_s8 + $0x1ac] sm:$0xff] %v282_v46  ;;  %285 = vst [vmem:[%s3880_s8 + $0x1b4] sm:$0xff] %v284_v47  ;;  %v288_v49 = vld [vmem:[%s3875_s7 + $0xc48] sm:$0xff]  ;;  %v290_v50 = vld [vmem:[%s3875_s7 + $0xc50] sm:$0xff] }
  0x33   : > { %287 = vst [vmem:[%s3880_s8 + $0x1c0] sm:$0xff] %v286_v48  ;;  %289 = vst [vmem:[%s3880_s8 + $0x1c8] sm:$0xff] %v288_v49  ;;  %v292_v51 = vld [vmem:[%s3875_s7 + $0xd04] sm:$0xff]  ;;  %v294_v52 = vld [vmem:[%s3875_s7 + $0xd0c] sm:$0xff] }
  0x34   : > { %291 = vst [vmem:[%s3880_s8 + $0x1d0] sm:$0xff] %v290_v50  ;;  %v296_v53 = vld [vmem:[%s3875_s7 + $0xd14] sm:$0xff]  ;;  %293 = vst [vmem:[%s3880_s8 + $0x1dc] sm:$0xff] %v292_v51  ;;  %v298_v54 = vld [vmem:[%s3875_s7 + $0xdc8] sm:$0xff] }
  0x35   : > { %295 = vst [vmem:[%s3880_s8 + $0x1e4] sm:$0xff] %v294_v52  ;;  %297 = vst [vmem:[%s3880_s8 + $0x1ec] sm:$0xff] %v296_v53  ;;  %v300_v55 = vld [vmem:[%s3875_s7 + $0xdd0] sm:$0xff]  ;;  %v302_v56 = vld [vmem:[%s3875_s7 + $0xdd8] sm:$0xff] }
  0x36   : > { %299 = vst [vmem:[%s3880_s8 + $0x1f8] sm:$0xff] %v298_v54  ;;  %301 = vst [vmem:[%s3880_s8 + $0x200] sm:$0xff] %v300_v55  ;;  %v304_v57 = vld [vmem:[%s3875_s7 + $0xe8c] sm:$0xff]  ;;  %v306_v58 = vld [vmem:[%s3875_s7 + $0xe94] sm:$0xff] }
  0x37   : > { %303 = vst [vmem:[%s3880_s8 + $0x208] sm:$0xff] %v302_v56  ;;  %v308_v59 = vld [vmem:[%s3875_s7 + $0xe9c] sm:$0xff]  ;;  %305 = vst [vmem:[%s3880_s8 + $0x214] sm:$0xff] %v304_v57  ;;  %v310_v60 = vld [vmem:[%s3875_s7 + $0xf50] sm:$0xff] }
  0x38   : > { %307 = vst [vmem:[%s3880_s8 + $0x21c] sm:$0xff] %v306_v58  ;;  %309 = vst [vmem:[%s3880_s8 + $0x224] sm:$0xff] %v308_v59  ;;  %v312_v61 = vld [vmem:[%s3875_s7 + $0xf58] sm:$0xff]  ;;  %v314_v62 = vld [vmem:[%s3875_s7 + $0xf60] sm:$0xff] }
  0x39   : > { %311 = vst [vmem:[%s3880_s8 + $0x230] sm:$0xff] %v310_v60  ;;  %313 = vst [vmem:[%s3880_s8 + $0x238] sm:$0xff] %v312_v61  ;;  %v316_v63 = vld [vmem:[%s3875_s7 + $0x1014] sm:$0xff]  ;;  %v318_v0 = vld [vmem:[%s3875_s7 + $0x101c] sm:$0xff] }
  0x3a   : > { %315 = vst [vmem:[%s3880_s8 + $0x240] sm:$0xff] %v314_v62  ;;  %v320_v1 = vld [vmem:[%s3875_s7 + $0x1024] sm:$0xff]  ;;  %317 = vst [vmem:[%s3880_s8 + $0x24c] sm:$0xff] %v316_v63  ;;  %v322_v2 = vld [vmem:[%s3875_s7 + $0x10d8] sm:$0xff] }
  0x3b   : > { %319 = vst [vmem:[%s3880_s8 + $0x254] sm:$0xff] %v318_v0  ;;  %321 = vst [vmem:[%s3880_s8 + $0x25c] sm:$0xff] %v320_v1  ;;  %v324_v3 = vld [vmem:[%s3875_s7 + $0x10e0] sm:$0xff]  ;;  %v326_v4 = vld [vmem:[%s3875_s7 + $0x10e8] sm:$0xff] }
  0x3c   : > { %323 = vst [vmem:[%s3880_s8 + $0x268] sm:$0xff] %v322_v2  ;;  %325 = vst [vmem:[%s3880_s8 + $0x270] sm:$0xff] %v324_v3  ;;  %v328_v5 = vld [vmem:[%s3875_s7 + $0x119c] sm:$0xff]  ;;  %v330_v6 = vld [vmem:[%s3875_s7 + $0x11a4] sm:$0xff] }
  0x3d   : > { %327 = vst [vmem:[%s3880_s8 + $0x278] sm:$0xff] %v326_v4  ;;  %v332_v7 = vld [vmem:[%s3875_s7 + $0x11ac] sm:$0xff]  ;;  %329 = vst [vmem:[%s3880_s8 + $0x284] sm:$0xff] %v328_v5  ;;  %v334_v8 = vld [vmem:[%s3875_s7 + $0x1260] sm:$0xff] }
  0x3e   : > { %331 = vst [vmem:[%s3880_s8 + $0x28c] sm:$0xff] %v330_v6  ;;  %333 = vst [vmem:[%s3880_s8 + $0x294] sm:$0xff] %v332_v7  ;;  %v336_v9 = vld [vmem:[%s3875_s7 + $0x1268] sm:$0xff]  ;;  %v338_v10 = vld [vmem:[%s3875_s7 + $0x1270] sm:$0xff] }
  0x3f   : > { %335 = vst [vmem:[%s3880_s8 + $0x2a0] sm:$0xff] %v334_v8  ;;  %337 = vst [vmem:[%s3880_s8 + $0x2a8] sm:$0xff] %v336_v9  ;;  %v340_v11 = vld [vmem:[%s3875_s7 + $0x1324] sm:$0xff]  ;;  %v342_v12 = vld [vmem:[%s3875_s7 + $0x132c] sm:$0xff] }
  0x40   : > { %339 = vst [vmem:[%s3880_s8 + $0x2b0] sm:$0xff] %v338_v10  ;;  %v344_v13 = vld [vmem:[%s3875_s7 + $0x1334] sm:$0xff]  ;;  %341 = vst [vmem:[%s3880_s8 + $0x2bc] sm:$0xff] %v340_v11  ;;  %v346_v14 = vld [vmem:[%s3875_s7 + $0x13e8] sm:$0xff] }
  0x41   : > { %343 = vst [vmem:[%s3880_s8 + $0x2c4] sm:$0xff] %v342_v12  ;;  %345 = vst [vmem:[%s3880_s8 + $0x2cc] sm:$0xff] %v344_v13  ;;  %v348_v15 = vld [vmem:[%s3875_s7 + $0x13f0] sm:$0xff]  ;;  %v350_v16 = vld [vmem:[%s3875_s7 + $0x13f8] sm:$0xff] }
  0x42   : > { %347 = vst [vmem:[%s3880_s8 + $0x2d8] sm:$0xff] %v346_v14  ;;  %349 = vst [vmem:[%s3880_s8 + $0x2e0] sm:$0xff] %v348_v15  ;;  %v352_v17 = vld [vmem:[%s3875_s7 + $0x14ac] sm:$0xff]  ;;  %v354_v18 = vld [vmem:[%s3875_s7 + $0x14b4] sm:$0xff] }
  0x43   : > { %351 = vst [vmem:[%s3880_s8 + $0x2e8] sm:$0xff] %v350_v16  ;;  %v356_v19 = vld [vmem:[%s3875_s7 + $0x14bc] sm:$0xff]  ;;  %353 = vst [vmem:[%s3880_s8 + $0x2f4] sm:$0xff] %v352_v17  ;;  %v358_v20 = vld [vmem:[%s3875_s7 + $0x1570] sm:$0xff] }
  0x44   : > { %355 = vst [vmem:[%s3880_s8 + $0x2fc] sm:$0xff] %v354_v18  ;;  %357 = vst [vmem:[%s3880_s8 + $0x304] sm:$0xff] %v356_v19  ;;  %v360_v21 = vld [vmem:[%s3875_s7 + $0x1578] sm:$0xff]  ;;  %v362_v22 = vld [vmem:[%s3875_s7 + $0x1580] sm:$0xff] }
  0x45   : > { %359 = vst [vmem:[%s3880_s8 + $0x310] sm:$0xff] %v358_v20  ;;  %361 = vst [vmem:[%s3880_s8 + $0x318] sm:$0xff] %v360_v21  ;;  %v364_v23 = vld [vmem:[%s3875_s7 + $0x1634] sm:$0xff]  ;;  %v366_v24 = vld [vmem:[%s3875_s7 + $0x163c] sm:$0xff] }
  0x46   : > { %363 = vst [vmem:[%s3880_s8 + $0x320] sm:$0xff] %v362_v22  ;;  %v368_v25 = vld [vmem:[%s3875_s7 + $0x1644] sm:$0xff]  ;;  %365 = vst [vmem:[%s3880_s8 + $0x32c] sm:$0xff] %v364_v23  ;;  %v370_v26 = vld [vmem:[%s3875_s7 + $0x16f8] sm:$0xff] }
  0x47   : > { %367 = vst [vmem:[%s3880_s8 + $0x334] sm:$0xff] %v366_v24  ;;  %369 = vst [vmem:[%s3880_s8 + $0x33c] sm:$0xff] %v368_v25  ;;  %v372_v27 = vld [vmem:[%s3875_s7 + $0x1700] sm:$0xff]  ;;  %v374_v28 = vld [vmem:[%s3875_s7 + $0x1708] sm:$0xff] }
  0x48   : > { %371 = vst [vmem:[%s3880_s8 + $0x348] sm:$0xff] %v370_v26  ;;  %373 = vst [vmem:[%s3880_s8 + $0x350] sm:$0xff] %v372_v27  ;;  %v376_v29 = vld [vmem:[%s3875_s7 + $0x17bc] sm:$0xff]  ;;  %v378_v30 = vld [vmem:[%s3875_s7 + $0x17c4] sm:$0xff] }
  0x49   : > { %375 = vst [vmem:[%s3880_s8 + $0x358] sm:$0xff] %v374_v28  ;;  %v380_v31 = vld [vmem:[%s3875_s7 + $0x17cc] sm:$0xff]  ;;  %377 = vst [vmem:[%s3880_s8 + $0x364] sm:$0xff] %v376_v29  ;;  %v2733_v32 = vld [vmem:[%s3875_s7 + $0x18] sm:$0xf] }
  0x4a   : > { %379 = vst [vmem:[%s3880_s8 + $0x36c] sm:$0xff] %v378_v30  ;;  %381 = vst [vmem:[%s3880_s8 + $0x374] sm:$0xff] %v380_v31  ;;  %v2735_v33 = vld [vmem:[%s3875_s7 + $0xdc] sm:$0xf]  ;;  %v2737_v34 = vld [vmem:[%s3875_s7 + $0x1a0] sm:$0xf] }
  0x4b   : > { %2734 = vst [vmem:[%s3880_s8 + $0x18] sm:$0xf] %v2733_v32  ;;  %2736 = vst [vmem:[%s3880_s8 + $0x34] sm:$0xf] %v2735_v33  ;;  %v2739_v35 = vld [vmem:[%s3875_s7 + $0x264] sm:$0xf] }
  0x4c   : > { %2738 = vst [vmem:[%s3880_s8 + $0x50] sm:$0xf] %v2737_v34  ;;  %v2741_v36 = vld [vmem:[%s3875_s7 + $0x328] sm:$0xf]  ;;  %v2743_v37 = vld [vmem:[%s3875_s7 + $0x3ec] sm:$0xf] }
  0x4d   : > { %2740 = vst [vmem:[%s3880_s8 + $0x6c] sm:$0xf] %v2739_v35  ;;  %2742 = vst [vmem:[%s3880_s8 + $0x88] sm:$0xf] %v2741_v36  ;;  %v2745_v38 = vld [vmem:[%s3875_s7 + $0x4b0] sm:$0xf] }
  0x4e   : > { %2744 = vst [vmem:[%s3880_s8 + $0xa4] sm:$0xf] %v2743_v37  ;;  %v2747_v39 = vld [vmem:[%s3875_s7 + $0x574] sm:$0xf]  ;;  %v2749_v40 = vld [vmem:[%s3875_s7 + $0x638] sm:$0xf] }
  0x4f   : > { %2746 = vst [vmem:[%s3880_s8 + $0xc0] sm:$0xf] %v2745_v38  ;;  %2748 = vst [vmem:[%s3880_s8 + $0xdc] sm:$0xf] %v2747_v39  ;;  %v2751_v41 = vld [vmem:[%s3875_s7 + $0x6fc] sm:$0xf] }
  0x50   : > { %2750 = vst [vmem:[%s3880_s8 + $0xf8] sm:$0xf] %v2749_v40  ;;  %v2753_v42 = vld [vmem:[%s3875_s7 + $0x7c0] sm:$0xf]  ;;  %v2755_v43 = vld [vmem:[%s3875_s7 + $0x884] sm:$0xf] }
  0x51   : > { %2752 = vst [vmem:[%s3880_s8 + $0x114] sm:$0xf] %v2751_v41  ;;  %2754 = vst [vmem:[%s3880_s8 + $0x130] sm:$0xf] %v2753_v42  ;;  %v2757_v44 = vld [vmem:[%s3875_s7 + $0x948] sm:$0xf] }
  0x52   : > { %2756 = vst [vmem:[%s3880_s8 + $0x14c] sm:$0xf] %v2755_v43  ;;  %v2759_v45 = vld [vmem:[%s3875_s7 + $0xa0c] sm:$0xf]  ;;  %v2761_v46 = vld [vmem:[%s3875_s7 + $0xad0] sm:$0xf] }
  0x53   : > { %2758 = vst [vmem:[%s3880_s8 + $0x168] sm:$0xf] %v2757_v44  ;;  %2760 = vst [vmem:[%s3880_s8 + $0x184] sm:$0xf] %v2759_v45  ;;  %v2763_v47 = vld [vmem:[%s3875_s7 + $0xb94] sm:$0xf] }
  0x54   : > { %2762 = vst [vmem:[%s3880_s8 + $0x1a0] sm:$0xf] %v2761_v46  ;;  %v2765_v48 = vld [vmem:[%s3875_s7 + $0xc58] sm:$0xf]  ;;  %v2767_v49 = vld [vmem:[%s3875_s7 + $0xd1c] sm:$0xf] }
  0x55   : > { %2764 = vst [vmem:[%s3880_s8 + $0x1bc] sm:$0xf] %v2763_v47  ;;  %2766 = vst [vmem:[%s3880_s8 + $0x1d8] sm:$0xf] %v2765_v48  ;;  %v2769_v50 = vld [vmem:[%s3875_s7 + $0xde0] sm:$0xf] }
  0x56   : > { %2768 = vst [vmem:[%s3880_s8 + $0x1f4] sm:$0xf] %v2767_v49  ;;  %v2771_v51 = vld [vmem:[%s3875_s7 + $0xea4] sm:$0xf]  ;;  %v2773_v52 = vld [vmem:[%s3875_s7 + $0xf68] sm:$0xf] }
  0x57   : > { %2770 = vst [vmem:[%s3880_s8 + $0x210] sm:$0xf] %v2769_v50  ;;  %2772 = vst [vmem:[%s3880_s8 + $0x22c] sm:$0xf] %v2771_v51  ;;  %v2775_v53 = vld [vmem:[%s3875_s7 + $0x102c] sm:$0xf] }
  0x58   : > { %2774 = vst [vmem:[%s3880_s8 + $0x248] sm:$0xf] %v2773_v52  ;;  %v2777_v54 = vld [vmem:[%s3875_s7 + $0x10f0] sm:$0xf]  ;;  %v2779_v55 = vld [vmem:[%s3875_s7 + $0x11b4] sm:$0xf] }
  0x59   : > { %2776 = vst [vmem:[%s3880_s8 + $0x264] sm:$0xf] %v2775_v53  ;;  %2778 = vst [vmem:[%s3880_s8 + $0x280] sm:$0xf] %v2777_v54  ;;  %v2781_v56 = vld [vmem:[%s3875_s7 + $0x1278] sm:$0xf] }
  0x5a   : > { %2780 = vst [vmem:[%s3880_s8 + $0x29c] sm:$0xf] %v2779_v55  ;;  %v2783_v57 = vld [vmem:[%s3875_s7 + $0x133c] sm:$0xf]  ;;  %v2785_v58 = vld [vmem:[%s3875_s7 + $0x1400] sm:$0xf] }
  0x5b   : > { %2782 = vst [vmem:[%s3880_s8 + $0x2b8] sm:$0xf] %v2781_v56  ;;  %2784 = vst [vmem:[%s3880_s8 + $0x2d4] sm:$0xf] %v2783_v57  ;;  %v2787_v59 = vld [vmem:[%s3875_s7 + $0x14c4] sm:$0xf] }
  0x5c   : > { %2786 = vst [vmem:[%s3880_s8 + $0x2f0] sm:$0xf] %v2785_v58  ;;  %v2789_v60 = vld [vmem:[%s3875_s7 + $0x1588] sm:$0xf]  ;;  %v2791_v61 = vld [vmem:[%s3875_s7 + $0x164c] sm:$0xf] }
  0x5d   : > { %2788 = vst [vmem:[%s3880_s8 + $0x30c] sm:$0xf] %v2787_v59  ;;  %2790 = vst [vmem:[%s3880_s8 + $0x328] sm:$0xf] %v2789_v60  ;;  %v2793_v62 = vld [vmem:[%s3875_s7 + $0x1710] sm:$0xf] }
  0x5e   : > { %2792 = vst [vmem:[%s3880_s8 + $0x344] sm:$0xf] %v2791_v61  ;;  %v2795_v63 = vld [vmem:[%s3875_s7 + $0x17d4] sm:$0xf]  ;;  %2794 = vst [vmem:[%s3880_s8 + $0x360] sm:$0xf] %v2793_v62 }
  0x5f   : > { %2796 = vst [vmem:[%s3880_s8 + $0x37c] sm:$0xf] %v2795_v63 }
  0x60 PF: > { %p2797_p7 = scmp.ge.s32.totalorder %s3792_s18, 1  ;;  %p469_p8 = scmp.lt.s32.totalorder %s3792_s18, 15 }
  0x62   : > { %p470_p9 = pnand %p2797_p7, %p469_p8 }
  0x63   : > { %s476_s9 = sand.u32 (!%p470_p9), 1, %s3768_s12   ;;  %s515_s10 = smul.u32 (!%p470_p9), 112, %s3776_s14 }
  0x64   : > { %473 = sbr.rel (%p470_p9) target bundleno = 636 (0x27c), region = 54  ;;  %s2799_s21 = sshll.u32 (!%p470_p9), %s3780_s15, 5 }
  0x65   : > { %s3400_s11 = smul.u32 (!%p470_p9), 896, %s476_s9  ;;  %p516_p10 = scmp.lt.s32.totalorder (!%p470_p9), %s515_s10, 783 }
  0x66   : > { %p528_p11 = scmp.lt.s32.totalorder (!%p470_p9), %s2799_s21, 63  ;;  %p2801_p12 = scmp.ne.s32.totalorder (!%p470_p9), %s3776_s14, 0 }
  0x67   : > { %s4150_s12 = scalar_lea.vmem (!%p470_p9), [#allocation3], %s3400_s11 }
  0x6b   : > { %s4630_s10 = smov (!%p516_p10, %s515_s10), 783  ;;  %s4632_s21 = smov (!%p528_p11, %s2799_s21), 63 }
  0x6c   : > { %s2798_s22 = sshll.u32 %s4630_s10, 2  ;;  %s2800_s27 = sshll.u32 %s4632_s21, 3  ;;  %v3794_v0 = vmov (!%p2801_p12), 0.0  }
  0x6d   : > { %s4143_s26 = scalar_lea.vmem %s4614_s1, %s2798_s22  ;;  %s4148_s30 = scalar_lea.vmem %s4616_s3, %s2800_s27  ;;  %541 = vst [vmem:[#allocation2] sm:$0xff] (!%p2801_p12), %v3794_v0  ;;  %542 = vst [vmem:[#allocation2 + $0x8] sm:$0xff] (!%p2801_p12), %v3794_v0 }
  0x6e   : > { %540 = sbr.rel (%p2801_p12) target bundleno = 125 (0x7d), region = 62  ;;  %543 = vst [vmem:[#allocation2 + $0x10] sm:$0xff] (!%p2801_p12), %v3794_v0  ;;  %544 = vst [vmem:[#allocation2 + $0x18] sm:$0xff] (!%p2801_p12), %v3794_v0 }
  0x6f   : > { %545 = vst [vmem:[#allocation2 + $0x20] sm:$0xff] (!%p2801_p12), %v3794_v0  ;;  %546 = vst [vmem:[#allocation2 + $0x28] sm:$0xff] (!%p2801_p12), %v3794_v0 }
  0x70   : > { %547 = vst [vmem:[#allocation2 + $0x30] sm:$0xff] (!%p2801_p12), %v3794_v0  ;;  %548 = vst [vmem:[#allocation2 + $0x38] sm:$0xff] (!%p2801_p12), %v3794_v0 }
  0x71   : > { %549 = vst [vmem:[#allocation2 + $0x40] sm:$0xff] (!%p2801_p12), %v3794_v0  ;;  %550 = vst [vmem:[#allocation2 + $0x48] sm:$0xff] (!%p2801_p12), %v3794_v0 }
  0x72   : > { %551 = vst [vmem:[#allocation2 + $0x50] sm:$0xff] (!%p2801_p12), %v3794_v0  ;;  %552 = vst [vmem:[#allocation2 + $0x58] sm:$0xff] (!%p2801_p12), %v3794_v0 }
  0x73   : > { %553 = vst [vmem:[#allocation2 + $0x60] sm:$0xff] (!%p2801_p12), %v3794_v0  ;;  %554 = vst [vmem:[#allocation2 + $0x68] sm:$0xff] (!%p2801_p12), %v3794_v0 }
  0x74   : > { %555 = vst [vmem:[#allocation2 + $0x70] sm:$0xff] (!%p2801_p12), %v3794_v0  ;;  %556 = vst [vmem:[#allocation2 + $0x78] sm:$0xff] (!%p2801_p12), %v3794_v0 }
  0x75   : > { %557 = vst [vmem:[#allocation2 + $0x80] sm:$0xff] %v3794_v0  ;;  %558 = vst [vmem:[#allocation2 + $0x88] sm:$0xff] %v3794_v0 }
  0x76   : > { %559 = vst [vmem:[#allocation2 + $0x90] sm:$0xff] %v3794_v0  ;;  %560 = vst [vmem:[#allocation2 + $0x98] sm:$0xff] %v3794_v0 }
  0x77   : > { %561 = vst [vmem:[#allocation2 + $0xa0] sm:$0xff] %v3794_v0  ;;  %562 = vst [vmem:[#allocation2 + $0xa8] sm:$0xff] %v3794_v0 }
  0x78   : > { %563 = vst [vmem:[#allocation2 + $0xb0] sm:$0xff] %v3794_v0  ;;  %564 = vst [vmem:[#allocation2 + $0xb8] sm:$0xff] %v3794_v0 }
  0x79   : > { %565 = vst [vmem:[#allocation2 + $0xc0] sm:$0xff] %v3794_v0  ;;  %566 = vst [vmem:[#allocation2 + $0xc8] sm:$0xff] %v3794_v0 }
  0x7a   : > { %567 = vst [vmem:[#allocation2 + $0xd0] sm:$0xff] %v3794_v0  ;;  %568 = vst [vmem:[#allocation2 + $0xd8] sm:$0xff] %v3794_v0 }
  0x7b   : > { %569 = vst [vmem:[#allocation2 + $0xe0] sm:$0xff] %v3794_v0  ;;  %570 = vst [vmem:[#allocation2 + $0xe8] sm:$0xff] %v3794_v0 }
  0x7c   : > { %571 = vst [vmem:[#allocation2 + $0xf0] sm:$0xff] %v3794_v0  ;;  %572 = vst [vmem:[#allocation2 + $0xf8] sm:$0xff] %v3794_v0 }
  0x7d PF: > { %v3458_v1 = vld [vmem:[%s4143_s26 + $0x40] sm:$0xff]   ;;  %v3460_v3 = vld [vmem:[%s4143_s26 + $0x48] sm:$0xff]   ;;  %v3462_v5 = vld [vmem:[%s4143_s26 + $0x50] sm:$0xff]   ;;  %p2970_p13 = scmp.ne.s32.totalorder %s3776_s14, 6 }
  0x7e   : > { %v3459_v2 = vld [vmem:[%s4143_s26] sm:$0xff]   ;;  %2974 = vmatprep.subr.bf16.mxu0 %v3458_v1  ;;  %3382 = vmatprep.subr.bf16.mxu1 %v3458_v1  ;;  %v3461_v4 = vld [vmem:[%s4143_s26 + $0x8] sm:$0xff]   ;;  %v3463_v6 = vld [vmem:[%s4143_s26 + $0x10] sm:$0xff]  }
  0x7f   : > { %2975 = vmatpush3.bf16.msra.mxu0 %v3459_v2  ;;  %3390 = vmatpush3.bf16.msra.mxu1 %v3459_v2  ;;  %v3464_v7 = vld [vmem:[%s4143_s26 + $0x58] sm:$0xff]   ;;  %v3466_v9 = vld [vmem:[%s4143_s26 + $0x60] sm:$0xff]   ;;  %v3468_v11 = vld [vmem:[%s4143_s26 + $0x68] sm:$0xff]  }
  0x80   : > { %2976 = vmatprep.subr.bf16.mxu0 %v3460_v3  ;;  %3383 = vmatprep.subr.bf16.mxu1 %v3460_v3  ;;  %v3465_v8 = vld [vmem:[%s4143_s26 + $0x18] sm:$0xff]   ;;  %v3467_v10 = vld [vmem:[%s4143_s26 + $0x20] sm:$0xff]   ;;  %v3469_v14 = vld [vmem:[%s4143_s26 + $0x28] sm:$0xff]  }
  0x81   : > { %v3476_v12 = vld [vmem:[%s4150_s12 + $0x4] ss:$28 sps:$4 sm:$0xff]   ;;  %v3470_v15 = vld [vmem:[%s4143_s26 + $0x70] sm:$0xff]   ;;  %v3472_v17 = vld [vmem:[%s4143_s26 + $0x78] sm:$0xff]  }
  0x82   : > { %v3479_v13 = vld [vmem:[%s4150_s12 + $0x2a4] ss:$28 sps:$4 sm:$0xff]   ;;  %1789 = vmatprep.mubr.bf16.mxu0 %v3476_v12  ;;  %v3471_v16 = vld [vmem:[%s4143_s26 + $0x30] sm:$0xff]   ;;  %v3473_v18 = vld [vmem:[%s4143_s26 + $0x38] sm:$0xff]  }
  0x83   : > { %2977 = vmatpush3.bf16.msra.mxu0 %v3461_v4  ;;  %3391 = vmatpush3.bf16.msra.mxu1 %v3461_v4  ;;  %v3480_v19 = vld [vmem:[%s4143_s26 + $0xc0] sm:$0xff]   ;;  %v3484_v25 = vld [vmem:[%s4143_s26 + $0xc8] sm:$0xff]   ;;  %v3486_v26 = vld [vmem:[%s4150_s12 + $0x3c] ss:$28 sps:$4 sm:$0xff]  }
  0x84   : > { %2978 = vmatprep.subr.bf16.mxu0 %v3462_v5  ;;  %3384 = vmatprep.subr.bf16.mxu1 %v3462_v5  ;;  %v3474_v20 = vld [vmem:[%s4150_s12] ss:$28 sps:$4 sm:$0xff]   ;;  %v3495_v28 = vld [vmem:[%s4143_s26 + $0x148] sm:$0xff]   ;;  %v3490_v31 = vld [vmem:[%s4150_s12 + $0x38] ss:$28 sps:$4 sm:$0xff]  }
  0x85   : > { %1885 = vmatprep.mubr.bf16.mxu1 %v3479_v13  ;;  %v3477_v21 = vld [vmem:[%s4150_s12 + $0x2a0] ss:$28 sps:$4 sm:$0xff]   ;;  %v3485_v29 = vld [vmem:[%s4143_s26 + $0x88] sm:$0xff]   ;;  %v3491_v32 = vld [vmem:[%s4150_s12 + $0x2d8] ss:$28 sps:$4 sm:$0xff]  }
  0x86   : > { %v3481_v22 = vld [vmem:[%s4143_s26 + $0x140] sm:$0xff]   ;;  %v3488_v27 = vld [vmem:[%s4150_s12 + $0x2dc] ss:$28 sps:$4 sm:$0xff]   ;;  %v3497_v30 = vld [vmem:[%s4143_s26 + $0x108] sm:$0xff]  }
  0x87   : > { %2979 = vmatpush3.bf16.msra.mxu0 %v3463_v6  ;;  %3392 = vmatpush3.bf16.msra.mxu1 %v3463_v6  ;;  %v3482_v23 = vld [vmem:[%s4143_s26 + $0x80] sm:$0xff]   ;;  %v3492_v33 = vld [vmem:[%s4143_s26 + $0xd0] sm:$0xff]   ;;  %v3494_v35 = vld [vmem:[%s4143_s26 + $0xd8] sm:$0xff]  }
  0x88   : > { %2980 = vmatprep.subr.bf16.mxu0 %v3464_v7  ;;  %3385 = vmatprep.subr.bf16.mxu1 %v3464_v7  ;;  %v3483_v24 = vld [vmem:[%s4143_s26 + $0x100] sm:$0xff]   ;;  %v3493_v34 = vld [vmem:[%s4143_s26 + $0x90] sm:$0xff]   ;;  %v3496_v38 = vld [vmem:[%s4143_s26 + $0x98] sm:$0xff]  }
  0x89   : > { %v3498_v36 = vld [vmem:[%s4150_s12 + $0x74] ss:$28 sps:$4 sm:$0xff]   ;;  %v3504_v39 = vld [vmem:[%s4143_s26 + $0xe0] sm:$0xff]   ;;  %v3506_v44 = vld [vmem:[%s4143_s26 + $0xe8] sm:$0xff]  }
  0x8a   : > { %v3500_v37 = vld [vmem:[%s4150_s12 + $0x314] ss:$28 sps:$4 sm:$0xff]   ;;  %v3505_v43 = vld [vmem:[%s4143_s26 + $0xa0] sm:$0xff]   ;;  %v3508_v46 = vld [vmem:[%s4150_s12 + $0xac] ss:$28 sps:$4 sm:$0xff]  }
  0x8b   : > { %2981 = vmatpush3.bf16.msra.mxu0 %v3465_v8  ;;  %3393 = vmatpush3.bf16.msra.mxu1 %v3465_v8  ;;  %v3502_v40 = vld [vmem:[%s4150_s12 + $0x70] ss:$28 sps:$4 sm:$0xff]   ;;  %v3512_v50 = vld [vmem:[%s4150_s12 + $0xa8] ss:$28 sps:$4 sm:$0xff]   ;;  %v3526_v52 = vld [vmem:[%s4143_s26 + $0x158] sm:$0xff]  }
  0x8c   : > { %2982 = vmatprep.subr.bf16.mxu0 %v3466_v9  ;;  %3386 = vmatprep.subr.bf16.mxu1 %v3466_v9  ;;  %v3503_v41 = vld [vmem:[%s4150_s12 + $0x310] ss:$28 sps:$4 sm:$0xff]   ;;  %v3513_v51 = vld [vmem:[%s4150_s12 + $0x348] ss:$28 sps:$4 sm:$0xff]   ;;  %v3528_v54 = vld [vmem:[%s4143_s26 + $0x118] sm:$0xff]  }
  0x8d   : > { %v3515_v42 = vld [vmem:[%s4143_s26 + $0x150] sm:$0xff]   ;;  %v3510_v47 = vld [vmem:[%s4150_s12 + $0x34c] ss:$28 sps:$4 sm:$0xff]   ;;  %v3520_v55 = vld [vmem:[%s4150_s12 + $0xe4] ss:$28 sps:$4 sm:$0xff]  }
  0x8e   : > { %v3517_v45 = vld [vmem:[%s4143_s26 + $0x110] sm:$0xff]   ;;  %v3507_v48 = vld [vmem:[%s4143_s26 + $0xa8] sm:$0xff]   ;;  %v3518_v56 = vld [vmem:[%s4143_s26 + $0xf8] sm:$0xff]  }
  0x8f   : > { %2983 = vmatpush3.bf16.msra.mxu0 %v3467_v10  ;;  %3394 = vmatpush3.bf16.msra.mxu1 %v3467_v10  ;;  %v3514_v49 = vld [vmem:[%s4143_s26 + $0xf0] sm:$0xff]   ;;  %v3524_v57 = vld [vmem:[%s4150_s12 + $0xc] ss:$28 sps:$4 sm:$0xff]   ;;  %v3519_v58 = vld [vmem:[%s4143_s26 + $0xb8] sm:$0xff]  }
  0x90   : > { %2984 = vmatprep.subr.bf16.mxu0 %v3468_v11  ;;  %3387 = vmatprep.subr.bf16.mxu1 %v3468_v11  ;;  %v3516_v53 = vld [vmem:[%s4143_s26 + $0xb0] sm:$0xff]   ;;  %v3527_v59 = vld [vmem:[%s4143_s26 + $0x180] sm:$0xff]   ;;  %v3529_v0 = vld [vmem:[%s4150_s12 + $0x11c] ss:$28 sps:$4 sm:$0xff]  }
  0x91   : > { %v3522_v60 = vld [vmem:[%s4150_s12 + $0x8] ss:$28 sps:$4 sm:$0xff]   ;;  %v3525_v63 = vld [vmem:[%s4150_s12 + $0xe0] ss:$28 sps:$4 sm:$0xff]   ;;  %v3533_v5 = vld [vmem:[%s4150_s12 + $0x118] ss:$28 sps:$4 sm:$0xff]  }
  0x92   : > { %v3541_v61 = vld [vmem:[%s4143_s26 + $0x160] sm:$0xff]   ;;  %v3543_v2 = vld [vmem:[%s4143_s26 + $0x188] sm:$0xff]   ;;  %v3535_v7 = vld [vmem:[%s4150_s12 + $0x154] ss:$28 sps:$4 sm:$0xff]  }
  0x93   : > { %2985 = vmatpush3.bf16.msra.mxu0 %v3469_v14  ;;  %3395 = vmatpush3.bf16.msra.mxu1 %v3469_v14  ;;  %v3542_v62 = vld [vmem:[%s4143_s26 + $0x120] sm:$0xff]   ;;  %v3550_v3 = vld [vmem:[%s4143_s26 + $0x168] sm:$0xff]   ;;  %v3558_v8 = vld [vmem:[%s4143_s26 + $0x190] sm:$0xff]  }
  0x94   : > { %2986 = vmatprep.subr.bf16.mxu0 %v3470_v15  ;;  %3388 = vmatprep.subr.bf16.mxu1 %v3470_v15  ;;  %v3531_v1 = vld [vmem:[%s4150_s12 + $0x44] ss:$28 sps:$4 sm:$0xff]   ;;  %v3551_v4 = vld [vmem:[%s4143_s26 + $0x128] sm:$0xff]   ;;  %v3537_v9 = vld [vmem:[%s4150_s12 + $0x7c] ss:$28 sps:$4 sm:$0xff]  }
  0x95   : > { %v3534_v6 = vld [vmem:[%s4150_s12 + $0x40] ss:$28 sps:$4 sm:$0xff]   ;;  %v3565_v10 = vld [vmem:[%s4143_s26 + $0x170] sm:$0xff]   ;;  %v3544_v14 = vld [vmem:[%s4150_s12 + $0x18c] ss:$28 sps:$4 sm:$0xff]  }
  0x96   : > { %v3566_v11 = vld [vmem:[%s4143_s26 + $0x130] sm:$0xff]  }
  0x97   : > { %2987 = vmatpush3.bf16.msra.mxu0 %v3471_v16  ;;  %3396 = vmatpush3.bf16.msra.mxu1 %v3471_v16  ;;  %v3539_v12 = vld [vmem:[%s4150_s12 + $0x150] ss:$28 sps:$4 sm:$0xff]   ;;  %v3540_v13 = vld [vmem:[%s4150_s12 + $0x78] ss:$28 sps:$4 sm:$0xff]  }
  0x98   : > { %2988 = vmatprep.subr.bf16.mxu0 %v3472_v17  ;;  %3389 = vmatprep.subr.bf16.mxu1 %v3472_v17  ;;  %v3546_v15 = vld [vmem:[%s4150_s12 + $0xb4] ss:$28 sps:$4 sm:$0xff]   ;;  %v3573_v16 = vld [vmem:[%s4143_s26 + $0x178] sm:$0xff]  }
  0x99   : > { %v3574_v17 = vld [vmem:[%s4143_s26 + $0x198] sm:$0xff]  }
  0x9b   : > { %2989 = vmatpush3.bf16.msra.mxu0 %v3473_v18  ;;  %3397 = vmatpush3.bf16.msra.mxu1 %v3473_v18  ;;  %v3575_v18 = vld [vmem:[%s4143_s26 + $0x138] sm:$0xff]  }
  0x9c   : > { %3086 = vmatprep.subr.bf16.mxu1 %v3480_v19  ;;  %3198 = vmatprep.subr.bf16.mxu0 %v3481_v22  ;;  %v3548_v19 = vld [vmem:[%s4150_s12 + $0x188] ss:$28 sps:$4 sm:$0xff]  }
  0x9d   : > { %v3554_v22 = vld [vmem:[%s4150_s12 + $0xec] ss:$28 sps:$4 sm:$0xff]  }
  0x9e   : > { %1790 = vmatmul.mubr.bf16.vlgmr.msra.gmra.mrb[0].mxu0 %v3474_v20  ;;  %1886 = vmatmul.mubr.bf16.vlgmr.msra.gmra.mrb[0].mxu1 %v3477_v21  ;;  %v3549_v20 = vld [vmem:[%s4150_s12 + $0xb0] ss:$28 sps:$4 sm:$0xff]   ;;  %v3552_v21 = vld [vmem:[%s4150_s12 + $0x1c4] ss:$28 sps:$4 sm:$0xff]  }
  0x9f   : > { %3087 = vmatpush3.bf16.msra.mxu1 %v3482_v23  ;;  %3199 = vmatpush3.bf16.msra.mxu0 %v3483_v24  ;;  %v3588_v23 = vld [vmem:[%s4143_s26 + $0x1a0] sm:$0xff]  }
  0xa0   : > { %3088 = vmatprep.subr.bf16.mxu1 %v3484_v25  ;;  %1797 = vmatprep.mubr.bf16.mxu0 %v3486_v26  ;;  %v3556_v24 = vld [vmem:[%s4150_s12 + $0x1c0] ss:$28 sps:$4 sm:$0xff]   ;;  %v3557_v25 = vld [vmem:[%s4150_s12 + $0xe8] ss:$28 sps:$4 sm:$0xff]  }
  0xa1   : > { %1893 = vmatprep.mubr.bf16.mxu1 %v3488_v27  ;;  %3200 = vmatprep.subr.bf16.mxu0 %v3495_v28  ;;  %v3601_v26 = vld [vmem:[%s4143_s26 + $0x1a8] sm:$0xff]   ;;  %v3559_v27 = vld [vmem:[%s4150_s12 + $0x1fc] ss:$28 sps:$4 sm:$0xff]   ;;  %v3561_v28 = vld [vmem:[%s4150_s12 + $0x124] ss:$28 sps:$4 sm:$0xff]  }
  0xa3   : > { %3089 = vmatpush3.bf16.msra.mxu1 %v3485_v29  ;;  %3201 = vmatpush3.bf16.msra.mxu0 %v3497_v30  ;;  %v3614_v29 = vld [vmem:[%s4143_s26 + $0x1b0] sm:$0xff]  }
  0xa4   : > { %3090 = vmatprep.subr.bf16.mxu1 %v3492_v33  ;;  %3202 = vmatprep.subr.bf16.mxu0 %v3515_v42  ;;  %v3563_v30 = vld [vmem:[%s4150_s12 + $0x1f8] ss:$28 sps:$4 sm:$0xff]  }
  0xa5   : > { %v3569_v33 = vld [vmem:[%s4150_s12 + $0x15c] ss:$28 sps:$4 sm:$0xff]   ;;  %v3586_v42 = vld [vmem:[%s4150_s12 + $0x14] ss:$28 sps:$4 sm:$0xff]  }
  0xa6   : > { %1798 = vmatmul.mubr.bf16.gmra.mrb[4].mxu0 %v3490_v31  ;;  %1894 = vmatmul.mubr.bf16.gmra.mrb[4].mxu1 %v3491_v32  ;;  %v3564_v31 = vld [vmem:[%s4150_s12 + $0x120] ss:$28 sps:$4 sm:$0xff]   ;;  %v3567_v32 = vld [vmem:[%s4150_s12 + $0x234] ss:$28 sps:$4 sm:$0xff]  }
  0xa7   : > { %3091 = vmatpush3.bf16.msra.mxu1 %v3493_v34  ;;  %1805 = vmatprep.mubr.bf16.mxu0 %v3498_v36  ;;  %v3627_v34 = vld [vmem:[%s4143_s26 + $0x1b8] sm:$0xff]  }
  0xa8   : > { %3092 = vmatprep.subr.bf16.mxu1 %v3494_v35  ;;  %1901 = vmatprep.mubr.bf16.mxu1 %v3500_v37  ;;  %v3571_v35 = vld [vmem:[%s4150_s12 + $0x230] ss:$28 sps:$4 sm:$0xff]   ;;  %v3572_v36 = vld [vmem:[%s4150_s12 + $0x158] ss:$28 sps:$4 sm:$0xff]  }
  0xa9   : > { %3203 = vmatpush3.bf16.msra.mxu0 %v3517_v45  ;;  %v3576_v37 = vld [vmem:[%s4150_s12 + $0x26c] ss:$28 sps:$4 sm:$0xff]   ;;  %v3589_v45 = vld [vmem:[%s4150_s12 + $0x204] ss:$28 sps:$4 sm:$0xff]  }
  0xaa   : > { %3204 = vmatprep.subr.bf16.mxu0 %v3526_v52  ;;  %v3600_v52 = vld [vmem:[%s4150_s12 + $0x80] ss:$28 sps:$4 sm:$0xff]  }
  0xab   : > { %3093 = vmatpush3.bf16.msra.mxu1 %v3496_v38  ;;  %v3578_v38 = vld [vmem:[%s4150_s12 + $0x194] ss:$28 sps:$4 sm:$0xff]  }
  0xac   : > { %3094 = vmatprep.subr.bf16.mxu1 %v3504_v39  ;;  %v3580_v39 = vld [vmem:[%s4150_s12 + $0x268] ss:$28 sps:$4 sm:$0xff]  }
  0xad   : > { %3205 = vmatpush3.bf16.msra.mxu0 %v3528_v54  ;;  %v3604_v54 = vld [vmem:[%s4150_s12 + $0xbc] ss:$28 sps:$4 sm:$0xff]  }
  0xae   : > { %1806 = vmatmul.mubr.bf16.gmra.mrb[8].mxu0 %v3502_v40  ;;  %1902 = vmatmul.mubr.bf16.gmra.mrb[8].mxu1 %v3503_v41  ;;  %v3581_v40 = vld [vmem:[%s4150_s12 + $0x190] ss:$28 sps:$4 sm:$0xff]  }
  0xaf   : > { %3095 = vmatpush3.bf16.msra.mxu1 %v3505_v43  ;;  %1813 = vmatprep.mubr.bf16.mxu0 %v3508_v46  ;;  %v3582_v41 = vld [vmem:[%s4150_s12 + $0x1cc] ss:$28 sps:$4 sm:$0xff]  }
  0xb0   : > { %3096 = vmatprep.subr.bf16.mxu1 %v3506_v44  ;;  %1909 = vmatprep.mubr.bf16.mxu1 %v3510_v47  ;;  %v3584_v43 = vld [vmem:[%s4150_s12 + $0x10] ss:$28 sps:$4 sm:$0xff]   ;;  %v3587_v44 = vld [vmem:[%s4150_s12 + $0x1c8] ss:$28 sps:$4 sm:$0xff]   ;;  %v3593_v47 = vld [vmem:[%s4150_s12 + $0x200] ss:$28 sps:$4 sm:$0xff]  }
  0xb1   : > { %3206 = vmatprep.subr.bf16.mxu0 %v3541_v61  ;;  %v3591_v46 = vld [vmem:[%s4150_s12 + $0x4c] ss:$28 sps:$4 sm:$0xff]   ;;  %v3615_v61 = vld [vmem:[%s4150_s12 + $0x2e4] ss:$28 sps:$4 sm:$0xff]  }
  0xb2   : > { %3207 = vmatpush3.bf16.msra.mxu0 %v3542_v62  ;;  %v3617_v62 = vld [vmem:[%s4150_s12 + $0x12c] ss:$28 sps:$4 sm:$0xff]  }
  0xb3   : > { %3097 = vmatpush3.bf16.msra.mxu1 %v3507_v48  ;;  %3208 = vmatprep.subr.bf16.mxu0 %v3550_v3  ;;  %v3594_v48 = vld [vmem:[%s4150_s12 + $0x48] ss:$28 sps:$4 sm:$0xff]   ;;  %v3625_v3 = vld [vmem:[%s4150_s12 + $0x318] ss:$28 sps:$4 sm:$0xff]  }
  0xb4   : > { %3098 = vmatprep.subr.bf16.mxu1 %v3514_v49  ;;  %v3595_v49 = vld [vmem:[%s4150_s12 + $0x23c] ss:$28 sps:$4 sm:$0xff]  }
  0xb6   : > { %1814 = vmatmul.mubr.bf16.gmra.mrb[12].mxu0 %v3512_v50  ;;  %1910 = vmatmul.mubr.bf16.gmra.mrb[12].mxu1 %v3513_v51  ;;  %v3597_v50 = vld [vmem:[%s4150_s12 + $0x84] ss:$28 sps:$4 sm:$0xff]   ;;  %v3599_v51 = vld [vmem:[%s4150_s12 + $0x238] ss:$28 sps:$4 sm:$0xff]  }
  0xb7   : > { %3099 = vmatpush3.bf16.msra.mxu1 %v3516_v53  ;;  %1821 = vmatprep.mubr.bf16.mxu0 %v3520_v55  ;;  %v3602_v53 = vld [vmem:[%s4150_s12 + $0x274] ss:$28 sps:$4 sm:$0xff]  }
  0xb8   : > { %3100 = vmatprep.subr.bf16.mxu1 %v3518_v56  ;;  %1950 = vmatprep.mubr.bf16.mxu1 %v3524_v57  ;;  %v3606_v55 = vld [vmem:[%s4150_s12 + $0x270] ss:$28 sps:$4 sm:$0xff]   ;;  %v3607_v56 = vld [vmem:[%s4150_s12 + $0xb8] ss:$28 sps:$4 sm:$0xff]  }
  0xb9   : > { %3209 = vmatpush3.bf16.msra.mxu0 %v3551_v4  ;;  %v3608_v57 = vld [vmem:[%s4150_s12 + $0x2ac] ss:$28 sps:$4 sm:$0xff]   ;;  %v3626_v4 = vld [vmem:[%s4150_s12 + $0x160] ss:$28 sps:$4 sm:$0xff]  }
  0xba   : > { %3210 = vmatprep.subr.bf16.mxu0 %v3565_v10  ;;  %v3636_v10 = vld [vmem:[%s4150_s12 + $0x18] ss:$28 sps:$4 sm:$0xff]  }
  0xbb   : > { %3101 = vmatpush3.bf16.msra.mxu1 %v3519_v58  ;;  %v3610_v58 = vld [vmem:[%s4150_s12 + $0xf4] ss:$28 sps:$4 sm:$0xff]  }
  0xbc   : > { %3334 = vmatprep.subr.bf16.mxu1 %v3527_v59 }
  0xbd   : > { %3211 = vmatpush3.bf16.msra.mxu0 %v3566_v11  ;;  %v3637_v11 = vld [vmem:[%s4150_s12 + $0x1d0] ss:$28 sps:$4 sm:$0xff]  }
  0xbe   : > { %1822 = vmatmul.mubr.bf16.gmra.mrb[16].mxu0 %v3525_v63  ;;  %1951 = vmatmul.mubr.bf16.vlgmr.msra.gmra.mrb[16].mxu1 %v3522_v60  ;;  %v3613_v60 = vld [vmem:[%s4150_s12 + $0xf0] ss:$28 sps:$4 sm:$0xff]   ;;  %v3619_v63 = vld [vmem:[%s4150_s12 + $0x2e0] ss:$28 sps:$4 sm:$0xff]  }
  0xbf   : > { %3335 = vmatpush3.bf16.msra.mxu1 %v3527_v59  ;;  %1829 = vmatprep.mubr.bf16.mxu0 %v3529_v0  ;;  %v3612_v59 = vld [vmem:[%s4150_s12 + $0x2a8] ss:$28 sps:$4 sm:$0xff]  }
  0xc0   : > { %1958 = vmatprep.mubr.bf16.mxu1 %v3531_v1  ;;  %3336 = vmatprep.subr.bf16.mxu1 %v3543_v2  ;;  %v3620_v0 = vld [vmem:[%s4150_s12 + $0x128] ss:$28 sps:$4 sm:$0xff]   ;;  %v3621_v1 = vld [vmem:[%s4150_s12 + $0x31c] ss:$28 sps:$4 sm:$0xff]  }
  0xc1   : > { %3212 = vmatprep.subr.bf16.mxu0 %v3573_v16  ;;  %v3643_v16 = vld [vmem:[%s4150_s12 + $0xc0] ss:$28 sps:$4 sm:$0xff]  }
  0xc2   : > { %3213 = vmatpush3.bf16.msra.mxu0 %v3575_v18  ;;  %v3646_v18 = vld [vmem:[%s4150_s12 + $0xf8] ss:$28 sps:$4 sm:$0xff]  }
  0xc3   : > { %3337 = vmatpush3.bf16.msra.mxu1 %v3543_v2  ;;  %v3623_v2 = vld [vmem:[%s4150_s12 + $0x164] ss:$28 sps:$4 sm:$0xff]  }
  0xc4   : > { %3338 = vmatprep.subr.bf16.mxu1 %v3558_v8 }
  0xc6   : > { %1830 = vmatmul.mubr.bf16.gmra.mrb[20].mxu0 %v3533_v5  ;;  %1959 = vmatmul.mubr.bf16.gmra.mrb[20].mxu1 %v3534_v6  ;;  %v3628_v5 = vld [vmem:[%s4150_s12 + $0x354] ss:$28 sps:$4 sm:$0xff]   ;;  %v3630_v6 = vld [vmem:[%s4150_s12 + $0x19c] ss:$28 sps:$4 sm:$0xff]  }
  0xc7   : > { %1837 = vmatprep.mubr.bf16.mxu0 %v3535_v7  ;;  %1966 = vmatprep.mubr.bf16.mxu1 %v3537_v9  ;;  %v3632_v7 = vld [vmem:[%s4150_s12 + $0x350] ss:$28 sps:$4 sm:$0xff]  }
  0xc8   : > { %3339 = vmatpush3.bf16.msra.mxu1 %v3558_v8  ;;  %v3633_v8 = vld [vmem:[%s4150_s12 + $0x198] ss:$28 sps:$4 sm:$0xff]  }
  0xc9   : > { %3340 = vmatprep.subr.bf16.mxu1 %v3574_v17  ;;  %v3634_v9 = vld [vmem:[%s4150_s12 + $0x1d4] ss:$28 sps:$4 sm:$0xff]  }
  0xcc   : > { %3341 = vmatpush3.bf16.msra.mxu1 %v3574_v17  ;;  %v3644_v17 = vld [vmem:[%s4150_s12 + $0x244] ss:$28 sps:$4 sm:$0xff]  }
  0xcd   : > { %3342 = vmatprep.subr.bf16.mxu1 %v3588_v23 }
  0xce   : > { %1838 = vmatmul.mubr.bf16.gmra.mrb[24].mxu0 %v3539_v12  ;;  %1967 = vmatmul.mubr.bf16.gmra.mrb[24].mxu1 %v3540_v13  ;;  %v3638_v12 = vld [vmem:[%s4150_s12 + $0x50] ss:$28 sps:$4 sm:$0xff]  }
  0xcf   : > { %1845 = vmatprep.mubr.bf16.mxu0 %v3544_v14  ;;  %1974 = vmatprep.mubr.bf16.mxu1 %v3546_v15  ;;  %v3639_v13 = vld [vmem:[%s4150_s12 + $0x20c] ss:$28 sps:$4 sm:$0xff]  }
  0xd0   : > { %3343 = vmatpush3.bf16.msra.mxu1 %v3588_v23  ;;  %v3641_v14 = vld [vmem:[%s4150_s12 + $0x88] ss:$28 sps:$4 sm:$0xff]   ;;  %v3652_v23 = vld [vmem:[%s4150_s12 + $0x278] ss:$28 sps:$4 sm:$0xff]  }
  0xd1   : > { %3344 = vmatprep.subr.bf16.mxu1 %v3601_v26  ;;  %v3642_v15 = vld [vmem:[%s4150_s12 + $0x208] ss:$28 sps:$4 sm:$0xff]  }
  0xd4   : > { %3345 = vmatpush3.bf16.msra.mxu1 %v3601_v26  ;;  %v3656_v26 = vld [vmem:[%s4150_s12 + $0x1d8] ss:$28 sps:$4 sm:$0xff]  }
  0xd5   : > { %3346 = vmatprep.subr.bf16.mxu1 %v3614_v29 }
  0xd6   : > { %1846 = vmatmul.mubr.bf16.gmra.mrb[28].mxu0 %v3548_v19  ;;  %1975 = vmatmul.mubr.bf16.gmra.mrb[28].mxu1 %v3549_v20  ;;  %v3647_v19 = vld [vmem:[%s4150_s12 + $0x240] ss:$28 sps:$4 sm:$0xff]   ;;  %v3648_v20 = vld [vmem:[%s4150_s12 + $0x130] ss:$28 sps:$4 sm:$0xff]  }
  0xd7   : > { %1853 = vmatprep.mubr.bf16.mxu0 %v3552_v21  ;;  %1982 = vmatprep.mubr.bf16.mxu1 %v3554_v22  ;;  %v3649_v21 = vld [vmem:[%s4150_s12 + $0x27c] ss:$28 sps:$4 sm:$0xff]   ;;  %v3651_v22 = vld [vmem:[%s4150_s12 + $0x168] ss:$28 sps:$4 sm:$0xff]  }
  0xd8   : > { %3347 = vmatpush3.bf16.msra.mxu1 %v3614_v29  ;;  %v3659_v29 = vld [vmem:[%s4150_s12 + $0x2ec] ss:$28 sps:$4 sm:$0xff]  }
  0xd9   : > { %3348 = vmatprep.subr.bf16.mxu1 %v3627_v34 }
  0xdc   : > { %3349 = vmatpush3.bf16.msra.mxu1 %v3627_v34  ;;  %v3666_v34 = vld [vmem:[%s4150_s12 + $0x2b8] ss:$28 sps:$4 sm:$0xff]  }
  0xde   : > { %1854 = vmatmul.mubr.bf16.gmra.mrb[32].mxu0 %v3556_v24  ;;  %1983 = vmatmul.mubr.bf16.gmra.mrb[32].mxu1 %v3557_v25  ;;  %v3653_v24 = vld [vmem:[%s4150_s12 + $0x1a0] ss:$28 sps:$4 sm:$0xff]   ;;  %v3654_v25 = vld [vmem:[%s4150_s12 + $0x2b4] ss:$28 sps:$4 sm:$0xff]  }
  0xdf   : > { %1861 = vmatprep.mubr.bf16.mxu0 %v3559_v27  ;;  %1990 = vmatprep.mubr.bf16.mxu1 %v3561_v28  ;;  %v3657_v27 = vld [vmem:[%s4150_s12 + $0x2b0] ss:$28 sps:$4 sm:$0xff]  }
  0xe0   : > { %v3658_v28 = vld [vmem:[%s4150_s12 + $0x210] ss:$28 sps:$4 sm:$0xff]  }
  0xe6   : > { %1862 = vmatmul.mubr.bf16.gmra.mrb[36].mxu0 %v3563_v30  ;;  %1991 = vmatmul.mubr.bf16.gmra.mrb[36].mxu1 %v3564_v31  ;;  %v3661_v30 = vld [vmem:[%s4150_s12 + $0x248] ss:$28 sps:$4 sm:$0xff]  }
  0xe7   : > { %1869 = vmatprep.mubr.bf16.mxu0 %v3567_v32  ;;  %1998 = vmatprep.mubr.bf16.mxu1 %v3569_v33  ;;  %v3662_v31 = vld [vmem:[%s4150_s12 + $0x2e8] ss:$28 sps:$4 sm:$0xff]   ;;  %v3663_v32 = vld [vmem:[%s4150_s12 + $0x280] ss:$28 sps:$4 sm:$0xff]  }
  0xe8   : > { %v3664_v33 = vld [vmem:[%s4150_s12 + $0x324] ss:$28 sps:$4 sm:$0xff]  }
  0xee   : > { %1870 = vmatmul.mubr.bf16.gmra.mrb[40].mxu0 %v3571_v35  ;;  %1999 = vmatmul.mubr.bf16.gmra.mrb[40].mxu1 %v3572_v36  ;;  %v3667_v35 = vld [vmem:[%s4150_s12 + $0x320] ss:$28 sps:$4 sm:$0xff]   ;;  %v3668_v36 = vld [vmem:[%s4150_s12 + $0x2f0] ss:$28 sps:$4 sm:$0xff]  }
  0xef   : > { %1877 = vmatprep.mubr.bf16.mxu0 %v3576_v37  ;;  %2006 = vmatprep.mubr.bf16.mxu1 %v3578_v38  ;;  %v3669_v37 = vld [vmem:[%s4150_s12 + $0x35c] ss:$28 sps:$4 sm:$0xff]   ;;  %v3671_v38 = vld [vmem:[%s4150_s12 + $0x328] ss:$28 sps:$4 sm:$0xff]  }
  0xf6   : > { %1878 = vmatmul.mubr.bf16.gmra.mrb[44].mxu0 %v3580_v39  ;;  %2007 = vmatmul.mubr.bf16.gmra.mrb[44].mxu1 %v3581_v40 }
  0xf7   : > { %2014 = vmatprep.mubr.bf16.mxu1 %v3582_v41  ;;  %2111 = vmatprep.mubr.bf16.mxu0 %v3586_v42 }
  0xfe   : > { %2015 = vmatmul.mubr.bf16.gmra.mrb[48].mxu1 %v3587_v44  ;;  %2112 = vmatmul.mubr.bf16.vlgmr.msra.gmra.mrb[48].mxu0 %v3584_v43  ;;  %v3672_v43 = vld [vmem:[%s4150_s12 + $0x358] ss:$28 sps:$4 sm:$0xff]   ;;  %v3673_v44 = vld [vmem:[%s4150_s12 + $0x360] ss:$28 sps:$4 sm:$0xff]  }
  0xff   : > { %2022 = vmatprep.mubr.bf16.mxu1 %v3589_v45  ;;  %2119 = vmatprep.mubr.bf16.mxu0 %v3591_v46 }
 0x106   : > { %2023 = vmatmul.mubr.bf16.gmra.mrb[52].mxu1 %v3593_v47  ;;  %2120 = vmatmul.mubr.bf16.gmra.mrb[52].mxu0 %v3594_v48 }
 0x107   : > { %2030 = vmatprep.mubr.bf16.mxu1 %v3595_v49  ;;  %2127 = vmatprep.mubr.bf16.mxu0 %v3597_v50 }
 0x10e   : > { %2031 = vmatmul.mubr.bf16.gmra.mrb[56].mxu1 %v3599_v51  ;;  %2128 = vmatmul.mubr.bf16.gmra.mrb[56].mxu0 %v3600_v52 }
 0x10f   : > { %2038 = vmatprep.mubr.bf16.mxu1 %v3602_v53  ;;  %2135 = vmatprep.mubr.bf16.mxu0 %v3604_v54 }
 0x116   : > { %2039 = vmatmul.mubr.bf16.gmra.mrb[60].mxu1 %v3606_v55  ;;  %2136 = vmatmul.mubr.bf16.gmra.mrb[60].mxu0 %v3607_v56 }
 0x117   : > { %2046 = vmatprep.mubr.bf16.mxu1 %v3608_v57  ;;  %2143 = vmatprep.mubr.bf16.mxu0 %v3610_v58 }
 0x11e   : > { %2047 = vmatmul.mubr.bf16.gmra.mrb[64].mxu1 %v3612_v59  ;;  %2144 = vmatmul.mubr.bf16.gmra.mrb[64].mxu0 %v3613_v60 }
 0x11f   : > { %2054 = vmatprep.mubr.bf16.mxu1 %v3615_v61  ;;  %2151 = vmatprep.mubr.bf16.mxu0 %v3617_v62 }
 0x126   : > { %2055 = vmatmul.mubr.bf16.gmra.mrb[68].mxu1 %v3619_v63  ;;  %2152 = vmatmul.mubr.bf16.gmra.mrb[68].mxu0 %v3620_v0 }
 0x127   : > { %2062 = vmatprep.mubr.bf16.mxu1 %v3621_v1  ;;  %2159 = vmatprep.mubr.bf16.mxu0 %v3623_v2 }
 0x12e   : > { %2063 = vmatmul.mubr.bf16.gmra.mrb[72].mxu1 %v3625_v3  ;;  %2160 = vmatmul.mubr.bf16.gmra.mrb[72].mxu0 %v3626_v4 }
 0x12f   : > { %2070 = vmatprep.mubr.bf16.mxu1 %v3628_v5  ;;  %2167 = vmatprep.mubr.bf16.mxu0 %v3630_v6 }
 0x136   : > { %2071 = vmatmul.mubr.bf16.gmra.mrb[76].mxu1 %v3632_v7  ;;  %2168 = vmatmul.mubr.bf16.gmra.mrb[76].mxu0 %v3633_v8 }
 0x137   : > { %2175 = vmatprep.mubr.bf16.mxu0 %v3634_v9  ;;  %3350 = vmatprep.mubr.bf16.mxu1 %v3636_v10 }
 0x13e   : > { %2176 = vmatmul.mubr.bf16.gmra.mrb[80].mxu0 %v3637_v11  ;;  %3351 = vmatmul.mubr.bf16.vlgmr.msra.gmra.mrb[80].mxu1 %v3638_v12 }
 0x13f   : > { %2183 = vmatprep.mubr.bf16.mxu0 %v3639_v13  ;;  %3354 = vmatprep.mubr.bf16.mxu1 %v3641_v14 }
 0x146   : > { %2184 = vmatmul.mubr.bf16.gmra.mrb[84].mxu0 %v3642_v15  ;;  %3355 = vmatmul.mubr.bf16.gmra.mrb[84].mxu1 %v3643_v16 }
 0x147   : > { %2191 = vmatprep.mubr.bf16.mxu0 %v3644_v17  ;;  %3358 = vmatprep.mubr.bf16.mxu1 %v3646_v18 }
 0x14e   : > { %2192 = vmatmul.mubr.bf16.gmra.mrb[88].mxu0 %v3647_v19  ;;  %3359 = vmatmul.mubr.bf16.gmra.mrb[88].mxu1 %v3648_v20 }
 0x14f   : > { %2199 = vmatprep.mubr.bf16.mxu0 %v3649_v21  ;;  %3362 = vmatprep.mubr.bf16.mxu1 %v3651_v22 }
 0x156   : > { %2200 = vmatmul.mubr.bf16.gmra.mrb[92].mxu0 %v3652_v23  ;;  %3363 = vmatmul.mubr.bf16.gmra.mrb[92].mxu1 %v3653_v24 }
 0x157   : > { %2207 = vmatprep.mubr.bf16.mxu0 %v3654_v25  ;;  %3366 = vmatprep.mubr.bf16.mxu1 %v3656_v26 }
 0x15e   : > { %2208 = vmatmul.mubr.bf16.gmra.mrb[96].mxu0 %v3657_v27  ;;  %3367 = vmatmul.mubr.bf16.gmra.mrb[96].mxu1 %v3658_v28 }
 0x15f   : > { %2215 = vmatprep.mubr.bf16.mxu0 %v3659_v29  ;;  %3370 = vmatprep.mubr.bf16.mxu1 %v3661_v30 }
 0x166   : > { %2216 = vmatmul.mubr.bf16.gmra.mrb[100].mxu0 %v3662_v31  ;;  %3371 = vmatmul.mubr.bf16.gmra.mrb[100].mxu1 %v3663_v32 }
 0x167   : > { %2223 = vmatprep.mubr.bf16.mxu0 %v3664_v33  ;;  %3374 = vmatprep.mubr.bf16.mxu1 %v3666_v34 }
 0x16e   : > { %2224 = vmatmul.mubr.bf16.gmra.mrb[104].mxu0 %v3667_v35  ;;  %3375 = vmatmul.mubr.bf16.gmra.mrb[104].mxu1 %v3668_v36 }
 0x16f   : > { %2231 = vmatprep.mubr.bf16.mxu0 %v3669_v37  ;;  %3378 = vmatprep.mubr.bf16.mxu1 %v3671_v38 }
 0x171   : > { %v2990_v39 = vpop.f32.mrb[0].mxu0  ;;  %v3062_v40 = vpop.f32.mrb[0].mxu1 }
 0x172   : > { %v2991_v41 = vpop.f32.mrb[1].mxu0  ;;  %v3063_v42 = vpop.f32.mrb[1].mxu1 }
 0x173   : > { %v2992_v45 = vadd.f32 %v2991_v41, %v2990_v39  ;;  %v2993_v46 = vpop.f32.mrb[2].mxu0  ;;  %v4321_v47 = vadd.f32 %v3063_v42, %v3062_v40  ;;  %v3065_v48 = vpop.f32.mrb[2].mxu1 }
 0x174   : > { %v2994_v49 = vpop.f32.mrb[3].mxu0  ;;  %v3066_v50 = vpop.f32.mrb[3].mxu1 }
 0x175   : > { %v2995_v51 = vadd.f32 %v2994_v49, %v2993_v46  ;;  %v4323_v52 = vadd.f32 %v3066_v50, %v3065_v48 }
 0x176   : > { %2232 = vmatmul.mubr.bf16.gmra.mrb[108].mxu0 %v3672_v43  ;;  %3379 = vmatmul.mubr.bf16.gmra.mrb[108].mxu1 %v3673_v44 }
 0x179   : > { %v2996_v53 = vpop.f32.mrb[4].mxu0  ;;  %v3068_v54 = vpop.f32.mrb[4].mxu1 }
 0x17a   : > { %v2997_v55 = vpop.f32.mrb[5].mxu0  ;;  %v3069_v56 = vpop.f32.mrb[5].mxu1 }
 0x17b   : > { %v2998_v57 = vadd.f32 %v2997_v55, %v2996_v53  ;;  %v2999_v58 = vpop.f32.mrb[6].mxu0  ;;  %v4325_v59 = vadd.f32 %v3069_v56, %v3068_v54  ;;  %v3071_v60 = vpop.f32.mrb[6].mxu1 }
 0x17c   : > { %v3000_v61 = vpop.f32.mrb[7].mxu0  ;;  %v3072_v62 = vpop.f32.mrb[7].mxu1 }
 0x17d   : > { %v3001_v63 = vadd.f32 %v3000_v61, %v2999_v58  ;;  %v4327_v0 = vadd.f32 %v3072_v62, %v3071_v60 }
 0x181   : > { %v3002_v1 = vpop.f32.mrb[8].mxu0  ;;  %v3074_v2 = vpop.f32.mrb[8].mxu1 }
 0x182   : > { %v3003_v3 = vpop.f32.mrb[9].mxu0  ;;  %v3075_v4 = vpop.f32.mrb[9].mxu1 }
 0x183   : > { %v3004_v5 = vadd.f32 %v3003_v3, %v3002_v1  ;;  %v3005_v6 = vpop.f32.mrb[10].mxu0  ;;  %v4329_v7 = vadd.f32 %v3075_v4, %v3074_v2  ;;  %v3077_v8 = vpop.f32.mrb[10].mxu1 }
 0x184   : > { %v3006_v9 = vpop.f32.mrb[11].mxu0  ;;  %v3078_v10 = vpop.f32.mrb[11].mxu1 }
 0x185   : > { %v3007_v11 = vadd.f32 %v3006_v9, %v3005_v6  ;;  %v4331_v12 = vadd.f32 %v3078_v10, %v3077_v8 }
 0x189   : > { %v3008_v13 = vpop.f32.mrb[12].mxu0  ;;  %v3080_v14 = vpop.f32.mrb[12].mxu1 }
 0x18a   : > { %v3009_v15 = vpop.f32.mrb[13].mxu0  ;;  %v3081_v16 = vpop.f32.mrb[13].mxu1 }
 0x18b   : > { %v3010_v17 = vadd.f32 %v3009_v15, %v3008_v13  ;;  %v3011_v18 = vpop.f32.mrb[14].mxu0  ;;  %v4333_v19 = vadd.f32 %v3081_v16, %v3080_v14  ;;  %v3083_v20 = vpop.f32.mrb[14].mxu1 }
 0x18c   : > { %v3012_v21 = vpop.f32.mrb[15].mxu0  ;;  %v3084_v22 = vpop.f32.mrb[15].mxu1 }
 0x18d   : > { %v3013_v23 = vadd.f32 %v3012_v21, %v3011_v18  ;;  %v4335_v24 = vadd.f32 %v3084_v22, %v3083_v20 }
 0x191   : > { %v3014_v25 = vpop.f32.mrb[16].mxu0  ;;  %v3102_v26 = vpop.f32.mrb[16].mxu1 }
 0x192   : > { %v3015_v27 = vpop.f32.mrb[17].mxu0  ;;  %v3103_v28 = vpop.f32.mrb[17].mxu1 }
 0x193   : > { %v3016_v29 = vadd.f32 %v3015_v27, %v3014_v25  ;;  %v3104_v30 = vadd.f32 %v3103_v28, %v3102_v26  ;;  %v3017_v31 = vpop.f32.mrb[18].mxu0  ;;  %v3105_v32 = vpop.f32.mrb[18].mxu1 }
 0x194   : > { %v3018_v33 = vpop.f32.mrb[19].mxu0  ;;  %v3106_v34 = vpop.f32.mrb[19].mxu1 }
 0x195   : > { %v4337_v35 = vadd.f32 %v3104_v30, %v2992_v45  ;;  %v3019_v36 = vadd.f32 %v3018_v33, %v3017_v31  ;;  %v3107_v37 = vadd.f32 %v3106_v34, %v3105_v32 }
 0x197   : > { %v4339_v38 = vadd.f32 %v3107_v37, %v2995_v51 }
 0x199   : > { %v3020_v39 = vpop.f32.mrb[20].mxu0  ;;  %v3108_v40 = vpop.f32.mrb[20].mxu1 }
 0x19a   : > { %v3021_v41 = vpop.f32.mrb[21].mxu0  ;;  %v3109_v42 = vpop.f32.mrb[21].mxu1 }
 0x19b   : > { %v3022_v43 = vadd.f32 %v3021_v41, %v3020_v39  ;;  %v3110_v44 = vadd.f32 %v3109_v42, %v3108_v40  ;;  %v3023_v46 = vpop.f32.mrb[22].mxu0  ;;  %v3111_v48 = vpop.f32.mrb[22].mxu1 }
 0x19c   : > { %v3024_v49 = vpop.f32.mrb[23].mxu0  ;;  %v3112_v50 = vpop.f32.mrb[23].mxu1 }
 0x19d   : > { %v4341_v53 = vadd.f32 %v3110_v44, %v2998_v57  ;;  %v3025_v54 = vadd.f32 %v3024_v49, %v3023_v46  ;;  %v3113_v55 = vadd.f32 %v3112_v50, %v3111_v48 }
 0x19f   : > { %v4343_v45 = vadd.f32 %v3113_v55, %v3001_v63 }
 0x1a1   : > { %v3026_v56 = vpop.f32.mrb[24].mxu0  ;;  %v3114_v58 = vpop.f32.mrb[24].mxu1 }
 0x1a2   : > { %v3027_v51 = vpop.f32.mrb[25].mxu0  ;;  %v3115_v60 = vpop.f32.mrb[25].mxu1 }
 0x1a3   : > { %v3028_v61 = vadd.f32 %v3027_v51, %v3026_v56  ;;  %v3116_v62 = vadd.f32 %v3115_v60, %v3114_v58  ;;  %v3029_v1 = vpop.f32.mrb[26].mxu0  ;;  %v3117_v2 = vpop.f32.mrb[26].mxu1 }
 0x1a4   : > { %v3030_v3 = vpop.f32.mrb[27].mxu0  ;;  %v3118_v4 = vpop.f32.mrb[27].mxu1 }
 0x1a5   : > { %v4345_v6 = vadd.f32 %v3116_v62, %v3004_v5  ;;  %v3031_v8 = vadd.f32 %v3030_v3, %v3029_v1  ;;  %v3119_v9 = vadd.f32 %v3118_v4, %v3117_v2 }
 0x1a7   : > { %v4347_v57 = vadd.f32 %v3119_v9, %v3007_v11 }
 0x1a9   : > { %v3032_v10 = vpop.f32.mrb[28].mxu0  ;;  %v3120_v13 = vpop.f32.mrb[28].mxu1 }
 0x1aa   : > { %v3033_v63 = vpop.f32.mrb[29].mxu0  ;;  %v3121_v14 = vpop.f32.mrb[29].mxu1 }
 0x1ab   : > { %v3034_v15 = vadd.f32 %v3033_v63, %v3032_v10  ;;  %v3122_v16 = vadd.f32 %v3121_v14, %v3120_v13  ;;  %v3035_v18 = vpop.f32.mrb[30].mxu0  ;;  %v3123_v20 = vpop.f32.mrb[30].mxu1 }
 0x1ac   : > { %v3036_v21 = vpop.f32.mrb[31].mxu0  ;;  %v3124_v22 = vpop.f32.mrb[31].mxu1 }
 0x1ad   : > { %v4349_v25 = vadd.f32 %v3122_v16, %v3010_v17  ;;  %v3037_v26 = vadd.f32 %v3036_v21, %v3035_v18  ;;  %v3125_v27 = vadd.f32 %v3124_v22, %v3123_v20 }
 0x1af   : > { %v4351_v5 = vadd.f32 %v3125_v27, %v3013_v23 }
 0x1b1   : > { %v3038_v28 = vpop.f32.mrb[32].mxu0  ;;  %v3126_v30 = vpop.f32.mrb[32].mxu1 }
 0x1b2   : > { %v3039_v11 = vpop.f32.mrb[33].mxu0  ;;  %v3127_v31 = vpop.f32.mrb[33].mxu1 }
 0x1b3   : > { %v3040_v32 = vadd.f32 %v3039_v11, %v3038_v28  ;;  %v3128_v33 = vadd.f32 %v3127_v31, %v3126_v30  ;;  %v3041_v34 = vpop.f32.mrb[34].mxu0  ;;  %v3129_v37 = vpop.f32.mrb[34].mxu1 }
 0x1b4   : > { %v3042_v39 = vpop.f32.mrb[35].mxu0  ;;  %v3130_v40 = vpop.f32.mrb[35].mxu1 }
 0x1b5   : > { %v4353_v41 = vadd.f32 %v3128_v33, %v3016_v29  ;;  %v3043_v42 = vadd.f32 %v3042_v39, %v3041_v34  ;;  %v3131_v44 = vadd.f32 %v3130_v40, %v3129_v37 }
 0x1b7   : > { %v4355_v17 = vadd.f32 %v3131_v44, %v3019_v36 }
 0x1b9   : > { %v3044_v46 = vpop.f32.mrb[36].mxu0  ;;  %v3132_v48 = vpop.f32.mrb[36].mxu1 }
 0x1ba   : > { %v3045_v23 = vpop.f32.mrb[37].mxu0  ;;  %v3133_v49 = vpop.f32.mrb[37].mxu1 }
 0x1bb   : > { %v4357_v50 = vadd.f32 %v3045_v23, %v3044_v46  ;;  %v3134_v55 = vadd.f32 %v3133_v49, %v3132_v48  ;;  %v3047_v56 = vpop.f32.mrb[38].mxu0  ;;  %v3135_v58 = vpop.f32.mrb[38].mxu1 }
 0x1bc   : > { %v3048_v51 = vpop.f32.mrb[39].mxu0  ;;  %v3136_v60 = vpop.f32.mrb[39].mxu1 }
 0x1bd   : > { %v4359_v62 = vadd.f32 %v3134_v55, %v3022_v43  ;;  %v3049_v1 = vadd.f32 %v3048_v51, %v3047_v56  ;;  %v3137_v29 = vadd.f32 %v3136_v60, %v3135_v58 }
 0x1bf   : > { %v4361_v2 = vadd.f32 %v3137_v29, %v3025_v54 }
 0x1c1   : > { %v3050_v3 = vpop.f32.mrb[40].mxu0  ;;  %v3138_v36 = vpop.f32.mrb[40].mxu1 }
 0x1c2   : > { %v3051_v4 = vpop.f32.mrb[41].mxu0  ;;  %v3139_v9 = vpop.f32.mrb[41].mxu1 }
 0x1c3   : > { %v4363_v10 = vadd.f32 %v3051_v4, %v3050_v3  ;;  %v3140_v13 = vadd.f32 %v3139_v9, %v3138_v36  ;;  %v3053_v63 = vpop.f32.mrb[42].mxu0  ;;  %v3141_v14 = vpop.f32.mrb[42].mxu1 }
 0x1c4   : > { %v3054_v16 = vpop.f32.mrb[43].mxu0  ;;  %v3142_v18 = vpop.f32.mrb[43].mxu1 }
 0x1c5   : > { %v4365_v20 = vadd.f32 %v3140_v13, %v3028_v61  ;;  %v4367_v21 = vadd.f32 %v3054_v16, %v3053_v63  ;;  %v3143_v43 = vadd.f32 %v3142_v18, %v3141_v14 }
 0x1c7   : > { %v4369_v22 = vadd.f32 %v3143_v43, %v3031_v8 }
 0x1c9   : > { %v3056_v54 = vpop.f32.mrb[44].mxu0  ;;  %v3144_v27 = vpop.f32.mrb[44].mxu1 }
 0x1ca   : > { %v3057_v28 = vpop.f32.mrb[45].mxu0  ;;  %v3145_v30 = vpop.f32.mrb[45].mxu1 }
 0x1cb   : > { %v4371_v11 = vadd.f32 %v3057_v28, %v3056_v54  ;;  %v3146_v31 = vadd.f32 %v3145_v30, %v3144_v27  ;;  %v3059_v33 = vpop.f32.mrb[46].mxu0  ;;  %v3147_v34 = vpop.f32.mrb[46].mxu1 }
 0x1cc   : > { %v3060_v37 = vpop.f32.mrb[47].mxu0  ;;  %v3148_v39 = vpop.f32.mrb[47].mxu1 }
 0x1cd   : > { %v4373_v40 = vadd.f32 %v3146_v31, %v3034_v15  ;;  %v4375_v61 = vadd.f32 %v3060_v37, %v3059_v33  ;;  %v3149_v44 = vadd.f32 %v3148_v39, %v3147_v34 }
 0x1cf   : > { %v4377_v46 = vadd.f32 %v3149_v44, %v3037_v26 }
 0x1d1   : > { %v3150_v8 = vpop.f32.mrb[48].mxu1  ;;  %v3214_v48 = vpop.f32.mrb[48].mxu0 }
 0x1d2   : > { %v3151_v23 = vpop.f32.mrb[49].mxu1  ;;  %v3215_v49 = vpop.f32.mrb[49].mxu0 }
 0x1d3   : > { %v3152_v55 = vadd.f32 %v3151_v23, %v3150_v8  ;;  %v3216_v56 = vadd.f32 %v3215_v49, %v3214_v48  ;;  %v3153_v58 = vpop.f32.mrb[50].mxu1  ;;  %v3217_v51 = vpop.f32.mrb[50].mxu0 }
 0x1d4   : > { %v3154_v60 = vpop.f32.mrb[51].mxu1  ;;  %v3218_v29 = vpop.f32.mrb[51].mxu0 }
 0x1d5   : > { %v4379_v3 = vadd.f32 %v3152_v55, %v3040_v32  ;;  %v3155_v36 = vadd.f32 %v3154_v60, %v3153_v58  ;;  %v3219_v15 = vadd.f32 %v3218_v29, %v3217_v51  ;;  %v4382_v4 = vadd.f32 %v3216_v56, %v4337_v35 }
 0x1d7   : > { %v4384_v9 = vadd.f32 %v3155_v36, %v3043_v42  ;;  %v4387_v26 = vadd.f32 %v3219_v15, %v4339_v38 }
 0x1d9   : > { %v3156_v13 = vpop.f32.mrb[52].mxu1  ;;  %v3220_v63 = vpop.f32.mrb[52].mxu0 }
 0x1da   : > { %v3157_v14 = vpop.f32.mrb[53].mxu1  ;;  %v3221_v16 = vpop.f32.mrb[53].mxu0 }
 0x1db   : > { %v3158_v18 = vadd.f32 %v3157_v14, %v3156_v13  ;;  %v3222_v43 = vadd.f32 %v3221_v16, %v3220_v63  ;;  %v3159_v54 = vpop.f32.mrb[54].mxu1  ;;  %v3223_v27 = vpop.f32.mrb[54].mxu0 }
 0x1dc   : > { %v3160_v32 = vpop.f32.mrb[55].mxu1  ;;  %v3224_v28 = vpop.f32.mrb[55].mxu0 }
 0x1dd   : > { %v4390_v30 = vadd.f32 %v3158_v18, %v4357_v50  ;;  %v3161_v35 = vadd.f32 %v3160_v32, %v3159_v54  ;;  %v3225_v31 = vadd.f32 %v3224_v28, %v3223_v27  ;;  %v4393_v42 = vadd.f32 %v3222_v43, %v4341_v53 }
 0x1df   : > { %v4395_v38 = vadd.f32 %v3161_v35, %v3049_v1  ;;  %v4398_v33 = vadd.f32 %v3225_v31, %v4343_v45 }
 0x1e1   : > { %v3162_v34 = vpop.f32.mrb[56].mxu1  ;;  %v3226_v37 = vpop.f32.mrb[56].mxu0 }
 0x1e2   : > { %v3163_v39 = vpop.f32.mrb[57].mxu1  ;;  %v3227_v44 = vpop.f32.mrb[57].mxu0 }
 0x1e3   : > { %v3164_v8 = vadd.f32 %v3163_v39, %v3162_v34  ;;  %v3228_v48 = vadd.f32 %v3227_v44, %v3226_v37  ;;  %v3165_v23 = vpop.f32.mrb[58].mxu1  ;;  %v3229_v49 = vpop.f32.mrb[58].mxu0 }
 0x1e4   : > { %v3166_v50 = vpop.f32.mrb[59].mxu1  ;;  %v3230_v55 = vpop.f32.mrb[59].mxu0 }
 0x1e5   : > { %v4401_v56 = vadd.f32 %v3164_v8, %v4363_v10  ;;  %v3167_v53 = vadd.f32 %v3166_v50, %v3165_v23  ;;  %v3231_v58 = vadd.f32 %v3230_v55, %v3229_v49  ;;  %v4404_v1 = vadd.f32 %v3228_v48, %v4345_v6 }
 0x1e7   : > { %v4407_v45 = vadd.f32 %v3167_v53, %v4367_v21  ;;  %v4410_v51 = vadd.f32 %v3231_v58, %v4347_v57 }
 0x1e9   : > { %v3168_v60 = vpop.f32.mrb[60].mxu1  ;;  %v3232_v29 = vpop.f32.mrb[60].mxu0 }
 0x1ea   : > { %v3169_v36 = vpop.f32.mrb[61].mxu1  ;;  %v3233_v15 = vpop.f32.mrb[61].mxu0 }
 0x1eb   : > { %v3170_v13 = vadd.f32 %v3169_v36, %v3168_v60  ;;  %v3234_v63 = vadd.f32 %v3233_v15, %v3232_v29  ;;  %v3171_v14 = vpop.f32.mrb[62].mxu1  ;;  %v3235_v10 = vpop.f32.mrb[62].mxu0 }
 0x1ec   : > { %v3172_v16 = vpop.f32.mrb[63].mxu1  ;;  %v3236_v18 = vpop.f32.mrb[63].mxu0 }
 0x1ed   : > { %v4413_v43 = vadd.f32 %v3170_v13, %v4371_v11  ;;  %v3173_v6 = vadd.f32 %v3172_v16, %v3171_v14  ;;  %v3237_v54 = vadd.f32 %v3236_v18, %v3235_v10  ;;  %v4416_v21 = vadd.f32 %v3234_v63, %v4349_v25 }
 0x1ef   : > { %v4419_v57 = vadd.f32 %v3173_v6, %v4375_v61  ;;  %v4422_v27 = vadd.f32 %v3237_v54, %v4351_v5 }
 0x1f1   : > { %v3174_v32 = vpop.f32.mrb[64].mxu1  ;;  %v3238_v28 = vpop.f32.mrb[64].mxu0 }
 0x1f2   : > { %v3175_v35 = vpop.f32.mrb[65].mxu1  ;;  %v3239_v31 = vpop.f32.mrb[65].mxu0 }
 0x1f3   : > { %v3176_v34 = vadd.f32 %v3175_v35, %v3174_v32  ;;  %v3240_v37 = vadd.f32 %v3239_v31, %v3238_v28  ;;  %v3177_v39 = vpop.f32.mrb[66].mxu1  ;;  %v3241_v11 = vpop.f32.mrb[66].mxu0 }
 0x1f4   : > { %v3178_v44 = vpop.f32.mrb[67].mxu1  ;;  %v3242_v8 = vpop.f32.mrb[67].mxu0 }
 0x1f5   : > { %v4425_v48 = vadd.f32 %v3176_v34, %v4321_v47  ;;  %v3179_v25 = vadd.f32 %v3178_v44, %v3177_v39  ;;  %v3243_v23 = vadd.f32 %v3242_v8, %v3241_v11  ;;  %v4428_v61 = vadd.f32 %v3240_v37, %v4353_v41 }
 0x1f7   : > { %v4431_v5 = vadd.f32 %v3179_v25, %v4323_v52  ;;  %v4434_v49 = vadd.f32 %v3243_v23, %v4355_v17 }
 0x1f9   : > { %v3180_v50 = vpop.f32.mrb[68].mxu1  ;;  %v3244_v55 = vpop.f32.mrb[68].mxu0 }
 0x1fa   : > { %v3181_v53 = vpop.f32.mrb[69].mxu1  ;;  %v3245_v58 = vpop.f32.mrb[69].mxu0 }
 0x1fb   : > { %v3182_v60 = vadd.f32 %v3181_v53, %v3180_v50  ;;  %v3246_v29 = vadd.f32 %v3245_v58, %v3244_v55  ;;  %v3183_v36 = vpop.f32.mrb[70].mxu1  ;;  %v3247_v47 = vpop.f32.mrb[70].mxu0 }
 0x1fc   : > { %v3184_v15 = vpop.f32.mrb[71].mxu1  ;;  %v3248_v13 = vpop.f32.mrb[71].mxu0 }
 0x1fd   : > { %v4437_v63 = vadd.f32 %v3182_v60, %v4325_v59  ;;  %v3185_v41 = vadd.f32 %v3184_v15, %v3183_v36  ;;  %v3249_v14 = vadd.f32 %v3248_v13, %v3247_v47  ;;  %v4440_v52 = vadd.f32 %v3246_v29, %v4359_v62  ;;  %v575_v13 = vld [vmem:[#allocation2 + $0x10] sm:$0xff] }
 0x1ff   : > { %v4443_v17 = vadd.f32 %v3185_v41, %v4327_v0  ;;  %v4446_v10 = vadd.f32 %v3249_v14, %v4361_v2 }
 0x201   : > { %v3186_v16 = vpop.f32.mrb[72].mxu1  ;;  %v3250_v18 = vpop.f32.mrb[72].mxu0 }
 0x202   : > { %v3187_v6 = vpop.f32.mrb[73].mxu1  ;;  %v3251_v54 = vpop.f32.mrb[73].mxu0 }
 0x203   : > { %v3188_v32 = vadd.f32 %v3187_v6, %v3186_v16  ;;  %v3252_v28 = vadd.f32 %v3251_v54, %v3250_v18  ;;  %v3189_v35 = vpop.f32.mrb[74].mxu1  ;;  %v3253_v59 = vpop.f32.mrb[74].mxu0  ;;  %v573_v18 = vld [vmem:[#allocation2] sm:$0xff] }
 0x204   : > { %v3190_v31 = vpop.f32.mrb[75].mxu1  ;;  %v3254_v34 = vpop.f32.mrb[75].mxu0 }
 0x205   : > { %v4449_v37 = vadd.f32 %v3188_v32, %v4329_v7  ;;  %v3191_v62 = vadd.f32 %v3190_v31, %v3189_v35  ;;  %v3255_v39 = vadd.f32 %v3254_v34, %v3253_v59  ;;  %v4452_v0 = vadd.f32 %v3252_v28, %v4365_v20 }
 0x207   : > { %v4455_v2 = vadd.f32 %v3191_v62, %v4331_v12  ;;  %v4458_v11 = vadd.f32 %v3255_v39, %v4369_v22 }
 0x209   : > { %v3192_v44 = vpop.f32.mrb[76].mxu1  ;;  %v3256_v8 = vpop.f32.mrb[76].mxu0 }
 0x20a   : > { %v3193_v25 = vpop.f32.mrb[77].mxu1  ;;  %v3257_v23 = vpop.f32.mrb[77].mxu0 }
 0x20b   : > { %v3194_v50 = vadd.f32 %v3193_v25, %v3192_v44  ;;  %v3258_v55 = vadd.f32 %v3257_v23, %v3256_v8  ;;  %v3195_v53 = vpop.f32.mrb[78].mxu1  ;;  %v3259_v7 = vpop.f32.mrb[78].mxu0  ;;  %v579_v25 = vld [vmem:[#allocation2 + $0x30] sm:$0xff] }
 0x20c   : > { %v3196_v58 = vpop.f32.mrb[79].mxu1  ;;  %v3260_v60 = vpop.f32.mrb[79].mxu0 }
 0x20d   : > { %v4461_v29 = vadd.f32 %v3194_v50, %v4333_v19  ;;  %v3197_v20 = vadd.f32 %v3196_v58, %v3195_v53  ;;  %v3261_v36 = vadd.f32 %v3260_v60, %v3259_v7  ;;  %v4464_v12 = vadd.f32 %v3258_v55, %v4373_v40  ;;  %v576_v40 = vld [vmem:[#allocation2 + $0x18] sm:$0xff]  ;;  %v577_v53 = vld [vmem:[#allocation2 + $0x20] sm:$0xff] }
 0x20e   : > { %v580_v60 = vld [vmem:[#allocation2 + $0x38] sm:$0xff] }
 0x20f   : > { %v4467_v22 = vadd.f32 %v3197_v20, %v4335_v24  ;;  %v4470_v47 = vadd.f32 %v3261_v36, %v4377_v46  ;;  %v574_v46 = vld [vmem:[#allocation2 + $0x8] sm:$0xff] }
 0x211   : > { %v3262_v15 = vpop.f32.mrb[80].mxu0  ;;  %v3352_v41 = vpop.f32.mrb[80].mxu1 }
 0x212   : > { %v2283_v14 = vadd.f32 %v3352_v41, %v4393_v42  ;;  %v3263_v16 = vpop.f32.mrb[81].mxu0  ;;  %v2274_v19 = vpop.f32.mrb[81].mxu1 }
 0x213   : > { %v3264_v6 = vadd.f32 %v3263_v16, %v3262_v15  ;;  %v2275_v54 = vadd.f32 %v2274_v19, %v4382_v4  ;;  %v3265_v32 = vpop.f32.mrb[82].mxu0  ;;  %v3353_v28 = vpop.f32.mrb[82].mxu1 }
 0x214   : > { %v2403_v35 = vadd.f32 %v2283_v14, %v575_v13  ;;  %v2286_v24 = vadd.f32 %v3353_v28, %v4398_v33  ;;  %v3266_v59 = vpop.f32.mrb[83].mxu0  ;;  %v2277_v31 = vpop.f32.mrb[83].mxu1  ;;  %v578_v13 = vld [vmem:[#allocation2 + $0x28] sm:$0xff] }
 0x215   : > { %v2401_v34 = vadd.f32 %v2275_v54, %v573_v18  ;;  %v3267_v62 = vadd.f32 %v3266_v59, %v3265_v32  ;;  %v2278_v39 = vadd.f32 %v2277_v31, %v4387_v26  ;;  %v4477_v42 = vadd.f32 %v3264_v6, %v4379_v3  ;;  %v583_v54 = vld [vmem:[#allocation2 + $0x50] sm:$0xff] }
 0x216   : > { %2435 = vst [vmem:[#allocation2 + $0x10] sm:$0xff] %v2403_v35  ;;  %v2404_v44 = vadd.f32 %v2286_v24, %v576_v40  ;;  %v581_v35 = vld [vmem:[#allocation2 + $0x40] sm:$0xff] }
 0x217   : > { %2433 = vst [vmem:[#allocation2] sm:$0xff] %v2401_v34  ;;  %v2402_v4 = vadd.f32 %v2278_v39, %v574_v46  ;;  %v4480_v8 = vadd.f32 %v3267_v62, %v4384_v9  ;;  %v584_v46 = vld [vmem:[#allocation2 + $0x58] sm:$0xff]  ;;  %v582_v39 = vld [vmem:[#allocation2 + $0x48] sm:$0xff] }
 0x218   : > { %2436 = vst [vmem:[#allocation2 + $0x18] sm:$0xff] %v2404_v44 }
 0x219   : > { %2434 = vst [vmem:[#allocation2 + $0x8] sm:$0xff] %v2402_v4  ;;  %v3268_v33 = vpop.f32.mrb[84].mxu0  ;;  %v3356_v23 = vpop.f32.mrb[84].mxu1 }
 0x21a   : > { %v2299_v50 = vadd.f32 %v3356_v23, %v4416_v21  ;;  %v3269_v55 = vpop.f32.mrb[85].mxu0  ;;  %v2290_v26 = vpop.f32.mrb[85].mxu1 }
 0x21b   : > { %v3270_v7 = vadd.f32 %v3269_v55, %v3268_v33  ;;  %v2291_v3 = vadd.f32 %v2290_v26, %v4404_v1  ;;  %v3271_v58 = vpop.f32.mrb[86].mxu0  ;;  %v3357_v20 = vpop.f32.mrb[86].mxu1  ;;  %v587_v55 = vld [vmem:[#allocation2 + $0x70] sm:$0xff] }
 0x21c   : > { %v2407_v36 = vadd.f32 %v2299_v50, %v579_v25  ;;  %v2302_v9 = vadd.f32 %v3357_v20, %v4422_v27  ;;  %v3272_v15 = vpop.f32.mrb[87].mxu0  ;;  %v2293_v41 = vpop.f32.mrb[87].mxu1  ;;  %v588_v20 = vld [vmem:[#allocation2 + $0x78] sm:$0xff] }
 0x21d   : > { %v2405_v14 = vadd.f32 %v2291_v3, %v577_v53  ;;  %v3273_v16 = vadd.f32 %v3272_v15, %v3271_v58  ;;  %v2294_v18 = vadd.f32 %v2293_v41, %v4410_v51  ;;  %v4487_v21 = vadd.f32 %v3270_v7, %v4390_v30  ;;  %v585_v3 = vld [vmem:[#allocation2 + $0x60] sm:$0xff] }
 0x21e   : > { %2439 = vst [vmem:[#allocation2 + $0x30] sm:$0xff] %v2407_v36  ;;  %v2408_v19 = vadd.f32 %v2302_v9, %v580_v60 }
 0x21f   : > { %2437 = vst [vmem:[#allocation2 + $0x20] sm:$0xff] %v2405_v14  ;;  %v2406_v1 = vadd.f32 %v2294_v18, %v578_v13  ;;  %v4490_v6 = vadd.f32 %v3273_v16, %v4395_v38  ;;  %v586_v13 = vld [vmem:[#allocation2 + $0x68] sm:$0xff] }
 0x220   : > { %2440 = vst [vmem:[#allocation2 + $0x38] sm:$0xff] %v2408_v19 }
 0x221   : > { %2438 = vst [vmem:[#allocation2 + $0x28] sm:$0xff] %v2406_v1  ;;  %v3274_v27 = vpop.f32.mrb[88].mxu0  ;;  %v3360_v32 = vpop.f32.mrb[88].mxu1 }
 0x222   : > { %v2315_v40 = vadd.f32 %v3360_v32, %v4440_v52  ;;  %v3275_v28 = vpop.f32.mrb[89].mxu0  ;;  %v2306_v51 = vpop.f32.mrb[89].mxu1 }
 0x223   : > { %v3276_v24 = vadd.f32 %v3275_v28, %v3274_v27  ;;  %v2307_v30 = vadd.f32 %v2306_v51, %v4428_v61  ;;  %v3277_v59 = vpop.f32.mrb[90].mxu0  ;;  %v3361_v31 = vpop.f32.mrb[90].mxu1  ;;  %v589_v28 = vld [vmem:[#allocation2 + $0x80] sm:$0xff] }
 0x224   : > { %v2411_v34 = vadd.f32 %v2315_v40, %v583_v54  ;;  %v2318_v38 = vadd.f32 %v3361_v31, %v4446_v10  ;;  %v3278_v62 = vpop.f32.mrb[91].mxu0  ;;  %v2309_v44 = vpop.f32.mrb[91].mxu1  ;;  %v591_v54 = vld [vmem:[#allocation2 + $0x90] sm:$0xff]  ;;  %v590_v31 = vld [vmem:[#allocation2 + $0x88] sm:$0xff] }
 0x225   : > { %v2409_v4 = vadd.f32 %v2307_v30, %v581_v35  ;;  %v3279_v33 = vadd.f32 %v3278_v62, %v3277_v59  ;;  %v2310_v25 = vadd.f32 %v2309_v44, %v4434_v49  ;;  %v4497_v52 = vadd.f32 %v3276_v24, %v4401_v56  ;;  %v592_v24 = vld [vmem:[#allocation2 + $0x98] sm:$0xff] }
 0x226   : > { %2443 = vst [vmem:[#allocation2 + $0x50] sm:$0xff] %v2411_v34  ;;  %v2412_v23 = vadd.f32 %v2318_v38, %v584_v46 }
 0x227   : > { %2441 = vst [vmem:[#allocation2 + $0x40] sm:$0xff] %v2409_v4  ;;  %v2410_v61 = vadd.f32 %v2310_v25, %v582_v39  ;;  %v4500_v50 = vadd.f32 %v3279_v33, %v4407_v45  ;;  %v595_v25 = vld [vmem:[#allocation2 + $0xb0] sm:$0xff] }
 0x228   : > { %2444 = vst [vmem:[#allocation2 + $0x58] sm:$0xff] %v2412_v23 }
 0x229   : > { %2442 = vst [vmem:[#allocation2 + $0x48] sm:$0xff] %v2410_v61  ;;  %v3280_v10 = vpop.f32.mrb[92].mxu0  ;;  %v3364_v53 = vpop.f32.mrb[92].mxu1 }
 0x22a   : > { %v2331_v26 = vadd.f32 %v3364_v53, %v4464_v12  ;;  %v3281_v7 = vpop.f32.mrb[93].mxu0  ;;  %v2322_v49 = vpop.f32.mrb[93].mxu1 }
 0x22b   : > { %v3282_v58 = vadd.f32 %v3281_v7, %v3280_v10  ;;  %v2323_v56 = vadd.f32 %v2322_v49, %v4452_v0  ;;  %v3283_v60 = vpop.f32.mrb[94].mxu0  ;;  %v3365_v36 = vpop.f32.mrb[94].mxu1  ;;  %v593_v10 = vld [vmem:[#allocation2 + $0xa0] sm:$0xff] }
 0x22c   : > { %v2415_v9 = vadd.f32 %v2331_v26, %v587_v55  ;;  %v2334_v45 = vadd.f32 %v3365_v36, %v4470_v47  ;;  %v3284_v15 = vpop.f32.mrb[95].mxu0  ;;  %v2325_v41 = vpop.f32.mrb[95].mxu1 }
 0x22d   : > { %v2413_v14 = vadd.f32 %v2323_v56, %v585_v3  ;;  %v3285_v16 = vadd.f32 %v3284_v15, %v3283_v60  ;;  %v2326_v18 = vadd.f32 %v2325_v41, %v4458_v11  ;;  %v2202_v12 = vadd.f32 %v3282_v58, %v4413_v43  ;;  %v594_v56 = vld [vmem:[#allocation2 + $0xa8] sm:$0xff]  ;;  %v599_v41 = vld [vmem:[#allocation2 + $0xd0] sm:$0xff] }
 0x22e   : > { %2447 = vst [vmem:[#allocation2 + $0x70] sm:$0xff] %v2415_v9  ;;  %v2416_v19 = vadd.f32 %v2334_v45, %v588_v20 }
 0x22f   : > { %2445 = vst [vmem:[#allocation2 + $0x60] sm:$0xff] %v2413_v14  ;;  %v2414_v1 = vadd.f32 %v2326_v18, %v586_v13  ;;  %v2205_v0 = vadd.f32 %v3285_v16, %v4419_v57 }
 0x230   : > { %2448 = vst [vmem:[#allocation2 + $0x78] sm:$0xff] %v2416_v19 }
 0x231   : > { %2446 = vst [vmem:[#allocation2 + $0x68] sm:$0xff] %v2414_v1  ;;  %v3286_v27 = vpop.f32.mrb[96].mxu0  ;;  %v3368_v47 = vpop.f32.mrb[96].mxu1 }
 0x232   : > { %v2347_v32 = vadd.f32 %v3368_v47, %v4487_v21  ;;  %v3287_v40 = vpop.f32.mrb[97].mxu0  ;;  %v2338_v35 = vpop.f32.mrb[97].mxu1 }
 0x233   : > { %v3288_v51 = vadd.f32 %v3287_v40, %v3286_v27  ;;  %v2339_v11 = vadd.f32 %v2338_v35, %v4477_v42  ;;  %v3289_v43 = vpop.f32.mrb[98].mxu0  ;;  %v3369_v30 = vpop.f32.mrb[98].mxu1  ;;  %v600_v27 = vld [vmem:[#allocation2 + $0xd8] sm:$0xff]  ;;  %v598_v40 = vld [vmem:[#allocation2 + $0xc8] sm:$0xff] }
 0x234   : > { %v2419_v59 = vadd.f32 %v2347_v32, %v591_v54  ;;  %v2350_v46 = vadd.f32 %v3369_v30, %v4490_v6  ;;  %v3290_v57 = vpop.f32.mrb[99].mxu0  ;;  %v2341_v34 = vpop.f32.mrb[99].mxu1 }
 0x235   : > { %v2417_v38 = vadd.f32 %v2339_v11, %v589_v28  ;;  %v3291_v62 = vadd.f32 %v3290_v57, %v3289_v43  ;;  %v2342_v39 = vadd.f32 %v2341_v34, %v4480_v8  ;;  %v2210_v21 = vadd.f32 %v3288_v51, %v4425_v48  ;;  %v596_v48 = vld [vmem:[#allocation2 + $0xb8] sm:$0xff] }
 0x236   : > { %2451 = vst [vmem:[#allocation2 + $0x90] sm:$0xff] %v2419_v59  ;;  %v2420_v44 = vadd.f32 %v2350_v46, %v592_v24 }
 0x237   : > { %2449 = vst [vmem:[#allocation2 + $0x80] sm:$0xff] %v2417_v38  ;;  %v2418_v4 = vadd.f32 %v2342_v39, %v590_v31  ;;  %v2213_v42 = vadd.f32 %v3291_v62, %v4431_v5  ;;  %v601_v31 = vld [vmem:[#allocation2 + $0xe0] sm:$0xff] }
 0x238   : > { %2452 = vst [vmem:[#allocation2 + $0x98] sm:$0xff] %v2420_v44 }
 0x239   : > { %2450 = vst [vmem:[#allocation2 + $0x88] sm:$0xff] %v2418_v4  ;;  %v3292_v33 = vpop.f32.mrb[100].mxu0  ;;  %v3372_v6 = vpop.f32.mrb[100].mxu1  ;;  %v602_v4 = vld [vmem:[#allocation2 + $0xe8] sm:$0xff] }
 0x23a   : > { %v2363_v23 = vadd.f32 %v3372_v6, %v2202_v12  ;;  %v3293_v61 = vpop.f32.mrb[101].mxu0  ;;  %v2354_v55 = vpop.f32.mrb[101].mxu1  ;;  %v597_v12 = vld [vmem:[#allocation2 + $0xc0] sm:$0xff] }
 0x23b   : > { %v3294_v53 = vadd.f32 %v3293_v61, %v3292_v33  ;;  %v2355_v8 = vadd.f32 %v2354_v55, %v4497_v52  ;;  %v3295_v26 = vpop.f32.mrb[102].mxu0  ;;  %v3373_v7 = vpop.f32.mrb[102].mxu1  ;;  %v604_v55 = vld [vmem:[#allocation2 + $0xf8] sm:$0xff] }
 0x23c   : > { %v2423_v3 = vadd.f32 %v2363_v23, %v595_v25  ;;  %v2366_v49 = vadd.f32 %v3373_v7, %v2205_v0  ;;  %v3296_v58 = vpop.f32.mrb[103].mxu0  ;;  %v2357_v5 = vpop.f32.mrb[103].mxu1  ;;  %v2470_v7 = vld [vmem:[#allocation2 + $0x8] sm:$0xff] (!%p2970_p13) }
 0x23d   : > { %v2421_v60 = vadd.f32 %v2355_v8, %v593_v10  ;;  %v3297_v20 = vadd.f32 %v3296_v58, %v3295_v26  ;;  %v2358_v36 = vadd.f32 %v2357_v5, %v4500_v50  ;;  %v2218_v9 = vadd.f32 %v3294_v53, %v4437_v63  ;;  %v2472_v58 = vld [vmem:[#allocation2 + $0x18] sm:$0xff] (!%p2970_p13) }
 0x23e   : > { %2455 = vst [vmem:[#allocation2 + $0xb0] sm:$0xff] %v2423_v3  ;;  %v2424_v45 = vadd.f32 %v2366_v49, %v596_v48  ;;  %v4526_v48 = vld [vmem:[%s4615_s2] ss:$0 sm:$0xff] (!%p2970_p13)  ;;  %v2471_v49 = vld [vmem:[#allocation2 + $0x10] sm:$0xff] (!%p2970_p13) }
 0x23f   : > { %2453 = vst [vmem:[#allocation2 + $0xa0] sm:$0xff] %v2421_v60  ;;  %v2422_v15 = vadd.f32 %v2358_v36, %v594_v56  ;;  %v2221_v52 = vadd.f32 %v3297_v20, %v4443_v17  ;;  %v2509_v3 = vadd.f32 (!%p2970_p13), %v4526_v48, %v2470_v7  ;;  %v2473_v56 = vld [vmem:[#allocation2 + $0x20] sm:$0xff] (!%p2970_p13)  ;;  %v2510_v5 = vadd.f32 (!%p2970_p13), %v4526_v48, %v2471_v49  ;;  %v2474_v20 = vld [vmem:[#allocation2 + $0x28] sm:$0xff] (!%p2970_p13)  ;;  %v2475_v36 = vld [vmem:[#allocation2 + $0x30] sm:$0xff] (!%p2970_p13) }
 0x240   : > { %2456 = vst [vmem:[#allocation2 + $0xb8] sm:$0xff] %v2424_v45  ;;  %v2511_v60 = vadd.f32 (!%p2970_p13), %v4526_v48, %v2472_v58  ;;  %v2476_v45 = vld [vmem:[#allocation2 + $0x38] sm:$0xff] (!%p2970_p13) }
 0x241   : > { %2454 = vst [vmem:[#allocation2 + $0xa8] sm:$0xff] %v2422_v15  ;;  %v3298_v13 = vpop.f32.mrb[104].mxu0  ;;  %v3376_v14 = vpop.f32.mrb[104].mxu1  ;;  %v2513_v15 = vadd.f32 (!%p2970_p13), %v4526_v48, %v2474_v20 }
 0x242   : > { %v2379_v16 = vadd.f32 %v3376_v14, %v2218_v9  ;;  %v3299_v18 = vpop.f32.mrb[105].mxu0  ;;  %v2370_v19 = vpop.f32.mrb[105].mxu1  ;;  %v2512_v9 = vadd.f32 (!%p2970_p13), %v4526_v48, %v2473_v56  ;;  %v2515_v14 = vadd.f32 (!%p2970_p13), %v4526_v48, %v2476_v45 }
 0x243   : > { %v3300_v1 = vadd.f32 %v3299_v18, %v3298_v13  ;;  %v2371_v0 = vadd.f32 %v2370_v19, %v2210_v21  ;;  %v3301_v50 = vpop.f32.mrb[106].mxu0  ;;  %v3377_v63 = vpop.f32.mrb[106].mxu1  ;;  %v2514_v13 = vadd.f32 (!%p2970_p13), %v4526_v48, %v2475_v36 }
 0x244   : > { %v2427_v54 = vadd.f32 %v2379_v16, %v599_v41  ;;  %v2382_v47 = vadd.f32 %v3377_v63, %v2221_v52  ;;  %v3302_v32 = vpop.f32.mrb[107].mxu0  ;;  %v2373_v28 = vpop.f32.mrb[107].mxu1  ;;  %v2477_v52 = vld [vmem:[#allocation2 + $0x40] sm:$0xff] (!%p2970_p13)  ;;  %v2478_v41 = vld [vmem:[#allocation2 + $0x48] sm:$0xff] (!%p2970_p13)  ;;  %v2479_v16 = vld [vmem:[#allocation2 + $0x50] sm:$0xff] (!%p2970_p13) }
 0x245   : > { %v2425_v17 = vadd.f32 %v2371_v0, %v597_v12  ;;  %v3303_v35 = vadd.f32 %v3302_v32, %v3301_v50  ;;  %v2374_v51 = vadd.f32 %v2373_v28, %v2213_v42  ;;  %v2226_v11 = vadd.f32 %v3300_v1, %v4449_v37  ;;  %v2480_v12 = vld [vmem:[#allocation2 + $0x58] sm:$0xff] (!%p2970_p13)  ;;  %v2481_v1 = vld [vmem:[#allocation2 + $0x60] sm:$0xff] (!%p2970_p13)  ;;  %v2482_v50 = vld [vmem:[#allocation2 + $0x68] sm:$0xff] (!%p2970_p13) }
 0x246   : > { %2459 = vst [vmem:[#allocation2 + $0xd0] sm:$0xff] %v2427_v54  ;;  %v2428_v43 = vadd.f32 %v2382_v47, %v600_v27  ;;  %v2516_v18 = vadd.f32 (!%p2970_p13), %v4526_v48, %v2477_v52  ;;  %v2517_v19 = vadd.f32 (!%p2970_p13), %v4526_v48, %v2478_v41  ;;  %v2518_v0 = vadd.f32 (!%p2970_p13), %v4526_v48, %v2479_v16  ;;  %v2483_v63 = vld [vmem:[#allocation2 + $0x70] sm:$0xff] (!%p2970_p13)  ;;  %v2484_v47 = vld [vmem:[#allocation2 + $0x78] sm:$0xff] (!%p2970_p13) }
 0x247   : > { %2457 = vst [vmem:[#allocation2 + $0xc0] sm:$0xff] %v2425_v17  ;;  %v2426_v24 = vadd.f32 %v2374_v51, %v598_v40  ;;  %v2229_v30 = vadd.f32 %v3303_v35, %v4455_v2  ;;  %v603_v2 = vld [vmem:[#allocation2 + $0xf0] sm:$0xff]  ;;  %v2519_v27 = vadd.f32 (!%p2970_p13), %v4526_v48, %v2480_v12  ;;  %v2520_v54 = vadd.f32 (!%p2970_p13), %v4526_v48, %v2481_v1  ;;  %v2485_v40 = vld [vmem:[#allocation2 + $0x80] sm:$0xff] (!%p2970_p13)  ;;  %v2486_v35 = vld [vmem:[#allocation2 + $0x88] sm:$0xff] (!%p2970_p13) }
 0x248   : > { %2460 = vst [vmem:[#allocation2 + $0xd8] sm:$0xff] %v2428_v43  ;;  %v2521_v32 = vadd.f32 (!%p2970_p13), %v4526_v48, %v2482_v50  ;;  %v2522_v17 = vadd.f32 (!%p2970_p13), %v4526_v48, %v2483_v63  ;;  %v2487_v43 = vld [vmem:[#allocation2 + $0x90] sm:$0xff] (!%p2970_p13) }
 0x249   : > { %2458 = vst [vmem:[#allocation2 + $0xc8] sm:$0xff] %v2426_v24  ;;  %v3304_v59 = vpop.f32.mrb[108].mxu0  ;;  %v3380_v46 = vpop.f32.mrb[108].mxu1 }
 0x24a   : > { %v3305_v57 = vpop.f32.mrb[109].mxu0  ;;  %v2386_v34 = vpop.f32.mrb[109].mxu1 }
 0x24b   : > { %v3306_v38 = vadd.f32 %v3305_v57, %v3304_v59  ;;  %v2387_v62 = vadd.f32 %v2386_v34, %v2226_v11  ;;  %v3307_v39 = vpop.f32.mrb[110].mxu0  ;;  %v3381_v21 = vpop.f32.mrb[110].mxu1  ;;  %v2523_v11 = vadd.f32 (!%p2970_p13), %v4526_v48, %v2484_v47  ;;  %v2488_v59 = vld [vmem:[#allocation2 + $0x98] sm:$0xff] (!%p2970_p13)  ;;  %v2525_v57 = vadd.f32 (!%p2970_p13), %v4526_v48, %v2486_v35 }
 0x24c   : > { %v3308_v44 = vpop.f32.mrb[111].mxu0  ;;  %v2389_v37 = vpop.f32.mrb[111].mxu1 }
 0x24d   : > { %v2234_v42 = vadd.f32 %v3306_v38, %v4461_v29  ;;  %v2429_v33 = vadd.f32 %v2387_v62, %v601_v31  ;;  %v3309_v25 = vadd.f32 %v3308_v44, %v3307_v39  ;;  %v2390_v6 = vadd.f32 %v2389_v37, %v2229_v30  ;;  %v2469_v29 = vld [vmem:[#allocation2] sm:$0xff] (!%p2970_p13)  ;;  %v2490_v62 = vld [vmem:[#allocation2 + $0xa8] sm:$0xff] (!%p2970_p13)  ;;  %v2491_v44 = vld [vmem:[#allocation2 + $0xb0] sm:$0xff] (!%p2970_p13) }
 0x24e   : > { %v2524_v30 = vadd.f32 (!%p2970_p13), %v4526_v48, %v2485_v40  ;;  %v2489_v31 = vld [vmem:[#allocation2 + $0xa0] sm:$0xff] (!%p2970_p13)  ;;  %v2526_v38 = vadd.f32 (!%p2970_p13), %v4526_v48, %v2487_v43 }
 0x24f   : > { %v2395_v23 = vadd.f32 %v3380_v46, %v2234_v42  ;;  %2461 = vst [vmem:[#allocation2 + $0xe0] sm:$0xff] %v2429_v33  ;;  %v2237_v61 = vadd.f32 %v3309_v25, %v4467_v22  ;;  %v2430_v10 = vadd.f32 %v2390_v6, %v602_v4  ;;  %2468 = sbr.rel (%p2970_p13) target bundleno = 636 (0x27c), region = 66  ;;  %v2508_v22 = vadd.f32 (!%p2970_p13), %v4526_v48, %v2469_v29  ;;  %v2492_v42 = vld [vmem:[#allocation2 + $0xb8] sm:$0xff] (!%p2970_p13)  ;;  %v2493_v6 = vld [vmem:[#allocation2 + $0xc0] sm:$0xff] (!%p2970_p13) }
 0x250   : > { %v2528_v37 = vadd.f32 (!%p2970_p13), %v4526_v48, %v2489_v31  ;;  %v2529_v25 = vadd.f32 (!%p2970_p13), %v4526_v48, %v2490_v62  ;;  %v2496_v29 = vld [vmem:[#allocation2 + $0xd8] sm:$0xff] (!%p2970_p13) }
 0x251   : > { %v2431_v53 = vadd.f32 %v2395_v23, %v603_v2  ;;  %v2398_v8 = vadd.f32 %v3381_v21, %v2237_v61  ;;  %2462 = vst [vmem:[#allocation2 + $0xe8] sm:$0xff] %v2430_v10  ;;  %3674 = vtanh.f32 (!%p2970_p13), %v2508_v22  ;;  %v2527_v21 = vadd.f32 (!%p2970_p13), %v4526_v48, %v2488_v59  ;;  %v2494_v61 = vld [vmem:[#allocation2 + $0xc8] sm:$0xff] (!%p2970_p13) }
 0x252   : > { %3676 = vtanh.f32 (!%p2970_p13), %v2509_v3  ;;  %v2530_v23 = vadd.f32 (!%p2970_p13), %v4526_v48, %v2491_v44  ;;  %v2533_v22 = vadd.f32 (!%p2970_p13), %v4526_v48, %v2494_v61 }
 0x253   : > { %2463 = vst [vmem:[#allocation2 + $0xf0] sm:$0xff] %v2431_v53  ;;  %v2432_v26 = vadd.f32 %v2398_v8, %v604_v55  ;;  %3678 = vtanh.f32 (!%p2970_p13), %v2510_v5  ;;  %v2531_v55 = vadd.f32 (!%p2970_p13), %v4526_v48, %v2492_v42  ;;  %v2495_v53 = vld [vmem:[#allocation2 + $0xd0] sm:$0xff] (!%p2970_p13) }
 0x254   : > { %3680 = vtanh.f32 (!%p2970_p13), %v2511_v60  ;;  %v2534_v58 = vadd.f32 (!%p2970_p13), %v4526_v48, %v2495_v53  ;;  %v2535_v60 = vadd.f32 (!%p2970_p13), %v4526_v48, %v2496_v29 }
 0x255   : > { %2464 = vst [vmem:[#allocation2 + $0xf8] sm:$0xff] %v2432_v26  ;;  %3682 = vtanh.f32 (!%p2970_p13), %v2512_v9  ;;  %v2532_v26 = vadd.f32 (!%p2970_p13), %v4526_v48, %v2493_v6 }
 0x256   : > { %3684 = vtanh.f32 %v2513_v15  ;;  %v2497_v3 = vld [vmem:[#allocation2 + $0xe0] sm:$0xff] }
 0x257   : > { %3686 = vtanh.f32 %v2514_v13  ;;  %v2536_v9 = vadd.f32 %v4526_v48, %v2497_v3 }
 0x258   : > { %3688 = vtanh.f32 %v2515_v14  ;;  %v2498_v56 = vld [vmem:[#allocation2 + $0xe8] sm:$0xff] }
 0x259   : > { %3690 = vtanh.f32 %v2516_v18  ;;  %v2537_v52 = vadd.f32 %v4526_v48, %v2498_v56 }
 0x25a   : > { %3692 = vtanh.f32 %v2517_v19  ;;  %v2499_v20 = vld [vmem:[#allocation2 + $0xf0] sm:$0xff] }
 0x25b   : > { %v3675_v28 = vpop.eup %3674  ;;  %3694 = vtanh.f32 %v2518_v0  ;;  %v2538_v41 = vadd.f32 %v4526_v48, %v2499_v20 }
 0x25c   : > { %v3677_v51 = vpop.eup %3676  ;;  %2572 = vst [vmem:[%s4148_s30] sm:$0xff] %v3675_v28  ;;  %3696 = vtanh.f32 %v2519_v27  ;;  %v2500_v45 = vld [vmem:[#allocation2 + $0xf8] sm:$0xff] }
 0x25d   : > { %v3679_v24 = vpop.eup %3678  ;;  %2573 = vst [vmem:[%s4148_s30 + $0x8] sm:$0xff] %v3677_v51  ;;  %3698 = vtanh.f32 %v2520_v54  ;;  %v2539_v16 = vadd.f32 %v4526_v48, %v2500_v45 }
 0x25e   : > { %v3681_v46 = vpop.eup %3680  ;;  %2574 = vst [vmem:[%s4148_s30 + $0x10] sm:$0xff] %v3679_v24  ;;  %3700 = vtanh.f32 %v2521_v32 }
 0x25f   : > { %v3683_v34 = vpop.eup %3682  ;;  %2575 = vst [vmem:[%s4148_s30 + $0x18] sm:$0xff] %v3681_v46  ;;  %3702 = vtanh.f32 %v2522_v17 }
 0x260   : > { %v3685_v39 = vpop.eup %3684  ;;  %2576 = vst [vmem:[%s4148_s30 + $0x20] sm:$0xff] %v3683_v34  ;;  %3704 = vtanh.f32 %v2523_v11 }
 0x261   : > { %v3687_v4 = vpop.eup %3686  ;;  %2577 = vst [vmem:[%s4148_s30 + $0x28] sm:$0xff] %v3685_v39  ;;  %3706 = vtanh.f32 %v2524_v30 }
 0x262   : > { %v3689_v33 = vpop.eup %3688  ;;  %2578 = vst [vmem:[%s4148_s30 + $0x30] sm:$0xff] %v3687_v4  ;;  %3708 = vtanh.f32 %v2525_v57 }
 0x263   : > { %v3691_v2 = vpop.eup %3690  ;;  %2579 = vst [vmem:[%s4148_s30 + $0x38] sm:$0xff] %v3689_v33  ;;  %3710 = vtanh.f32 %v2526_v38 }
 0x264   : > { %v3693_v10 = vpop.eup %3692  ;;  %2580 = vst [vmem:[%s4148_s30 + $0x40] sm:$0xff] %v3691_v2  ;;  %3712 = vtanh.f32 %v2527_v21 }
 0x265   : > { %v3695_v8 = vpop.eup %3694  ;;  %2581 = vst [vmem:[%s4148_s30 + $0x48] sm:$0xff] %v3693_v10  ;;  %3714 = vtanh.f32 %v2528_v37 }
 0x266   : > { %v3697_v7 = vpop.eup %3696  ;;  %2582 = vst [vmem:[%s4148_s30 + $0x50] sm:$0xff] %v3695_v8  ;;  %3716 = vtanh.f32 %v2529_v25 }
 0x267   : > { %v3699_v49 = vpop.eup %3698  ;;  %2583 = vst [vmem:[%s4148_s30 + $0x58] sm:$0xff] %v3697_v7  ;;  %3718 = vtanh.f32 %v2530_v23 }
 0x268   : > { %v3701_v5 = vpop.eup %3700  ;;  %2584 = vst [vmem:[%s4148_s30 + $0x60] sm:$0xff] %v3699_v49  ;;  %3720 = vtanh.f32 %v2531_v55 }
 0x269   : > { %v3703_v36 = vpop.eup %3702  ;;  %2585 = vst [vmem:[%s4148_s30 + $0x68] sm:$0xff] %v3701_v5  ;;  %3722 = vtanh.f32 %v2532_v26 }
 0x26a   : > { %v3705_v15 = vpop.eup %3704  ;;  %2586 = vst [vmem:[%s4148_s30 + $0x70] sm:$0xff] %v3703_v36  ;;  %3724 = vtanh.f32 %v2533_v22 }
 0x26b   : > { %v3707_v13 = vpop.eup %3706  ;;  %2587 = vst [vmem:[%s4148_s30 + $0x78] sm:$0xff] %v3705_v15  ;;  %3726 = vtanh.f32 %v2534_v58 }
 0x26c   : > { %v3709_v14 = vpop.eup %3708  ;;  %2588 = vst [vmem:[%s4148_s30 + $0x80] sm:$0xff] %v3707_v13  ;;  %3728 = vtanh.f32 %v2535_v60 }
 0x26d   : > { %v3711_v18 = vpop.eup %3710  ;;  %2589 = vst [vmem:[%s4148_s30 + $0x88] sm:$0xff] %v3709_v14  ;;  %3730 = vtanh.f32 %v2536_v9 }
 0x26e   : > { %v3713_v12 = vpop.eup %3712  ;;  %2590 = vst [vmem:[%s4148_s30 + $0x90] sm:$0xff] %v3711_v18  ;;  %3732 = vtanh.f32 %v2537_v52 }
 0x26f   : > { %v3715_v19 = vpop.eup %3714  ;;  %2591 = vst [vmem:[%s4148_s30 + $0x98] sm:$0xff] %v3713_v12  ;;  %3734 = vtanh.f32 %v2538_v41 }
 0x270   : > { %v3717_v1 = vpop.eup %3716  ;;  %2592 = vst [vmem:[%s4148_s30 + $0xa0] sm:$0xff] %v3715_v19  ;;  %3736 = vtanh.f32 %v2539_v16 }
 0x271   : > { %v3719_v48 = vpop.eup %3718  ;;  %2593 = vst [vmem:[%s4148_s30 + $0xa8] sm:$0xff] %v3717_v1 }
 0x272   : > { %v3721_v0 = vpop.eup %3720  ;;  %2594 = vst [vmem:[%s4148_s30 + $0xb0] sm:$0xff] %v3719_v48 }
 0x273   : > { %v3723_v50 = vpop.eup %3722  ;;  %2595 = vst [vmem:[%s4148_s30 + $0xb8] sm:$0xff] %v3721_v0 }
 0x274   : > { %v3725_v27 = vpop.eup %3724  ;;  %2596 = vst [vmem:[%s4148_s30 + $0xc0] sm:$0xff] %v3723_v50 }
 0x275   : > { %v3727_v63 = vpop.eup %3726  ;;  %2597 = vst [vmem:[%s4148_s30 + $0xc8] sm:$0xff] %v3725_v27 }
 0x276   : > { %v3729_v54 = vpop.eup %3728  ;;  %2598 = vst [vmem:[%s4148_s30 + $0xd0] sm:$0xff] %v3727_v63 }
 0x277   : > { %v3731_v47 = vpop.eup %3730  ;;  %2599 = vst [vmem:[%s4148_s30 + $0xd8] sm:$0xff] %v3729_v54 }
 0x278   : > { %v3733_v32 = vpop.eup %3732  ;;  %2600 = vst [vmem:[%s4148_s30 + $0xe0] sm:$0xff] %v3731_v47 }
 0x279   : > { %v3735_v40 = vpop.eup %3734  ;;  %2601 = vst [vmem:[%s4148_s30 + $0xe8] sm:$0xff] %v3733_v32 }
 0x27a   : > { %v3737_v28 = vpop.eup %3736  ;;  %2602 = vst [vmem:[%s4148_s30 + $0xf0] sm:$0xff] %v3735_v40 }
 0x27b   : > { %2603 = vst [vmem:[%s4148_s30 + $0xf8] sm:$0xff] %v3737_v28 }
 0x27c PF: > { %s13_s18 = sadd.s32 1, %s3792_s18   ;;  %s4617_s12 = smov %s3772_s13 }
 0x27d   : > { %p10_p0 = scmp.ge.s32.totalorder %s13_s18, 16   ;;  %s4618_s13 = smov %s3866_s25 }
 0x27e   : > { %s4619_s14 = smov %s3784_s16  ;;  %s4620_s15 = smov %s3788_s17 }
 0x27f   : > { %s4621_s16 = smov %s4624_s19  ;;  %s4622_s17 = smov %s4628_s20 }
 0x280   :  { %12 = sbr.rel (!%p10_p0) target bundleno = 4 (0x4), region = 113 }

</bundles_post_ra>
